<compile_context>
chip_gen: v7x
topology: tpu7x:2x2x1
jax: 0.10.0
libtpu: 0.0.40
codegen_flags: <defaults>
</compile_context>

<pallas_src>
import jax
import jax.numpy as jnp
from jax import lax
from jax.experimental import pallas as pl
from jax.experimental.pallas import tpu as pltpu


# ----------------------------------------------------------------------------
# Fused forward kernel: conv1 -> conv2 -> flatten -> dense1 -> dense2
# ----------------------------------------------------------------------------
def _fused_dqn_kernel(xs_ref, w1_ref, b1_ref, w2_ref, b2_ref, w3_ref, b3_ref,
                      w4_ref, b4_ref, q_ref, h1p_ref):
    """All refs are whole-array VMEM blocks (no grid).

    xs_ref : (N, 2, 2, P, P, Cin)   zero-padded, parity-split (space-to-batch)
                                    input: xs[n,a,b,u,v,c] = x_pad[n, 2u+a, 2v+b, c]
    w1_ref : (9*Cin, C1)            conv1 weight, K ordered (di, dj, ci)
    w2_ref : (9*C1,  C2)            conv2 weight, K ordered (di, dj, ci)
    w3_ref : (HH*HH*C2, HID)        dense1 weight, rows ordered (e, f, c)
    w4_ref : (HID, A)               dense2 weight
    b*_ref : (1, .) float32         biases
    q_ref  : (N, A)                 output Q-values
    h1p_ref: (N, 2, 2, P, P, C1)    VMEM scratch: conv1 output (ReLU'd),
                                    zero-padded + parity-split = conv2 input
    """
    n, _, _, up, _, cin = xs_ref.shape
    c1 = w1_ref.shape[1]
    c2 = w2_ref.shape[1]
    hh = up - 1                    # conv1 per-parity extent == conv2 output extent
    rows = n * hh * hh             # rows per output parity
    f32 = jnp.float32
    mxu = w1_ref.dtype             # MXU operand dtype (float32 or bfloat16)

    parities = [(0, 0), (0, 1), (1, 0), (1, 1)]

    # ---------------- conv1: 3x3, stride 1, pad 1, ReLU -----------------------
    # Zero the padded scratch (only the 1-px border survives; cheap + simple).
    h1p_ref[...] = jnp.zeros(h1p_ref.shape, h1p_ref.dtype)

    # Build im2col patches for ALL FOUR output parities at once: parities are
    # stacked along the row (sublane) dimension (row-aligned concat, cheap),
    # so there is a single lane-concat of 9 taps and one MXU matmul.
    tap_pieces = []
    for di in range(3):
        for dj in range(3):
            per_parity = []
            for (ai, aj) in parities:
                ra, qa = (ai + di) % 2, (ai + di) // 2
                rb, qb = (aj + dj) % 2, (aj + dj) // 2
                p = xs_ref[:, ra:ra + 1, rb:rb + 1,
                           qa:qa + hh, qb:qb + hh, :]          # (N,1,1,hh,hh,Cin)
                per_parity.append(p.reshape(rows, cin))
            tap_pieces.append(jnp.concatenate(per_parity, axis=0))  # (4*rows, Cin)
    patches1 = jnp.concatenate(tap_pieces, axis=1)             # (4*rows, 9*Cin)

    h1 = jnp.dot(patches1, w1_ref[...], preferred_element_type=f32) + b1_ref[...]
    h1 = jnp.maximum(h1, 0.0)                                  # (4*rows, C1) f32

    # Scatter each parity's output into the padded, parity-split layout that
    # turns conv2's stride-2 window reads into plain static slices.
    # conv1 outputs of parity (ai, aj) land on parity (1-ai, 1-aj) of the padded
    # grid, offset by (ai, aj) inside that parity plane.
    for idx, (ai, aj) in enumerate(parities):
        hp = h1[idx * rows:(idx + 1) * rows, :]                # row-aligned slice
        h1p_ref[:, 1 - ai:2 - ai, 1 - aj:2 - aj,
                ai:ai + hh, aj:aj + hh, :] = (
            hp.reshape(n, 1, 1, hh, hh, c1).astype(h1p_ref.dtype))

    # ---------------- conv2: 3x3, stride 2, pad 1, ReLU -----------------------
    pieces = []
    for di in range(3):
        for dj in range(3):
            pi, qi = di % 2, di // 2
            pj, qj = dj % 2, dj // 2
            p = h1p_ref[:, pi:pi + 1, pj:pj + 1,
                        qi:qi + hh, qj:qj + hh, :]             # (N,1,1,hh,hh,C1)
            pieces.append(p.reshape(rows, c1))
    patches2 = jnp.concatenate(pieces, axis=1).astype(mxu)     # (rows, 9*C1)
    h2 = jnp.dot(patches2, w2_ref[...], preferred_element_type=f32) + b2_ref[...]
    h2 = jnp.maximum(h2, 0.0)                                  # (rows, C2) f32

    # ---------------- flatten (e, f, c) + dense1 + ReLU ------------------------
    # Cast once before the lane-concat so only MXU-width bytes get shuffled.
    h2r = h2.astype(mxu).reshape(n, hh, hh, c2)                # leading-dim reshape
    flat = jnp.concatenate(
        [h2r[:, e:e + 1, f:f + 1, :].reshape(n, c2)
         for e in range(hh) for f in range(hh)],
        axis=1)                                                # (N, hh*hh*C2)
    y1 = jnp.dot(flat, w3_ref[...], preferred_element_type=f32)
    y1 = jnp.maximum(y1 + b3_ref[...], 0.0)                    # (N, HID) f32

    # ---------------- dense2: Q-values -----------------------------------------
    q = jnp.dot(y1.astype(mxu), w4_ref[...], preferred_element_type=f32) + b4_ref[...]
    q_ref[...] = q.astype(q_ref.dtype)


# ----------------------------------------------------------------------------
# Wrapper: tiny XLA glue (input layout) + the single pallas_call
# ----------------------------------------------------------------------------
def _space_to_batch_pad(x_nchw):
    """(N,C,H,W) NCHW -> zero-padded, parity-split NHWC:
       out[n, a, b, u, v, c] = pad1(x_nhwc)[n, 2u+a, 2v+b, c]."""
    n, c, h, w = x_nchw.shape
    x = jnp.transpose(x_nchw, (0, 2, 3, 1))                    # NHWC
    xp = jnp.pad(x, ((0, 0), (1, 1), (1, 1), (0, 0)))          # (N, H+2, W+2, C)
    up, vp = (h + 2) // 2, (w + 2) // 2
    xs = xp.reshape(n, up, 2, vp, 2, c).transpose(0, 2, 4, 1, 3, 5)
    return xs                                                  # (N, 2, 2, up, vp, C)


def _fused_dqn_forward(params, x):
    """params: kernel-format weights/biases, x: (N, Cin, H, W) NCHW."""
    w1f, b1, w2f, b2, w3k, b3, w4k, b4 = params
    n, _, h, _ = x.shape
    c1 = w1f.shape[1]
    n_actions = w4k.shape[1]
    up = (h + 2) // 2

    xs = _space_to_batch_pad(x).astype(w1f.dtype)              # ~10 KB layout prep

    return pl.pallas_call(
        _fused_dqn_kernel,
        out_shape=jax.ShapeDtypeStruct((n, n_actions), jnp.float32),
        scratch_shapes=[pltpu.VMEM((n, 2, 2, up, up, c1), jnp.float32)],
    )(xs, w1f, b1, w2f, b2, w3k, b3, w4k, b4)


_fused_dqn_forward_jit = jax.jit(_fused_dqn_forward)


# ----------------------------------------------------------------------------
# The inner DQN-style CNN model and the FunctionApproximator wrapper
# ----------------------------------------------------------------------------
class DQNModel:
    """DQN-style CNN whose forward pass is a single fused Pallas TPU kernel."""

    def __init__(self, key, in_channels=4, spatial=16, n_actions=4, hidden=32,
                 mxu_dtype=jnp.bfloat16):
        assert spatial % 2 == 0, "fused kernel assumes even, square spatial dims"
        k1, k2, k3, k4 = jax.random.split(key, 4)
        c1, c2 = 8, 16
        hh = spatial // 2
        flat = c2 * hh * hh

        def xavier(key, shape, fan_in, fan_out):
            scale = jnp.sqrt(2.0 / (fan_in + fan_out))
            return jax.random.normal(key, shape, dtype=jnp.float32) * scale

        # canonical (PyTorch-layout) parameters -- used by the pure-JAX reference
        self.w1 = xavier(k1, (c1, in_channels, 3, 3), in_channels * 9, c1)
        self.b1 = jnp.zeros((c1,), jnp.float32)
        self.w2 = xavier(k2, (c2, c1, 3, 3), c1 * 9, c2)
        self.b2 = jnp.zeros((c2,), jnp.float32)
        self.w3 = xavier(k3, (flat, hidden), flat, hidden)
        self.b3 = jnp.zeros((hidden,), jnp.float32)
        self.w4 = xavier(k4, (hidden, n_actions), hidden, n_actions)
        self.b4 = jnp.zeros((n_actions,), jnp.float32)

        # kernel-format parameters (prepared ONCE at init):
        #  - conv weights as (9*Cin, Cout) with K ordered (di, dj, ci)  (channel-last)
        #  - dense1 weight rows permuted from NCHW-flatten order (c, e, f) to the
        #    kernel's channel-last (e, f, c) flatten order
        w1f = jnp.transpose(self.w1, (2, 3, 1, 0)).reshape(9 * in_channels, c1)
        w2f = jnp.transpose(self.w2, (2, 3, 1, 0)).reshape(9 * c1, c2)
        ee, ff, cc = jnp.meshgrid(jnp.arange(hh), jnp.arange(hh), jnp.arange(c2),
                                  indexing="ij")
        src = (cc * (hh * hh) + ee * hh + ff).reshape(-1)      # NCHW-flatten index
        w3k = self.w3[src, :]
        self._params = (
            w1f.astype(mxu_dtype), self.b1.reshape(1, c1).astype(jnp.float32),
            w2f.astype(mxu_dtype), self.b2.reshape(1, c2).astype(jnp.float32),
            w3k.astype(mxu_dtype), self.b3.reshape(1, hidden).astype(jnp.float32),
            self.w4.astype(mxu_dtype), self.b4.reshape(1, n_actions).astype(jnp.float32),
        )

    def __call__(self, x):
        return _fused_dqn_forward_jit(self._params, x)

    # pure-JAX reference for verification
    def reference(self, x):
        def conv(x, w, b, stride, pad):
            y = lax.conv_general_dilated(
                x, w, window_strides=(stride, stride),
                padding=((pad, pad), (pad, pad)),
                dimension_numbers=("NCHW", "OIHW", "NCHW"))
            return y + b.reshape(1, -1, 1, 1)
        h = jnp.maximum(conv(x, self.w1, self.b1, 1, 1), 0.0)
        h = jnp.maximum(conv(h, self.w2, self.b2, 2, 1), 0.0)
        h = h.reshape(h.shape[0], -1)
        h = jnp.maximum(h @ self.w3 + self.b3, 0.0)
        return h @ self.w4 + self.b4


class FunctionApproximator:
    """Mirrors the PyTorch module: forward(x) = self.model(x)."""

    def __init__(self, model, learning_rate=1e-05, ctx="cpu", not_init_flag=False):
        self.model = model
        self.__not_init_flag = not_init_flag  # optimizer setup not needed for forward

    def inference(self, observed_arr):
        return self(observed_arr)

    def forward(self, x):
        return self.model(x)

    def __call__(self, x):
        return self.forward(x)


# ----------------------------------------------------------------------------
if __name__ == "__main__":
    key = jax.random.PRNGKey(0)
    k_param, k_data = jax.random.split(key)

    batch, channels, spatial = 2, 4, 16
    x = jax.random.normal(k_data, (batch, channels, spatial, spatial), dtype=jnp.float32)

    # f32 MXU operands: strict numerical check against the lax.conv reference
    model_f32 = DQNModel(k_param, in_channels=channels, spatial=spatial,
                         n_actions=4, hidden=32, mxu_dtype=jnp.float32)
    approx_f32 = FunctionApproximator(model_f32)
    q_f32 = jax.block_until_ready(approx_f32.inference(x))
    ref = jax.block_until_ready(model_f32.reference(x))
    assert q_f32.shape == (batch, 4)
    assert jnp.allclose(q_f32, ref, atol=5e-4, rtol=5e-4)

    # bf16 MXU operands (v6e / v7x fast path), f32 accumulation + epilogue:
    # same network, looser tolerance for bf16 operand rounding.
    model_bf16 = DQNModel(k_param, in_channels=channels, spatial=spatial,
                          n_actions=4, hidden=32, mxu_dtype=jnp.bfloat16)
    approx_bf16 = FunctionApproximator(model_bf16)
    q_bf16 = jax.block_until_ready(approx_bf16.inference(x))
    assert q_bf16.shape == (batch, 4)
    assert jnp.allclose(q_bf16, ref, atol=1e-1, rtol=1e-1)

    print("KERNEL_OK")
</pallas_src>

<mosaic_0001>
module attributes {stable_mosaic.version = 11 : i64} {
  func.func @_fused_dqn_kernel(%arg0: memref<2x2x2x9x9x4xf32, #tpu.memory_space<vmem>>, %arg1: memref<36x8xf32, #tpu.memory_space<vmem>>, %arg2: memref<1x8xf32, #tpu.memory_space<vmem>>, %arg3: memref<72x16xf32, #tpu.memory_space<vmem>>, %arg4: memref<1x16xf32, #tpu.memory_space<vmem>>, %arg5: memref<1024x32xf32, #tpu.memory_space<vmem>>, %arg6: memref<1x32xf32, #tpu.memory_space<vmem>>, %arg7: memref<32x4xf32, #tpu.memory_space<vmem>>, %arg8: memref<1x4xf32, #tpu.memory_space<vmem>>, %arg9: memref<2x4xf32, #tpu.memory_space<vmem>>, %arg10: memref<2x2x2x9x9x8xf32, #tpu.memory_space<vmem>>) attributes {dimension_semantics = [], scalar_prefetch = 0 : i64, scratch_operands = 1 : i64, tpu.core_type = #tpu.core_type<tc>} {
    %cst = arith.constant 0.000000e+00 : f32
    %0 = vector.broadcast %cst : f32 to vector<2x2x2x9x9x8xf32>
    %c0 = arith.constant 0 : index
    %c0_0 = arith.constant 0 : index
    %c0_1 = arith.constant 0 : index
    %c0_2 = arith.constant 0 : index
    %c0_3 = arith.constant 0 : index
    %c0_4 = arith.constant 0 : index
    %1 = vector.load %arg10[%c0, %c0_0, %c0_1, %c0_2, %c0_3, %c0_4] : memref<2x2x2x9x9x8xf32, #tpu.memory_space<vmem>>, vector<2x2x2x9x9x8xf32>
    tpu.vector_store %arg10[%c0, %c0_0, %c0_1, %c0_2, %c0_3, %c0_4], %0 {strides = array<i32>} : memref<2x2x2x9x9x8xf32, #tpu.memory_space<vmem>>, vector<2x2x2x9x9x8xf32>,
    %c0_5 = arith.constant 0 : index
    %c0_6 = arith.constant 0 : index
    %c0_7 = arith.constant 0 : index
    %c0_8 = arith.constant 0 : index
    %c0_9 = arith.constant 0 : index
    %c0_10 = arith.constant 0 : index
    %2 = vector.load %arg0[%c0_5, %c0_6, %c0_7, %c0_8, %c0_9, %c0_10] : memref<2x2x2x9x9x4xf32, #tpu.memory_space<vmem>>, vector<2x1x1x8x8x4xf32>
    %3 = vector.shape_cast %2 : vector<2x1x1x8x8x4xf32> to vector<128x4xf32>
    %c0_11 = arith.constant 0 : index
    %c0_12 = arith.constant 0 : index
    %c1 = arith.constant 1 : index
    %c0_13 = arith.constant 0 : index
    %c0_14 = arith.constant 0 : index
    %c0_15 = arith.constant 0 : index
    %4 = vector.load %arg0[%c0_11, %c0_12, %c1, %c0_13, %c0_14, %c0_15] : memref<2x2x2x9x9x4xf32, #tpu.memory_space<vmem>>, vector<2x1x1x8x8x4xf32>
    %5 = vector.shape_cast %4 : vector<2x1x1x8x8x4xf32> to vector<128x4xf32>
    %c0_16 = arith.constant 0 : index
    %c1_17 = arith.constant 1 : index
    %c0_18 = arith.constant 0 : index
    %c0_19 = arith.constant 0 : index
    %c0_20 = arith.constant 0 : index
    %c0_21 = arith.constant 0 : index
    %6 = vector.load %arg0[%c0_16, %c1_17, %c0_18, %c0_19, %c0_20, %c0_21] : memref<2x2x2x9x9x4xf32, #tpu.memory_space<vmem>>, vector<2x1x1x8x8x4xf32>
    %7 = vector.shape_cast %6 : vector<2x1x1x8x8x4xf32> to vector<128x4xf32>
    %c0_22 = arith.constant 0 : index
    %c1_23 = arith.constant 1 : index
    %c1_24 = arith.constant 1 : index
    %c0_25 = arith.constant 0 : index
    %c0_26 = arith.constant 0 : index
    %c0_27 = arith.constant 0 : index
    %8 = vector.load %arg0[%c0_22, %c1_23, %c1_24, %c0_25, %c0_26, %c0_27] : memref<2x2x2x9x9x4xf32, #tpu.memory_space<vmem>>, vector<2x1x1x8x8x4xf32>
    %9 = vector.shape_cast %8 : vector<2x1x1x8x8x4xf32> to vector<128x4xf32>
    %10 = tpu.concatenate %3, %5, %7, %9 in 0 : vector<128x4xf32>, vector<128x4xf32>, vector<128x4xf32>, vector<128x4xf32> -> vector<512x4xf32>
    %c0_28 = arith.constant 0 : index
    %c0_29 = arith.constant 0 : index
    %c1_30 = arith.constant 1 : index
    %c0_31 = arith.constant 0 : index
    %c0_32 = arith.constant 0 : index
    %c0_33 = arith.constant 0 : index
    %11 = vector.load %arg0[%c0_28, %c0_29, %c1_30, %c0_31, %c0_32, %c0_33] : memref<2x2x2x9x9x4xf32, #tpu.memory_space<vmem>>, vector<2x1x1x8x8x4xf32>
    %12 = vector.shape_cast %11 : vector<2x1x1x8x8x4xf32> to vector<128x4xf32>
    %c0_34 = arith.constant 0 : index
    %c0_35 = arith.constant 0 : index
    %c0_36 = arith.constant 0 : index
    %c0_37 = arith.constant 0 : index
    %c1_38 = arith.constant 1 : index
    %c0_39 = arith.constant 0 : index
    %13 = vector.load %arg0[%c0_34, %c0_35, %c0_36, %c0_37, %c1_38, %c0_39] : memref<2x2x2x9x9x4xf32, #tpu.memory_space<vmem>>, vector<2x1x1x8x8x4xf32>
    %14 = vector.shape_cast %13 : vector<2x1x1x8x8x4xf32> to vector<128x4xf32>
    %c0_40 = arith.constant 0 : index
    %c1_41 = arith.constant 1 : index
    %c1_42 = arith.constant 1 : index
    %c0_43 = arith.constant 0 : index
    %c0_44 = arith.constant 0 : index
    %c0_45 = arith.constant 0 : index
    %15 = vector.load %arg0[%c0_40, %c1_41, %c1_42, %c0_43, %c0_44, %c0_45] : memref<2x2x2x9x9x4xf32, #tpu.memory_space<vmem>>, vector<2x1x1x8x8x4xf32>
    %16 = vector.shape_cast %15 : vector<2x1x1x8x8x4xf32> to vector<128x4xf32>
    %c0_46 = arith.constant 0 : index
    %c1_47 = arith.constant 1 : index
    %c0_48 = arith.constant 0 : index
    %c0_49 = arith.constant 0 : index
    %c1_50 = arith.constant 1 : index
    %c0_51 = arith.constant 0 : index
    %17 = vector.load %arg0[%c0_46, %c1_47, %c0_48, %c0_49, %c1_50, %c0_51] : memref<2x2x2x9x9x4xf32, #tpu.memory_space<vmem>>, vector<2x1x1x8x8x4xf32>
    %18 = vector.shape_cast %17 : vector<2x1x1x8x8x4xf32> to vector<128x4xf32>
    %19 = tpu.concatenate %12, %14, %16, %18 in 0 : vector<128x4xf32>, vector<128x4xf32>, vector<128x4xf32>, vector<128x4xf32> -> vector<512x4xf32>
    %c0_52 = arith.constant 0 : index
    %c0_53 = arith.constant 0 : index
    %c0_54 = arith.constant 0 : index
    %c0_55 = arith.constant 0 : index
    %c1_56 = arith.constant 1 : index
    %c0_57 = arith.constant 0 : index
    %20 = vector.load %arg0[%c0_52, %c0_53, %c0_54, %c0_55, %c1_56, %c0_57] : memref<2x2x2x9x9x4xf32, #tpu.memory_space<vmem>>, vector<2x1x1x8x8x4xf32>
    %21 = vector.shape_cast %20 : vector<2x1x1x8x8x4xf32> to vector<128x4xf32>
    %c0_58 = arith.constant 0 : index
    %c0_59 = arith.constant 0 : index
    %c1_60 = arith.constant 1 : index
    %c0_61 = arith.constant 0 : index
    %c1_62 = arith.constant 1 : index
    %c0_63 = arith.constant 0 : index
    %22 = vector.load %arg0[%c0_58, %c0_59, %c1_60, %c0_61, %c1_62, %c0_63] : memref<2x2x2x9x9x4xf32, #tpu.memory_space<vmem>>, vector<2x1x1x8x8x4xf32>
    %23 = vector.shape_cast %22 : vector<2x1x1x8x8x4xf32> to vector<128x4xf32>
    %c0_64 = arith.constant 0 : index
    %c1_65 = arith.constant 1 : index
    %c0_66 = arith.constant 0 : index
    %c0_67 = arith.constant 0 : index
    %c1_68 = arith.constant 1 : index
    %c0_69 = arith.constant 0 : index
    %24 = vector.load %arg0[%c0_64, %c1_65, %c0_66, %c0_67, %c1_68, %c0_69] : memref<2x2x2x9x9x4xf32, #tpu.memory_space<vmem>>, vector<2x1x1x8x8x4xf32>
    %25 = vector.shape_cast %24 : vector<2x1x1x8x8x4xf32> to vector<128x4xf32>
    %c0_70 = arith.constant 0 : index
    %c1_71 = arith.constant 1 : index
    %c1_72 = arith.constant 1 : index
    %c0_73 = arith.constant 0 : index
    %c1_74 = arith.constant 1 : index
    %c0_75 = arith.constant 0 : index
    %26 = vector.load %arg0[%c0_70, %c1_71, %c1_72, %c0_73, %c1_74, %c0_75] : memref<2x2x2x9x9x4xf32, #tpu.memory_space<vmem>>, vector<2x1x1x8x8x4xf32>
    %27 = vector.shape_cast %26 : vector<2x1x1x8x8x4xf32> to vector<128x4xf32>
    %28 = tpu.concatenate %21, %23, %25, %27 in 0 : vector<128x4xf32>, vector<128x4xf32>, vector<128x4xf32>, vector<128x4xf32> -> vector<512x4xf32>
    %c0_76 = arith.constant 0 : index
    %c1_77 = arith.constant 1 : index
    %c0_78 = arith.constant 0 : index
    %c0_79 = arith.constant 0 : index
    %c0_80 = arith.constant 0 : index
    %c0_81 = arith.constant 0 : index
    %29 = vector.load %arg0[%c0_76, %c1_77, %c0_78, %c0_79, %c0_80, %c0_81] : memref<2x2x2x9x9x4xf32, #tpu.memory_space<vmem>>, vector<2x1x1x8x8x4xf32>
    %30 = vector.shape_cast %29 : vector<2x1x1x8x8x4xf32> to vector<128x4xf32>
    %c0_82 = arith.constant 0 : index
    %c1_83 = arith.constant 1 : index
    %c1_84 = arith.constant 1 : index
    %c0_85 = arith.constant 0 : index
    %c0_86 = arith.constant 0 : index
    %c0_87 = arith.constant 0 : index
    %31 = vector.load %arg0[%c0_82, %c1_83, %c1_84, %c0_85, %c0_86, %c0_87] : memref<2x2x2x9x9x4xf32, #tpu.memory_space<vmem>>, vector<2x1x1x8x8x4xf32>
    %32 = vector.shape_cast %31 : vector<2x1x1x8x8x4xf32> to vector<128x4xf32>
    %c0_88 = arith.constant 0 : index
    %c0_89 = arith.constant 0 : index
    %c0_90 = arith.constant 0 : index
    %c1_91 = arith.constant 1 : index
    %c0_92 = arith.constant 0 : index
    %c0_93 = arith.constant 0 : index
    %33 = vector.load %arg0[%c0_88, %c0_89, %c0_90, %c1_91, %c0_92, %c0_93] : memref<2x2x2x9x9x4xf32, #tpu.memory_space<vmem>>, vector<2x1x1x8x8x4xf32>
    %34 = vector.shape_cast %33 : vector<2x1x1x8x8x4xf32> to vector<128x4xf32>
    %c0_94 = arith.constant 0 : index
    %c0_95 = arith.constant 0 : index
    %c1_96 = arith.constant 1 : index
    %c1_97 = arith.constant 1 : index
    %c0_98 = arith.constant 0 : index
    %c0_99 = arith.constant 0 : index
    %35 = vector.load %arg0[%c0_94, %c0_95, %c1_96, %c1_97, %c0_98, %c0_99] : memref<2x2x2x9x9x4xf32, #tpu.memory_space<vmem>>, vector<2x1x1x8x8x4xf32>
    %36 = vector.shape_cast %35 : vector<2x1x1x8x8x4xf32> to vector<128x4xf32>
    %37 = tpu.concatenate %30, %32, %34, %36 in 0 : vector<128x4xf32>, vector<128x4xf32>, vector<128x4xf32>, vector<128x4xf32> -> vector<512x4xf32>
    %c0_100 = arith.constant 0 : index
    %c1_101 = arith.constant 1 : index
    %c1_102 = arith.constant 1 : index
    %c0_103 = arith.constant 0 : index
    %c0_104 = arith.constant 0 : index
    %c0_105 = arith.constant 0 : index
    %38 = vector.load %arg0[%c0_100, %c1_101, %c1_102, %c0_103, %c0_104, %c0_105] : memref<2x2x2x9x9x4xf32, #tpu.memory_space<vmem>>, vector<2x1x1x8x8x4xf32>
    %39 = vector.shape_cast %38 : vector<2x1x1x8x8x4xf32> to vector<128x4xf32>
    %c0_106 = arith.constant 0 : index
    %c1_107 = arith.constant 1 : index
    %c0_108 = arith.constant 0 : index
    %c0_109 = arith.constant 0 : index
    %c1_110 = arith.constant 1 : index
    %c0_111 = arith.constant 0 : index
    %40 = vector.load %arg0[%c0_106, %c1_107, %c0_108, %c0_109, %c1_110, %c0_111] : memref<2x2x2x9x9x4xf32, #tpu.memory_space<vmem>>, vector<2x1x1x8x8x4xf32>
    %41 = vector.shape_cast %40 : vector<2x1x1x8x8x4xf32> to vector<128x4xf32>
    %c0_112 = arith.constant 0 : index
    %c0_113 = arith.constant 0 : index
    %c1_114 = arith.constant 1 : index
    %c1_115 = arith.constant 1 : index
    %c0_116 = arith.constant 0 : index
    %c0_117 = arith.constant 0 : index
    %42 = vector.load %arg0[%c0_112, %c0_113, %c1_114, %c1_115, %c0_116, %c0_117] : memref<2x2x2x9x9x4xf32, #tpu.memory_space<vmem>>, vector<2x1x1x8x8x4xf32>
    %43 = vector.shape_cast %42 : vector<2x1x1x8x8x4xf32> to vector<128x4xf32>
    %c0_118 = arith.constant 0 : index
    %c0_119 = arith.constant 0 : index
    %c0_120 = arith.constant 0 : index
    %c1_121 = arith.constant 1 : index
    %c1_122 = arith.constant 1 : index
    %c0_123 = arith.constant 0 : index
    %44 = vector.load %arg0[%c0_118, %c0_119, %c0_120, %c1_121, %c1_122, %c0_123] : memref<2x2x2x9x9x4xf32, #tpu.memory_space<vmem>>, vector<2x1x1x8x8x4xf32>
    %45 = vector.shape_cast %44 : vector<2x1x1x8x8x4xf32> to vector<128x4xf32>
    %46 = tpu.concatenate %39, %41, %43, %45 in 0 : vector<128x4xf32>, vector<128x4xf32>, vector<128x4xf32>, vector<128x4xf32> -> vector<512x4xf32>
    %c0_124 = arith.constant 0 : index
    %c1_125 = arith.constant 1 : index
    %c0_126 = arith.constant 0 : index
    %c0_127 = arith.constant 0 : index
    %c1_128 = arith.constant 1 : index
    %c0_129 = arith.constant 0 : index
    %47 = vector.load %arg0[%c0_124, %c1_125, %c0_126, %c0_127, %c1_128, %c0_129] : memref<2x2x2x9x9x4xf32, #tpu.memory_space<vmem>>, vector<2x1x1x8x8x4xf32>
    %48 = vector.shape_cast %47 : vector<2x1x1x8x8x4xf32> to vector<128x4xf32>
    %c0_130 = arith.constant 0 : index
    %c1_131 = arith.constant 1 : index
    %c1_132 = arith.constant 1 : index
    %c0_133 = arith.constant 0 : index
    %c1_134 = arith.constant 1 : index
    %c0_135 = arith.constant 0 : index
    %49 = vector.load %arg0[%c0_130, %c1_131, %c1_132, %c0_133, %c1_134, %c0_135] : memref<2x2x2x9x9x4xf32, #tpu.memory_space<vmem>>, vector<2x1x1x8x8x4xf32>
    %50 = vector.shape_cast %49 : vector<2x1x1x8x8x4xf32> to vector<128x4xf32>
    %c0_136 = arith.constant 0 : index
    %c0_137 = arith.constant 0 : index
    %c0_138 = arith.constant 0 : index
    %c1_139 = arith.constant 1 : index
    %c1_140 = arith.constant 1 : index
    %c0_141 = arith.constant 0 : index
    %51 = vector.load %arg0[%c0_136, %c0_137, %c0_138, %c1_139, %c1_140, %c0_141] : memref<2x2x2x9x9x4xf32, #tpu.memory_space<vmem>>, vector<2x1x1x8x8x4xf32>
    %52 = vector.shape_cast %51 : vector<2x1x1x8x8x4xf32> to vector<128x4xf32>
    %c0_142 = arith.constant 0 : index
    %c0_143 = arith.constant 0 : index
    %c1_144 = arith.constant 1 : index
    %c1_145 = arith.constant 1 : index
    %c1_146 = arith.constant 1 : index
    %c0_147 = arith.constant 0 : index
    %53 = vector.load %arg0[%c0_142, %c0_143, %c1_144, %c1_145, %c1_146, %c0_147] : memref<2x2x2x9x9x4xf32, #tpu.memory_space<vmem>>, vector<2x1x1x8x8x4xf32>
    %54 = vector.shape_cast %53 : vector<2x1x1x8x8x4xf32> to vector<128x4xf32>
    %55 = tpu.concatenate %48, %50, %52, %54 in 0 : vector<128x4xf32>, vector<128x4xf32>, vector<128x4xf32>, vector<128x4xf32> -> vector<512x4xf32>
    %c0_148 = arith.constant 0 : index
    %c0_149 = arith.constant 0 : index
    %c0_150 = arith.constant 0 : index
    %c1_151 = arith.constant 1 : index
    %c0_152 = arith.constant 0 : index
    %c0_153 = arith.constant 0 : index
    %56 = vector.load %arg0[%c0_148, %c0_149, %c0_150, %c1_151, %c0_152, %c0_153] : memref<2x2x2x9x9x4xf32, #tpu.memory_space<vmem>>, vector<2x1x1x8x8x4xf32>
    %57 = vector.shape_cast %56 : vector<2x1x1x8x8x4xf32> to vector<128x4xf32>
    %c0_154 = arith.constant 0 : index
    %c0_155 = arith.constant 0 : index
    %c1_156 = arith.constant 1 : index
    %c1_157 = arith.constant 1 : index
    %c0_158 = arith.constant 0 : index
    %c0_159 = arith.constant 0 : index
    %58 = vector.load %arg0[%c0_154, %c0_155, %c1_156, %c1_157, %c0_158, %c0_159] : memref<2x2x2x9x9x4xf32, #tpu.memory_space<vmem>>, vector<2x1x1x8x8x4xf32>
    %59 = vector.shape_cast %58 : vector<2x1x1x8x8x4xf32> to vector<128x4xf32>
    %c0_160 = arith.constant 0 : index
    %c1_161 = arith.constant 1 : index
    %c0_162 = arith.constant 0 : index
    %c1_163 = arith.constant 1 : index
    %c0_164 = arith.constant 0 : index
    %c0_165 = arith.constant 0 : index
    %60 = vector.load %arg0[%c0_160, %c1_161, %c0_162, %c1_163, %c0_164, %c0_165] : memref<2x2x2x9x9x4xf32, #tpu.memory_space<vmem>>, vector<2x1x1x8x8x4xf32>
    %61 = vector.shape_cast %60 : vector<2x1x1x8x8x4xf32> to vector<128x4xf32>
    %c0_166 = arith.constant 0 : index
    %c1_167 = arith.constant 1 : index
    %c1_168 = arith.constant 1 : index
    %c1_169 = arith.constant 1 : index
    %c0_170 = arith.constant 0 : index
    %c0_171 = arith.constant 0 : index
    %62 = vector.load %arg0[%c0_166, %c1_167, %c1_168, %c1_169, %c0_170, %c0_171] : memref<2x2x2x9x9x4xf32, #tpu.memory_space<vmem>>, vector<2x1x1x8x8x4xf32>
    %63 = vector.shape_cast %62 : vector<2x1x1x8x8x4xf32> to vector<128x4xf32>
    %64 = tpu.concatenate %57, %59, %61, %63 in 0 : vector<128x4xf32>, vector<128x4xf32>, vector<128x4xf32>, vector<128x4xf32> -> vector<512x4xf32>
    %c0_172 = arith.constant 0 : index
    %c0_173 = arith.constant 0 : index
    %c1_174 = arith.constant 1 : index
    %c1_175 = arith.constant 1 : index
    %c0_176 = arith.constant 0 : index
    %c0_177 = arith.constant 0 : index
    %65 = vector.load %arg0[%c0_172, %c0_173, %c1_174, %c1_175, %c0_176, %c0_177] : memref<2x2x2x9x9x4xf32, #tpu.memory_space<vmem>>, vector<2x1x1x8x8x4xf32>
    %66 = vector.shape_cast %65 : vector<2x1x1x8x8x4xf32> to vector<128x4xf32>
    %c0_178 = arith.constant 0 : index
    %c0_179 = arith.constant 0 : index
    %c0_180 = arith.constant 0 : index
    %c1_181 = arith.constant 1 : index
    %c1_182 = arith.constant 1 : index
    %c0_183 = arith.constant 0 : index
    %67 = vector.load %arg0[%c0_178, %c0_179, %c0_180, %c1_181, %c1_182, %c0_183] : memref<2x2x2x9x9x4xf32, #tpu.memory_space<vmem>>, vector<2x1x1x8x8x4xf32>
    %68 = vector.shape_cast %67 : vector<2x1x1x8x8x4xf32> to vector<128x4xf32>
    %c0_184 = arith.constant 0 : index
    %c1_185 = arith.constant 1 : index
    %c1_186 = arith.constant 1 : index
    %c1_187 = arith.constant 1 : index
    %c0_188 = arith.constant 0 : index
    %c0_189 = arith.constant 0 : index
    %69 = vector.load %arg0[%c0_184, %c1_185, %c1_186, %c1_187, %c0_188, %c0_189] : memref<2x2x2x9x9x4xf32, #tpu.memory_space<vmem>>, vector<2x1x1x8x8x4xf32>
    %70 = vector.shape_cast %69 : vector<2x1x1x8x8x4xf32> to vector<128x4xf32>
    %c0_190 = arith.constant 0 : index
    %c1_191 = arith.constant 1 : index
    %c0_192 = arith.constant 0 : index
    %c1_193 = arith.constant 1 : index
    %c1_194 = arith.constant 1 : index
    %c0_195 = arith.constant 0 : index
    %71 = vector.load %arg0[%c0_190, %c1_191, %c0_192, %c1_193, %c1_194, %c0_195] : memref<2x2x2x9x9x4xf32, #tpu.memory_space<vmem>>, vector<2x1x1x8x8x4xf32>
    %72 = vector.shape_cast %71 : vector<2x1x1x8x8x4xf32> to vector<128x4xf32>
    %73 = tpu.concatenate %66, %68, %70, %72 in 0 : vector<128x4xf32>, vector<128x4xf32>, vector<128x4xf32>, vector<128x4xf32> -> vector<512x4xf32>
    %c0_196 = arith.constant 0 : index
    %c0_197 = arith.constant 0 : index
    %c0_198 = arith.constant 0 : index
    %c1_199 = arith.constant 1 : index
    %c1_200 = arith.constant 1 : index
    %c0_201 = arith.constant 0 : index
    %74 = vector.load %arg0[%c0_196, %c0_197, %c0_198, %c1_199, %c1_200, %c0_201] : memref<2x2x2x9x9x4xf32, #tpu.memory_space<vmem>>, vector<2x1x1x8x8x4xf32>
    %75 = vector.shape_cast %74 : vector<2x1x1x8x8x4xf32> to vector<128x4xf32>
    %c0_202 = arith.constant 0 : index
    %c0_203 = arith.constant 0 : index
    %c1_204 = arith.constant 1 : index
    %c1_205 = arith.constant 1 : index
    %c1_206 = arith.constant 1 : index
    %c0_207 = arith.constant 0 : index
    %76 = vector.load %arg0[%c0_202, %c0_203, %c1_204, %c1_205, %c1_206, %c0_207] : memref<2x2x2x9x9x4xf32, #tpu.memory_space<vmem>>, vector<2x1x1x8x8x4xf32>
    %77 = vector.shape_cast %76 : vector<2x1x1x8x8x4xf32> to vector<128x4xf32>
    %c0_208 = arith.constant 0 : index
    %c1_209 = arith.constant 1 : index
    %c0_210 = arith.constant 0 : index
    %c1_211 = arith.constant 1 : index
    %c1_212 = arith.constant 1 : index
    %c0_213 = arith.constant 0 : index
    %78 = vector.load %arg0[%c0_208, %c1_209, %c0_210, %c1_211, %c1_212, %c0_213] : memref<2x2x2x9x9x4xf32, #tpu.memory_space<vmem>>, vector<2x1x1x8x8x4xf32>
    %79 = vector.shape_cast %78 : vector<2x1x1x8x8x4xf32> to vector<128x4xf32>
    %c0_214 = arith.constant 0 : index
    %c1_215 = arith.constant 1 : index
    %c1_216 = arith.constant 1 : index
    %c1_217 = arith.constant 1 : index
    %c1_218 = arith.constant 1 : index
    %c0_219 = arith.constant 0 : index
    %80 = vector.load %arg0[%c0_214, %c1_215, %c1_216, %c1_217, %c1_218, %c0_219] : memref<2x2x2x9x9x4xf32, #tpu.memory_space<vmem>>, vector<2x1x1x8x8x4xf32>
    %81 = vector.shape_cast %80 : vector<2x1x1x8x8x4xf32> to vector<128x4xf32>
    %82 = tpu.concatenate %75, %77, %79, %81 in 0 : vector<128x4xf32>, vector<128x4xf32>, vector<128x4xf32>, vector<128x4xf32> -> vector<512x4xf32>
    %83 = tpu.concatenate %10, %19, %28, %37, %46, %55, %64, %73, %82 in 1 : vector<512x4xf32>, vector<512x4xf32>, vector<512x4xf32>, vector<512x4xf32>, vector<512x4xf32>, vector<512x4xf32>, vector<512x4xf32>, vector<512x4xf32>, vector<512x4xf32> -> vector<512x36xf32>
    %c0_220 = arith.constant 0 : index
    %c0_221 = arith.constant 0 : index
    %84 = vector.load %arg1[%c0_220, %c0_221] : memref<36x8xf32, #tpu.memory_space<vmem>>, vector<36x8xf32>
    %cst_222 = arith.constant dense<0.000000e+00> : vector<512x8xf32>
    %85 = tpu.matmul %83, %84, %cst_222 {dimension_numbers = #tpu.dot_dimension_numbers<[1], [0], [0], [1], [0, 0, 1, 1], [], []>} : vector<512x36xf32>, vector<36x8xf32>, vector<512x8xf32> -> vector<512x8xf32>
    %c0_223 = arith.constant 0 : index
    %c0_224 = arith.constant 0 : index
    %86 = vector.load %arg2[%c0_223, %c0_224] : memref<1x8xf32, #tpu.memory_space<vmem>>, vector<1x8xf32>
    %87 = vector.broadcast %86 : vector<1x8xf32> to vector<512x8xf32>
    %88 = arith.addf %85, %87 : vector<512x8xf32>
    %cst_225 = arith.constant 0.000000e+00 : f32
    %89 = vector.broadcast %cst_225 : f32 to vector<512x8xf32>
    %90 = arith.maximumf %88, %89 : vector<512x8xf32>
    %91 = vector.extract_strided_slice %90 {offsets = [0, 0], sizes = [128, 8], strides = [1, 1]} : vector<512x8xf32> to vector<128x8xf32>
    %92 = vector.shape_cast %91 : vector<128x8xf32> to vector<2x1x1x8x8x8xf32>
    %c0_226 = arith.constant 0 : index
    %c1_227 = arith.constant 1 : index
    %c1_228 = arith.constant 1 : index
    %c0_229 = arith.constant 0 : index
    %c0_230 = arith.constant 0 : index
    %c0_231 = arith.constant 0 : index
    %93 = vector.load %arg10[%c0_226, %c1_227, %c1_228, %c0_229, %c0_230, %c0_231] : memref<2x2x2x9x9x8xf32, #tpu.memory_space<vmem>>, vector<2x1x1x8x8x8xf32>
    tpu.vector_store %arg10[%c0_226, %c1_227, %c1_228, %c0_229, %c0_230, %c0_231], %92 {strides = array<i32>} : memref<2x2x2x9x9x8xf32, #tpu.memory_space<vmem>>, vector<2x1x1x8x8x8xf32>,
    %94 = vector.extract_strided_slice %90 {offsets = [128, 0], sizes = [128, 8], strides = [1, 1]} : vector<512x8xf32> to vector<128x8xf32>
    %95 = vector.shape_cast %94 : vector<128x8xf32> to vector<2x1x1x8x8x8xf32>
    %c0_232 = arith.constant 0 : index
    %c1_233 = arith.constant 1 : index
    %c0_234 = arith.constant 0 : index
    %c0_235 = arith.constant 0 : index
    %c1_236 = arith.constant 1 : index
    %c0_237 = arith.constant 0 : index
    %96 = vector.load %arg10[%c0_232, %c1_233, %c0_234, %c0_235, %c1_236, %c0_237] : memref<2x2x2x9x9x8xf32, #tpu.memory_space<vmem>>, vector<2x1x1x8x8x8xf32>
    tpu.vector_store %arg10[%c0_232, %c1_233, %c0_234, %c0_235, %c1_236, %c0_237], %95 {strides = array<i32>} : memref<2x2x2x9x9x8xf32, #tpu.memory_space<vmem>>, vector<2x1x1x8x8x8xf32>,
    %97 = vector.extract_strided_slice %90 {offsets = [256, 0], sizes = [128, 8], strides = [1, 1]} : vector<512x8xf32> to vector<128x8xf32>
    %98 = vector.shape_cast %97 : vector<128x8xf32> to vector<2x1x1x8x8x8xf32>
    %c0_238 = arith.constant 0 : index
    %c0_239 = arith.constant 0 : index
    %c1_240 = arith.constant 1 : index
    %c1_241 = arith.constant 1 : index
    %c0_242 = arith.constant 0 : index
    %c0_243 = arith.constant 0 : index
    %99 = vector.load %arg10[%c0_238, %c0_239, %c1_240, %c1_241, %c0_242, %c0_243] : memref<2x2x2x9x9x8xf32, #tpu.memory_space<vmem>>, vector<2x1x1x8x8x8xf32>
    tpu.vector_store %arg10[%c0_238, %c0_239, %c1_240, %c1_241, %c0_242, %c0_243], %98 {strides = array<i32>} : memref<2x2x2x9x9x8xf32, #tpu.memory_space<vmem>>, vector<2x1x1x8x8x8xf32>,
    %100 = vector.extract_strided_slice %90 {offsets = [384, 0], sizes = [128, 8], strides = [1, 1]} : vector<512x8xf32> to vector<128x8xf32>
    %101 = vector.shape_cast %100 : vector<128x8xf32> to vector<2x1x1x8x8x8xf32>
    %c0_244 = arith.constant 0 : index
    %c0_245 = arith.constant 0 : index
    %c0_246 = arith.constant 0 : index
    %c1_247 = arith.constant 1 : index
    %c1_248 = arith.constant 1 : index
    %c0_249 = arith.constant 0 : index
    %102 = vector.load %arg10[%c0_244, %c0_245, %c0_246, %c1_247, %c1_248, %c0_249] : memref<2x2x2x9x9x8xf32, #tpu.memory_space<vmem>>, vector<2x1x1x8x8x8xf32>
    tpu.vector_store %arg10[%c0_244, %c0_245, %c0_246, %c1_247, %c1_248, %c0_249], %101 {strides = array<i32>} : memref<2x2x2x9x9x8xf32, #tpu.memory_space<vmem>>, vector<2x1x1x8x8x8xf32>,
    %c0_250 = arith.constant 0 : index
    %c0_251 = arith.constant 0 : index
    %c0_252 = arith.constant 0 : index
    %c0_253 = arith.constant 0 : index
    %c0_254 = arith.constant 0 : index
    %c0_255 = arith.constant 0 : index
    %103 = vector.load %arg10[%c0_250, %c0_251, %c0_252, %c0_253, %c0_254, %c0_255] : memref<2x2x2x9x9x8xf32, #tpu.memory_space<vmem>>, vector<2x1x1x8x8x8xf32>
    %104 = vector.shape_cast %103 : vector<2x1x1x8x8x8xf32> to vector<128x8xf32>
    %c0_256 = arith.constant 0 : index
    %c0_257 = arith.constant 0 : index
    %c1_258 = arith.constant 1 : index
    %c0_259 = arith.constant 0 : index
    %c0_260 = arith.constant 0 : index
    %c0_261 = arith.constant 0 : index
    %105 = vector.load %arg10[%c0_256, %c0_257, %c1_258, %c0_259, %c0_260, %c0_261] : memref<2x2x2x9x9x8xf32, #tpu.memory_space<vmem>>, vector<2x1x1x8x8x8xf32>
    %106 = vector.shape_cast %105 : vector<2x1x1x8x8x8xf32> to vector<128x8xf32>
    %c0_262 = arith.constant 0 : index
    %c0_263 = arith.constant 0 : index
    %c0_264 = arith.constant 0 : index
    %c0_265 = arith.constant 0 : index
    %c1_266 = arith.constant 1 : index
    %c0_267 = arith.constant 0 : index
    %107 = vector.load %arg10[%c0_262, %c0_263, %c0_264, %c0_265, %c1_266, %c0_267] : memref<2x2x2x9x9x8xf32, #tpu.memory_space<vmem>>, vector<2x1x1x8x8x8xf32>
    %108 = vector.shape_cast %107 : vector<2x1x1x8x8x8xf32> to vector<128x8xf32>
    %c0_268 = arith.constant 0 : index
    %c1_269 = arith.constant 1 : index
    %c0_270 = arith.constant 0 : index
    %c0_271 = arith.constant 0 : index
    %c0_272 = arith.constant 0 : index
    %c0_273 = arith.constant 0 : index
    %109 = vector.load %arg10[%c0_268, %c1_269, %c0_270, %c0_271, %c0_272, %c0_273] : memref<2x2x2x9x9x8xf32, #tpu.memory_space<vmem>>, vector<2x1x1x8x8x8xf32>
    %110 = vector.shape_cast %109 : vector<2x1x1x8x8x8xf32> to vector<128x8xf32>
    %c0_274 = arith.constant 0 : index
    %c1_275 = arith.constant 1 : index
    %c1_276 = arith.constant 1 : index
    %c0_277 = arith.constant 0 : index
    %c0_278 = arith.constant 0 : index
    %c0_279 = arith.constant 0 : index
    %111 = vector.load %arg10[%c0_274, %c1_275, %c1_276, %c0_277, %c0_278, %c0_279] : memref<2x2x2x9x9x8xf32, #tpu.memory_space<vmem>>, vector<2x1x1x8x8x8xf32>
    %112 = vector.shape_cast %111 : vector<2x1x1x8x8x8xf32> to vector<128x8xf32>
    %c0_280 = arith.constant 0 : index
    %c1_281 = arith.constant 1 : index
    %c0_282 = arith.constant 0 : index
    %c0_283 = arith.constant 0 : index
    %c1_284 = arith.constant 1 : index
    %c0_285 = arith.constant 0 : index
    %113 = vector.load %arg10[%c0_280, %c1_281, %c0_282, %c0_283, %c1_284, %c0_285] : memref<2x2x2x9x9x8xf32, #tpu.memory_space<vmem>>, vector<2x1x1x8x8x8xf32>
    %114 = vector.shape_cast %113 : vector<2x1x1x8x8x8xf32> to vector<128x8xf32>
    %c0_286 = arith.constant 0 : index
    %c0_287 = arith.constant 0 : index
    %c0_288 = arith.constant 0 : index
    %c1_289 = arith.constant 1 : index
    %c0_290 = arith.constant 0 : index
    %c0_291 = arith.constant 0 : index
    %115 = vector.load %arg10[%c0_286, %c0_287, %c0_288, %c1_289, %c0_290, %c0_291] : memref<2x2x2x9x9x8xf32, #tpu.memory_space<vmem>>, vector<2x1x1x8x8x8xf32>
    %116 = vector.shape_cast %115 : vector<2x1x1x8x8x8xf32> to vector<128x8xf32>
    %c0_292 = arith.constant 0 : index
    %c0_293 = arith.constant 0 : index
    %c1_294 = arith.constant 1 : index
    %c1_295 = arith.constant 1 : index
    %c0_296 = arith.constant 0 : index
    %c0_297 = arith.constant 0 : index
    %117 = vector.load %arg10[%c0_292, %c0_293, %c1_294, %c1_295, %c0_296, %c0_297] : memref<2x2x2x9x9x8xf32, #tpu.memory_space<vmem>>, vector<2x1x1x8x8x8xf32>
    %118 = vector.shape_cast %117 : vector<2x1x1x8x8x8xf32> to vector<128x8xf32>
    %c0_298 = arith.constant 0 : index
    %c0_299 = arith.constant 0 : index
    %c0_300 = arith.constant 0 : index
    %c1_301 = arith.constant 1 : index
    %c1_302 = arith.constant 1 : index
    %c0_303 = arith.constant 0 : index
    %119 = vector.load %arg10[%c0_298, %c0_299, %c0_300, %c1_301, %c1_302, %c0_303] : memref<2x2x2x9x9x8xf32, #tpu.memory_space<vmem>>, vector<2x1x1x8x8x8xf32>
    %120 = vector.shape_cast %119 : vector<2x1x1x8x8x8xf32> to vector<128x8xf32>
    %121 = tpu.concatenate %104, %106, %108, %110, %112, %114, %116, %118, %120 in 1 : vector<128x8xf32>, vector<128x8xf32>, vector<128x8xf32>, vector<128x8xf32>, vector<128x8xf32>, vector<128x8xf32>, vector<128x8xf32>, vector<128x8xf32>, vector<128x8xf32> -> vector<128x72xf32>
    %c0_304 = arith.constant 0 : index
    %c0_305 = arith.constant 0 : index
    %122 = vector.load %arg3[%c0_304, %c0_305] : memref<72x16xf32, #tpu.memory_space<vmem>>, vector<72x16xf32>
    %cst_306 = arith.constant dense<0.000000e+00> : vector<128x16xf32>
    %123 = tpu.matmul %121, %122, %cst_306 {dimension_numbers = #tpu.dot_dimension_numbers<[1], [0], [0], [1], [0, 0, 1, 1], [], []>} : vector<128x72xf32>, vector<72x16xf32>, vector<128x16xf32> -> vector<128x16xf32>
    %c0_307 = arith.constant 0 : index
    %c0_308 = arith.constant 0 : index
    %124 = vector.load %arg4[%c0_307, %c0_308] : memref<1x16xf32, #tpu.memory_space<vmem>>, vector<1x16xf32>
    %125 = vector.broadcast %124 : vector<1x16xf32> to vector<128x16xf32>
    %126 = arith.addf %123, %125 : vector<128x16xf32>
    %cst_309 = arith.constant 0.000000e+00 : f32
    %127 = vector.broadcast %cst_309 : f32 to vector<128x16xf32>
    %128 = arith.maximumf %126, %127 : vector<128x16xf32>
    %129 = vector.shape_cast %128 : vector<128x16xf32> to vector<2x8x8x16xf32>
    %130 = vector.extract_strided_slice %129 {offsets = [0, 0, 0, 0], sizes = [2, 1, 1, 16], strides = [1, 1, 1, 1]} : vector<2x8x8x16xf32> to vector<2x1x1x16xf32>
    %131 = vector.shape_cast %130 : vector<2x1x1x16xf32> to vector<2x16xf32>
    %132 = vector.extract_strided_slice %129 {offsets = [0, 0, 1, 0], sizes = [2, 1, 1, 16], strides = [1, 1, 1, 1]} : vector<2x8x8x16xf32> to vector<2x1x1x16xf32>
    %133 = vector.shape_cast %132 : vector<2x1x1x16xf32> to vector<2x16xf32>
    %134 = vector.extract_strided_slice %129 {offsets = [0, 0, 2, 0], sizes = [2, 1, 1, 16], strides = [1, 1, 1, 1]} : vector<2x8x8x16xf32> to vector<2x1x1x16xf32>
    %135 = vector.shape_cast %134 : vector<2x1x1x16xf32> to vector<2x16xf32>
    %136 = vector.extract_strided_slice %129 {offsets = [0, 0, 3, 0], sizes = [2, 1, 1, 16], strides = [1, 1, 1, 1]} : vector<2x8x8x16xf32> to vector<2x1x1x16xf32>
    %137 = vector.shape_cast %136 : vector<2x1x1x16xf32> to vector<2x16xf32>
    %138 = vector.extract_strided_slice %129 {offsets = [0, 0, 4, 0], sizes = [2, 1, 1, 16], strides = [1, 1, 1, 1]} : vector<2x8x8x16xf32> to vector<2x1x1x16xf32>
    %139 = vector.shape_cast %138 : vector<2x1x1x16xf32> to vector<2x16xf32>
    %140 = vector.extract_strided_slice %129 {offsets = [0, 0, 5, 0], sizes = [2, 1, 1, 16], strides = [1, 1, 1, 1]} : vector<2x8x8x16xf32> to vector<2x1x1x16xf32>
    %141 = vector.shape_cast %140 : vector<2x1x1x16xf32> to vector<2x16xf32>
    %142 = vector.extract_strided_slice %129 {offsets = [0, 0, 6, 0], sizes = [2, 1, 1, 16], strides = [1, 1, 1, 1]} : vector<2x8x8x16xf32> to vector<2x1x1x16xf32>
    %143 = vector.shape_cast %142 : vector<2x1x1x16xf32> to vector<2x16xf32>
    %144 = vector.extract_strided_slice %129 {offsets = [0, 0, 7, 0], sizes = [2, 1, 1, 16], strides = [1, 1, 1, 1]} : vector<2x8x8x16xf32> to vector<2x1x1x16xf32>
    %145 = vector.shape_cast %144 : vector<2x1x1x16xf32> to vector<2x16xf32>
    %146 = vector.extract_strided_slice %129 {offsets = [0, 1, 0, 0], sizes = [2, 1, 1, 16], strides = [1, 1, 1, 1]} : vector<2x8x8x16xf32> to vector<2x1x1x16xf32>
    %147 = vector.shape_cast %146 : vector<2x1x1x16xf32> to vector<2x16xf32>
    %148 = vector.extract_strided_slice %129 {offsets = [0, 1, 1, 0], sizes = [2, 1, 1, 16], strides = [1, 1, 1, 1]} : vector<2x8x8x16xf32> to vector<2x1x1x16xf32>
    %149 = vector.shape_cast %148 : vector<2x1x1x16xf32> to vector<2x16xf32>
    %150 = vector.extract_strided_slice %129 {offsets = [0, 1, 2, 0], sizes = [2, 1, 1, 16], strides = [1, 1, 1, 1]} : vector<2x8x8x16xf32> to vector<2x1x1x16xf32>
    %151 = vector.shape_cast %150 : vector<2x1x1x16xf32> to vector<2x16xf32>
    %152 = vector.extract_strided_slice %129 {offsets = [0, 1, 3, 0], sizes = [2, 1, 1, 16], strides = [1, 1, 1, 1]} : vector<2x8x8x16xf32> to vector<2x1x1x16xf32>
    %153 = vector.shape_cast %152 : vector<2x1x1x16xf32> to vector<2x16xf32>
    %154 = vector.extract_strided_slice %129 {offsets = [0, 1, 4, 0], sizes = [2, 1, 1, 16], strides = [1, 1, 1, 1]} : vector<2x8x8x16xf32> to vector<2x1x1x16xf32>
    %155 = vector.shape_cast %154 : vector<2x1x1x16xf32> to vector<2x16xf32>
    %156 = vector.extract_strided_slice %129 {offsets = [0, 1, 5, 0], sizes = [2, 1, 1, 16], strides = [1, 1, 1, 1]} : vector<2x8x8x16xf32> to vector<2x1x1x16xf32>
    %157 = vector.shape_cast %156 : vector<2x1x1x16xf32> to vector<2x16xf32>
    %158 = vector.extract_strided_slice %129 {offsets = [0, 1, 6, 0], sizes = [2, 1, 1, 16], strides = [1, 1, 1, 1]} : vector<2x8x8x16xf32> to vector<2x1x1x16xf32>
    %159 = vector.shape_cast %158 : vector<2x1x1x16xf32> to vector<2x16xf32>
    %160 = vector.extract_strided_slice %129 {offsets = [0, 1, 7, 0], sizes = [2, 1, 1, 16], strides = [1, 1, 1, 1]} : vector<2x8x8x16xf32> to vector<2x1x1x16xf32>
    %161 = vector.shape_cast %160 : vector<2x1x1x16xf32> to vector<2x16xf32>
    %162 = vector.extract_strided_slice %129 {offsets = [0, 2, 0, 0], sizes = [2, 1, 1, 16], strides = [1, 1, 1, 1]} : vector<2x8x8x16xf32> to vector<2x1x1x16xf32>
    %163 = vector.shape_cast %162 : vector<2x1x1x16xf32> to vector<2x16xf32>
    %164 = vector.extract_strided_slice %129 {offsets = [0, 2, 1, 0], sizes = [2, 1, 1, 16], strides = [1, 1, 1, 1]} : vector<2x8x8x16xf32> to vector<2x1x1x16xf32>
    %165 = vector.shape_cast %164 : vector<2x1x1x16xf32> to vector<2x16xf32>
    %166 = vector.extract_strided_slice %129 {offsets = [0, 2, 2, 0], sizes = [2, 1, 1, 16], strides = [1, 1, 1, 1]} : vector<2x8x8x16xf32> to vector<2x1x1x16xf32>
    %167 = vector.shape_cast %166 : vector<2x1x1x16xf32> to vector<2x16xf32>
    %168 = vector.extract_strided_slice %129 {offsets = [0, 2, 3, 0], sizes = [2, 1, 1, 16], strides = [1, 1, 1, 1]} : vector<2x8x8x16xf32> to vector<2x1x1x16xf32>
    %169 = vector.shape_cast %168 : vector<2x1x1x16xf32> to vector<2x16xf32>
    %170 = vector.extract_strided_slice %129 {offsets = [0, 2, 4, 0], sizes = [2, 1, 1, 16], strides = [1, 1, 1, 1]} : vector<2x8x8x16xf32> to vector<2x1x1x16xf32>
    %171 = vector.shape_cast %170 : vector<2x1x1x16xf32> to vector<2x16xf32>
    %172 = vector.extract_strided_slice %129 {offsets = [0, 2, 5, 0], sizes = [2, 1, 1, 16], strides = [1, 1, 1, 1]} : vector<2x8x8x16xf32> to vector<2x1x1x16xf32>
    %173 = vector.shape_cast %172 : vector<2x1x1x16xf32> to vector<2x16xf32>
    %174 = vector.extract_strided_slice %129 {offsets = [0, 2, 6, 0], sizes = [2, 1, 1, 16], strides = [1, 1, 1, 1]} : vector<2x8x8x16xf32> to vector<2x1x1x16xf32>
    %175 = vector.shape_cast %174 : vector<2x1x1x16xf32> to vector<2x16xf32>
    %176 = vector.extract_strided_slice %129 {offsets = [0, 2, 7, 0], sizes = [2, 1, 1, 16], strides = [1, 1, 1, 1]} : vector<2x8x8x16xf32> to vector<2x1x1x16xf32>
    %177 = vector.shape_cast %176 : vector<2x1x1x16xf32> to vector<2x16xf32>
    %178 = vector.extract_strided_slice %129 {offsets = [0, 3, 0, 0], sizes = [2, 1, 1, 16], strides = [1, 1, 1, 1]} : vector<2x8x8x16xf32> to vector<2x1x1x16xf32>
    %179 = vector.shape_cast %178 : vector<2x1x1x16xf32> to vector<2x16xf32>
    %180 = vector.extract_strided_slice %129 {offsets = [0, 3, 1, 0], sizes = [2, 1, 1, 16], strides = [1, 1, 1, 1]} : vector<2x8x8x16xf32> to vector<2x1x1x16xf32>
    %181 = vector.shape_cast %180 : vector<2x1x1x16xf32> to vector<2x16xf32>
    %182 = vector.extract_strided_slice %129 {offsets = [0, 3, 2, 0], sizes = [2, 1, 1, 16], strides = [1, 1, 1, 1]} : vector<2x8x8x16xf32> to vector<2x1x1x16xf32>
    %183 = vector.shape_cast %182 : vector<2x1x1x16xf32> to vector<2x16xf32>
    %184 = vector.extract_strided_slice %129 {offsets = [0, 3, 3, 0], sizes = [2, 1, 1, 16], strides = [1, 1, 1, 1]} : vector<2x8x8x16xf32> to vector<2x1x1x16xf32>
    %185 = vector.shape_cast %184 : vector<2x1x1x16xf32> to vector<2x16xf32>
    %186 = vector.extract_strided_slice %129 {offsets = [0, 3, 4, 0], sizes = [2, 1, 1, 16], strides = [1, 1, 1, 1]} : vector<2x8x8x16xf32> to vector<2x1x1x16xf32>
    %187 = vector.shape_cast %186 : vector<2x1x1x16xf32> to vector<2x16xf32>
    %188 = vector.extract_strided_slice %129 {offsets = [0, 3, 5, 0], sizes = [2, 1, 1, 16], strides = [1, 1, 1, 1]} : vector<2x8x8x16xf32> to vector<2x1x1x16xf32>
    %189 = vector.shape_cast %188 : vector<2x1x1x16xf32> to vector<2x16xf32>
    %190 = vector.extract_strided_slice %129 {offsets = [0, 3, 6, 0], sizes = [2, 1, 1, 16], strides = [1, 1, 1, 1]} : vector<2x8x8x16xf32> to vector<2x1x1x16xf32>
    %191 = vector.shape_cast %190 : vector<2x1x1x16xf32> to vector<2x16xf32>
    %192 = vector.extract_strided_slice %129 {offsets = [0, 3, 7, 0], sizes = [2, 1, 1, 16], strides = [1, 1, 1, 1]} : vector<2x8x8x16xf32> to vector<2x1x1x16xf32>
    %193 = vector.shape_cast %192 : vector<2x1x1x16xf32> to vector<2x16xf32>
    %194 = vector.extract_strided_slice %129 {offsets = [0, 4, 0, 0], sizes = [2, 1, 1, 16], strides = [1, 1, 1, 1]} : vector<2x8x8x16xf32> to vector<2x1x1x16xf32>
    %195 = vector.shape_cast %194 : vector<2x1x1x16xf32> to vector<2x16xf32>
    %196 = vector.extract_strided_slice %129 {offsets = [0, 4, 1, 0], sizes = [2, 1, 1, 16], strides = [1, 1, 1, 1]} : vector<2x8x8x16xf32> to vector<2x1x1x16xf32>
    %197 = vector.shape_cast %196 : vector<2x1x1x16xf32> to vector<2x16xf32>
    %198 = vector.extract_strided_slice %129 {offsets = [0, 4, 2, 0], sizes = [2, 1, 1, 16], strides = [1, 1, 1, 1]} : vector<2x8x8x16xf32> to vector<2x1x1x16xf32>
    %199 = vector.shape_cast %198 : vector<2x1x1x16xf32> to vector<2x16xf32>
    %200 = vector.extract_strided_slice %129 {offsets = [0, 4, 3, 0], sizes = [2, 1, 1, 16], strides = [1, 1, 1, 1]} : vector<2x8x8x16xf32> to vector<2x1x1x16xf32>
    %201 = vector.shape_cast %200 : vector<2x1x1x16xf32> to vector<2x16xf32>
    %202 = vector.extract_strided_slice %129 {offsets = [0, 4, 4, 0], sizes = [2, 1, 1, 16], strides = [1, 1, 1, 1]} : vector<2x8x8x16xf32> to vector<2x1x1x16xf32>
    %203 = vector.shape_cast %202 : vector<2x1x1x16xf32> to vector<2x16xf32>
    %204 = vector.extract_strided_slice %129 {offsets = [0, 4, 5, 0], sizes = [2, 1, 1, 16], strides = [1, 1, 1, 1]} : vector<2x8x8x16xf32> to vector<2x1x1x16xf32>
    %205 = vector.shape_cast %204 : vector<2x1x1x16xf32> to vector<2x16xf32>
    %206 = vector.extract_strided_slice %129 {offsets = [0, 4, 6, 0], sizes = [2, 1, 1, 16], strides = [1, 1, 1, 1]} : vector<2x8x8x16xf32> to vector<2x1x1x16xf32>
    %207 = vector.shape_cast %206 : vector<2x1x1x16xf32> to vector<2x16xf32>
    %208 = vector.extract_strided_slice %129 {offsets = [0, 4, 7, 0], sizes = [2, 1, 1, 16], strides = [1, 1, 1, 1]} : vector<2x8x8x16xf32> to vector<2x1x1x16xf32>
    %209 = vector.shape_cast %208 : vector<2x1x1x16xf32> to vector<2x16xf32>
    %210 = vector.extract_strided_slice %129 {offsets = [0, 5, 0, 0], sizes = [2, 1, 1, 16], strides = [1, 1, 1, 1]} : vector<2x8x8x16xf32> to vector<2x1x1x16xf32>
    %211 = vector.shape_cast %210 : vector<2x1x1x16xf32> to vector<2x16xf32>
    %212 = vector.extract_strided_slice %129 {offsets = [0, 5, 1, 0], sizes = [2, 1, 1, 16], strides = [1, 1, 1, 1]} : vector<2x8x8x16xf32> to vector<2x1x1x16xf32>
    %213 = vector.shape_cast %212 : vector<2x1x1x16xf32> to vector<2x16xf32>
    %214 = vector.extract_strided_slice %129 {offsets = [0, 5, 2, 0], sizes = [2, 1, 1, 16], strides = [1, 1, 1, 1]} : vector<2x8x8x16xf32> to vector<2x1x1x16xf32>
    %215 = vector.shape_cast %214 : vector<2x1x1x16xf32> to vector<2x16xf32>
    %216 = vector.extract_strided_slice %129 {offsets = [0, 5, 3, 0], sizes = [2, 1, 1, 16], strides = [1, 1, 1, 1]} : vector<2x8x8x16xf32> to vector<2x1x1x16xf32>
    %217 = vector.shape_cast %216 : vector<2x1x1x16xf32> to vector<2x16xf32>
    %218 = vector.extract_strided_slice %129 {offsets = [0, 5, 4, 0], sizes = [2, 1, 1, 16], strides = [1, 1, 1, 1]} : vector<2x8x8x16xf32> to vector<2x1x1x16xf32>
    %219 = vector.shape_cast %218 : vector<2x1x1x16xf32> to vector<2x16xf32>
    %220 = vector.extract_strided_slice %129 {offsets = [0, 5, 5, 0], sizes = [2, 1, 1, 16], strides = [1, 1, 1, 1]} : vector<2x8x8x16xf32> to vector<2x1x1x16xf32>
    %221 = vector.shape_cast %220 : vector<2x1x1x16xf32> to vector<2x16xf32>
    %222 = vector.extract_strided_slice %129 {offsets = [0, 5, 6, 0], sizes = [2, 1, 1, 16], strides = [1, 1, 1, 1]} : vector<2x8x8x16xf32> to vector<2x1x1x16xf32>
    %223 = vector.shape_cast %222 : vector<2x1x1x16xf32> to vector<2x16xf32>
    %224 = vector.extract_strided_slice %129 {offsets = [0, 5, 7, 0], sizes = [2, 1, 1, 16], strides = [1, 1, 1, 1]} : vector<2x8x8x16xf32> to vector<2x1x1x16xf32>
    %225 = vector.shape_cast %224 : vector<2x1x1x16xf32> to vector<2x16xf32>
    %226 = vector.extract_strided_slice %129 {offsets = [0, 6, 0, 0], sizes = [2, 1, 1, 16], strides = [1, 1, 1, 1]} : vector<2x8x8x16xf32> to vector<2x1x1x16xf32>
    %227 = vector.shape_cast %226 : vector<2x1x1x16xf32> to vector<2x16xf32>
    %228 = vector.extract_strided_slice %129 {offsets = [0, 6, 1, 0], sizes = [2, 1, 1, 16], strides = [1, 1, 1, 1]} : vector<2x8x8x16xf32> to vector<2x1x1x16xf32>
    %229 = vector.shape_cast %228 : vector<2x1x1x16xf32> to vector<2x16xf32>
    %230 = vector.extract_strided_slice %129 {offsets = [0, 6, 2, 0], sizes = [2, 1, 1, 16], strides = [1, 1, 1, 1]} : vector<2x8x8x16xf32> to vector<2x1x1x16xf32>
    %231 = vector.shape_cast %230 : vector<2x1x1x16xf32> to vector<2x16xf32>
    %232 = vector.extract_strided_slice %129 {offsets = [0, 6, 3, 0], sizes = [2, 1, 1, 16], strides = [1, 1, 1, 1]} : vector<2x8x8x16xf32> to vector<2x1x1x16xf32>
    %233 = vector.shape_cast %232 : vector<2x1x1x16xf32> to vector<2x16xf32>
    %234 = vector.extract_strided_slice %129 {offsets = [0, 6, 4, 0], sizes = [2, 1, 1, 16], strides = [1, 1, 1, 1]} : vector<2x8x8x16xf32> to vector<2x1x1x16xf32>
    %235 = vector.shape_cast %234 : vector<2x1x1x16xf32> to vector<2x16xf32>
    %236 = vector.extract_strided_slice %129 {offsets = [0, 6, 5, 0], sizes = [2, 1, 1, 16], strides = [1, 1, 1, 1]} : vector<2x8x8x16xf32> to vector<2x1x1x16xf32>
    %237 = vector.shape_cast %236 : vector<2x1x1x16xf32> to vector<2x16xf32>
    %238 = vector.extract_strided_slice %129 {offsets = [0, 6, 6, 0], sizes = [2, 1, 1, 16], strides = [1, 1, 1, 1]} : vector<2x8x8x16xf32> to vector<2x1x1x16xf32>
    %239 = vector.shape_cast %238 : vector<2x1x1x16xf32> to vector<2x16xf32>
    %240 = vector.extract_strided_slice %129 {offsets = [0, 6, 7, 0], sizes = [2, 1, 1, 16], strides = [1, 1, 1, 1]} : vector<2x8x8x16xf32> to vector<2x1x1x16xf32>
    %241 = vector.shape_cast %240 : vector<2x1x1x16xf32> to vector<2x16xf32>
    %242 = vector.extract_strided_slice %129 {offsets = [0, 7, 0, 0], sizes = [2, 1, 1, 16], strides = [1, 1, 1, 1]} : vector<2x8x8x16xf32> to vector<2x1x1x16xf32>
    %243 = vector.shape_cast %242 : vector<2x1x1x16xf32> to vector<2x16xf32>
    %244 = vector.extract_strided_slice %129 {offsets = [0, 7, 1, 0], sizes = [2, 1, 1, 16], strides = [1, 1, 1, 1]} : vector<2x8x8x16xf32> to vector<2x1x1x16xf32>
    %245 = vector.shape_cast %244 : vector<2x1x1x16xf32> to vector<2x16xf32>
    %246 = vector.extract_strided_slice %129 {offsets = [0, 7, 2, 0], sizes = [2, 1, 1, 16], strides = [1, 1, 1, 1]} : vector<2x8x8x16xf32> to vector<2x1x1x16xf32>
    %247 = vector.shape_cast %246 : vector<2x1x1x16xf32> to vector<2x16xf32>
    %248 = vector.extract_strided_slice %129 {offsets = [0, 7, 3, 0], sizes = [2, 1, 1, 16], strides = [1, 1, 1, 1]} : vector<2x8x8x16xf32> to vector<2x1x1x16xf32>
    %249 = vector.shape_cast %248 : vector<2x1x1x16xf32> to vector<2x16xf32>
    %250 = vector.extract_strided_slice %129 {offsets = [0, 7, 4, 0], sizes = [2, 1, 1, 16], strides = [1, 1, 1, 1]} : vector<2x8x8x16xf32> to vector<2x1x1x16xf32>
    %251 = vector.shape_cast %250 : vector<2x1x1x16xf32> to vector<2x16xf32>
    %252 = vector.extract_strided_slice %129 {offsets = [0, 7, 5, 0], sizes = [2, 1, 1, 16], strides = [1, 1, 1, 1]} : vector<2x8x8x16xf32> to vector<2x1x1x16xf32>
    %253 = vector.shape_cast %252 : vector<2x1x1x16xf32> to vector<2x16xf32>
    %254 = vector.extract_strided_slice %129 {offsets = [0, 7, 6, 0], sizes = [2, 1, 1, 16], strides = [1, 1, 1, 1]} : vector<2x8x8x16xf32> to vector<2x1x1x16xf32>
    %255 = vector.shape_cast %254 : vector<2x1x1x16xf32> to vector<2x16xf32>
    %256 = vector.extract_strided_slice %129 {offsets = [0, 7, 7, 0], sizes = [2, 1, 1, 16], strides = [1, 1, 1, 1]} : vector<2x8x8x16xf32> to vector<2x1x1x16xf32>
    %257 = vector.shape_cast %256 : vector<2x1x1x16xf32> to vector<2x16xf32>
    %258 = tpu.concatenate %131, %133, %135, %137, %139, %141, %143, %145, %147, %149, %151, %153, %155, %157, %159, %161 in 1 : vector<2x16xf32>, vector<2x16xf32>, vector<2x16xf32>, vector<2x16xf32>, vector<2x16xf32>, vector<2x16xf32>, vector<2x16xf32>, vector<2x16xf32>, vector<2x16xf32>, vector<2x16xf32>, vector<2x16xf32>, vector<2x16xf32>, vector<2x16xf32>, vector<2x16xf32>, vector<2x16xf32>, vector<2x16xf32> -> vector<2x256xf32>
    %259 = tpu.concatenate %163, %165, %167, %169, %171, %173, %175, %177, %179, %181, %183, %185, %187, %189, %191, %193 in 1 : vector<2x16xf32>, vector<2x16xf32>, vector<2x16xf32>, vector<2x16xf32>, vector<2x16xf32>, vector<2x16xf32>, vector<2x16xf32>, vector<2x16xf32>, vector<2x16xf32>, vector<2x16xf32>, vector<2x16xf32>, vector<2x16xf32>, vector<2x16xf32>, vector<2x16xf32>, vector<2x16xf32>, vector<2x16xf32> -> vector<2x256xf32>
    %260 = tpu.concatenate %195, %197, %199, %201, %203, %205, %207, %209, %211, %213, %215, %217, %219, %221, %223, %225 in 1 : vector<2x16xf32>, vector<2x16xf32>, vector<2x16xf32>, vector<2x16xf32>, vector<2x16xf32>, vector<2x16xf32>, vector<2x16xf32>, vector<2x16xf32>, vector<2x16xf32>, vector<2x16xf32>, vector<2x16xf32>, vector<2x16xf32>, vector<2x16xf32>, vector<2x16xf32>, vector<2x16xf32>, vector<2x16xf32> -> vector<2x256xf32>
    %261 = tpu.concatenate %227, %229, %231, %233, %235, %237, %239, %241, %243, %245, %247, %249, %251, %253, %255, %257 in 1 : vector<2x16xf32>, vector<2x16xf32>, vector<2x16xf32>, vector<2x16xf32>, vector<2x16xf32>, vector<2x16xf32>, vector<2x16xf32>, vector<2x16xf32>, vector<2x16xf32>, vector<2x16xf32>, vector<2x16xf32>, vector<2x16xf32>, vector<2x16xf32>, vector<2x16xf32>, vector<2x16xf32>, vector<2x16xf32> -> vector<2x256xf32>
    %262 = tpu.concatenate %258, %259, %260, %261 in 1 : vector<2x256xf32>, vector<2x256xf32>, vector<2x256xf32>, vector<2x256xf32> -> vector<2x1024xf32>
    %c0_310 = arith.constant 0 : index
    %c0_311 = arith.constant 0 : index
    %263 = vector.load %arg5[%c0_310, %c0_311] : memref<1024x32xf32, #tpu.memory_space<vmem>>, vector<1024x32xf32>
    %cst_312 = arith.constant dense<0.000000e+00> : vector<2x32xf32>
    %264 = tpu.matmul %262, %263, %cst_312 {dimension_numbers = #tpu.dot_dimension_numbers<[1], [0], [0], [1], [0, 0, 1, 1], [], []>} : vector<2x1024xf32>, vector<1024x32xf32>, vector<2x32xf32> -> vector<2x32xf32>
    %c0_313 = arith.constant 0 : index
    %c0_314 = arith.constant 0 : index
    %265 = vector.load %arg6[%c0_313, %c0_314] : memref<1x32xf32, #tpu.memory_space<vmem>>, vector<1x32xf32>
    %266 = vector.broadcast %265 : vector<1x32xf32> to vector<2x32xf32>
    %267 = arith.addf %264, %266 : vector<2x32xf32>
    %cst_315 = arith.constant 0.000000e+00 : f32
    %268 = vector.broadcast %cst_315 : f32 to vector<2x32xf32>
    %269 = arith.maximumf %267, %268 : vector<2x32xf32>
    %c0_316 = arith.constant 0 : index
    %c0_317 = arith.constant 0 : index
    %270 = vector.load %arg7[%c0_316, %c0_317] : memref<32x4xf32, #tpu.memory_space<vmem>>, vector<32x4xf32>
    %cst_318 = arith.constant dense<0.000000e+00> : vector<2x4xf32>
    %271 = tpu.matmul %269, %270, %cst_318 {dimension_numbers = #tpu.dot_dimension_numbers<[1], [0], [0], [1], [0, 0, 1, 1], [], []>} : vector<2x32xf32>, vector<32x4xf32>, vector<2x4xf32> -> vector<2x4xf32>
    %c0_319 = arith.constant 0 : index
    %c0_320 = arith.constant 0 : index
    %272 = vector.load %arg8[%c0_319, %c0_320] : memref<1x4xf32, #tpu.memory_space<vmem>>, vector<1x4xf32>
    %273 = vector.broadcast %272 : vector<1x4xf32> to vector<2x4xf32>
    %274 = arith.addf %271, %273 : vector<2x4xf32>
    %c0_321 = arith.constant 0 : index
    %c0_322 = arith.constant 0 : index
    %275 = vector.load %arg9[%c0_321, %c0_322] : memref<2x4xf32, #tpu.memory_space<vmem>>, vector<2x4xf32>
    tpu.vector_store %arg9[%c0_321, %c0_322], %274 {strides = array<i32>} : memref<2x4xf32, #tpu.memory_space<vmem>>, vector<2x4xf32>,
    return
  }
}

</mosaic_0001>

<bundles_post_ra>
// kernel: _fused_dqn_forward.1
= control target key start
LH: loop header
LB: loop body
LE: loop exit
PB: predicated region body
PF: predicated region fallthrough
CT: control target
= control target key end

     0   :  { %s6649_s13 = smov 4   ;;  %s11912_s0 = inlined_call_operand.vmem [shape: f32[2,2,2,9,9,4], index: 0, kind: input, shape index: {}]   ;;  %s11913_s1 = inlined_call_operand.vmem [shape: f32[36,8], index: 1, kind: input, shape index: {}]   ;;  %s11914_s2 = inlined_call_operand.vmem [shape: f32[1,8], index: 2, kind: input, shape index: {}]   ;;  %s11915_s3 = inlined_call_operand.vmem [shape: f32[72,16], index: 3, kind: input, shape index: {}]   ;;  %s11916_s4 = inlined_call_operand.vmem [shape: f32[1,16], index: 4, kind: input, shape index: {}]   ;;  %s11917_s5 = inlined_call_operand.vmem [shape: f32[1024,32], index: 5, kind: input, shape index: {}]   ;;  %s11918_s6 = inlined_call_operand.vmem [shape: f32[1,32], index: 6, kind: input, shape index: {}]   ;;  %s11919_s7 = inlined_call_operand.vmem [shape: f32[32,4], index: 7, kind: input, shape index: {}]   ;;  %s11920_s8 = inlined_call_operand.vmem [shape: f32[1,4], index: 8, kind: input, shape index: {}]   ;;  %s11921_s9 = inlined_call_operand.hbm [shape: f32[2,4], index: 9, kind: output, shape index: {}]  }
   0x1   :  { %v6721_v0 = vld [vmem:[%s11912_s0 + $0xb0] sm:$0xff]  ;;  %v6732_v2 = vld [vmem:[%s11912_s0 + $0xc0] sm:$0xff] }
   0x2   :  { %v5422_v1 = vld [vmem:[%s11912_s0 + $0x90] sm:$0xff]  ;;  %510 = vrot.lane.b32.xlu1 %v6721_v0, %s6649_s13  ;;  %v6737_v3 = vld [vmem:[%s11912_s0 + $0xa0] sm:$0xff] }
   0x3   :  { %506 = vrot.lane.b32.xlu0 %v5422_v1, %s6649_s13  ;;  %v6746_v4 = vld [vmem:[%s11912_s0 + $0xe0] sm:$0xff]  ;;  %v6751_v5 = vld [vmem:[%s11912_s0 + $0xd0] sm:$0xff] }
   0x4   :  { %v6760_v6 = vld [vmem:[%s11912_s0 + $0x100] sm:$0xff]  ;;  %v6765_v7 = vld [vmem:[%s11912_s0 + $0xf0] sm:$0xff] }
   0x5   :  { %v6774_v8 = vld [vmem:[%s11912_s0 + $0x2e0] sm:$0xff]  ;;  %v5430_v9 = vld [vmem:[%s11912_s0 + $0x2d0] sm:$0xff] }
   0x6   :  { %512 = vrot.lane.b32.xlu1 %v6732_v2, %s6649_s13  ;;  %v6785_v10 = vld [vmem:[%s11912_s0 + $0x300] sm:$0xff]  ;;  %v6790_v11 = vld [vmem:[%s11912_s0 + $0x2f0] sm:$0xff] }
   0x7   :  { %508 = vrot.lane.b32.xlu0 %v6737_v3, %s6649_s13  ;;  %v6799_v12 = vld [vmem:[%s11912_s0 + $0x320] sm:$0xff]  ;;  %v6804_v13 = vld [vmem:[%s11912_s0 + $0x310] sm:$0xff] }
   0x8   :  { %11941 = vst [vmem:[#allocation6_spill] sm:$0xff] %v6799_v12  ;;  %v5437_v14 = vld [vmem:[%s11912_s0 + $0x340] sm:$0xff]  ;;  %v5436_v15 = vld [vmem:[%s11912_s0 + $0x330] sm:$0xff] }
   0x9   :  { %v6821_v16 = vld [vmem:[%s11912_s0 + $0x11] sm:$0xff]  ;;  %v6826_v17 = vld [vmem:[%s11912_s0 + $0x1] sm:$0xff] }
   0xa   :  { %516 = vrot.lane.b32.xlu1 %v6746_v4, %s6649_s13 }
   0xb   :  { %514 = vrot.lane.b32.xlu0 %v6751_v5, %s6649_s13 }
   0xe   :  { %520 = vrot.lane.b32.xlu1 %v6760_v6, %s6649_s13 }
   0xf   :  { %518 = vrot.lane.b32.xlu0 %v6765_v7, %s6649_s13 }
  0x12   :  { %524 = vrot.lane.b32.xlu1 %v6774_v8, %s6649_s13 }
  0x13   :  { %522 = vrot.lane.b32.xlu0 %v5430_v9, %s6649_s13 }
  0x16   :  { %528 = vrot.lane.b32.xlu1 %v6785_v10, %s6649_s13 }
  0x17   :  { %526 = vrot.lane.b32.xlu0 %v6790_v11, %s6649_s13 }
  0x1a   :  { %532 = vrot.lane.b32.xlu1 %v6799_v12, %s6649_s13 }
  0x1b   :  { %530 = vrot.lane.b32.xlu0 %v6804_v13, %s6649_s13 }
  0x1e   :  { %536 = vrot.lane.b32.xlu1 %v5437_v14, %s6649_s13 }
  0x1f   :  { %534 = vrot.lane.b32.xlu0 %v5436_v15, %s6649_s13 }
  0x20   :  { %14 = vsyncpa [#allocation4], 0  ;;  %v6835_v18 = vld [vmem:[%s11912_s0 + $0x31] sm:$0xff]  ;;  %v6840_v19 = vld [vmem:[%s11912_s0 + $0x21] sm:$0xff]  ;;  %s6650_s18 = smov 8   ;;  %s6651_s20 = smov 12  }
  0x21   :  { %v6849_v20 = vld [vmem:[%s11912_s0 + $0x51] sm:$0xff]  ;;  %v6854_v21 = vld [vmem:[%s11912_s0 + $0x41] sm:$0xff]  ;;  %s6652_s23 = smov 16   ;;  %s6653_s28 = smov 20   ;;  %vm2942_vm0 = vcmask 1043456   ;;  %vm2218_vm1 = vcmask 31744  }
  0x22   :  { %540 = vrot.lane.b32.xlu1 %v6821_v16, %s6649_s13  ;;  %v6863_v22 = vld [vmem:[%s11912_s0 + $0x71] sm:$0xff]  ;;  %v6868_v23 = vld [vmem:[%s11912_s0 + $0x61] sm:$0xff]  ;;  %s6654_s15 = smov 24   ;;  %s6655_s26 = smov 28   ;;  %vm33_vm2 = vcmask 64512   ;;  %vm2347_vm3 = vcmask 97280  }
  0x23   :  { %538 = vrot.lane.b32.xlu0 %v6826_v17, %s6649_s13  ;;  %v6877_v24 = vld [vmem:[%s11912_s0 + $0x251] sm:$0xff]  ;;  %v6882_v25 = vld [vmem:[%s11912_s0 + $0x241] sm:$0xff]  ;;  %vm2412_vm4 = vcmask 130048   ;;  %vm2477_vm5 = vcmask 162816   ;;  %vm2542_vm6 = vcmask 195584   ;;  %vm2607_vm7 = vcmask 228352  }
  0x24   :  { %v6891_v26 = vld [vmem:[%s11912_s0 + $0x271] sm:$0xff]  ;;  %v6896_v27 = vld [vmem:[%s11912_s0 + $0x261] sm:$0xff]  ;;  %vm2672_vm8 = vcmask 261120   ;;  %vm2749_vm9 = vcmask 293888   ;;  %vm35_vm10 = vcmask 57344   ;;  %s6658_s14 = smov 40  }
  0x25   :  { %v6905_v28 = vld [vmem:[%s11912_s0 + $0x291] sm:$0xff]  ;;  %v6910_v29 = vld [vmem:[%s11912_s0 + $0x281] sm:$0xff]  ;;  %s6659_s22 = smov 48   ;;  %s6660_s29 = smov 56   ;;  %vm4201_vm11 = vcmask 392192   ;;  %vm4184_vm12 = vcmask 326656  }
  0x26   :  { %544 = vrot.lane.b32.xlu1 %v6835_v18, %s6649_s13  ;;  %v6919_v30 = vld [vmem:[%s11912_s0 + $0x2b1] sm:$0xff]  ;;  %v6924_v31 = vld [vmem:[%s11912_s0 + $0x2a1] sm:$0xff]  ;;  %s6661_s10 = smov 64   ;;  %vm4218_vm13 = vcmask 457728   ;;  %vm4235_vm14 = vcmask 523264   ;;  %vm4268_vm15 = vcmask 588800  }
  0x27   :  { %542 = vrot.lane.b32.xlu0 %v6840_v19, %s6649_s13  ;;  %11942 = vst [vmem:[#allocation7_spill] sm:$0xff] %v6919_v30  ;;  %v6933_v32 = vld [vmem:[%s11912_s0 + $0x1c0] sm:$0xff]  ;;  %v6938_v33 = vld [vmem:[%s11912_s0 + $0x1b0] sm:$0xff]  ;;  %s6662_s11 = smov 80   ;;  %s6664_s19 = smov 112  }
  0x28   :  { %11943 = vst [vmem:[#allocation8_spill] sm:$0xff] %v6933_v32  ;;  %11944 = vst [vmem:[#allocation9_spill] sm:$0xff] %v6938_v33  ;;  %v6947_v34 = vld [vmem:[%s11912_s0 + $0x1e0] sm:$0xff]  ;;  %v6952_v35 = vld [vmem:[%s11912_s0 + $0x1d0] sm:$0xff] }
  0x29   :  { %v6961_v36 = vld [vmem:[%s11912_s0 + $0x200] sm:$0xff]  ;;  %v6966_v37 = vld [vmem:[%s11912_s0 + $0x1f0] sm:$0xff] }
  0x2a   :  { %548 = vrot.lane.b32.xlu1 %v6849_v20, %s6649_s13  ;;  %v6975_v38 = vld [vmem:[%s11912_s0 + $0x220] sm:$0xff]  ;;  %v6980_v39 = vld [vmem:[%s11912_s0 + $0x210] sm:$0xff] }
  0x2b   :  { %546 = vrot.lane.b32.xlu0 %v6854_v21, %s6649_s13  ;;  %v6989_v40 = vld [vmem:[%s11912_s0 + $0x400] sm:$0xff]  ;;  %v6994_v41 = vld [vmem:[%s11912_s0 + $0x3f0] sm:$0xff] }
  0x2c   :  { %v7003_v42 = vld [vmem:[%s11912_s0 + $0x420] sm:$0xff]  ;;  %v7008_v43 = vld [vmem:[%s11912_s0 + $0x410] sm:$0xff] }
  0x2d   :  { %v7017_v44 = vld [vmem:[%s11912_s0 + $0x440] sm:$0xff]  ;;  %v7022_v45 = vld [vmem:[%s11912_s0 + $0x430] sm:$0xff] }
  0x2e   :  { %552 = vrot.lane.b32.xlu1 %v6863_v22, %s6649_s13  ;;  %v7031_v46 = vld [vmem:[%s11912_s0 + $0x460] sm:$0xff]  ;;  %v7036_v47 = vld [vmem:[%s11912_s0 + $0x450] sm:$0xff] }
  0x2f   :  { %550 = vrot.lane.b32.xlu0 %v6868_v23, %s6649_s13  ;;  %11945 = vst [vmem:[#allocation10_spill] sm:$0xff] %v7031_v46  ;;  %11946 = vst [vmem:[#allocation11_spill] sm:$0xff] %v7036_v47  ;;  %v7045_v48 = vld [vmem:[%s11912_s0 + $0x131] sm:$0xff]  ;;  %v7050_v49 = vld [vmem:[%s11912_s0 + $0x121] sm:$0xff] }
  0x30   :  { %v7059_v50 = vld [vmem:[%s11912_s0 + $0x151] sm:$0xff]  ;;  %v7064_v51 = vld [vmem:[%s11912_s0 + $0x141] sm:$0xff] }
  0x31   :  { %v7073_v52 = vld [vmem:[%s11912_s0 + $0x171] sm:$0xff]  ;;  %v7078_v53 = vld [vmem:[%s11912_s0 + $0x161] sm:$0xff] }
  0x32   :  { %556 = vrot.lane.b32.xlu1 %v6877_v24, %s6649_s13  ;;  %v7087_v54 = vld [vmem:[%s11912_s0 + $0x191] sm:$0xff]  ;;  %v7092_v55 = vld [vmem:[%s11912_s0 + $0x181] sm:$0xff] }
  0x33   :  { %554 = vrot.lane.b32.xlu0 %v6882_v25, %s6649_s13  ;;  %v7101_v56 = vld [vmem:[%s11912_s0 + $0x371] sm:$0xff]  ;;  %v7106_v57 = vld [vmem:[%s11912_s0 + $0x361] sm:$0xff] }
  0x34   :  { %v7115_v58 = vld [vmem:[%s11912_s0 + $0x391] sm:$0xff]  ;;  %v7120_v59 = vld [vmem:[%s11912_s0 + $0x381] sm:$0xff] }
  0x35   :  { %v7133_v62 = vld [vmem:[%s11912_s0 + $0x3b1] sm:$0xff]  ;;  %v7138_v63 = vld [vmem:[%s11912_s0 + $0x3a1] sm:$0xff] }
  0x36   :  { %560 = vrot.lane.b32.xlu1 %v6891_v26, %s6649_s13  ;;  %v7151_v14 = vld [vmem:[%s11912_s0 + $0x3d1] sm:$0xff]  ;;  %v7156_v15 = vld [vmem:[%s11912_s0 + $0x3c1] sm:$0xff] }
  0x37   :  { %558 = vrot.lane.b32.xlu0 %v6896_v27, %s6649_s13  ;;  %11947 = vst [vmem:[#allocation12_spill] sm:$0xff] %v7151_v14 }
  0x3a   :  { %564 = vrot.lane.b32.xlu1 %v6905_v28, %s6649_s13 }
  0x3b   :  { %562 = vrot.lane.b32.xlu0 %v6910_v29, %s6649_s13 }
  0x3e   :  { %568 = vrot.lane.b32.xlu1 %v6919_v30, %s6649_s13 }
  0x3f   :  { %566 = vrot.lane.b32.xlu0 %v6924_v31, %s6649_s13 }
  0x42   :  { %572 = vrot.lane.b32.xlu1 %v6933_v32, %s6649_s13 }
  0x43   :  { %570 = vrot.lane.b32.xlu0 %v6938_v33, %s6649_s13 }
  0x46   :  { %576 = vrot.lane.b32.xlu1 %v6947_v34, %s6649_s13 }
  0x47   :  { %574 = vrot.lane.b32.xlu0 %v6952_v35, %s6649_s13 }
  0x4a   :  { %580 = vrot.lane.b32.xlu1 %v6961_v36, %s6649_s13 }
  0x4b   :  { %578 = vrot.lane.b32.xlu0 %v6966_v37, %s6649_s13 }
  0x4e   :  { %584 = vrot.lane.b32.xlu1 %v6975_v38, %s6649_s13 }
  0x4f   :  { %582 = vrot.lane.b32.xlu0 %v6980_v39, %s6649_s13 }
  0x52   :  { %588 = vrot.lane.b32.xlu1 %v6989_v40, %s6649_s13 }
  0x53   :  { %586 = vrot.lane.b32.xlu0 %v6994_v41, %s6649_s13 }
  0x56   :  { %592 = vrot.lane.b32.xlu1 %v7003_v42, %s6649_s13 }
  0x57   :  { %590 = vrot.lane.b32.xlu0 %v7008_v43, %s6649_s13 }
  0x5a   :  { %596 = vrot.lane.b32.xlu1 %v7017_v44, %s6649_s13 }
  0x5b   :  { %594 = vrot.lane.b32.xlu0 %v7022_v45, %s6649_s13 }
  0x5e   :  { %600 = vrot.lane.b32.xlu1 %v7031_v46, %s6649_s13 }
  0x5f   :  { %598 = vrot.lane.b32.xlu0 %v7036_v47, %s6649_s13 }
  0x62   :  { %604 = vrot.lane.b32.xlu1 %v7045_v48, %s6649_s13 }
  0x63   :  { %602 = vrot.lane.b32.xlu0 %v7050_v49, %s6649_s13 }
  0x66   :  { %608 = vrot.lane.b32.xlu1 %v7059_v50, %s6649_s13 }
  0x67   :  { %606 = vrot.lane.b32.xlu0 %v7064_v51, %s6649_s13 }
  0x6a   :  { %612 = vrot.lane.b32.xlu1 %v7073_v52, %s6649_s13 }
  0x6b   :  { %610 = vrot.lane.b32.xlu0 %v7078_v53, %s6649_s13 }
  0x6e   :  { %616 = vrot.lane.b32.xlu1 %v7087_v54, %s6649_s13 }
  0x6f   :  { %614 = vrot.lane.b32.xlu0 %v7092_v55, %s6649_s13 }
  0x72   :  { %620 = vrot.lane.b32.xlu1 %v7101_v56, %s6649_s13 }
  0x73   :  { %618 = vrot.lane.b32.xlu0 %v7106_v57, %s6649_s13 }
  0x74   :  { %v7122_v60 = vpop.permute.xlu1 %510 }
  0x75   :  { %v7124_v61 = vpop.permute.xlu0 %506 }
  0x76   :  { %624 = vrot.lane.b32.xlu1 %v7115_v58, %s6649_s13 }
  0x77   :  { %622 = vrot.lane.b32.xlu0 %v7120_v59, %s6649_s13 }
  0x78   :  { %v7140_v1 = vpop.permute.xlu1 %512 }
  0x79   :  { %v7142_v9 = vpop.permute.xlu0 %508 }
  0x7a   :  { %628 = vrot.lane.b32.xlu1 %v7133_v62, %s6649_s13 }
  0x7b   :  { %626 = vrot.lane.b32.xlu0 %v7138_v63, %s6649_s13 }
  0x7c   :  { %v7158_v46 = vpop.permute.xlu1 %516 }
  0x7d   :  { %11948 = vst [vmem:[#allocation13_spill] sm:$0xff] %v7158_v46  ;;  %v7160_v47 = vpop.permute.xlu0 %514 }
  0x7e   :  { %11949 = vst [vmem:[#allocation14_spill] sm:$0xff] %v7160_v47  ;;  %632 = vrot.lane.b32.xlu1 %v7151_v14, %s6649_s13 }
  0x7f   :  { %630 = vrot.lane.b32.xlu0 %v7156_v15, %s6649_s13  ;;  %s6663_s13 = smov 96  }
  0x80   :  { %v7166_v12 = vpop.permute.xlu1 %520 }
  0x81   :  { %11950 = vst [vmem:[#allocation15_spill] sm:$0xff] %v7166_v12  ;;  %v7168_v30 = vpop.permute.xlu0 %518 }
  0x82   :  { %11951 = vst [vmem:[#allocation16_spill] sm:$0xff] %v7168_v30  ;;  %732 = vrot.lane.b32.xlu1 %v6821_v16, %s6650_s18 }
  0x83   :  { %730 = vrot.lane.b32.xlu0 %v6826_v17, %s6650_s18  ;;  %v5438_v17 = vld [vmem:[%s11912_s0 + $0x120] sm:$0xff] }
  0x84   :  { %v7174_v46 = vpop.permute.xlu1 %524 }
  0x85   :  { %11952 = vst [vmem:[#allocation17_spill] sm:$0xff] %v7174_v46  ;;  %v7176_v47 = vpop.permute.xlu0 %522 }
  0x86   :  { %11953 = vst [vmem:[#allocation18_spill] sm:$0xff] %v7176_v47  ;;  %736 = vrot.lane.b32.xlu1 %v6835_v18, %s6650_s18 }
  0x87   :  { %734 = vrot.lane.b32.xlu0 %v6840_v19, %s6650_s18 }
  0x88   :  { %v7182_v12 = vpop.permute.xlu1 %528 }
  0x89   :  { %11954 = vst [vmem:[#allocation19_spill] sm:$0xff] %v7182_v12  ;;  %v7184_v30 = vpop.permute.xlu0 %526  ;;  %v5439_v12 = vld [vmem:[%s11912_s0 + $0x130] sm:$0xff] }
  0x8a   :  { %11955 = vst [vmem:[#allocation20_spill] sm:$0xff] %v7184_v30  ;;  %740 = vrot.lane.b32.xlu1 %v6849_v20, %s6650_s18 }
  0x8b   :  { %738 = vrot.lane.b32.xlu0 %v6854_v21, %s6650_s18 }
  0x8c   :  { %v7193_v46 = vpop.permute.xlu1 %532 }
  0x8d   :  { %11956 = vst [vmem:[#allocation21_spill] sm:$0xff] %v7193_v46  ;;  %v7195_v47 = vpop.permute.xlu0 %530 }
  0x8e   :  { %11957 = vst [vmem:[#allocation22_spill] sm:$0xff] %v7195_v47  ;;  %970 = vrot.lane.b32.xlu1 %v5438_v17, %s6651_s20  ;;  %v2737_v47 = vld [vmem:[%s11913_s1] sm:$0xff] }
  0x8f   :  { %742 = vrot.lane.b32.xlu0 %v6868_v23, %s6650_s18 }
  0x90   :  { %v7203_v30 = vpop.permute.xlu1 %536 }
  0x91   :  { %11958 = vst [vmem:[#allocation23_spill] sm:$0xff] %v7203_v30  ;;  %v7205_v14 = vpop.permute.xlu0 %534  ;;  %v2738_v30 = vld [vmem:[%s11913_s1 + $0x8] sm:$0xff] }
  0x92   :  { %11959 = vst [vmem:[#allocation24_spill] sm:$0xff] %v7205_v14  ;;  %1178 = vrot.lane.b32.xlu1 %v6938_v33, %s6652_s23  ;;  %v2739_v33 = vld [vmem:[%s11913_s1 + $0x10] sm:$0xff] }
  0x93   :  { %972 = vrot.lane.b32.xlu0 %v5439_v12, %s6651_s20  ;;  %v6130_v12 = vpack.c.bf16 %v2738_v30, %v2737_v47  ;;  %v5440_v47 = vld [vmem:[%s11912_s0 + $0x140] sm:$0xff] }
  0x94   :  { %v7210_v46 = vpop.permute.xlu1 %540 }
  0x95   :  { %11960 = vst [vmem:[#allocation25_spill] sm:$0xff] %v7210_v46  ;;  %v7212_v17 = vpop.permute.xlu0 %538  ;;  %6131 = vmatprep.subr.bf16.mxu0 %v6130_v12 }
  0x96   :  { %11961 = vst [vmem:[#allocation26_spill] sm:$0xff] %v7212_v17  ;;  %1386 = vrot.lane.b32.xlu1 %v7050_v49, %s6653_s28  ;;  %v7231_v17 = vld [vmem:[%s11912_s0 + $0x10] sm:$0xff]  ;;  %6133 = vmatpush3.bf16.msra.mxu0 %v6130_v12 }
  0x97   :  { %1180 = vrot.lane.b32.xlu0 %v6933_v32, %s6652_s23  ;;  %v2740_v32 = vld [vmem:[%s11913_s1 + $0x18] sm:$0xff] }
  0x98   :  { %v7224_v14 = vpop.permute.xlu1 %544  ;;  %v6134_v30 = vpack.c.bf16 %v2740_v32, %v2739_v33  ;;  %v5441_v32 = vld [vmem:[%s11912_s0 + $0x150] sm:$0xff]  ;;  %v2741_v33 = vld [vmem:[%s11913_s1 + $0x20] sm:$0xf]  ;;  %s6656_s1 = smov 32  }
  0x99   :  { %11962 = vst [vmem:[#allocation27_spill] sm:$0xff] %v7224_v14  ;;  %v7226_v46 = vpop.permute.xlu0 %542 }
  0x9a   :  { %11963 = vst [vmem:[#allocation28_spill] sm:$0xff] %v7226_v46  ;;  %1610 = vrot.lane.b32.xlu1 %v7231_v17, %s6654_s15  ;;  %6135 = vmatprep.subr.bf16.mxu0 %v6134_v30  ;;  %v7253_v46 = vld [vmem:[%s11912_s0 + $0x20] sm:$0xff] }
  0x9b   :  { %1388 = vrot.lane.b32.xlu0 %v7045_v48, %s6653_s28  ;;  %6137 = vmatpush3.bf16.msra.mxu0 %v6134_v30 }
  0x9c   :  { %v7246_v12 = vpop.permute.xlu1 %548  ;;  %5979 = vmatprep.subr.msk.mxu0 %vm2942_vm0, %v2741_v33 }
  0x9d   :  { %11964 = vst [vmem:[#allocation29_spill] sm:$0xff] %v7246_v12  ;;  %v7248_v14 = vpop.permute.xlu0 %546 }
  0x9e   :  { %11965 = vst [vmem:[#allocation30_spill] sm:$0xff] %v7248_v14  ;;  %1612 = vrot.lane.b32.xlu1 %v7253_v46, %s6654_s15 }
  0x9f   :  { %974 = vrot.lane.b32.xlu0 %v5440_v47, %s6651_s20  ;;  %5980 = vmatpush3.msk.msra.mxu0 %vm2942_vm0, %v2741_v33  ;;  %vm4481_vm0 = vcmask 1041409  }
  0xa0   :  { %v7264_v12 = vpop.permute.xlu1 %552 }
  0xa1   :  { %11966 = vst [vmem:[#allocation31_spill] sm:$0xff] %v7264_v12  ;;  %v7266_v14 = vpop.permute.xlu0 %550 }
  0xa2   :  { %11967 = vst [vmem:[#allocation32_spill] sm:$0xff] %v7266_v14  ;;  %976 = vrot.lane.b32.xlu1 %v5441_v32, %s6651_s20 }
  0xa3   :  { %1818 = vrot.lane.b32.xlu0 %v6737_v3, %s6655_s26 }
  0xa4   :  { %v7271_v30 = vpop.permute.xlu1 %556 }
  0xa5   :  { %v7273_v47 = vpop.permute.xlu0 %554 }
  0xa6   :  { %1820 = vrot.lane.b32.xlu1 %v6721_v0, %s6655_s26 }
  0xa7   :  { %1182 = vrot.lane.b32.xlu0 %v6952_v35, %s6652_s23 }
  0xa8   :  { %v7279_v12 = vpop.permute.xlu1 %560 }
  0xa9   :  { %v7281_v14 = vpop.permute.xlu0 %558 }
  0xaa   :  { %1184 = vrot.lane.b32.xlu1 %v6947_v34, %s6652_s23  ;;  %v7302_v34 = vld [vmem:[%s11912_s0 + $0x30] sm:$0xff] }
  0xab   :  { %2026 = vrot.lane.b32.xlu0 %v6821_v16, %s6656_s1  ;;  %v5442_v16 = vld [vmem:[%s11912_s0 + $0x160] sm:$0xff] }
  0xac   :  { %v7287_v3 = vpop.permute.xlu1 %564 }
  0xad   :  { %11968 = vst [vmem:[#allocation33_spill] sm:$0xff] %v7287_v3  ;;  %v7289_v32 = vpop.permute.xlu0 %562 }
  0xae   :  { %11969 = vst [vmem:[#allocation34_spill] sm:$0xff] %v7289_v32  ;;  %2028 = vrot.lane.b32.xlu1 %v6840_v19, %s6656_s1 }
  0xaf   :  { %1390 = vrot.lane.b32.xlu0 %v7064_v51, %s6653_s28 }
  0xb0   :  { %v7295_v0 = vpop.permute.xlu1 %568 }
  0xb1   :  { %11970 = vst [vmem:[#allocation35_spill] sm:$0xff] %v7295_v0  ;;  %v7297_v33 = vpop.permute.xlu0 %566 }
  0xb2   :  { %11971 = vst [vmem:[#allocation36_spill] sm:$0xff] %v7297_v33  ;;  %1614 = vrot.lane.b32.xlu1 %v7302_v34, %s6654_s15  ;;  %v7318_v33 = vld [vmem:[%s11912_s0 + $0x40] sm:$0xff] }
  0xb3   :  { %1392 = vrot.lane.b32.xlu0 %v7059_v50, %s6653_s28  ;;  %v5443_v50 = vld [vmem:[%s11912_s0 + $0x170] sm:$0xff] }
  0xb4   :  { %v7311_v19 = vpop.permute.xlu1 %572 }
  0xb5   :  { %11972 = vst [vmem:[#allocation37_spill] sm:$0xff] %v7311_v19  ;;  %v7313_v0 = vpop.permute.xlu0 %570 }
  0xb6   :  { %11973 = vst [vmem:[#allocation38_spill] sm:$0xff] %v7313_v0  ;;  %1616 = vrot.lane.b32.xlu1 %v7318_v33, %s6654_s15 }
  0xb7   :  { %978 = vrot.lane.b32.xlu0 %v5442_v16, %s6651_s20 }
  0xb8   :  { %v7326_v3 = vpop.permute.xlu1 %576 }
  0xb9   :  { %11974 = vst [vmem:[#allocation39_spill] sm:$0xff] %v7326_v3  ;;  %v7328_v32 = vpop.permute.xlu0 %574 }
  0xba   :  { %11975 = vst [vmem:[#allocation40_spill] sm:$0xff] %v7328_v32  ;;  %980 = vrot.lane.b32.xlu1 %v5443_v50, %s6651_s20  ;;  %v12028_v32 = vld [vmem:[#allocation29_spill] sm:$0xff] }
  0xbb   :  { %1822 = vrot.lane.b32.xlu0 %v6732_v2, %s6655_s26 }
  0xbc   :  { %v7333_v19 = vpop.permute.xlu1 %580 }
  0xbd   :  { %11976 = vst [vmem:[#allocation41_spill] sm:$0xff] %v7333_v19  ;;  %v7335_v0 = vpop.permute.xlu0 %578 }
  0xbe   :  { %11977 = vst [vmem:[#allocation42_spill] sm:$0xff] %v7335_v0  ;;  %1824 = vrot.lane.b32.xlu1 %v6751_v5, %s6655_s26 }
  0xbf   :  { %1186 = vrot.lane.b32.xlu0 %v6966_v37, %s6652_s23 }
  0xc0   :  { %v7341_v16 = vpop.permute.xlu1 %584 }
  0xc1   :  { %11978 = vst [vmem:[#allocation43_spill] sm:$0xff] %v7341_v16  ;;  %v7343_v3 = vpop.permute.xlu0 %582 }
  0xc2   :  { %11979 = vst [vmem:[#allocation44_spill] sm:$0xff] %v7343_v3  ;;  %1188 = vrot.lane.b32.xlu1 %v6961_v36, %s6652_s23  ;;  %v7364_v36 = vld [vmem:[%s11912_s0 + $0x50] sm:$0xff] }
  0xc3   :  { %2030 = vrot.lane.b32.xlu0 %v6835_v18, %s6656_s1 }
  0xc4   :  { %v7349_v2 = vpop.permute.xlu1 %588 }
  0xc5   :  { %11980 = vst [vmem:[#allocation45_spill] sm:$0xff] %v7349_v2  ;;  %v7351_v50 = vpop.permute.xlu0 %586 }
  0xc6   :  { %11981 = vst [vmem:[#allocation46_spill] sm:$0xff] %v7351_v50  ;;  %2032 = vrot.lane.b32.xlu1 %v6854_v21, %s6656_s1 }
  0xc7   :  { %1394 = vrot.lane.b32.xlu0 %v7078_v53, %s6653_s28  ;;  %v5444_v53 = vld [vmem:[%s11912_s0 + $0x180] sm:$0xff] }
  0xc8   :  { %v7357_v5 = vpop.permute.xlu1 %592 }
  0xc9   :  { %11982 = vst [vmem:[#allocation47_spill] sm:$0xff] %v7357_v5  ;;  %v7359_v37 = vpop.permute.xlu0 %590 }
  0xca   :  { %11983 = vst [vmem:[#allocation48_spill] sm:$0xff] %v7359_v37  ;;  %1618 = vrot.lane.b32.xlu1 %v7364_v36, %s6654_s15 }
  0xcb   :  { %1396 = vrot.lane.b32.xlu0 %v7073_v52, %s6653_s28  ;;  %v7387_v52 = vld [vmem:[%s11912_s0 + $0x60] sm:$0xff] }
  0xcc   :  { %v7370_v18 = vpop.permute.xlu1 %596 }
  0xcd   :  { %11984 = vst [vmem:[#allocation49_spill] sm:$0xff] %v7370_v18  ;;  %v7372_v21 = vpop.permute.xlu0 %594 }
  0xce   :  { %11985 = vst [vmem:[#allocation50_spill] sm:$0xff] %v7372_v21  ;;  %982 = vrot.lane.b32.xlu1 %v5444_v53, %s6651_s20 }
  0xcf   :  { %744 = vrot.lane.b32.xlu0 %v6863_v22, %s6650_s18 }
  0xd0   :  { %v7380_v5 = vpop.permute.xlu1 %600 }
  0xd1   :  { %11986 = vst [vmem:[#allocation51_spill] sm:$0xff] %v7380_v5  ;;  %v7382_v37 = vpop.permute.xlu0 %598  ;;  %v5445_v5 = vld [vmem:[%s11912_s0 + $0x190] sm:$0xff] }
  0xd2   :  { %11987 = vst [vmem:[#allocation52_spill] sm:$0xff] %v7382_v37  ;;  %1826 = vrot.lane.b32.xlu1 %v6746_v4, %s6655_s26 }
  0xd3   :  { %1620 = vrot.lane.b32.xlu0 %v7387_v52, %s6654_s15 }
  0xd4   :  { %v7393_v18 = vpop.permute.xlu1 %604 }
  0xd5   :  { %11988 = vst [vmem:[#allocation53_spill] sm:$0xff] %v7393_v18  ;;  %v7395_v53 = vpop.permute.xlu0 %602 }
  0xd6   :  { %11989 = vst [vmem:[#allocation54_spill] sm:$0xff] %v7395_v53  ;;  %1190 = vrot.lane.b32.xlu1 %v6980_v39, %s6652_s23 }
  0xd7   :  { %984 = vrot.lane.b32.xlu0 %v5445_v5, %s6651_s20 }
  0xd8   :  { %v7403_v37 = vpop.permute.xlu1 %608 }
  0xd9   :  { %11990 = vst [vmem:[#allocation55_spill] sm:$0xff] %v7403_v37  ;;  %v7405_v21 = vpop.permute.xlu0 %606 }
  0xda   :  { %11991 = vst [vmem:[#allocation56_spill] sm:$0xff] %v7405_v21  ;;  %2034 = vrot.lane.b32.xlu1 %v6849_v20, %s6656_s1  ;;  %v7520_v21 = vld [vmem:[%s11912_s0 + $0x260] sm:$0xff] }
  0xdb   :  { %1828 = vrot.lane.b32.xlu0 %v6765_v7, %s6655_s26 }
  0xdc   :  { %v7411_v4 = vpop.permute.xlu1 %612 }
  0xdd   :  { %11992 = vst [vmem:[#allocation57_spill] sm:$0xff] %v7411_v4  ;;  %v7413_v18 = vpop.permute.xlu0 %610  ;;  %v5448_v4 = vld [vmem:[%s11912_s0 + $0x380] sm:$0xff] }
  0xde   :  { %11993 = vst [vmem:[#allocation58_spill] sm:$0xff] %v7413_v18  ;;  %1398 = vrot.lane.b32.xlu1 %v7092_v55, %s6653_s28  ;;  %v7434_v55 = vld [vmem:[%s11912_s0 + $0x70] sm:$0xff] }
  0xdf   :  { %1192 = vrot.lane.b32.xlu0 %v6975_v38, %s6652_s23 }
  0xe0   :  { %v7419_v39 = vpop.permute.xlu1 %616 }
  0xe1   :  { %11994 = vst [vmem:[#allocation59_spill] sm:$0xff] %v7419_v39  ;;  %v7421_v5 = vpop.permute.xlu0 %614 }
  0xe2   :  { %11995 = vst [vmem:[#allocation60_spill] sm:$0xff] %v7421_v5  ;;  %746 = vrot.lane.b32.xlu1 %v6882_v25, %s6650_s18 }
  0xe3   :  { %2036 = vrot.lane.b32.xlu0 %v6868_v23, %s6656_s1  ;;  %v5446_v23 = vld [vmem:[%s11912_s0 + $0x360] sm:$0xff] }
  0xe4   :  { %v7427_v7 = vpop.permute.xlu1 %620 }
  0xe5   :  { %11996 = vst [vmem:[#allocation61_spill] sm:$0xff] %v7427_v7  ;;  %v7429_v20 = vpop.permute.xlu0 %618 }
  0xe6   :  { %11997 = vst [vmem:[#allocation62_spill] sm:$0xff] %v7429_v20  ;;  %1622 = vrot.lane.b32.xlu1 %v7434_v55, %s6654_s15  ;;  %v5525_v20 = vld [vmem:[%s11912_s0 + $0x80] sm:$0xff] }
  0xe7   :  { %1400 = vrot.lane.b32.xlu0 %v7087_v54, %s6653_s28 }
  0xe8   :  { %v7440_v38 = vpop.permute.xlu1 %624 }
  0xe9   :  { %11998 = vst [vmem:[#allocation63_spill] sm:$0xff] %v7440_v38  ;;  %v7442_v25 = vpop.permute.xlu0 %622 }
  0xea   :  { %11999 = vst [vmem:[#allocation64_spill] sm:$0xff] %v7442_v25  ;;  %986 = vrot.lane.b32.xlu1 %v5446_v23, %s6651_s20  ;;  %v5447_v23 = vld [vmem:[%s11912_s0 + $0x370] sm:$0xff] }
  0xeb   :  { %748 = vrot.lane.b32.xlu0 %v6877_v24, %s6650_s18 }
  0xec   :  { %v7453_v7 = vpop.permute.xlu1 %628 }
  0xed   :  { %12000 = vst [vmem:[#allocation65_spill] sm:$0xff] %v7453_v7  ;;  %v7455_v54 = vpop.permute.xlu0 %626  ;;  %v7473_v7 = vld [vmem:[%s11912_s0 + $0x110] sm:$0xff] }
  0xee   :  { %12001 = vst [vmem:[#allocation66_spill] sm:$0xff] %v7455_v54  ;;  %1830 = vrot.lane.b32.xlu1 %v6760_v6, %s6655_s26 }
  0xef   :  { %1624 = vrot.lane.b32.xlu0 %v5525_v20, %s6654_s15 }
  0xf0   :  { %v7460_v25 = vpop.permute.xlu1 %632 }
  0xf1   :  { %12002 = vst [vmem:[#allocation67_spill] sm:$0xff] %v7460_v25  ;;  %v7462_v38 = vpop.permute.xlu0 %630 }
  0xf2   :  { %12003 = vst [vmem:[#allocation68_spill] sm:$0xff] %v7462_v38  ;;  %1194 = vrot.lane.b32.xlu1 %v6994_v41, %s6652_s23  ;;  %v7490_v41 = vld [vmem:[%s11912_s0 + $0x81] sm:$0xff] }
  0xf3   :  { %988 = vrot.lane.b32.xlu0 %v5447_v23, %s6651_s20 }
  0xf4   :  { %v733_v6 = vpop.permute.xlu1 %732 }
  0xf5   :  { %v731_v20 = vpop.permute.xlu0 %730 }
  0xf6   :  { %2038 = vrot.lane.b32.xlu1 %v6863_v22, %s6656_s1 }
  0xf7   :  { %1832 = vrot.lane.b32.xlu0 %v7473_v7, %s6655_s26 }
  0xf8   :  { %v7479_v38 = vpop.permute.xlu1 %736 }
  0xf9   :  { %v7481_v25 = vpop.permute.xlu0 %734 }
  0xfa   :  { %1402 = vrot.lane.b32.xlu1 %v7106_v57, %s6653_s28 }
  0xfb   :  { %1196 = vrot.lane.b32.xlu0 %v6989_v40, %s6652_s23  ;;  %v7505_v40 = vld [vmem:[%s11912_s0 + $0x250] sm:$0xff] }
  0xfc   :  { %v7492_v23 = vpop.permute.xlu1 %740 }
  0xfd   :  { %v7494_v22 = vpop.permute.xlu0 %738 }
  0xfe   :  { %750 = vrot.lane.b32.xlu1 %v6896_v27, %s6650_s18 }
  0xff   :  { %2040 = vrot.lane.b32.xlu0 %v7490_v41, %s6656_s1 }
 0x100   :  { %v971_v54 = vpop.permute.xlu1 %970 }
 0x101   :  { %v7500_v57 = vpop.permute.xlu0 %742 }
 0x102   :  { %1626 = vrot.lane.b32.xlu1 %v7505_v40, %s6654_s15 }
 0x103   :  { %1404 = vrot.lane.b32.xlu0 %v7101_v56, %s6653_s28 }
 0x104   :  { %v1179_v39 = vpop.permute.xlu1 %1178 }
 0x105   :  { %v973_v5 = vpop.permute.xlu0 %972 }
 0x106   :  { %990 = vrot.lane.b32.xlu1 %v5448_v4, %s6651_s20  ;;  %v5449_v4 = vld [vmem:[%s11912_s0 + $0x390] sm:$0xff] }
 0x107   :  { %752 = vrot.lane.b32.xlu0 %v6891_v26, %s6650_s18 }
 0x108   :  { %v1387_v18 = vpop.permute.xlu1 %1386 }
 0x109   :  { %v1181_v37 = vpop.permute.xlu0 %1180 }
 0x10a   :  { %1834 = vrot.lane.b32.xlu1 %v6774_v8, %s6655_s26  ;;  %v179_v8 = vld [vmem:[%s11912_s0] sm:$0xff] }
 0x10b   :  { %1628 = vrot.lane.b32.xlu0 %v7520_v21, %s6654_s15 }
 0x10c   :  { %v1611_v56 = vpop.permute.xlu1 %1610 }
 0x10d   :  { %v1389_v53 = vpop.permute.xlu0 %1388 }
 0x10e   :  { %1198 = vrot.lane.b32.xlu1 %v7008_v43, %s6652_s23 }
 0x10f   :  { %992 = vrot.lane.b32.xlu0 %v5449_v4, %s6651_s20  ;;  %v2219_v4 = vsel %vm2218_vm1, %v179_v8, %v7124_v61  ;;  %v2220_v61 = vsel %vm2218_vm1, %v7231_v17, %v7142_v9  ;;  %v7567_v9 = vld [vmem:[%s11912_s0 + $0x270] sm:$0xff] }
 0x110   :  { %v1613_v2 = vpop.permute.xlu1 %1612 }
 0x111   :  { %v7532_v50 = vpop.permute.xlu0 %974 }
 0x112   :  { %2042 = vrot.lane.b32.xlu1 %v6877_v24, %s6656_s1 }
 0x113   :  { %1836 = vrot.lane.b32.xlu0 %v6790_v11, %s6655_s26  ;;  %v2283_v11 = vsel %vm33_vm2, %v2219_v4, %v731_v20 }
 0x114   :  { %v7541_v16 = vpop.permute.xlu1 %976  ;;  %v2348_v24 = vsel %vm2347_vm3, %v2283_v11, %v971_v54 }
 0x115   :  { %v1819_v43 = vpop.permute.xlu0 %1818  ;;  %v2413_v0 = vsel %vm2412_vm4, %v2348_v24, %v1179_v39  ;;  %v5451_v24 = vld [vmem:[%s11912_s0 + $0x3b0] sm:$0xff] }
 0x116   :  { %1406 = vrot.lane.b32.xlu1 %v7120_v59, %s6653_s28  ;;  %v2478_v59 = vsel %vm2477_vm5, %v2413_v0, %v1387_v18 }
 0x117   :  { %1200 = vrot.lane.b32.xlu0 %v7003_v42, %s6652_s23  ;;  %v2284_v42 = vsel %vm33_vm2, %v2220_v61, %v733_v6  ;;  %v2543_v54 = vsel %vm2542_vm6, %v2478_v59, %v1611_v56 }
 0x118   :  { %v1821_v3 = vpop.permute.xlu1 %1820  ;;  %v2349_v39 = vsel %vm2347_vm3, %v2284_v42, %v973_v5  ;;  %v2608_v20 = vsel %vm2607_vm7, %v2543_v54, %v1819_v43 }
 0x119   :  { %v1183_v19 = vpop.permute.xlu0 %1182  ;;  %v2414_v17 = vsel %vm2412_vm4, %v2349_v39, %v1181_v37  ;;  %v5450_v37 = vld [vmem:[%s11912_s0 + $0x3a0] sm:$0xff] }
 0x11a   :  { %754 = vrot.lane.b32.xlu1 %v6910_v29, %s6650_s18  ;;  %v2479_v0 = vsel %vm2477_vm5, %v2414_v17, %v1389_v53 }
 0x11b   :  { %2044 = vrot.lane.b32.xlu0 %v6896_v27, %s6656_s1  ;;  %v2544_v18 = vsel %vm2542_vm6, %v2479_v0, %v1613_v2 }
 0x11c   :  { %v1185_v8 = vpop.permute.xlu1 %1184  ;;  %v2609_v5 = vsel %vm2607_vm7, %v2544_v18, %v1821_v3  ;;  %v7590_v3 = vld [vmem:[%s11912_s0 + $0x280] sm:$0xff] }
 0x11d   :  { %v2027_v4 = vpop.permute.xlu0 %2026  ;;  %v5452_v18 = vld [vmem:[%s11912_s0 + $0x3c0] sm:$0xff] }
 0x11e   :  { %v2673_v27 = vsel %vm2672_vm8, %v2608_v20, %v2027_v4  ;;  %1630 = vrot.lane.b32.xlu1 %v7567_v9, %s6654_s15 }
 0x11f   :  { %1408 = vrot.lane.b32.xlu0 %v7115_v58, %s6653_s28  ;;  %5981 = vmatprep.mubr.msk.f32.mxu0 %vm2749_vm9, %v2673_v27 }
 0x120   :  { %v2029_v6 = vpop.permute.xlu1 %2028 }
 0x121   :  { %v1391_v56 = vpop.permute.xlu0 %1390  ;;  %v2674_v53 = vsel %vm2672_vm8, %v2609_v5, %v2029_v6  ;;  %v12004_v5 = vld [vmem:[#allocation7_spill] sm:$0xff] }
 0x122   :  { %994 = vrot.lane.b32.xlu1 %v5450_v37, %s6651_s20  ;;  %5982 = vmatmul.mubr.msk.f32.vlgmr.msra.gmra.mrb[0].mxu0 %vm2749_vm9, %v2674_v53  ;;  %v12005_v37 = vld [vmem:[#allocation6_spill] sm:$0xff] }
 0x123   :  { %756 = vrot.lane.b32.xlu0 %v6905_v28, %s6650_s18 }
 0x124   :  { %v1615_v58 = vpop.permute.xlu1 %1614 }
 0x125   :  { %v1393_v2 = vpop.permute.xlu0 %1392 }
 0x126   :  { %1838 = vrot.lane.b32.xlu1 %v6785_v10, %s6655_s26  ;;  %v2221_v10 = vsel %vm2218_vm1, %v7253_v46, %v7122_v60  ;;  %v2222_v46 = vsel %vm2218_vm1, %v7302_v34, %v7140_v1 }
 0x127   :  { %1632 = vrot.lane.b32.xlu0 %v7590_v3, %s6654_s15  ;;  %v2285_v42 = vsel %vm33_vm2, %v2221_v10, %v7481_v25 }
 0x128   :  { %v1617_v43 = vpop.permute.xlu1 %1616 }
 0x129   :  { %v979_v11 = vpop.permute.xlu0 %978 }
 0x12a   :  { %1202 = vrot.lane.b32.xlu1 %v7022_v45, %s6652_s23  ;;  %v2350_v45 = vsel %vm2347_vm3, %v2285_v42, %v7532_v50  ;;  %v7684_v42 = vld [vmem:[%s11912_s0 + $0x330] sm:$0xff] }
 0x12b   :  { %996 = vrot.lane.b32.xlu0 %v5451_v24, %s6651_s20  ;;  %v2415_v20 = vsel %vm2412_vm4, %v2350_v45, %v1183_v19 }
 0x12c   :  { %v7602_v61 = vpop.permute.xlu1 %980  ;;  %v2480_v60 = vsel %vm2477_vm5, %v2415_v20, %v1391_v56 }
 0x12d   :  { %v1823_v59 = vpop.permute.xlu0 %1822 }
 0x12e   :  { %2046 = vrot.lane.b32.xlu1 %v6891_v26, %s6656_s1  ;;  %v2545_v26 = vsel %vm2542_vm6, %v2480_v60, %v1615_v58 }
 0x12f   :  { %1840 = vrot.lane.b32.xlu0 %v6804_v13, %s6655_s26  ;;  %v2286_v13 = vsel %vm33_vm2, %v2222_v46, %v7479_v38  ;;  %v2610_v50 = vsel %vm2607_vm7, %v2545_v26, %v1823_v59  ;;  %v12007_v59 = vld [vmem:[#allocation11_spill] sm:$0xff] }
 0x130   :  { %v1825_v54 = vpop.permute.xlu1 %1824  ;;  %v2351_v19 = vsel %vm2347_vm3, %v2286_v13, %v7541_v16 }
 0x131   :  { %v1187_v39 = vpop.permute.xlu0 %1186  ;;  %v2416_v34 = vsel %vm2412_vm4, %v2351_v19, %v1185_v8  ;;  %v7643_v8 = vld [vmem:[%s11912_s0 + $0x290] sm:$0xff]  ;;  %v12008_v19 = vld [vmem:[#allocation13_spill] sm:$0xff] }
 0x132   :  { %1410 = vrot.lane.b32.xlu1 %v7138_v63, %s6653_s28  ;;  %v2481_v63 = vsel %vm2477_vm5, %v2416_v34, %v1393_v2  ;;  %v5453_v2 = vld [vmem:[%s11912_s0 + $0x3d0] sm:$0xff] }
 0x133   :  { %1204 = vrot.lane.b32.xlu0 %v7017_v44, %s6652_s23  ;;  %v2546_v44 = vsel %vm2542_vm6, %v2481_v63, %v1617_v43  ;;  %v12006_v43 = vld [vmem:[#allocation14_spill] sm:$0xff] }
 0x134   :  { %v1189_v25 = vpop.permute.xlu1 %1188  ;;  %v2611_v16 = vsel %vm2607_vm7, %v2546_v44, %v1825_v54  ;;  %v2223_v24 = vsel %vm2218_vm1, %v7318_v33, %v12006_v43  ;;  %v12012_v43 = vld [vmem:[#allocation16_spill] sm:$0xff] }
 0x135   :  { %v2031_v1 = vpop.permute.xlu0 %2030  ;;  %v2287_v10 = vsel %vm33_vm2, %v2223_v24, %v7494_v22  ;;  %v2225_v24 = vsel %vm2218_vm1, %v7387_v52, %v12012_v43 }
 0x136   :  { %v2675_v4 = vsel %vm2672_vm8, %v2610_v50, %v2031_v1  ;;  %758 = vrot.lane.b32.xlu1 %v6924_v31, %s6650_s18  ;;  %v2352_v45 = vsel %vm2347_vm3, %v2287_v10, %v979_v11  ;;  %v5486_v1 = vld [vmem:[%s11912_s0 + $0x91] sm:$0xff]  ;;  %v2289_v10 = vsel %vm33_vm2, %v2225_v24, %v7500_v57 }
 0x137   :  { %2048 = vrot.lane.b32.xlu0 %v6910_v29, %s6656_s1  ;;  %5984 = vmatprep.mubr.msk.f32.mxu0 %vm2749_vm9, %v2675_v4  ;;  %v2417_v33 = vsel %vm2412_vm4, %v2352_v45, %v1187_v39  ;;  %v2224_v39 = vsel %vm2218_vm1, %v7364_v36, %v12008_v19  ;;  %v7769_v45 = vld [vmem:[%s11912_s0 + $0x2b1] sm:$0xff] }
 0x138   :  { %v2033_v38 = vpop.permute.xlu1 %2032  ;;  %v2288_v50 = vsel %vm33_vm2, %v2224_v39, %v7492_v23  ;;  %v12014_v19 = vld [vmem:[#allocation15_spill] sm:$0xff] }
 0x139   :  { %v1395_v17 = vpop.permute.xlu0 %1394  ;;  %v2676_v27 = vsel %vm2672_vm8, %v2611_v16, %v2033_v38  ;;  %v2353_v34 = vsel %vm2347_vm3, %v2288_v50, %v7602_v61  ;;  %v7725_v61 = vld [vmem:[%s11912_s0 + $0x2b0] sm:$0xff]  ;;  %v2226_v39 = vsel %vm2218_vm1, %v7434_v55, %v12014_v19  ;;  %v12016_v19 = vld [vmem:[#allocation17_spill] sm:$0xff] }
 0x13a   :  { %1634 = vrot.lane.b32.xlu1 %v7643_v8, %s6654_s15  ;;  %5985 = vmatmul.mubr.msk.f32.gmra.mrb[2].mxu0 %vm2749_vm9, %v2676_v27  ;;  %v2482_v46 = vsel %vm2477_vm5, %v2417_v33, %v1395_v17  ;;  %v2418_v63 = vsel %vm2412_vm4, %v2353_v34, %v1189_v25  ;;  %v12010_v17 = vld [vmem:[#allocation12_spill] sm:$0xff] }
 0x13b   :  { %1412 = vrot.lane.b32.xlu0 %v7133_v62, %s6653_s28  ;;  %v7664_v62 = vld [vmem:[%s11912_s0 + $0x2a0] sm:$0xff]  ;;  %v7774_v33 = vld [vmem:[%s11912_s0 + $0x350] sm:$0xff] }
 0x13c   :  { %v1619_v29 = vpop.permute.xlu1 %1618  ;;  %v7806_v50 = vld [vmem:[%s11912_s0 + $0xb1] sm:$0xff] }
 0x13d   :  { %v1397_v0 = vpop.permute.xlu0 %1396  ;;  %v2547_v22 = vsel %vm2542_vm6, %v2482_v46, %v1619_v29 }
 0x13e   :  { %998 = vrot.lane.b32.xlu1 %v5452_v18, %s6651_s20  ;;  %v7745_v18 = vld [vmem:[%s11912_s0 + $0x340] sm:$0xff] }
 0x13f   :  { %760 = vrot.lane.b32.xlu0 %v12004_v5, %s6650_s18  ;;  %v5533_v5 = vld [vmem:[%s11912_s0 + $0x2c0] sm:$0xff] }
 0x140   :  { %v7657_v6 = vpop.permute.xlu1 %982 }
 0x141   :  { %v7659_v56 = vpop.permute.xlu0 %744  ;;  %v2354_v52 = vsel %vm2347_vm3, %v2289_v10, %v7657_v6  ;;  %v5502_v6 = vld [vmem:[%s11912_s0 + $0x1b1] sm:$0xff] }
 0x142   :  { %1842 = vrot.lane.b32.xlu1 %v12005_v37, %s6655_s26 }
 0x143   :  { %1636 = vrot.lane.b32.xlu0 %v7664_v62, %s6654_s15 }
 0x144   :  { %v1827_v53 = vpop.permute.xlu1 %1826 }
 0x145   :  { %v1621_v58 = vpop.permute.xlu0 %1620  ;;  %v2612_v60 = vsel %vm2607_vm7, %v2547_v22, %v1827_v53 }
 0x146   :  { %1206 = vrot.lane.b32.xlu1 %v12007_v59, %s6652_s23  ;;  %v12013_v59 = vld [vmem:[#allocation8_spill] sm:$0xff] }
 0x147   :  { %1000 = vrot.lane.b32.xlu0 %v5453_v2, %s6651_s20 }
 0x148   :  { %v1191_v54 = vpop.permute.xlu1 %1190 }
 0x149   :  { %v7687_v20 = vpop.permute.xlu0 %984  ;;  %v2419_v22 = vsel %vm2412_vm4, %v2354_v52, %v1191_v54  ;;  %v6450_v52 = vld [vmem:[%s11912_s0 + $0x1e0] sm:$0xff] }
 0x14a   :  { %2050 = vrot.lane.b32.xlu1 %v6905_v28, %s6656_s1  ;;  %v12009_v28 = vld [vmem:[#allocation10_spill] sm:$0xff] }
 0x14b   :  { %1844 = vrot.lane.b32.xlu0 %v7684_v42, %s6655_s26 }
 0x14c   :  { %v2035_v13 = vpop.permute.xlu1 %2034 }
 0x14d   :  { %v1829_v26 = vpop.permute.xlu0 %1828  ;;  %v2677_v11 = vsel %vm2672_vm8, %v2612_v60, %v2035_v13 }
 0x14e   :  { %1414 = vrot.lane.b32.xlu1 %v7156_v15, %s6653_s28  ;;  %5987 = vmatprep.mubr.msk.f32.mxu0 %vm2749_vm9, %v2677_v11  ;;  %v2483_v15 = vsel %vm2477_vm5, %v2418_v63, %v1397_v0  ;;  %v12011_v0 = vld [vmem:[#allocation9_spill] sm:$0xff] }
 0x14f   :  { %1208 = vrot.lane.b32.xlu0 %v12009_v28, %s6652_s23  ;;  %v2548_v23 = vsel %vm2542_vm6, %v2483_v15, %v1621_v58  ;;  %v2290_v28 = vsel %vm33_vm2, %v2226_v39, %v7659_v56  ;;  %v2228_v39 = vsel %vm2218_vm1, %v7505_v40, %v12016_v19 }
 0x150   :  { %v1399_v4 = vpop.permute.xlu1 %1398  ;;  %v2613_v44 = vsel %vm2607_vm7, %v2548_v23, %v1829_v26  ;;  %v2355_v55 = vsel %vm2347_vm3, %v2290_v28, %v7687_v20  ;;  %v5503_v20 = vld [vmem:[%s11912_s0 + $0x1c1] sm:$0xff]  ;;  %v8053_v28 = vld [vmem:[%s11912_s0 + $0x151] sm:$0xff] }
 0x151   :  { %v1193_v36 = vpop.permute.xlu0 %1192  ;;  %v2484_v57 = vsel %vm2477_vm5, %v2419_v22, %v1399_v4 }
 0x152   :  { %762 = vrot.lane.b32.xlu1 %v5486_v1, %s6650_s18  ;;  %v7811_v1 = vld [vmem:[%s11912_s0 + $0x2c1] sm:$0xff]  ;;  %v2420_v56 = vsel %vm2412_vm4, %v2355_v55, %v1193_v36 }
 0x153   :  { %2052 = vrot.lane.b32.xlu0 %v6924_v31, %s6656_s1  ;;  %v7736_v31 = vld [vmem:[%s11912_s0 + $0xa1] sm:$0xff] }
 0x154   :  { %v7720_v16 = vpop.permute.xlu1 %746 }
 0x155   :  { %v2037_v38 = vpop.permute.xlu0 %2036 }
 0x156   :  { %v2678_v25 = vsel %vm2672_vm8, %v2613_v44, %v2037_v38  ;;  %1638 = vrot.lane.b32.xlu1 %v7725_v61, %s6654_s15  ;;  %v7836_v38 = vld [vmem:[%s11912_s0 + $0xa0] sm:$0xff] }
 0x157   :  { %1416 = vrot.lane.b32.xlu0 %v12010_v17, %s6653_s28  ;;  %5988 = vmatmul.mubr.msk.f32.gmra.mrb[4].mxu0 %vm2749_vm9, %v2678_v25  ;;  %v7845_v25 = vld [vmem:[%s11912_s0 + $0xc1] sm:$0xff] }
 0x158   :  { %v1623_v27 = vpop.permute.xlu1 %1622 }
 0x159   :  { %v1401_v29 = vpop.permute.xlu0 %1400  ;;  %v2549_v60 = vsel %vm2542_vm6, %v2484_v57, %v1623_v27 }
 0x15a   :  { %1002 = vrot.lane.b32.xlu1 %v12011_v0, %s6651_s20  ;;  %v2485_v4 = vsel %vm2477_vm5, %v2420_v56, %v1401_v29  ;;  %v11929_v29 = vmov 0.0  }
 0x15b   :  { %764 = vrot.lane.b32.xlu0 %v7736_v31, %s6650_s18  ;;  %91 = vst.msk [vmem:[#allocation2 + $0x1c0] sm:$0xff] %vm33_vm2, %v11929_v29  ;;  %34 = vst.msk [vmem:[#allocation2] sm:$0xff] %vm33_vm2, %v11929_v29 }
 0x15c   :  { %v7750_v37 = vpop.permute.xlu1 %986  ;;  %37 = vst.msk [vmem:[#allocation2 + $0x10] sm:$0xff] %vm33_vm2, %v11929_v29  ;;  %39 = vst.msk [vmem:[#allocation2 + $0x20] sm:$0xff] %vm33_vm2, %v11929_v29 }
 0x15d   :  { %v7752_v53 = vpop.permute.xlu0 %748  ;;  %41 = vst.msk [vmem:[#allocation2 + $0x30] sm:$0xff] %vm33_vm2, %v11929_v29  ;;  %43 = vst.msk [vmem:[#allocation2 + $0x40] sm:$0xff] %vm33_vm2, %v11929_v29 }
 0x15e   :  { %1846 = vrot.lane.b32.xlu1 %v7745_v18, %s6655_s26  ;;  %45 = vst.msk [vmem:[#allocation2 + $0x50] sm:$0xff] %vm33_vm2, %v11929_v29  ;;  %47 = vst.msk [vmem:[#allocation2 + $0x60] sm:$0xff] %vm33_vm2, %v11929_v29  ;;  %v2292_v55 = vsel %vm33_vm2, %v2228_v39, %v7752_v53  ;;  %v8148_v39 = vld [vmem:[%s11912_s0 + $0x41] sm:$0xff] }
 0x15f   :  { %1640 = vrot.lane.b32.xlu0 %v5533_v5, %s6654_s15  ;;  %49 = vst.msk [vmem:[#allocation2 + $0x70] sm:$0xff] %vm33_vm2, %v11929_v29  ;;  %51 = vst.msk [vmem:[#allocation2 + $0x80] sm:$0xff] %vm33_vm2, %v11929_v29  ;;  %v7998_v5 = vld [vmem:[%s11912_s0 + $0x11] sm:$0xff] }
 0x160   :  { %v1831_v58 = vpop.permute.xlu1 %1830  ;;  %53 = vst.msk [vmem:[#allocation2 + $0x90] sm:$0xff] %vm33_vm2, %v11929_v29  ;;  %55 = vst.msk [vmem:[#allocation2 + $0xa0] sm:$0xff] %vm33_vm2, %v11929_v29 }
 0x161   :  { %v1625_v2 = vpop.permute.xlu0 %1624  ;;  %v2614_v13 = vsel %vm2607_vm7, %v2549_v60, %v1831_v58  ;;  %57 = vst.msk [vmem:[#allocation2 + $0xb0] sm:$0xff] %vm33_vm2, %v11929_v29  ;;  %59 = vst.msk [vmem:[#allocation2 + $0xc0] sm:$0xff] %vm33_vm2, %v11929_v29  ;;  %v8005_v58 = vld [vmem:[%s11912_s0 + $0xb0] sm:$0xff] }
 0x162   :  { %1210 = vrot.lane.b32.xlu1 %v7050_v49, %s6652_s23  ;;  %v2550_v63 = vsel %vm2542_vm6, %v2485_v4, %v1625_v2  ;;  %61 = vst.msk [vmem:[#allocation2 + $0xd0] sm:$0xff] %vm33_vm2, %v11929_v29  ;;  %63 = vst.msk [vmem:[#allocation2 + $0xe0] sm:$0xff] %vm33_vm2, %v11929_v29  ;;  %v187_v2 = vld [vmem:[%s11912_s0 + $0x240] sm:$0xff] }
 0x163   :  { %1004 = vrot.lane.b32.xlu0 %v12013_v59, %s6651_s20  ;;  %65 = vst.msk [vmem:[#allocation2 + $0xf0] sm:$0xff] %vm33_vm2, %v11929_v29  ;;  %67 = vst.msk [vmem:[#allocation2 + $0x100] sm:$0xff] %vm33_vm2, %v11929_v29  ;;  %v12015_v59 = vld [vmem:[#allocation18_spill] sm:$0xff] }
 0x164   :  { %v7778_v49 = vpop.permute.xlu1 %1194  ;;  %69 = vst.msk [vmem:[#allocation2 + $0x110] sm:$0xff] %vm33_vm2, %v11929_v29  ;;  %71 = vst.msk [vmem:[#allocation2 + $0x120] sm:$0xff] %vm33_vm2, %v11929_v29  ;;  %v2227_v10 = vsel %vm2218_vm1, %v187_v2, %v12015_v59 }
 0x165   :  { %v7780_v46 = vpop.permute.xlu0 %988  ;;  %73 = vst.msk [vmem:[#allocation2 + $0x130] sm:$0xff] %vm33_vm2, %v11929_v29  ;;  %75 = vst.msk [vmem:[#allocation2 + $0x140] sm:$0xff] %vm33_vm2, %v11929_v29  ;;  %v2291_v22 = vsel %vm33_vm2, %v2227_v10, %v7720_v16  ;;  %v8110_v10 = vld [vmem:[%s11912_s0 + $0x31] sm:$0xff] }
 0x166   :  { %2054 = vrot.lane.b32.xlu1 %v7769_v45, %s6656_s1  ;;  %77 = vst.msk [vmem:[#allocation2 + $0x150] sm:$0xff] %vm33_vm2, %v11929_v29  ;;  %79 = vst.msk [vmem:[#allocation2 + $0x160] sm:$0xff] %vm33_vm2, %v11929_v29  ;;  %v2356_v57 = vsel %vm2347_vm3, %v2291_v22, %v7750_v37  ;;  %v5504_v37 = vld [vmem:[%s11912_s0 + $0x1d1] sm:$0xff]  ;;  %v2357_v40 = vsel %vm2347_vm3, %v2292_v55, %v7780_v46  ;;  %v5505_v46 = vld [vmem:[%s11912_s0 + $0x1e1] sm:$0xff] }
 0x167   :  { %1848 = vrot.lane.b32.xlu0 %v7774_v33, %s6655_s26  ;;  %81 = vst.msk [vmem:[#allocation2 + $0x170] sm:$0xff] %vm33_vm2, %v11929_v29  ;;  %83 = vst.msk [vmem:[#allocation2 + $0x180] sm:$0xff] %vm33_vm2, %v11929_v29 }
 0x168   :  { %v2039_v26 = vpop.permute.xlu1 %2038  ;;  %85 = vst.msk [vmem:[#allocation2 + $0x190] sm:$0xff] %vm33_vm2, %v11929_v29  ;;  %89 = vst.msk [vmem:[#allocation2 + $0x1b0] sm:$0xff] %vm33_vm2, %v11929_v29 }
 0x169   :  { %v1833_v11 = vpop.permute.xlu0 %1832  ;;  %v2679_v54 = vsel %vm2672_vm8, %v2614_v13, %v2039_v26  ;;  %93 = vst.msk [vmem:[#allocation2 + $0x1d0] sm:$0xff] %vm33_vm2, %v11929_v29  ;;  %95 = vst.msk [vmem:[#allocation2 + $0x1e0] sm:$0xff] %vm33_vm2, %v11929_v29  ;;  %v2421_v13 = vsel %vm2412_vm4, %v2356_v57, %v7778_v49  ;;  %v8035_v26 = vld [vmem:[%s11912_s0 + $0x21] sm:$0xff] }
 0x16a   :  { %1418 = vrot.lane.b32.xlu1 %v5502_v6, %s6653_s28  ;;  %5990 = vmatprep.mubr.msk.f32.mxu0 %vm2749_vm9, %v2679_v54  ;;  %v2615_v15 = vsel %vm2607_vm7, %v2550_v63, %v1833_v11  ;;  %97 = vst.msk [vmem:[#allocation2 + $0x1f0] sm:$0xff] %vm33_vm2, %v11929_v29  ;;  %99 = vst.msk [vmem:[#allocation2 + $0x200] sm:$0xff] %vm33_vm2, %v11929_v29 }
 0x16b   :  { %1212 = vrot.lane.b32.xlu0 %v7045_v48, %s6652_s23  ;;  %101 = vst.msk [vmem:[#allocation2 + $0x210] sm:$0xff] %vm33_vm2, %v11929_v29  ;;  %103 = vst.msk [vmem:[#allocation2 + $0x220] sm:$0xff] %vm33_vm2, %v11929_v29 }
 0x16c   :  { %v7815_v34 = vpop.permute.xlu1 %1402  ;;  %107 = vst.msk [vmem:[#allocation2 + $0x240] sm:$0xff] %vm33_vm2, %v11929_v29  ;;  %109 = vst.msk [vmem:[#allocation2 + $0x250] sm:$0xff] %vm33_vm2, %v11929_v29 }
 0x16d   :  { %v7817_v48 = vpop.permute.xlu0 %1196  ;;  %111 = vst.msk [vmem:[#allocation2 + $0x260] sm:$0xff] %vm33_vm2, %v11929_v29  ;;  %113 = vst.msk [vmem:[#allocation2 + $0x270] sm:$0xff] %vm33_vm2, %v11929_v29 }
 0x16e   :  { %766 = vrot.lane.b32.xlu1 %v7806_v50, %s6650_s18  ;;  %115 = vst.msk [vmem:[#allocation2 + $0x280] sm:$0xff] %vm33_vm2, %v11929_v29  ;;  %117 = vst.msk [vmem:[#allocation2 + $0x290] sm:$0xff] %vm33_vm2, %v11929_v29  ;;  %v2422_v63 = vsel %vm2412_vm4, %v2357_v40, %v7817_v48 }
 0x16f   :  { %2056 = vrot.lane.b32.xlu0 %v7811_v1, %s6656_s1  ;;  %119 = vst.msk [vmem:[#allocation2 + $0x2a0] sm:$0xff] %vm33_vm2, %v11929_v29  ;;  %121 = vst.msk [vmem:[#allocation2 + $0x2b0] sm:$0xff] %vm33_vm2, %v11929_v29 }
 0x170   :  { %v7830_v23 = vpop.permute.xlu1 %750  ;;  %123 = vst.msk [vmem:[#allocation2 + $0x2c0] sm:$0xff] %vm33_vm2, %v11929_v29  ;;  %125 = vst.msk [vmem:[#allocation2 + $0x2d0] sm:$0xff] %vm33_vm2, %v11929_v29 }
 0x171   :  { %v2041_v44 = vpop.permute.xlu0 %2040  ;;  %127 = vst.msk [vmem:[#allocation2 + $0x2e0] sm:$0xff] %vm33_vm2, %v11929_v29  ;;  %129 = vst.msk [vmem:[#allocation2 + $0x2f0] sm:$0xff] %vm33_vm2, %v11929_v29 }
 0x172   :  { %v2680_v36 = vsel %vm2672_vm8, %v2615_v15, %v2041_v44  ;;  %1642 = vrot.lane.b32.xlu1 %v7836_v38, %s6654_s15  ;;  %131 = vst.msk [vmem:[#allocation2 + $0x300] sm:$0xff] %vm33_vm2, %v11929_v29  ;;  %133 = vst.msk [vmem:[#allocation2 + $0x310] sm:$0xff] %vm33_vm2, %v11929_v29 }
 0x173   :  { %1420 = vrot.lane.b32.xlu0 %v5503_v20, %s6653_s28  ;;  %5991 = vmatmul.mubr.msk.f32.gmra.mrb[6].mxu0 %vm2749_vm9, %v2680_v36  ;;  %135 = vst.msk [vmem:[#allocation2 + $0x320] sm:$0xff] %vm33_vm2, %v11929_v29  ;;  %137 = vst.msk [vmem:[#allocation2 + $0x330] sm:$0xff] %vm33_vm2, %v11929_v29 }
 0x174   :  { %v7847_v17 = vpop.permute.xlu1 %1626  ;;  %139 = vst.msk [vmem:[#allocation2 + $0x340] sm:$0xff] %vm33_vm2, %v11929_v29  ;;  %141 = vst.msk [vmem:[#allocation2 + $0x350] sm:$0xff] %vm33_vm2, %v11929_v29 }
 0x175   :  { %v7849_v27 = vpop.permute.xlu0 %1404  ;;  %143 = vst.msk [vmem:[#allocation2 + $0x360] sm:$0xff] %vm33_vm2, %v11929_v29  ;;  %145 = vst.msk [vmem:[#allocation2 + $0x370] sm:$0xff] %vm33_vm2, %v11929_v29 }
 0x176   :  { %1006 = vrot.lane.b32.xlu1 %v6952_v35, %s6651_s20  ;;  %147 = vst.msk [vmem:[#allocation2 + $0x380] sm:$0xff] %vm33_vm2, %v11929_v29  ;;  %149 = vst.msk [vmem:[#allocation2 + $0x390] sm:$0xff] %vm33_vm2, %v11929_v29  ;;  %v2487_v20 = vsel %vm2477_vm5, %v2422_v63, %v7849_v27 }
 0x177   :  { %768 = vrot.lane.b32.xlu0 %v7845_v25, %s6650_s18  ;;  %151 = vst.msk [vmem:[#allocation2 + $0x3a0] sm:$0xff] %vm33_vm2, %v11929_v29  ;;  %153 = vst.msk [vmem:[#allocation2 + $0x3b0] sm:$0xff] %vm33_vm2, %v11929_v29 }
 0x178   :  { %155 = vst.msk [vmem:[#allocation2 + $0x3c0] sm:$0xff] %vm33_vm2, %v11929_v29  ;;  %157 = vst.msk [vmem:[#allocation2 + $0x3d0] sm:$0xff] %vm33_vm2, %v11929_v29  ;;  %v7991_v35 = vpop.permute.xlu1 %990 }
 0x179   :  { %161 = vst.msk [vmem:[#allocation2 + $0x3f0] sm:$0xff] %vm33_vm2, %v11929_v29  ;;  %163 = vst.msk [vmem:[#allocation2 + $0x400] sm:$0xff] %vm33_vm2, %v11929_v29  ;;  %v7993_v0 = vpop.permute.xlu0 %752 }
 0x17a   :  { %165 = vst.msk [vmem:[#allocation2 + $0x410] sm:$0xff] %vm33_vm2, %v11929_v29  ;;  %167 = vst.msk [vmem:[#allocation2 + $0x420] sm:$0xff] %vm33_vm2, %v11929_v29  ;;  %1850 = vrot.lane.b32.xlu1 %v7998_v5, %s6655_s26 }
 0x17b   :  { %169 = vst.msk [vmem:[#allocation2 + $0x430] sm:$0xff] %vm33_vm2, %v11929_v29  ;;  %171 = vst.msk [vmem:[#allocation2 + $0x440] sm:$0xff] %vm33_vm2, %v11929_v29  ;;  %1644 = vrot.lane.b32.xlu0 %v8005_v58, %s6654_s15 }
 0x17c   :  { %173 = vst.msk [vmem:[#allocation2 + $0x450] sm:$0xff] %vm33_vm2, %v11929_v29  ;;  %175 = vst.msk [vmem:[#allocation2 + $0x460] sm:$0xff] %vm33_vm2, %v11929_v29  ;;  %v1835_v43 = vpop.permute.xlu1 %1834  ;;  %v12026_v29 = vld [vmem:[#allocation27_spill] sm:$0xff] }
 0x17d   :  { %v1629_v24 = vpop.permute.xlu0 %1628 }
 0x17e   :  { %1214 = vrot.lane.b32.xlu1 %v7064_v51, %s6652_s23  ;;  %v2486_v51 = vsel %vm2477_vm5, %v2421_v13, %v7815_v34  ;;  %v8063_v34 = vld [vmem:[%s11912_s0 + $0xd1] sm:$0xff]  ;;  %v2552_v53 = vsel %vm2542_vm6, %v2487_v20, %v1629_v24 }
 0x17f   :  { %1008 = vrot.lane.b32.xlu0 %v6450_v52, %s6651_s20  ;;  %v2551_v16 = vsel %vm2542_vm6, %v2486_v51, %v7847_v17  ;;  %v8086_v17 = vld [vmem:[%s11912_s0 + $0xc0] sm:$0xff]  ;;  %v8117_v52 = vld [vmem:[%s11912_s0 + $0xd0] sm:$0xff] }
 0x180   :  { %v1199_v60 = vpop.permute.xlu1 %1198  ;;  %v2616_v49 = vsel %vm2607_vm7, %v2551_v16, %v1835_v43  ;;  %v6454_v43 = vld [vmem:[%s11912_s0 + $0x1f0] sm:$0xff]  ;;  %v8127_v16 = vld [vmem:[%s11912_s0 + $0x161] sm:$0xff] }
 0x181   :  { %v8024_v6 = vpop.permute.xlu0 %992  ;;  %v12017_v13 = vld [vmem:[#allocation20_spill] sm:$0xff] }
 0x182   :  { %2058 = vrot.lane.b32.xlu1 %v7736_v31, %s6656_s1  ;;  %v2229_v51 = vsel %vm2218_vm1, %v7520_v21, %v12017_v13  ;;  %v8165_v20 = vld [vmem:[%s11912_s0 + $0x171] sm:$0xff] }
 0x183   :  { %1852 = vrot.lane.b32.xlu0 %v8035_v26, %s6655_s26 }
 0x184   :  { %v2043_v11 = vpop.permute.xlu1 %2042 }
 0x185   :  { %v1837_v54 = vpop.permute.xlu0 %1836  ;;  %v2681_v31 = vsel %vm2672_vm8, %v2616_v49, %v2043_v11  ;;  %v2293_v49 = vsel %vm33_vm2, %v2229_v51, %v7830_v23 }
 0x186   :  { %1422 = vrot.lane.b32.xlu1 %v5504_v37, %s6653_s28  ;;  %5993 = vmatprep.mubr.msk.f32.mxu0 %vm2749_vm9, %v2681_v31  ;;  %v2617_v15 = vsel %vm2607_vm7, %v2552_v53, %v1837_v54  ;;  %v6458_v37 = vld [vmem:[%s11912_s0 + $0x200] sm:$0xff]  ;;  %v2358_v21 = vsel %vm2347_vm3, %v2293_v49, %v7991_v35  ;;  %v5506_v35 = vld [vmem:[%s11912_s0 + $0x1f1] sm:$0xff] }
 0x187   :  { %1216 = vrot.lane.b32.xlu0 %v8053_v28, %s6652_s23  ;;  %v2423_v31 = vsel %vm2412_vm4, %v2358_v21, %v1199_v60 }
 0x188   :  { %v1407_v56 = vpop.permute.xlu1 %1406 }
 0x189   :  { %v1201_v4 = vpop.permute.xlu0 %1200  ;;  %v2488_v19 = vsel %vm2477_vm5, %v2423_v31, %v1407_v56  ;;  %v12018_v56 = vld [vmem:[#allocation19_spill] sm:$0xff] }
 0x18a   :  { %770 = vrot.lane.b32.xlu1 %v8063_v34, %s6650_s18  ;;  %v2230_v63 = vsel %vm2218_vm1, %v7567_v9, %v12018_v56  ;;  %v8220_v31 = vld [vmem:[%s11912_s0 + $0x51] sm:$0xff] }
 0x18b   :  { %2060 = vrot.lane.b32.xlu0 %v7806_v50, %s6656_s1  ;;  %v8095_v50 = vld [vmem:[%s11912_s0 + $0xe1] sm:$0xff]  ;;  %v2294_v53 = vsel %vm33_vm2, %v2230_v63, %v7993_v0 }
 0x18c   :  { %v8080_v44 = vpop.permute.xlu1 %754  ;;  %v2359_v9 = vsel %vm2347_vm3, %v2294_v53, %v8024_v6 }
 0x18d   :  { %v2045_v48 = vpop.permute.xlu0 %2044 }
 0x18e   :  { %v2682_v36 = vsel %vm2672_vm8, %v2617_v15, %v2045_v48  ;;  %1646 = vrot.lane.b32.xlu1 %v8086_v17, %s6654_s15 }
 0x18f   :  { %1424 = vrot.lane.b32.xlu0 %v5505_v46, %s6653_s28  ;;  %5994 = vmatmul.mubr.msk.f32.gmra.mrb[8].mxu0 %vm2749_vm9, %v2682_v36  ;;  %v8175_v46 = vld [vmem:[%s11912_s0 + $0xf1] sm:$0xff]  ;;  %v2424_v36 = vsel %vm2412_vm4, %v2359_v9, %v1201_v4 }
 0x190   :  { %v1631_v27 = vpop.permute.xlu1 %1630 }
 0x191   :  { %v1409_v2 = vpop.permute.xlu0 %1408  ;;  %v2553_v23 = vsel %vm2542_vm6, %v2488_v19, %v1631_v27  ;;  %v8227_v19 = vld [vmem:[%s11912_s0 + $0xf0] sm:$0xff] }
 0x192   :  { %1010 = vrot.lane.b32.xlu1 %v6454_v43, %s6651_s20  ;;  %v2489_v27 = vsel %vm2477_vm5, %v2424_v36, %v1409_v2  ;;  %v5507_v43 = vld [vmem:[%s11912_s0 + $0x201] sm:$0xff] }
 0x193   :  { %772 = vrot.lane.b32.xlu0 %v8095_v50, %s6650_s18  ;;  %v8196_v2 = vld [vmem:[%s11912_s0 + $0xe0] sm:$0xff] }
 0x194   :  { %v8103_v24 = vpop.permute.xlu1 %994 }
 0x195   :  { %v8105_v59 = vpop.permute.xlu0 %756 }
 0x196   :  { %1854 = vrot.lane.b32.xlu1 %v8110_v10, %s6655_s26 }
 0x197   :  { %1648 = vrot.lane.b32.xlu0 %v8117_v52, %s6654_s15 }
 0x198   :  { %v1839_v22 = vpop.permute.xlu1 %1838 }
 0x199   :  { %v1633_v57 = vpop.permute.xlu0 %1632  ;;  %v2618_v60 = vsel %vm2607_vm7, %v2553_v23, %v1839_v22 }
 0x19a   :  { %1218 = vrot.lane.b32.xlu1 %v8127_v16, %s6652_s23  ;;  %v2554_v0 = vsel %vm2542_vm6, %v2489_v27, %v1633_v57  ;;  %v8258_v27 = vld [vmem:[%s11912_s0 + $0x61] sm:$0xff] }
 0x19b   :  { %1012 = vrot.lane.b32.xlu0 %v6458_v37, %s6651_s20  ;;  %v6462_v37 = vld [vmem:[%s11912_s0 + $0x210] sm:$0xff] }
 0x19c   :  { %v1203_v11 = vpop.permute.xlu1 %1202 }
 0x19d   :  { %v8139_v54 = vpop.permute.xlu0 %996 }
 0x19e   :  { %2062 = vrot.lane.b32.xlu1 %v7845_v25, %s6656_s1 }
 0x19f   :  { %1856 = vrot.lane.b32.xlu0 %v8148_v39, %s6655_s26 }
 0x1a0   :  { %v2047_v55 = vpop.permute.xlu1 %2046 }
 0x1a1   :  { %v1841_v40 = vpop.permute.xlu0 %1840  ;;  %v2683_v25 = vsel %vm2672_vm8, %v2618_v60, %v2047_v55  ;;  %v12019_v60 = vld [vmem:[#allocation22_spill] sm:$0xff] }
 0x1a2   :  { %1426 = vrot.lane.b32.xlu1 %v5506_v35, %s6653_s28  ;;  %5996 = vmatprep.mubr.msk.f32.mxu0 %vm2749_vm9, %v2683_v25  ;;  %v2619_v6 = vsel %vm2607_vm7, %v2554_v0, %v1841_v40  ;;  %v2231_v55 = vsel %vm2218_vm1, %v7590_v3, %v12019_v60  ;;  %v8237_v40 = vld [vmem:[%s11912_s0 + $0x181] sm:$0xff] }
 0x1a3   :  { %1220 = vrot.lane.b32.xlu0 %v8165_v20, %s6652_s23  ;;  %v6466_v25 = vld [vmem:[%s11912_s0 + $0x220] sm:$0xff]  ;;  %v2295_v56 = vsel %vm33_vm2, %v2231_v55, %v8080_v44 }
 0x1a4   :  { %v1411_v15 = vpop.permute.xlu1 %1410  ;;  %v2360_v3 = vsel %vm2347_vm3, %v2295_v56, %v8103_v24  ;;  %v5508_v24 = vld [vmem:[%s11912_s0 + $0x211] sm:$0xff] }
 0x1a5   :  { %v1205_v48 = vpop.permute.xlu0 %1204  ;;  %v2425_v9 = vsel %vm2412_vm4, %v2360_v3, %v1203_v11 }
 0x1a6   :  { %774 = vrot.lane.b32.xlu1 %v8175_v46, %s6650_s18  ;;  %v2490_v36 = vsel %vm2477_vm5, %v2425_v9, %v1411_v15 }
 0x1a7   :  { %2064 = vrot.lane.b32.xlu0 %v8063_v34, %s6656_s1  ;;  %v8205_v34 = vld [vmem:[%s11912_s0 + $0x101] sm:$0xff] }
 0x1a8   :  { %v8190_v22 = vpop.permute.xlu1 %758 }
 0x1a9   :  { %v2049_v13 = vpop.permute.xlu0 %2048 }
 0x1aa   :  { %v2684_v4 = vsel %vm2672_vm8, %v2619_v6, %v2049_v13  ;;  %1650 = vrot.lane.b32.xlu1 %v8196_v2, %s6654_s15  ;;  %v8275_v13 = vld [vmem:[%s11912_s0 + $0x191] sm:$0xff] }
 0x1ab   :  { %1428 = vrot.lane.b32.xlu0 %v5507_v43, %s6653_s28  ;;  %5997 = vmatmul.mubr.msk.f32.gmra.mrb[10].mxu0 %vm2749_vm9, %v2684_v4  ;;  %v12020_v43 = vld [vmem:[#allocation21_spill] sm:$0xff] }
 0x1ac   :  { %v1635_v57 = vpop.permute.xlu1 %1634  ;;  %v2232_v6 = vsel %vm2218_vm1, %v7643_v8, %v12020_v43 }
 0x1ad   :  { %v1413_v51 = vpop.permute.xlu0 %1412  ;;  %v2555_v44 = vsel %vm2542_vm6, %v2490_v36, %v1635_v57  ;;  %v2296_v4 = vsel %vm33_vm2, %v2232_v6, %v8105_v59  ;;  %v5494_v57 = vld [vmem:[%s11912_s0 + $0x2d1] sm:$0xff]  ;;  %v8339_v6 = vld [vmem:[%s11912_s0 + $0x361] sm:$0xff] }
 0x1ae   :  { %1014 = vrot.lane.b32.xlu1 %v6462_v37, %s6651_s20  ;;  %v2361_v8 = vsel %vm2347_vm3, %v2296_v4, %v8139_v54  ;;  %v6470_v36 = vld [vmem:[%s11912_s0 + $0x3f0] sm:$0xff]  ;;  %v6473_v4 = vld [vmem:[%s11912_s0 + $0x400] sm:$0xff] }
 0x1af   :  { %776 = vrot.lane.b32.xlu0 %v8205_v34, %s6650_s18  ;;  %v2426_v60 = vsel %vm2412_vm4, %v2361_v8, %v1205_v48 }
 0x1b0   :  { %v8213_v49 = vpop.permute.xlu1 %998  ;;  %v2491_v55 = vsel %vm2477_vm5, %v2426_v60, %v1413_v51  ;;  %v8303_v51 = vld [vmem:[%s11912_s0 + $0x100] sm:$0xff] }
 0x1b1   :  { %v8215_v21 = vpop.permute.xlu0 %760 }
 0x1b2   :  { %1858 = vrot.lane.b32.xlu1 %v8220_v31, %s6655_s26 }
 0x1b3   :  { %1652 = vrot.lane.b32.xlu0 %v8227_v19, %s6654_s15 }
 0x1b4   :  { %v1843_v23 = vpop.permute.xlu1 %1842 }
 0x1b5   :  { %v1637_v35 = vpop.permute.xlu0 %1636  ;;  %v2620_v11 = vsel %vm2607_vm7, %v2555_v44, %v1843_v23 }
 0x1b6   :  { %1222 = vrot.lane.b32.xlu1 %v8237_v40, %s6652_s23  ;;  %v2556_v59 = vsel %vm2542_vm6, %v2491_v55, %v1637_v35 }
 0x1b7   :  { %1016 = vrot.lane.b32.xlu0 %v6466_v25, %s6651_s20  ;;  %v5509_v25 = vld [vmem:[%s11912_s0 + $0x221] sm:$0xff] }
 0x1b8   :  { %v1207_v63 = vpop.permute.xlu1 %1206 }
 0x1b9   :  { %v8249_v53 = vpop.permute.xlu0 %1000 }
 0x1ba   :  { %2066 = vrot.lane.b32.xlu1 %v8095_v50, %s6656_s1 }
 0x1bb   :  { %1860 = vrot.lane.b32.xlu0 %v8258_v27, %s6655_s26 }
 0x1bc   :  { %v2051_v15 = vpop.permute.xlu1 %2050 }
 0x1bd   :  { %v1845_v0 = vpop.permute.xlu0 %1844  ;;  %v2685_v50 = vsel %vm2672_vm8, %v2620_v11, %v2051_v15  ;;  %v8327_v11 = vld [vmem:[%s11912_s0 + $0x71] sm:$0xff] }
 0x1be   :  { %1430 = vrot.lane.b32.xlu1 %v5508_v24, %s6653_s28  ;;  %5999 = vmatprep.mubr.msk.f32.mxu0 %vm2749_vm9, %v2685_v50  ;;  %v2621_v56 = vsel %vm2607_vm7, %v2556_v59, %v1845_v0  ;;  %v12021_v50 = vld [vmem:[#allocation24_spill] sm:$0xff] }
 0x1bf   :  { %1224 = vrot.lane.b32.xlu0 %v8275_v13, %s6652_s23  ;;  %v2233_v43 = vsel %vm2218_vm1, %v7664_v62, %v12021_v50 }
 0x1c0   :  { %v1415_v37 = vpop.permute.xlu1 %1414 }
 0x1c1   :  { %v1209_v23 = vpop.permute.xlu0 %1208 }
 0x1c2   :  { %778 = vrot.lane.b32.xlu1 %v5494_v57, %s6650_s18 }
 0x1c3   :  { %2068 = vrot.lane.b32.xlu0 %v8175_v46, %s6656_s1  ;;  %v8312_v46 = vld [vmem:[%s11912_s0 + $0x2e1] sm:$0xff] }
 0x1c4   :  { %v8297_v54 = vpop.permute.xlu1 %762 }
 0x1c5   :  { %v2053_v3 = vpop.permute.xlu0 %2052 }
 0x1c6   :  { %v2686_v48 = vsel %vm2672_vm8, %v2621_v56, %v2053_v3  ;;  %1654 = vrot.lane.b32.xlu1 %v8303_v51, %s6654_s15  ;;  %v12022_v3 = vld [vmem:[#allocation23_spill] sm:$0xff] }
 0x1c7   :  { %1432 = vrot.lane.b32.xlu0 %v5509_v25, %s6653_s28  ;;  %6000 = vmatmul.mubr.msk.f32.gmra.mrb[12].mxu0 %vm2749_vm9, %v2686_v48  ;;  %v8382_v48 = vld [vmem:[%s11912_s0 + $0x2f1] sm:$0xff] }
 0x1c8   :  { %v1639_v35 = vpop.permute.xlu1 %1638 }
 0x1c9   :  { %v1417_v9 = vpop.permute.xlu0 %1416 }
 0x1ca   :  { %1018 = vrot.lane.b32.xlu1 %v6470_v36, %s6651_s20 }
 0x1cb   :  { %780 = vrot.lane.b32.xlu0 %v8312_v46, %s6650_s18 }
 0x1cc   :  { %v8320_v44 = vpop.permute.xlu1 %1002 }
 0x1cd   :  { %v8322_v24 = vpop.permute.xlu0 %764 }
 0x1ce   :  { %1862 = vrot.lane.b32.xlu1 %v8327_v11, %s6655_s26 }
 0x1cf   :  { %1656 = vrot.lane.b32.xlu0 %v7473_v7, %s6654_s15  ;;  %v2297_v7 = vsel %vm33_vm2, %v2233_v43, %v8190_v22  ;;  %v5510_v22 = vld [vmem:[%s11912_s0 + $0x3f1] sm:$0xff] }
 0x1d0   :  { %v1847_v15 = vpop.permute.xlu1 %1846  ;;  %v2362_v62 = vsel %vm2347_vm3, %v2297_v7, %v8213_v49 }
 0x1d1   :  { %v1641_v0 = vpop.permute.xlu0 %1640  ;;  %v2427_v60 = vsel %vm2412_vm4, %v2362_v62, %v1207_v63 }
 0x1d2   :  { %1226 = vrot.lane.b32.xlu1 %v8339_v6, %s6652_s23  ;;  %v2492_v55 = vsel %vm2477_vm5, %v2427_v60, %v1415_v37  ;;  %v2234_v37 = vsel %vm2218_vm1, %v7725_v61, %v12022_v3  ;;  %v5573_v61 = vld [vmem:[%s11912_s0 + $0x111] sm:$0xff] }
 0x1d3   :  { %1020 = vrot.lane.b32.xlu0 %v6473_v4, %s6651_s20  ;;  %v2557_v59 = vsel %vm2542_vm6, %v2492_v55, %v1639_v35  ;;  %v5511_v4 = vld [vmem:[%s11912_s0 + $0x401] sm:$0xff] }
 0x1d4   :  { %v1211_v57 = vpop.permute.xlu1 %1210  ;;  %v2622_v49 = vsel %vm2607_vm7, %v2557_v59, %v1847_v15  ;;  %v6476_v59 = vld [vmem:[%s11912_s0 + $0x410] sm:$0xff] }
 0x1d5   :  { %v8351_v8 = vpop.permute.xlu0 %1004 }
 0x1d6   :  { %2070 = vrot.lane.b32.xlu1 %v8205_v34, %s6656_s1  ;;  %v2298_v34 = vsel %vm33_vm2, %v2234_v37, %v8215_v21  ;;  %v6479_v37 = vld [vmem:[%s11912_s0 + $0x90] sm:$0xff] }
 0x1d7   :  { %1864 = vrot.lane.b32.xlu0 %v7490_v41, %s6655_s26  ;;  %v8372_v41 = vld [vmem:[%s11912_s0 + $0x371] sm:$0xff]  ;;  %v2363_v35 = vsel %vm2347_vm3, %v2298_v34, %v8249_v53  ;;  %v12023_v34 = vld [vmem:[#allocation26_spill] sm:$0xff] }
 0x1d8   :  { %v2055_v25 = vpop.permute.xlu1 %2054  ;;  %v2428_v50 = vsel %vm2412_vm4, %v2363_v35, %v1209_v23  ;;  %v6480_v35 = vld [vmem:[%s11912_s0 + $0x381] sm:$0xff] }
 0x1d9   :  { %v1849_v56 = vpop.permute.xlu0 %1848  ;;  %v2687_v63 = vsel %vm2672_vm8, %v2622_v49, %v2055_v25  ;;  %v2493_v21 = vsel %vm2477_vm5, %v2428_v50, %v1417_v9  ;;  %v8407_v9 = vld [vmem:[%s11912_s0 + $0x2e0] sm:$0xff]  ;;  %v6477_v25 = vld [vmem:[%s11912_s0 + $0x251] sm:$0xff] }
 0x1da   :  { %1434 = vrot.lane.b32.xlu1 %v5510_v22, %s6653_s28  ;;  %6002 = vmatprep.mubr.msk.f32.mxu0 %vm2749_vm9, %v2687_v63  ;;  %v2558_v43 = vsel %vm2542_vm6, %v2493_v21, %v1641_v0  ;;  %v8416_v0 = vld [vmem:[%s11912_s0 + $0x301] sm:$0xff] }
 0x1db   :  { %1228 = vrot.lane.b32.xlu0 %v8372_v41, %s6652_s23  ;;  %v2623_v53 = vsel %vm2607_vm7, %v2558_v43, %v1849_v56  ;;  %v8435_v56 = vld [vmem:[%s11912_s0 + $0x2f0] sm:$0xff]  ;;  %v6481_v50 = vld [vmem:[%s11912_s0 + $0x420] sm:$0xff] }
 0x1dc   :  { %v1419_v36 = vpop.permute.xlu1 %1418 }
 0x1dd   :  { %v8389_v15 = vpop.permute.xlu0 %1212 }
 0x1de   :  { %782 = vrot.lane.b32.xlu1 %v8382_v48, %s6650_s18 }
 0x1df   :  { %2072 = vrot.lane.b32.xlu0 %v5573_v61, %s6656_s1  ;;  %v2235_v61 = vsel %vm2218_vm1, %v6479_v37, %v12023_v34  ;;  %v12024_v34 = vld [vmem:[#allocation25_spill] sm:$0xff] }
 0x1e0   :  { %v8401_v7 = vpop.permute.xlu1 %766  ;;  %v2299_v21 = vsel %vm33_vm2, %v2235_v61, %v8297_v54  ;;  %v2236_v61 = vsel %vm2218_vm1, %v7836_v38, %v12024_v34 }
 0x1e1   :  { %v2057_v62 = vpop.permute.xlu0 %2056  ;;  %v2364_v43 = vsel %vm2347_vm3, %v2299_v21, %v8320_v44  ;;  %v5512_v44 = vld [vmem:[%s11912_s0 + $0x411] sm:$0xff] }
 0x1e2   :  { %v2688_v23 = vsel %vm2672_vm8, %v2623_v53, %v2057_v62  ;;  %1658 = vrot.lane.b32.xlu1 %v8407_v9, %s6654_s15  ;;  %v2429_v62 = vsel %vm2412_vm4, %v2364_v43, %v1211_v57  ;;  %v8494_v43 = vld [vmem:[%s11912_s0 + $0x311] sm:$0xff] }
 0x1e3   :  { %1436 = vrot.lane.b32.xlu0 %v5511_v4, %s6653_s28  ;;  %6003 = vmatmul.mubr.msk.f32.gmra.mrb[14].mxu0 %vm2749_vm9, %v2688_v23  ;;  %v2494_v23 = vsel %vm2477_vm5, %v2429_v62, %v1419_v36 }
 0x1e4   :  { %v1643_v60 = vpop.permute.xlu1 %1642 }
 0x1e5   :  { %v1421_v55 = vpop.permute.xlu0 %1420  ;;  %v2559_v54 = vsel %vm2542_vm6, %v2494_v23, %v1643_v60 }
 0x1e6   :  { %1022 = vrot.lane.b32.xlu1 %v6476_v59, %s6651_s20  ;;  %v6482_v59 = vld [vmem:[%s11912_s0 + $0x261] sm:$0xff] }
 0x1e7   :  { %784 = vrot.lane.b32.xlu0 %v8416_v0, %s6650_s18 }
 0x1e8   :  { %v8424_v22 = vpop.permute.xlu1 %1006 }
 0x1e9   :  { %v8426_v49 = vpop.permute.xlu0 %768 }
 0x1ea   :  { %1866 = vrot.lane.b32.xlu1 %v6477_v25, %s6655_s26 }
 0x1eb   :  { %1660 = vrot.lane.b32.xlu0 %v8435_v56, %s6654_s15 }
 0x1ec   :  { %v1851_v63 = vpop.permute.xlu1 %1850 }
 0x1ed   :  { %v1645_v3 = vpop.permute.xlu0 %1644  ;;  %v2624_v25 = vsel %vm2607_vm7, %v2559_v54, %v1851_v63  ;;  %v6483_v63 = vld [vmem:[%s11912_s0 + $0x391] sm:$0xff] }
 0x1ee   :  { %1230 = vrot.lane.b32.xlu1 %v6480_v35, %s6652_s23  ;;  %v2300_v35 = vsel %vm33_vm2, %v2236_v61, %v8322_v24 }
 0x1ef   :  { %1024 = vrot.lane.b32.xlu0 %v6481_v50, %s6651_s20  ;;  %v2365_v62 = vsel %vm2347_vm3, %v2300_v35, %v8351_v8 }
 0x1f0   :  { %v8456_v4 = vpop.permute.xlu1 %1214  ;;  %v2430_v24 = vsel %vm2412_vm4, %v2365_v62, %v8389_v15  ;;  %v8549_v62 = vld [vmem:[%s11912_s0 + $0x310] sm:$0xff] }
 0x1f1   :  { %v8458_v53 = vpop.permute.xlu0 %1008 }
 0x1f2   :  { %2074 = vrot.lane.b32.xlu1 %v8312_v46, %s6656_s1  ;;  %v8476_v46 = vld [vmem:[%s11914_s2] ss:$0 sm:$0xff] }
 0x1f3   :  { %1868 = vrot.lane.b32.xlu0 %v6482_v59, %s6655_s26 }
 0x1f4   :  { %v2059_v57 = vpop.permute.xlu1 %2058 }
 0x1f5   :  { %v1853_v37 = vpop.permute.xlu0 %1852  ;;  %v2689_v36 = vsel %vm2672_vm8, %v2624_v25, %v2059_v57  ;;  %v5983_v60 = vpop.f32.mrb[0].mxu0  ;;  %v2495_v25 = vsel %vm2477_vm5, %v2430_v24, %v1421_v55 }
 0x1f6   :  { %1438 = vrot.lane.b32.xlu1 %v5512_v44, %s6653_s28  ;;  %v3018_v50 = vadd.f32 %v5983_v60, %v8476_v46  ;;  %v3012_v21 = vpop.f32.mrb[1].mxu0  ;;  %6005 = vmatprep.mubr.msk.f32.mxu0 %vm2749_vm9, %v2689_v36  ;;  %v2560_v8 = vsel %vm2542_vm6, %v2495_v25, %v1645_v3  ;;  %v5513_v36 = vld [vmem:[%s11912_s0 + $0x421] sm:$0xff] }
 0x1f7   :  { %1232 = vrot.lane.b32.xlu0 %v6483_v63, %s6652_s23  ;;  %v3013_v23 = vadd.f32 %v8476_v46, %v3012_v21  ;;  %v2625_v15 = vsel %vm2607_vm7, %v2560_v8, %v1853_v37  ;;  %v8530_v3 = vld [vmem:[%s11912_s0 + $0x321] sm:$0xff]  ;;  %v6485_v63 = vld [vmem:[%s11912_s0 + $0x430] sm:$0xff] }
 0x1f8   :  { %v1423_v59 = vpop.permute.xlu1 %1422  ;;  %v3332_v44 = vmax.f32 %v3018_v50, 0.0  ;;  %v6486_v21 = vld [vmem:[%s11912_s0 + $0x271] sm:$0xff]  ;;  %v6489_v8 = vld [vmem:[%s11912_s0 + $0x440] sm:$0xff] }
 0x1f9   :  { %v8499_v54 = vpop.permute.xlu0 %1216  ;;  %v3331_v57 = vmax.f32 %v3013_v23, 0.0 }
 0x1fa   :  { %786 = vrot.lane.b32.xlu1 %v8494_v43, %s6650_s18  ;;  %3397 = vst.msk [vmem:[#allocation2 + $0x1c0] sm:$0xff] %vm33_vm2, %v3332_v44  ;;  %v12025_v44 = vld [vmem:[#allocation28_spill] sm:$0xff] }
 0x1fb   :  { %2076 = vrot.lane.b32.xlu0 %v8382_v48, %s6656_s1  ;;  %3396 = vst.msk [vmem:[#allocation2 + $0x1b0] sm:$0xff] %vm33_vm2, %v3331_v57  ;;  %v8521_v48 = vld [vmem:[%s11912_s0 + $0x300] sm:$0xff]  ;;  %v2237_v25 = vsel %vm2218_vm1, %v8005_v58, %v12025_v44 }
 0x1fc   :  { %v8515_v55 = vpop.permute.xlu1 %770  ;;  %v6488_v57 = vld [vmem:[%s11912_s0 + $0x3a1] sm:$0xff] }
 0x1fd   :  { %v2061_v34 = vpop.permute.xlu0 %2060 }
 0x1fe   :  { %v2690_v61 = vsel %vm2672_vm8, %v2625_v15, %v2061_v34  ;;  %1662 = vrot.lane.b32.xlu1 %v8521_v48, %s6654_s15 }
 0x1ff   :  { %1440 = vrot.lane.b32.xlu0 %v5513_v36, %s6653_s28  ;;  %6006 = vmatmul.mubr.msk.f32.gmra.mrb[16].mxu0 %vm2749_vm9, %v2690_v61  ;;  %v2301_v36 = vsel %vm33_vm2, %v2237_v25, %v8401_v7  ;;  %v6490_v7 = vld [vmem:[%s11912_s0 + $0x281] sm:$0xff] }
 0x200   :  { %v1647_v37 = vpop.permute.xlu1 %1646  ;;  %v2366_v15 = vsel %vm2347_vm3, %v2301_v36, %v8424_v22 }
 0x201   :  { %v1425_v60 = vpop.permute.xlu0 %1424 }
 0x202   :  { %1026 = vrot.lane.b32.xlu1 %v6485_v63, %s6651_s20  ;;  %v2431_v63 = vsel %vm2412_vm4, %v2366_v15, %v8456_v4  ;;  %v5514_v4 = vld [vmem:[%s11912_s0 + $0x431] sm:$0xff] }
 0x203   :  { %788 = vrot.lane.b32.xlu0 %v8530_v3, %s6650_s18 }
 0x204   :  { %v8538_v35 = vpop.permute.xlu1 %1010 }
 0x205   :  { %v8540_v50 = vpop.permute.xlu0 %772 }
 0x206   :  { %1870 = vrot.lane.b32.xlu1 %v6486_v21, %s6655_s26  ;;  %v2496_v21 = vsel %vm2477_vm5, %v2431_v63, %v1423_v59 }
 0x207   :  { %1664 = vrot.lane.b32.xlu0 %v8549_v62, %s6654_s15  ;;  %v2561_v22 = vsel %vm2542_vm6, %v2496_v21, %v1647_v37  ;;  %v2238_v37 = vsel %vm2218_vm1, %v8086_v17, %v12026_v29  ;;  %v8607_v29 = vld [vmem:[%s11912_s0 + $0x331] sm:$0xff] }
 0x208   :  { %v1855_v23 = vpop.permute.xlu1 %1854 }
 0x209   :  { %v1649_v24 = vpop.permute.xlu0 %1648  ;;  %v2626_v59 = vsel %vm2607_vm7, %v2561_v22, %v1855_v23  ;;  %v2302_v23 = vsel %vm33_vm2, %v2238_v37, %v8426_v49 }
 0x20a   :  { %1234 = vrot.lane.b32.xlu1 %v6488_v57, %s6652_s23 }
 0x20b   :  { %1028 = vrot.lane.b32.xlu0 %v6489_v8, %s6651_s20 }
 0x20c   :  { %v8568_v34 = vpop.permute.xlu1 %1218 }
 0x20d   :  { %v8570_v61 = vpop.permute.xlu0 %1012  ;;  %v5986_v44 = vpop.f32.mrb[2].mxu0 }
 0x20e   :  { %2078 = vrot.lane.b32.xlu1 %v8416_v0, %s6656_s1  ;;  %v3028_v25 = vadd.f32 %v5986_v44, %v8476_v46  ;;  %v3022_v57 = vpop.f32.mrb[3].mxu0  ;;  %v8596_v44 = vld [vmem:[%s11912_s0 + $0x3b1] sm:$0xff] }
 0x20f   :  { %1872 = vrot.lane.b32.xlu0 %v6490_v7, %s6655_s26  ;;  %v3023_v8 = vadd.f32 %v8476_v46, %v3022_v57  ;;  %v2367_v7 = vsel %vm2347_vm3, %v2302_v23, %v8458_v53  ;;  %v5515_v53 = vld [vmem:[%s11912_s0 + $0x441] sm:$0xff] }
 0x210   :  { %v2063_v0 = vpop.permute.xlu1 %2062  ;;  %v3334_v15 = vmax.f32 %v3028_v25, 0.0  ;;  %v2432_v49 = vsel %vm2412_vm4, %v2367_v7, %v8499_v54 }
 0x211   :  { %v1857_v36 = vpop.permute.xlu0 %1856  ;;  %v2691_v63 = vsel %vm2672_vm8, %v2626_v59, %v2063_v0  ;;  %v3333_v21 = vmax.f32 %v3023_v8, 0.0  ;;  %v2497_v57 = vsel %vm2477_vm5, %v2432_v49, %v1425_v60  ;;  %v8632_v60 = vld [vmem:[%s11912_s0 + $0x320] sm:$0xff] }
 0x212   :  { %1442 = vrot.lane.b32.xlu1 %v5514_v4, %s6653_s28  ;;  %3399 = vst.msk [vmem:[#allocation2 + $0x1e0] sm:$0xff] %vm33_vm2, %v3334_v15  ;;  %6008 = vmatprep.mubr.msk.f32.mxu0 %vm2749_vm9, %v2691_v63  ;;  %v2562_v4 = vsel %vm2542_vm6, %v2497_v57, %v1649_v24  ;;  %v6493_v15 = vld [vmem:[%s11912_s0 + $0x450] sm:$0xff]  ;;  %v12027_v49 = vld [vmem:[#allocation30_spill] sm:$0xff] }
 0x213   :  { %1236 = vrot.lane.b32.xlu0 %v8596_v44, %s6652_s23  ;;  %3398 = vst.msk [vmem:[#allocation2 + $0x1d0] sm:$0xff] %vm33_vm2, %v3333_v21  ;;  %v2627_v59 = vsel %vm2607_vm7, %v2562_v4, %v1857_v36  ;;  %v6494_v21 = vld [vmem:[%s11912_s0 + $0x291] sm:$0xff]  ;;  %v2239_v57 = vsel %vm2218_vm1, %v8117_v52, %v12027_v49  ;;  %v6495_v4 = vld [vmem:[%s11912_s0 + $0x3c1] sm:$0xff] }
 0x214   :  { %v1427_v22 = vpop.permute.xlu1 %1426 }
 0x215   :  { %v8612_v25 = vpop.permute.xlu0 %1220 }
 0x216   :  { %790 = vrot.lane.b32.xlu1 %v8607_v29, %s6650_s18 }
 0x217   :  { %2080 = vrot.lane.b32.xlu0 %v8494_v43, %s6656_s1  ;;  %v8641_v43 = vld [vmem:[%s11912_s0 + $0x341] sm:$0xff] }
 0x218   :  { %v8626_v8 = vpop.permute.xlu1 %774 }
 0x219   :  { %v2065_v0 = vpop.permute.xlu0 %2064 }
 0x21a   :  { %v2692_v54 = vsel %vm2672_vm8, %v2627_v59, %v2065_v0  ;;  %1666 = vrot.lane.b32.xlu1 %v8632_v60, %s6654_s15 }
 0x21b   :  { %1444 = vrot.lane.b32.xlu0 %v5515_v53, %s6653_s28  ;;  %6009 = vmatmul.mubr.msk.f32.gmra.mrb[18].mxu0 %vm2749_vm9, %v2692_v54  ;;  %v6496_v53 = vld [vmem:[%s11912_s0 + $0x460] sm:$0xff] }
 0x21c   :  { %v1651_v24 = vpop.permute.xlu1 %1650 }
 0x21d   :  { %v1429_v36 = vpop.permute.xlu0 %1428 }
 0x21e   :  { %1030 = vrot.lane.b32.xlu1 %v6493_v15, %s6651_s20 }
 0x21f   :  { %792 = vrot.lane.b32.xlu0 %v8641_v43, %s6650_s18 }
 0x220   :  { %v8649_v63 = vpop.permute.xlu1 %1014 }
 0x221   :  { %v8651_v37 = vpop.permute.xlu0 %776 }
 0x222   :  { %1874 = vrot.lane.b32.xlu1 %v6494_v21, %s6655_s26 }
 0x223   :  { %1668 = vrot.lane.b32.xlu0 %v7684_v42, %s6654_s15  ;;  %v2303_v42 = vsel %vm33_vm2, %v2239_v57, %v8515_v55  ;;  %v6497_v55 = vld [vmem:[%s11912_s0 + $0x2a1] sm:$0xff] }
 0x224   :  { %v1859_v23 = vpop.permute.xlu1 %1858  ;;  %v2368_v59 = vsel %vm2347_vm3, %v2303_v42, %v8538_v35 }
 0x225   :  { %v1653_v7 = vpop.permute.xlu0 %1652  ;;  %v2433_v15 = vsel %vm2412_vm4, %v2368_v59, %v8568_v34  ;;  %v5516_v34 = vld [vmem:[%s11912_s0 + $0x451] sm:$0xff] }
 0x226   :  { %1238 = vrot.lane.b32.xlu1 %v6495_v4, %s6652_s23  ;;  %v2498_v21 = vsel %vm2477_vm5, %v2433_v15, %v1427_v22 }
 0x227   :  { %1032 = vrot.lane.b32.xlu0 %v6496_v53, %s6651_s20  ;;  %v2563_v35 = vsel %vm2542_vm6, %v2498_v21, %v1651_v24  ;;  %v2240_v24 = vsel %vm2218_vm1, %v8196_v2, %v12028_v32 }
 0x228   :  { %v8674_v0 = vpop.permute.xlu1 %1222  ;;  %v2628_v22 = vsel %vm2607_vm7, %v2563_v35, %v1859_v23  ;;  %v2304_v23 = vsel %vm33_vm2, %v2240_v24, %v8540_v50  ;;  %v6499_v50 = vld [vmem:[%s11912_s0 + $0x121] sm:$0xff] }
 0x229   :  { %v8676_v54 = vpop.permute.xlu0 %1016 }
 0x22a   :  { %v5989_v49 = vpop.f32.mrb[4].mxu0  ;;  %2082 = vrot.lane.b32.xlu1 %v8530_v3, %s6656_s1 }
 0x22b   :  { %1876 = vrot.lane.b32.xlu0 %v6497_v55, %s6655_s26  ;;  %v3038_v57 = vadd.f32 %v5989_v49, %v8476_v46  ;;  %v3032_v4 = vpop.f32.mrb[5].mxu0  ;;  %v6498_v49 = vld [vmem:[%s11912_s0 + $0x3d1] sm:$0xff]  ;;  %v2369_v55 = vsel %vm2347_vm3, %v2304_v23, %v8570_v61  ;;  %v6502_v23 = vld [vmem:[%s11912_s0 + $0x20] sm:$0xff] }
 0x22c   :  { %v3033_v53 = vadd.f32 %v8476_v46, %v3032_v4  ;;  %v2067_v3 = vpop.permute.xlu1 %2066 }
 0x22d   :  { %v1861_v42 = vpop.permute.xlu0 %1860  ;;  %v3336_v59 = vmax.f32 %v3038_v57, 0.0  ;;  %v2693_v15 = vsel %vm2672_vm8, %v2628_v22, %v2067_v3  ;;  %v2434_v57 = vsel %vm2412_vm4, %v2369_v55, %v8612_v25  ;;  %v6500_v3 = vld [vmem:[%s11912_s0 + $0x10] sm:$0xff] }
 0x22e   :  { %v3335_v21 = vmax.f32 %v3033_v53, 0.0  ;;  %1446 = vrot.lane.b32.xlu1 %v5516_v34, %s6653_s28  ;;  %6011 = vmatprep.mubr.msk.f32.mxu0 %vm2749_vm9, %v2693_v15  ;;  %v2499_v4 = vsel %vm2477_vm5, %v2434_v57, %v1429_v36  ;;  %v5517_v34 = vld [vmem:[%s11912_s0 + $0x461] sm:$0xff] }
 0x22f   :  { %1240 = vrot.lane.b32.xlu0 %v6498_v49, %s6652_s23  ;;  %3401 = vst.msk [vmem:[#allocation2 + $0x200] sm:$0xff] %vm33_vm2, %v3336_v59  ;;  %v2564_v61 = vsel %vm2542_vm6, %v2499_v4, %v1653_v7 }
 0x230   :  { %3400 = vst.msk [vmem:[#allocation2 + $0x1f0] sm:$0xff] %vm33_vm2, %v3335_v21  ;;  %v1431_v32 = vpop.permute.xlu1 %1430  ;;  %v2629_v22 = vsel %vm2607_vm7, %v2564_v61, %v1861_v42  ;;  %v6501_v42 = vld [vmem:[%s11912_s0 + $0x131] sm:$0xff] }
 0x231   :  { %v1225_v35 = vpop.permute.xlu0 %1224  ;;  %v12029_v21 = vld [vmem:[#allocation32_spill] sm:$0xff] }
 0x232   :  { %794 = vrot.lane.b32.xlu1 %v6499_v50, %s6650_s18  ;;  %v2241_v49 = vsel %vm2218_vm1, %v8227_v19, %v12029_v21 }
 0x233   :  { %2084 = vrot.lane.b32.xlu0 %v8607_v29, %s6656_s1 }
 0x234   :  { %v8724_v25 = vpop.permute.xlu1 %778 }
 0x235   :  { %v2069_v36 = vpop.permute.xlu0 %2068 }
 0x236   :  { %v2694_v53 = vsel %vm2672_vm8, %v2629_v22, %v2069_v36  ;;  %1670 = vrot.lane.b32.xlu1 %v7745_v18, %s6654_s15 }
 0x237   :  { %1448 = vrot.lane.b32.xlu0 %v5517_v34, %s6653_s28  ;;  %6012 = vmatmul.mubr.msk.f32.gmra.mrb[20].mxu0 %vm2749_vm9, %v2694_v53 }
 0x238   :  { %v1655_v29 = vpop.permute.xlu1 %1654 }
 0x239   :  { %v1433_v7 = vpop.permute.xlu0 %1432 }
 0x23a   :  { %1034 = vrot.lane.b32.xlu1 %v6500_v3, %s6651_s20  ;;  %v12030_v3 = vld [vmem:[#allocation31_spill] sm:$0xff] }
 0x23b   :  { %796 = vrot.lane.b32.xlu0 %v6501_v42, %s6650_s18 }
 0x23c   :  { %v8739_v59 = vpop.permute.xlu1 %1018 }
 0x23d   :  { %v8741_v18 = vpop.permute.xlu0 %780 }
 0x23e   :  { %1878 = vrot.lane.b32.xlu1 %v7769_v45, %s6655_s26  ;;  %v2305_v45 = vsel %vm33_vm2, %v2241_v49, %v8626_v8  ;;  %v6503_v49 = vld [vmem:[%s11912_s0 + $0x141] sm:$0xff] }
 0x23f   :  { %1672 = vrot.lane.b32.xlu0 %v7774_v33, %s6654_s15  ;;  %v2370_v33 = vsel %vm2347_vm3, %v2305_v45, %v8649_v63 }
 0x240   :  { %v1863_v15 = vpop.permute.xlu1 %1862  ;;  %v2435_v4 = vsel %vm2412_vm4, %v2370_v33, %v8674_v0 }
 0x241   :  { %v1657_v24 = vpop.permute.xlu0 %1656 }
 0x242   :  { %1242 = vrot.lane.b32.xlu1 %v7836_v38, %s6652_s23  ;;  %v2500_v38 = vsel %vm2477_vm5, %v2435_v4, %v1431_v32  ;;  %v12031_v4 = vmov 0.0  }
 0x243   :  { %1036 = vrot.lane.b32.xlu0 %v6502_v23, %s6651_s20  ;;  %v2565_v8 = vsel %vm2542_vm6, %v2500_v38, %v1655_v29  ;;  %v5581_v29 = vld [vmem:[%s11912_s0 + $0x351] sm:$0xff]  ;;  %74 = vst.msk [vmem:[#allocation2 + $0x138] sm:$0x1] %vm35_vm10, %v12031_v4  ;;  %36 = vst.msk [vmem:[#allocation2 + $0x8] sm:$0x1] %vm35_vm10, %v12031_v4 }
 0x244   :  { %v8760_v55 = vpop.permute.xlu1 %1226  ;;  %v2630_v34 = vsel %vm2607_vm7, %v2565_v8, %v1863_v15  ;;  %v5582_v23 = vld [vmem:[%s11912_s0 + $0x130] sm:$0xff]  ;;  %38 = vst.msk [vmem:[#allocation2 + $0x18] sm:$0x1] %vm35_vm10, %v12031_v4  ;;  %40 = vst.msk [vmem:[#allocation2 + $0x28] sm:$0x1] %vm35_vm10, %v12031_v4  ;;  %v5583_v8 = vld [vmem:[%s11912_s0 + $0x140] sm:$0xff] }
 0x245   :  { %v8762_v57 = vpop.permute.xlu0 %1020  ;;  %42 = vst.msk [vmem:[#allocation2 + $0x38] sm:$0x1] %vm35_vm10, %v12031_v4  ;;  %44 = vst.msk [vmem:[#allocation2 + $0x48] sm:$0x1] %vm35_vm10, %v12031_v4  ;;  %v6504_v38 = vld [vmem:[%s11912_s0 + $0x30] sm:$0xff] }
 0x246   :  { %v5992_v50 = vpop.f32.mrb[6].mxu0  ;;  %2086 = vrot.lane.b32.xlu1 %v8641_v43, %s6656_s1  ;;  %v2242_v43 = vsel %vm2218_vm1, %v8303_v51, %v12030_v3  ;;  %46 = vst.msk [vmem:[#allocation2 + $0x58] sm:$0x1] %vm35_vm10, %v12031_v4  ;;  %48 = vst.msk [vmem:[#allocation2 + $0x68] sm:$0x1] %vm35_vm10, %v12031_v4 }
 0x247   :  { %1880 = vrot.lane.b32.xlu0 %v7811_v1, %s6655_s26  ;;  %v3048_v63 = vadd.f32 %v5992_v50, %v8476_v46  ;;  %v3042_v61 = vpop.f32.mrb[7].mxu0  ;;  %v2306_v1 = vsel %vm33_vm2, %v2242_v43, %v8651_v37  ;;  %50 = vst.msk [vmem:[#allocation2 + $0x78] sm:$0x1] %vm35_vm10, %v12031_v4  ;;  %52 = vst.msk [vmem:[#allocation2 + $0x88] sm:$0x1] %vm35_vm10, %v12031_v4  ;;  %v8893_v50 = vld [vmem:[%s11912_s0 + $0x1c0] sm:$0xff] }
 0x248   :  { %v3043_v22 = vadd.f32 %v8476_v46, %v3042_v61  ;;  %v2071_v36 = vpop.permute.xlu1 %2070  ;;  %v2371_v15 = vsel %vm2347_vm3, %v2306_v1, %v8676_v54  ;;  %72 = vst.msk [vmem:[#allocation2 + $0x128] sm:$0x1] %vm35_vm10, %v12031_v4  ;;  %76 = vst.msk [vmem:[#allocation2 + $0x148] sm:$0x1] %vm35_vm10, %v12031_v4 }
 0x249   :  { %v1865_v0 = vpop.permute.xlu0 %1864  ;;  %v3338_v53 = vmax.f32 %v3048_v63, 0.0  ;;  %v2695_v32 = vsel %vm2672_vm8, %v2630_v34, %v2071_v36  ;;  %78 = vst.msk [vmem:[#allocation2 + $0x158] sm:$0x1] %vm35_vm10, %v12031_v4  ;;  %80 = vst.msk [vmem:[#allocation2 + $0x168] sm:$0x1] %vm35_vm10, %v12031_v4 }
 0x24a   :  { %v3337_v42 = vmax.f32 %v3043_v22, 0.0  ;;  %1450 = vrot.lane.b32.xlu1 %v7998_v5, %s6653_s28  ;;  %6014 = vmatprep.mubr.msk.f32.mxu0 %vm2749_vm9, %v2695_v32  ;;  %82 = vst.msk [vmem:[#allocation2 + $0x178] sm:$0x1] %vm35_vm10, %v12031_v4  ;;  %84 = vst.msk [vmem:[#allocation2 + $0x188] sm:$0x1] %vm35_vm10, %v12031_v4  ;;  %v6505_v22 = vld [vmem:[%s11912_s0 + $0x2d0] sm:$0xff] }
 0x24b   :  { %1244 = vrot.lane.b32.xlu0 %v8005_v58, %s6652_s23  ;;  %3403 = vst.msk [vmem:[#allocation2 + $0x220] sm:$0xff] %vm33_vm2, %v3338_v53  ;;  %v2436_v58 = vsel %vm2412_vm4, %v2371_v15, %v1225_v35  ;;  %v2243_v36 = vsel %vm2218_vm1, %v6505_v22, %v7273_v47  ;;  %v8921_v32 = vld [vmem:[%s11912_s0 + $0x131] sm:$0xff] }
 0x24c   :  { %3402 = vst.msk [vmem:[#allocation2 + $0x210] sm:$0xff] %vm33_vm2, %v3337_v42  ;;  %v8793_v5 = vpop.permute.xlu1 %1434  ;;  %v2501_v37 = vsel %vm2477_vm5, %v2436_v58, %v1433_v7  ;;  %v2307_v53 = vsel %vm33_vm2, %v2243_v36, %v8724_v25  ;;  %v8926_v47 = vld [vmem:[%s11912_s0 + $0x1d0] sm:$0xff]  ;;  %v8996_v36 = vld [vmem:[%s11912_s0 + $0x1e0] sm:$0xff] }
 0x24d   :  { %v8795_v21 = vpop.permute.xlu0 %1228  ;;  %v2566_v54 = vsel %vm2542_vm6, %v2501_v37, %v1657_v24  ;;  %86 = vst.msk [vmem:[#allocation2 + $0x198] sm:$0x1] %vm35_vm10, %v12031_v4  ;;  %108 = vst.msk [vmem:[#allocation2 + $0x248] sm:$0x1] %vm35_vm10, %v12031_v4 }
 0x24e   :  { %798 = vrot.lane.b32.xlu1 %v6503_v49, %s6650_s18  ;;  %v2631_v45 = vsel %vm2607_vm7, %v2566_v54, %v1865_v0  ;;  %110 = vst.msk [vmem:[#allocation2 + $0x258] sm:$0x1] %vm35_vm10, %v12031_v4  ;;  %112 = vst.msk [vmem:[#allocation2 + $0x268] sm:$0x1] %vm35_vm10, %v12031_v4  ;;  %v6506_v0 = vld [vmem:[%s11912_s0 + $0x40] sm:$0xff] }
 0x24f   :  { %2088 = vrot.lane.b32.xlu0 %v5581_v29, %s6656_s1  ;;  %114 = vst.msk [vmem:[#allocation2 + $0x278] sm:$0x1] %vm35_vm10, %v12031_v4  ;;  %116 = vst.msk [vmem:[#allocation2 + $0x288] sm:$0x1] %vm35_vm10, %v12031_v4 }
 0x250   :  { %v8809_v33 = vpop.permute.xlu1 %782  ;;  %118 = vst.msk [vmem:[#allocation2 + $0x298] sm:$0x1] %vm35_vm10, %v12031_v4  ;;  %120 = vst.msk [vmem:[#allocation2 + $0x2a8] sm:$0x1] %vm35_vm10, %v12031_v4 }
 0x251   :  { %v2073_v35 = vpop.permute.xlu0 %2072  ;;  %122 = vst.msk [vmem:[#allocation2 + $0x2b8] sm:$0x1] %vm35_vm10, %v12031_v4  ;;  %124 = vst.msk [vmem:[#allocation2 + $0x2c8] sm:$0x1] %vm35_vm10, %v12031_v4 }
 0x252   :  { %v2696_v7 = vsel %vm2672_vm8, %v2631_v45, %v2073_v35  ;;  %1674 = vrot.lane.b32.xlu1 %v5582_v23, %s6654_s15  ;;  %144 = vst.msk [vmem:[#allocation2 + $0x368] sm:$0x1] %vm35_vm10, %v12031_v4  ;;  %146 = vst.msk [vmem:[#allocation2 + $0x378] sm:$0x1] %vm35_vm10, %v12031_v4  ;;  %v2244_v23 = vsel %vm2218_vm1, %v8407_v9, %v7271_v30 }
 0x253   :  { %1452 = vrot.lane.b32.xlu0 %v8035_v26, %s6653_s28  ;;  %148 = vst.msk [vmem:[#allocation2 + $0x388] sm:$0x1] %vm35_vm10, %v12031_v4  ;;  %150 = vst.msk [vmem:[#allocation2 + $0x398] sm:$0x1] %vm35_vm10, %v12031_v4  ;;  %6015 = vmatmul.mubr.msk.f32.gmra.mrb[22].mxu0 %vm2749_vm9, %v2696_v7  ;;  %v2308_v35 = vsel %vm33_vm2, %v2244_v23, %v8741_v18  ;;  %v8961_v7 = vld [vmem:[%s11912_s0 + $0x141] sm:$0xff] }
 0x254   :  { %152 = vst.msk [vmem:[#allocation2 + $0x3a8] sm:$0x1] %vm35_vm10, %v12031_v4  ;;  %154 = vst.msk [vmem:[#allocation2 + $0x3b8] sm:$0x1] %vm35_vm10, %v12031_v4  ;;  %v1659_v26 = vpop.permute.xlu1 %1658  ;;  %v2373_v30 = vsel %vm2347_vm3, %v2308_v35, %v8762_v57  ;;  %v5584_v57 = vld [vmem:[%s11912_s0 + $0x150] sm:$0xff]  ;;  %v2246_v35 = vsel %vm2218_vm1, %v8521_v48, %v7279_v12 }
 0x255   :  { %156 = vst.msk [vmem:[#allocation2 + $0x3c8] sm:$0x1] %vm35_vm10, %v12031_v4  ;;  %158 = vst.msk [vmem:[#allocation2 + $0x3d8] sm:$0x1] %vm35_vm10, %v12031_v4  ;;  %v1437_v24 = vpop.permute.xlu0 %1436 }
 0x256   :  { %1038 = vrot.lane.b32.xlu1 %v6504_v38, %s6651_s20 }
 0x257   :  { %800 = vrot.lane.b32.xlu0 %v8053_v28, %s6650_s18 }
 0x258   :  { %v8898_v63 = vpop.permute.xlu1 %1022 }
 0x259   :  { %v8900_v61 = vpop.permute.xlu0 %784 }
 0x25a   :  { %1882 = vrot.lane.b32.xlu1 %v8893_v50, %s6655_s26 }
 0x25b   :  { %1676 = vrot.lane.b32.xlu0 %v5583_v8, %s6654_s15 }
 0x25c   :  { %v1867_v34 = vpop.permute.xlu1 %1866 }
 0x25d   :  { %v1661_v28 = vpop.permute.xlu0 %1660 }
 0x25e   :  { %1246 = vrot.lane.b32.xlu1 %v8086_v17, %s6652_s23  ;;  %v2372_v17 = vsel %vm2347_vm3, %v2307_v53, %v8739_v59 }
 0x25f   :  { %1040 = vrot.lane.b32.xlu0 %v6506_v0, %s6651_s20  ;;  %v2437_v25 = vsel %vm2412_vm4, %v2372_v17, %v8760_v55 }
 0x260   :  { %v8930_v3 = vpop.permute.xlu1 %1230  ;;  %v2502_v42 = vsel %vm2477_vm5, %v2437_v25, %v8793_v5  ;;  %v2245_v25 = vsel %vm2218_vm1, %v8435_v56, %v7281_v14  ;;  %v9027_v14 = vld [vmem:[%s11912_s0 + $0x1f0] sm:$0xff] }
 0x261   :  { %v8932_v43 = vpop.permute.xlu0 %1024  ;;  %v2567_v29 = vsel %vm2542_vm6, %v2502_v42, %v1659_v26  ;;  %v6508_v42 = vld [vmem:[%s11912_s0 + $0x60] sm:$0xff] }
 0x262   :  { %v5995_v1 = vpop.f32.mrb[8].mxu0  ;;  %2090 = vrot.lane.b32.xlu1 %v8921_v32, %s6656_s1  ;;  %v2632_v58 = vsel %vm2607_vm7, %v2567_v29, %v1867_v34  ;;  %v9022_v29 = vld [vmem:[%s11912_s0 + $0x151] sm:$0xff] }
 0x263   :  { %1884 = vrot.lane.b32.xlu0 %v8926_v47, %s6655_s26  ;;  %v3058_v59 = vadd.f32 %v5995_v1, %v8476_v46  ;;  %v3052_v15 = vpop.f32.mrb[9].mxu0  ;;  %v2309_v1 = vsel %vm33_vm2, %v2245_v25, %v8809_v33 }
 0x264   :  { %v3053_v37 = vadd.f32 %v8476_v46, %v3052_v15  ;;  %v2075_v55 = vpop.permute.xlu1 %2074 }
 0x265   :  { %v1869_v49 = vpop.permute.xlu0 %1868  ;;  %v3340_v54 = vmax.f32 %v3058_v59, 0.0  ;;  %v2697_v5 = vsel %vm2672_vm8, %v2632_v58, %v2075_v55 }
 0x266   :  { %v3339_v45 = vmax.f32 %v3053_v37, 0.0  ;;  %1454 = vrot.lane.b32.xlu1 %v8110_v10, %s6653_s28  ;;  %6017 = vmatprep.mubr.msk.f32.mxu0 %vm2749_vm9, %v2697_v5 }
 0x267   :  { %1248 = vrot.lane.b32.xlu0 %v8117_v52, %s6652_s23  ;;  %3405 = vst.msk [vmem:[#allocation2 + $0x400] sm:$0xff] %vm33_vm2, %v3340_v54  ;;  %v2438_v52 = vsel %vm2412_vm4, %v2373_v30, %v8795_v21 }
 0x268   :  { %3404 = vst.msk [vmem:[#allocation2 + $0x3f0] sm:$0xff] %vm33_vm2, %v3339_v45  ;;  %v1439_v10 = vpop.permute.xlu1 %1438  ;;  %v2503_v18 = vsel %vm2477_vm5, %v2438_v52, %v1437_v24  ;;  %v9061_v52 = vld [vmem:[%s11912_s0 + $0x161] sm:$0xff] }
 0x269   :  { %v8966_v26 = vpop.permute.xlu0 %1232  ;;  %v2568_v38 = vsel %vm2542_vm6, %v2503_v18, %v1661_v28  ;;  %v6507_v28 = vld [vmem:[%s11912_s0 + $0x50] sm:$0xff] }
 0x26a   :  { %802 = vrot.lane.b32.xlu1 %v8127_v16, %s6650_s18  ;;  %v2633_v8 = vsel %vm2607_vm7, %v2568_v38, %v1869_v49 }
 0x26b   :  { %2092 = vrot.lane.b32.xlu0 %v8961_v7, %s6656_s1 }
 0x26c   :  { %v8980_v34 = vpop.permute.xlu1 %786 }
 0x26d   :  { %v2077_v22 = vpop.permute.xlu0 %2076 }
 0x26e   :  { %v2698_v21 = vsel %vm2672_vm8, %v2633_v8, %v2077_v22  ;;  %1678 = vrot.lane.b32.xlu1 %v5584_v57, %s6654_s15 }
 0x26f   :  { %1456 = vrot.lane.b32.xlu0 %v8148_v39, %s6653_s28  ;;  %6018 = vmatmul.mubr.msk.f32.gmra.mrb[24].mxu0 %vm2749_vm9, %v2698_v21  ;;  %v5585_v39 = vld [vmem:[%s11912_s0 + $0x160] sm:$0xff] }
 0x270   :  { %v1663_v16 = vpop.permute.xlu1 %1662 }
 0x271   :  { %v1441_v24 = vpop.permute.xlu0 %1440 }
 0x272   :  { %1042 = vrot.lane.b32.xlu1 %v6507_v28, %s6651_s20 }
 0x273   :  { %804 = vrot.lane.b32.xlu0 %v8165_v20, %s6650_s18 }
 0x274   :  { %v9001_v0 = vpop.permute.xlu1 %1026 }
 0x275   :  { %v9003_v53 = vpop.permute.xlu0 %788 }
 0x276   :  { %1886 = vrot.lane.b32.xlu1 %v8996_v36, %s6655_s26 }
 0x277   :  { %1680 = vrot.lane.b32.xlu0 %v5585_v39, %s6654_s15 }
 0x278   :  { %v1871_v17 = vpop.permute.xlu1 %1870 }
 0x279   :  { %v1665_v20 = vpop.permute.xlu0 %1664 }
 0x27a   :  { %1250 = vrot.lane.b32.xlu1 %v8196_v2, %s6652_s23  ;;  %v2374_v2 = vsel %vm2347_vm3, %v2309_v1, %v8898_v63 }
 0x27b   :  { %1044 = vrot.lane.b32.xlu0 %v6508_v42, %s6651_s20  ;;  %v2439_v33 = vsel %vm2412_vm4, %v2374_v2, %v8930_v3  ;;  %v6510_v42 = vld [vmem:[%s11912_s0 + $0x80] sm:$0xff]  ;;  %v9122_v2 = vld [vmem:[%s11912_s0 + $0x171] sm:$0xff] }
 0x27c   :  { %v9031_v56 = vpop.permute.xlu1 %1234  ;;  %v2504_v15 = vsel %vm2477_vm5, %v2439_v33, %v1439_v10  ;;  %v2310_v10 = vsel %vm33_vm2, %v2246_v35, %v8900_v61 }
 0x27d   :  { %v9033_v59 = vpop.permute.xlu0 %1028  ;;  %v2569_v37 = vsel %vm2542_vm6, %v2504_v15, %v1663_v16  ;;  %v2375_v12 = vsel %vm2347_vm3, %v2310_v10, %v8932_v43  ;;  %v5586_v43 = vld [vmem:[%s11912_s0 + $0x170] sm:$0xff] }
 0x27e   :  { %v5998_v58 = vpop.f32.mrb[10].mxu0  ;;  %2094 = vrot.lane.b32.xlu1 %v9022_v29, %s6656_s1  ;;  %v2634_v49 = vsel %vm2607_vm7, %v2569_v37, %v1871_v17  ;;  %v6509_v16 = vld [vmem:[%s11912_s0 + $0x70] sm:$0xff] }
 0x27f   :  { %1888 = vrot.lane.b32.xlu0 %v9027_v14, %s6655_s26  ;;  %v3068_v63 = vadd.f32 %v5998_v58, %v8476_v46  ;;  %v3062_v55 = vpop.f32.mrb[11].mxu0  ;;  %v9155_v10 = vld [vmem:[%s11912_s0 + $0x110] sm:$0xff] }
 0x280   :  { %v3063_v54 = vadd.f32 %v8476_v46, %v3062_v55  ;;  %v2079_v5 = vpop.permute.xlu1 %2078 }
 0x281   :  { %v1873_v3 = vpop.permute.xlu0 %1872  ;;  %v3342_v23 = vmax.f32 %v3068_v63, 0.0  ;;  %v2699_v45 = vsel %vm2672_vm8, %v2634_v49, %v2079_v5 }
 0x282   :  { %v3341_v30 = vmax.f32 %v3063_v54, 0.0  ;;  %1458 = vrot.lane.b32.xlu1 %v8220_v31, %s6653_s28  ;;  %6020 = vmatprep.mubr.msk.f32.mxu0 %vm2749_vm9, %v2699_v45  ;;  %v12033_v45 = vld [vmem:[#allocation33_spill] sm:$0xff] }
 0x283   :  { %1252 = vrot.lane.b32.xlu0 %v8227_v19, %s6652_s23  ;;  %3407 = vst.msk [vmem:[#allocation2 + $0x420] sm:$0xff] %vm33_vm2, %v3342_v23  ;;  %v2440_v19 = vsel %vm2412_vm4, %v2375_v12, %v8966_v26  ;;  %v2248_v35 = vsel %vm2218_vm1, %v8632_v60, %v12033_v45 }
 0x284   :  { %3406 = vst.msk [vmem:[#allocation2 + $0x410] sm:$0xff] %vm33_vm2, %v3341_v30  ;;  %v1443_v31 = vpop.permute.xlu1 %1442  ;;  %v2505_v61 = vsel %vm2477_vm5, %v2440_v19, %v1441_v24  ;;  %v9096_v24 = vld [vmem:[%s11912_s0 + $0x200] sm:$0xff]  ;;  %v2312_v12 = vsel %vm33_vm2, %v2248_v35, %v9003_v53 }
 0x285   :  { %v9066_v18 = vpop.permute.xlu0 %1236  ;;  %v2570_v38 = vsel %vm2542_vm6, %v2505_v61, %v1665_v20  ;;  %v12032_v20 = vld [vmem:[#allocation34_spill] sm:$0xff] }
 0x286   :  { %806 = vrot.lane.b32.xlu1 %v8237_v40, %s6650_s18  ;;  %v2635_v57 = vsel %vm2607_vm7, %v2570_v38, %v1873_v3  ;;  %v2247_v25 = vsel %vm2218_vm1, %v8549_v62, %v12032_v20  ;;  %v9127_v62 = vld [vmem:[%s11912_s0 + $0x210] sm:$0xff] }
 0x287   :  { %2096 = vrot.lane.b32.xlu0 %v9061_v52, %s6656_s1  ;;  %v2311_v1 = vsel %vm33_vm2, %v2247_v25, %v8980_v34 }
 0x288   :  { %v9080_v8 = vpop.permute.xlu1 %790 }
 0x289   :  { %v2081_v22 = vpop.permute.xlu0 %2080 }
 0x28a   :  { %v2700_v26 = vsel %vm2672_vm8, %v2635_v57, %v2081_v22  ;;  %1682 = vrot.lane.b32.xlu1 %v5586_v43, %s6654_s15 }
 0x28b   :  { %1460 = vrot.lane.b32.xlu0 %v8258_v27, %s6653_s28  ;;  %6021 = vmatmul.mubr.msk.f32.gmra.mrb[26].mxu0 %vm2749_vm9, %v2700_v26  ;;  %v5587_v27 = vld [vmem:[%s11912_s0 + $0x180] sm:$0xff] }
 0x28c   :  { %v1667_v40 = vpop.permute.xlu1 %1666 }
 0x28d   :  { %v1445_v21 = vpop.permute.xlu0 %1444 }
 0x28e   :  { %1046 = vrot.lane.b32.xlu1 %v6509_v16, %s6651_s20  ;;  %v6513_v16 = vld [vmem:[%s11912_s0 + $0x250] sm:$0xff] }
 0x28f   :  { %808 = vrot.lane.b32.xlu0 %v8275_v13, %s6650_s18 }
 0x290   :  { %v9101_v28 = vpop.permute.xlu1 %1030 }
 0x291   :  { %v9103_v39 = vpop.permute.xlu0 %792 }
 0x292   :  { %1890 = vrot.lane.b32.xlu1 %v9096_v24, %s6655_s26 }
 0x293   :  { %1684 = vrot.lane.b32.xlu0 %v5587_v27, %s6654_s15  ;;  %v9206_v27 = vld [vmem:[%s11912_s0 + $0x220] sm:$0xff] }
 0x294   :  { %v1875_v17 = vpop.permute.xlu1 %1874 }
 0x295   :  { %v1669_v13 = vpop.permute.xlu0 %1668 }
 0x296   :  { %1254 = vrot.lane.b32.xlu1 %v8303_v51, %s6652_s23  ;;  %v2376_v51 = vsel %vm2347_vm3, %v2311_v1, %v9001_v0  ;;  %v12034_v1 = vld [vmem:[#allocation36_spill] sm:$0xff] }
 0x297   :  { %1048 = vrot.lane.b32.xlu0 %v6510_v42, %s6651_s20  ;;  %v2441_v34 = vsel %vm2412_vm4, %v2376_v51, %v9031_v56  ;;  %v6514_v42 = vld [vmem:[%s11912_s0 + $0x330] sm:$0xff] }
 0x298   :  { %v9131_v33 = vpop.permute.xlu1 %1238  ;;  %v2506_v58 = vsel %vm2477_vm5, %v2441_v34, %v1443_v31  ;;  %v9166_v31 = vld [vmem:[%s11912_s0 + $0x181] sm:$0xff]  ;;  %v2249_v51 = vsel %vm2218_vm1, %v6514_v42, %v12034_v1 }
 0x299   :  { %v9133_v15 = vpop.permute.xlu0 %1032  ;;  %v2571_v63 = vsel %vm2542_vm6, %v2506_v58, %v1667_v40  ;;  %v6515_v34 = vld [vmem:[%s11912_s0 + $0x260] sm:$0xff]  ;;  %v2313_v58 = vsel %vm33_vm2, %v2249_v51, %v9080_v8 }
 0x29a   :  { %v6001_v37 = vpop.f32.mrb[12].mxu0  ;;  %2098 = vrot.lane.b32.xlu1 %v9122_v2, %s6656_s1  ;;  %v2636_v49 = vsel %vm2607_vm7, %v2571_v63, %v1875_v17  ;;  %v5589_v17 = vld [vmem:[%s11912_s0 + $0x1a0] sm:$0xff]  ;;  %v9239_v63 = vld [vmem:[%s11912_s0 + $0x230] sm:$0xff] }
 0x29b   :  { %1892 = vrot.lane.b32.xlu0 %v9127_v62, %s6655_s26  ;;  %v3078_v0 = vadd.f32 %v6001_v37, %v8476_v46  ;;  %v3072_v55 = vpop.f32.mrb[13].mxu0  ;;  %v9234_v37 = vld [vmem:[%s11912_s0 + $0x191] sm:$0xff]  ;;  %v9313_v1 = vld [vmem:[%s11912_s0 + $0x261] sm:$0xff] }
 0x29c   :  { %v3073_v54 = vadd.f32 %v8476_v46, %v3072_v55  ;;  %v2083_v5 = vpop.permute.xlu1 %2082 }
 0x29d   :  { %v1877_v56 = vpop.permute.xlu0 %1876  ;;  %v3344_v3 = vmax.f32 %v3078_v0, 0.0  ;;  %v2701_v23 = vsel %vm2672_vm8, %v2636_v49, %v2083_v5 }
 0x29e   :  { %v3343_v30 = vmax.f32 %v3073_v54, 0.0  ;;  %1462 = vrot.lane.b32.xlu1 %v8327_v11, %s6653_s28  ;;  %6023 = vmatprep.mubr.msk.f32.mxu0 %vm2749_vm9, %v2701_v23  ;;  %v2377_v11 = vsel %vm2347_vm3, %v2312_v12, %v9033_v59  ;;  %v5588_v59 = vld [vmem:[%s11912_s0 + $0x190] sm:$0xff]  ;;  %v6516_v12 = vld [vmem:[%s11912_s0 + $0x340] sm:$0xff] }
 0x29f   :  { %1256 = vrot.lane.b32.xlu0 %v9155_v10, %s6652_s23  ;;  %3409 = vst.msk [vmem:[#allocation2 + $0x440] sm:$0xff] %vm33_vm2, %v3344_v3  ;;  %v2442_v53 = vsel %vm2412_vm4, %v2377_v11, %v9066_v18  ;;  %v12035_v11 = vld [vmem:[#allocation35_spill] sm:$0xff] }
 0x2a0   :  { %3408 = vst.msk [vmem:[#allocation2 + $0x430] sm:$0xff] %vm33_vm2, %v3343_v30  ;;  %v1447_v19 = vpop.permute.xlu1 %1446  ;;  %v2507_v38 = vsel %vm2477_vm5, %v2442_v53, %v1445_v21 }
 0x2a1   :  { %v9171_v61 = vpop.permute.xlu0 %1240  ;;  %v2572_v43 = vsel %vm2542_vm6, %v2507_v38, %v1669_v13  ;;  %v9267_v38 = vld [vmem:[%s11912_s0 + $0x251] sm:$0xff] }
 0x2a2   :  { %810 = vrot.lane.b32.xlu1 %v8339_v6, %s6650_s18  ;;  %v2637_v57 = vsel %vm2607_vm7, %v2572_v43, %v1877_v56  ;;  %v9192_v6 = vld [vmem:[%s11912_s0 + $0x81] sm:$0xff] }
 0x2a3   :  { %2100 = vrot.lane.b32.xlu0 %v9166_v31, %s6656_s1 }
 0x2a4   :  { %v9185_v22 = vpop.permute.xlu1 %794 }
 0x2a5   :  { %v2085_v26 = vpop.permute.xlu0 %2084 }
 0x2a6   :  { %v2702_v18 = vsel %vm2672_vm8, %v2637_v57, %v2085_v26  ;;  %1686 = vrot.lane.b32.xlu1 %v5588_v59, %s6654_s15  ;;  %v9285_v59 = vld [vmem:[%s11912_s0 + $0x1a1] sm:$0xff] }
 0x2a7   :  { %1464 = vrot.lane.b32.xlu0 %v9192_v6, %s6653_s28  ;;  %6024 = vmatmul.mubr.msk.f32.gmra.mrb[28].mxu0 %vm2749_vm9, %v2702_v18 }
 0x2a8   :  { %v1671_v40 = vpop.permute.xlu1 %1670 }
 0x2a9   :  { %v1449_v21 = vpop.permute.xlu0 %1448 }
 0x2aa   :  { %1050 = vrot.lane.b32.xlu1 %v6513_v16, %s6651_s20  ;;  %v6519_v16 = vld [vmem:[%s11912_s0 + $0x381] sm:$0xff] }
 0x2ab   :  { %812 = vrot.lane.b32.xlu0 %v8372_v41, %s6650_s18 }
 0x2ac   :  { %v9211_v13 = vpop.permute.xlu1 %1034 }
 0x2ad   :  { %v9213_v20 = vpop.permute.xlu0 %796 }
 0x2ae   :  { %1894 = vrot.lane.b32.xlu1 %v9206_v27, %s6655_s26 }
 0x2af   :  { %1688 = vrot.lane.b32.xlu0 %v5589_v17, %s6654_s15  ;;  %v5590_v17 = vld [vmem:[%s11912_s0 + $0x370] sm:$0xff] }
 0x2b0   :  { %v1879_v25 = vpop.permute.xlu1 %1878 }
 0x2b1   :  { %v1673_v41 = vpop.permute.xlu0 %1672 }
 0x2b2   :  { %1258 = vrot.lane.b32.xlu1 %v8407_v9, %s6652_s23  ;;  %v2378_v9 = vsel %vm2347_vm3, %v2313_v58, %v9101_v28  ;;  %v6522_v58 = vld [vmem:[%s11912_s0 + $0x391] sm:$0xff] }
 0x2b3   :  { %1052 = vrot.lane.b32.xlu0 %v6515_v34, %s6651_s20  ;;  %v2443_v8 = vsel %vm2412_vm4, %v2378_v9, %v9131_v33  ;;  %v6521_v34 = vld [vmem:[%s11912_s0 + $0x270] sm:$0xff]  ;;  %v9329_v9 = vld [vmem:[%s11912_s0 + $0x400] sm:$0xff] }
 0x2b4   :  { %v9243_v0 = vpop.permute.xlu1 %1242  ;;  %v2508_v49 = vsel %vm2477_vm5, %v2443_v8, %v1447_v19  ;;  %v2250_v19 = vsel %vm2218_vm1, %v6516_v12, %v12035_v11  ;;  %v5591_v8 = vld [vmem:[%s11912_s0 + $0x380] sm:$0xff] }
 0x2b5   :  { %v9245_v55 = vpop.permute.xlu0 %1036  ;;  %v2573_v5 = vsel %vm2542_vm6, %v2508_v49, %v1671_v40  ;;  %v2314_v43 = vsel %vm33_vm2, %v2250_v19, %v9103_v39 }
 0x2b6   :  { %v6004_v54 = vpop.f32.mrb[14].mxu0  ;;  %2102 = vrot.lane.b32.xlu1 %v9234_v37, %s6656_s1  ;;  %v2638_v3 = vsel %vm2607_vm7, %v2573_v5, %v1879_v25  ;;  %v2379_v57 = vsel %vm2347_vm3, %v2314_v43, %v9133_v15 }
 0x2b7   :  { %1896 = vrot.lane.b32.xlu0 %v9239_v63, %s6655_s26  ;;  %v3088_v28 = vadd.f32 %v6004_v54, %v8476_v46  ;;  %v3082_v56 = vpop.f32.mrb[15].mxu0  ;;  %v2444_v39 = vsel %vm2412_vm4, %v2379_v57, %v9171_v61 }
 0x2b8   :  { %v3083_v23 = vadd.f32 %v8476_v46, %v3082_v56  ;;  %v2087_v45 = vpop.permute.xlu1 %2086  ;;  %v9274_v46 = vld [vmem:[%s11912_s0 + $0x2f0] sm:$0xff]  ;;  %v2509_v40 = vsel %vm2477_vm5, %v2444_v39, %v1449_v21  ;;  %v6523_v56 = vld [vmem:[%s11912_s0 + $0x120] sm:$0xff] }
 0x2b9   :  { %v1881_v33 = vpop.permute.xlu0 %1880  ;;  %v3346_v35 = vmax.f32 %v3088_v28, 0.0  ;;  %v2703_v30 = vsel %vm2672_vm8, %v2638_v3, %v2087_v45  ;;  %v2574_v15 = vsel %vm2542_vm6, %v2509_v40, %v1673_v41  ;;  %v12036_v3 = vld [vmem:[#allocation38_spill] sm:$0xff] }
 0x2ba   :  { %v3345_v53 = vmax.f32 %v3083_v23, 0.0  ;;  %1466 = vrot.lane.b32.xlu1 %v9267_v38, %s6653_s28  ;;  %6026 = vmatprep.mubr.msk.f32.mxu0 %vm2749_vm9, %v2703_v30  ;;  %v2639_v25 = vsel %vm2607_vm7, %v2574_v15, %v1881_v33  ;;  %v2251_v23 = vsel %vm2218_vm1, %v6523_v56, %v12036_v3  ;;  %v6524_v45 = vld [vmem:[%s11912_s0 + $0x280] sm:$0xff]  ;;  %v9362_v30 = vld [vmem:[%s11912_s0 + $0x410] sm:$0xff] }
 0x2bb   :  { %1260 = vrot.lane.b32.xlu0 %v9274_v46, %s6652_s23  ;;  %3411 = vst.msk [vmem:[#allocation2 + $0x460] sm:$0xff] %vm33_vm2, %v3346_v35  ;;  %v2315_v33 = vsel %vm33_vm2, %v2251_v23, %v9185_v22  ;;  %v9357_v35 = vld [vmem:[%s11912_s0 + $0x371] sm:$0xff] }
 0x2bc   :  { %3410 = vst.msk [vmem:[#allocation2 + $0x450] sm:$0xff] %vm33_vm2, %v3345_v53  ;;  %v1451_v26 = vpop.permute.xlu1 %1450 }
 0x2bd   :  { %v9290_v18 = vpop.permute.xlu0 %1244 }
 0x2be   :  { %814 = vrot.lane.b32.xlu1 %v6519_v16, %s6650_s18 }
 0x2bf   :  { %2104 = vrot.lane.b32.xlu0 %v9285_v59, %s6656_s1 }
 0x2c0   :  { %v9306_v61 = vpop.permute.xlu1 %798 }
 0x2c1   :  { %v2089_v21 = vpop.permute.xlu0 %2088 }
 0x2c2   :  { %v2704_v42 = vsel %vm2672_vm8, %v2639_v25, %v2089_v21  ;;  %1690 = vrot.lane.b32.xlu1 %v5590_v17, %s6654_s15  ;;  %v6526_v25 = vld [vmem:[%s11912_s0 + $0x130] sm:$0xff]  ;;  %v12037_v21 = vld [vmem:[#allocation37_spill] sm:$0xff] }
 0x2c3   :  { %1468 = vrot.lane.b32.xlu0 %v9313_v1, %s6653_s28  ;;  %6027 = vmatmul.mubr.msk.f32.gmra.mrb[30].mxu0 %vm2749_vm9, %v2704_v42  ;;  %v2252_v42 = vsel %vm2218_vm1, %v6526_v25, %v12037_v21  ;;  %v6533_v21 = vld [vmem:[%s11912_s0 + $0x2a0] sm:$0xff] }
 0x2c4   :  { %v1675_v41 = vpop.permute.xlu1 %1674 }
 0x2c5   :  { %v1453_v51 = vpop.permute.xlu0 %1452 }
 0x2c6   :  { %1054 = vrot.lane.b32.xlu1 %v6521_v34, %s6651_s20  ;;  %v9395_v34 = vld [vmem:[%s11912_s0 + $0x271] sm:$0xff] }
 0x2c7   :  { %816 = vrot.lane.b32.xlu0 %v6522_v58, %s6650_s18  ;;  %v9402_v58 = vld [vmem:[%s11912_s0 + $0x310] sm:$0xff] }
 0x2c8   :  { %v9334_v49 = vpop.permute.xlu1 %1038 }
 0x2c9   :  { %v9336_v54 = vpop.permute.xlu0 %800 }
 0x2ca   :  { %1898 = vrot.lane.b32.xlu1 %v9329_v9, %s6655_s26 }
 0x2cb   :  { %1692 = vrot.lane.b32.xlu0 %v5591_v8, %s6654_s15  ;;  %v2316_v8 = vsel %vm33_vm2, %v2252_v42, %v9213_v20 }
 0x2cc   :  { %v1883_v5 = vpop.permute.xlu1 %1882  ;;  %v2381_v56 = vsel %vm2347_vm3, %v2316_v8, %v9245_v55  ;;  %v9488_v8 = vld [vmem:[%s11912_s0 + $0x430] sm:$0xff] }
 0x2cd   :  { %v1677_v28 = vpop.permute.xlu0 %1676  ;;  %v2446_v20 = vsel %vm2412_vm4, %v2381_v56, %v9290_v18 }
 0x2ce   :  { %1262 = vrot.lane.b32.xlu1 %v8521_v48, %s6652_s23  ;;  %v2380_v48 = vsel %vm2347_vm3, %v2315_v33, %v9211_v13  ;;  %v9381_v13 = vld [vmem:[%s11914_s2] ss:$0 sm:$0xff]  ;;  %v6529_v33 = vld [vmem:[%s11912_s0 + $0x3a1] sm:$0xff] }
 0x2cf   :  { %1056 = vrot.lane.b32.xlu0 %v6524_v45, %s6651_s20  ;;  %v2445_v22 = vsel %vm2412_vm4, %v2380_v48, %v9243_v0  ;;  %v2511_v45 = vsel %vm2477_vm5, %v2446_v20, %v1453_v51  ;;  %v5592_v48 = vld [vmem:[%s11912_s0 + $0x390] sm:$0xff] }
 0x2d0   :  { %v9366_v12 = vpop.permute.xlu1 %1246  ;;  %v2510_v19 = vsel %vm2477_vm5, %v2445_v22, %v1451_v26  ;;  %v2576_v55 = vsel %vm2542_vm6, %v2511_v45, %v1677_v28 }
 0x2d1   :  { %v9368_v11 = vpop.permute.xlu0 %1040  ;;  %v2575_v43 = vsel %vm2542_vm6, %v2510_v19, %v1675_v41 }
 0x2d2   :  { %v6007_v53 = vpop.f32.mrb[16].mxu0  ;;  %2106 = vrot.lane.b32.xlu1 %v9357_v35, %s6656_s1  ;;  %v2640_v0 = vsel %vm2607_vm7, %v2575_v43, %v1883_v5  ;;  %v9413_v5 = vld [vmem:[%s11912_s0 + $0x381] sm:$0xff] }
 0x2d3   :  { %1900 = vrot.lane.b32.xlu0 %v9362_v30, %s6655_s26  ;;  %v3098_v57 = vadd.f32 %v9381_v13, %v6007_v53  ;;  %v3092_v39 = vpop.f32.mrb[17].mxu0  ;;  %v9441_v53 = vld [vmem:[%s11912_s0 + $0x281] sm:$0xff] }
 0x2d4   :  { %v3093_v26 = vadd.f32 %v9381_v13, %v3092_v39  ;;  %v2091_v40 = vpop.permute.xlu1 %2090  ;;  %v9455_v39 = vld [vmem:[%s11912_s0 + $0x420] sm:$0xff] }
 0x2d5   :  { %v1885_v16 = vpop.permute.xlu0 %1884  ;;  %v3348_v15 = vmax.f32 %v3098_v57, 0.0  ;;  %v2705_v17 = vsel %vm2672_vm8, %v2640_v0, %v2091_v40  ;;  %v6531_v57 = vld [vmem:[%s11912_s0 + $0x290] sm:$0xff]  ;;  %v5593_v0 = vld [vmem:[%s11912_s0 + $0x3a0] sm:$0xff] }
 0x2d6   :  { %v3347_v41 = vmax.f32 %v3093_v26, 0.0  ;;  %1470 = vrot.lane.b32.xlu1 %v9395_v34, %s6653_s28  ;;  %6029 = vmatprep.mubr.msk.f32.mxu0 %vm2749_vm9, %v2705_v17  ;;  %v2641_v22 = vsel %vm2607_vm7, %v2576_v55, %v1885_v16  ;;  %v12038_v17 = vld [vmem:[#allocation40_spill] sm:$0xff] }
 0x2d7   :  { %1264 = vrot.lane.b32.xlu0 %v9402_v58, %s6652_s23  ;;  %3414 = vst.msk [vmem:[#allocation2 + $0x131] sm:$0xff] %vm33_vm2, %v3348_v15  ;;  %v6532_v15 = vld [vmem:[%s11912_s0 + $0x140] sm:$0xff] }
 0x2d8   :  { %3413 = vst.msk [vmem:[#allocation2 + $0x121] sm:$0xff] %vm33_vm2, %v3347_v41  ;;  %v1455_v3 = vpop.permute.xlu1 %1454  ;;  %v2253_v25 = vsel %vm2218_vm1, %v6532_v15, %v12038_v17  ;;  %v9483_v41 = vld [vmem:[%s11912_s0 + $0x391] sm:$0xff] }
 0x2d9   :  { %v9418_v23 = vpop.permute.xlu0 %1248  ;;  %v2317_v42 = vsel %vm33_vm2, %v2253_v25, %v9306_v61  ;;  %v12039_v15 = vld [vmem:[#allocation39_spill] sm:$0xff] }
 0x2da   :  { %818 = vrot.lane.b32.xlu1 %v6529_v33, %s6650_s18  ;;  %v9516_v25 = vld [vmem:[%s11912_s0 + $0x291] sm:$0xff] }
 0x2db   :  { %2108 = vrot.lane.b32.xlu0 %v9413_v5, %s6656_s1 }
 0x2dc   :  { %v9434_v18 = vpop.permute.xlu1 %802 }
 0x2dd   :  { %v2093_v51 = vpop.permute.xlu0 %2092 }
 0x2de   :  { %v2706_v19 = vsel %vm2672_vm8, %v2641_v22, %v2093_v51  ;;  %1694 = vrot.lane.b32.xlu1 %v5592_v48, %s6654_s15 }
 0x2df   :  { %1472 = vrot.lane.b32.xlu0 %v9441_v53, %s6653_s28  ;;  %6030 = vmatmul.mubr.msk.f32.gmra.mrb[32].mxu0 %vm2749_vm9, %v2706_v19 }
 0x2e0   :  { %v1679_v28 = vpop.permute.xlu1 %1678 }
 0x2e1   :  { %v1457_v43 = vpop.permute.xlu0 %1456 }
 0x2e2   :  { %1058 = vrot.lane.b32.xlu1 %v6531_v57, %s6651_s20 }
 0x2e3   :  { %820 = vrot.lane.b32.xlu0 %v8596_v44, %s6650_s18 }
 0x2e4   :  { %v9460_v26 = vpop.permute.xlu1 %1042 }
 0x2e5   :  { %v9462_v40 = vpop.permute.xlu0 %804 }
 0x2e6   :  { %1902 = vrot.lane.b32.xlu1 %v9455_v39, %s6655_s26 }
 0x2e7   :  { %1696 = vrot.lane.b32.xlu0 %v5593_v0, %s6654_s15  ;;  %v6534_v0 = vld [vmem:[%s11912_s0 + $0x150] sm:$0xff] }
 0x2e8   :  { %v1887_v16 = vpop.permute.xlu1 %1886  ;;  %v2254_v17 = vsel %vm2218_vm1, %v6534_v0, %v12039_v15  ;;  %v5595_v0 = vld [vmem:[%s11912_s0 + $0x3c0] sm:$0xff] }
 0x2e9   :  { %v1681_v44 = vpop.permute.xlu0 %1680 }
 0x2ea   :  { %1266 = vrot.lane.b32.xlu1 %v8632_v60, %s6652_s23  ;;  %v2382_v60 = vsel %vm2347_vm3, %v2317_v42, %v9334_v49  ;;  %v9534_v42 = vld [vmem:[%s11912_s0 + $0x3a1] sm:$0xff] }
 0x2eb   :  { %1060 = vrot.lane.b32.xlu0 %v6533_v21, %s6651_s20  ;;  %v2447_v61 = vsel %vm2412_vm4, %v2382_v60, %v9366_v12  ;;  %v2318_v21 = vsel %vm33_vm2, %v2254_v17, %v9336_v54 }
 0x2ec   :  { %v9492_v56 = vpop.permute.xlu1 %1250  ;;  %v2512_v45 = vsel %vm2477_vm5, %v2447_v61, %v1455_v3  ;;  %v2383_v60 = vsel %vm2347_vm3, %v2318_v21, %v9368_v11 }
 0x2ed   :  { %v9494_v20 = vpop.permute.xlu0 %1044  ;;  %v2577_v55 = vsel %vm2542_vm6, %v2512_v45, %v1679_v28  ;;  %v2448_v54 = vsel %vm2412_vm4, %v2383_v60, %v9418_v23  ;;  %v6541_v60 = vld [vmem:[%s11912_s0 + $0x160] sm:$0xff] }
 0x2ee   :  { %v6010_v33 = vpop.f32.mrb[18].mxu0  ;;  %2110 = vrot.lane.b32.xlu1 %v9483_v41, %s6656_s1  ;;  %v2642_v22 = vsel %vm2607_vm7, %v2577_v55, %v1887_v16  ;;  %v9523_v16 = vld [vmem:[%s11912_s0 + $0x330] sm:$0xff]  ;;  %v6537_v55 = vld [vmem:[%s11912_s0 + $0x3c1] sm:$0xff] }
 0x2ef   :  { %1904 = vrot.lane.b32.xlu0 %v9488_v8, %s6655_s26  ;;  %v3108_v49 = vadd.f32 %v9381_v13, %v6010_v33  ;;  %v3102_v48 = vpop.f32.mrb[19].mxu0  ;;  %v2513_v33 = vsel %vm2477_vm5, %v2448_v54, %v1457_v43  ;;  %v12040_v54 = vld [vmem:[#allocation42_spill] sm:$0xff] }
 0x2f0   :  { %v3103_v51 = vadd.f32 %v9381_v13, %v3102_v48  ;;  %v2095_v19 = vpop.permute.xlu1 %2094  ;;  %v2578_v11 = vsel %vm2542_vm6, %v2513_v33, %v1681_v44  ;;  %v2255_v33 = vsel %vm2218_vm1, %v6541_v60, %v12040_v54 }
 0x2f1   :  { %v1889_v12 = vpop.permute.xlu0 %1888  ;;  %v3350_v57 = vmax.f32 %v3108_v49, 0.0  ;;  %v2707_v3 = vsel %vm2672_vm8, %v2642_v22, %v2095_v19  ;;  %v5594_v49 = vld [vmem:[%s11912_s0 + $0x3b0] sm:$0xff] }
 0x2f2   :  { %v3349_v28 = vmax.f32 %v3103_v51, 0.0  ;;  %1474 = vrot.lane.b32.xlu1 %v9516_v25, %s6653_s28  ;;  %6032 = vmatprep.mubr.msk.f32.mxu0 %vm2749_vm9, %v2707_v3  ;;  %v2643_v48 = vsel %vm2607_vm7, %v2578_v11, %v1889_v12  ;;  %v9562_v51 = vld [vmem:[%s11912_s0 + $0x2a1] sm:$0xff]  ;;  %v6539_v12 = vld [vmem:[%s11912_s0 + $0x2b0] sm:$0xff] }
 0x2f3   :  { %1268 = vrot.lane.b32.xlu0 %v9523_v16, %s6652_s23  ;;  %3416 = vst.msk [vmem:[#allocation2 + $0x151] sm:$0xff] %vm33_vm2, %v3350_v57  ;;  %v6540_v57 = vld [vmem:[%s11912_s0 + $0x3d1] sm:$0xff]  ;;  %v9578_v3 = vld [vmem:[%s11912_s0 + $0x440] sm:$0xff] }
 0x2f4   :  { %3415 = vst.msk [vmem:[#allocation2 + $0x141] sm:$0xff] %vm33_vm2, %v3349_v28  ;;  %v1459_v61 = vpop.permute.xlu1 %1458  ;;  %v6543_v11 = vld [vmem:[%s11912_s0 + $0x2c0] sm:$0xff] }
 0x2f5   :  { %v9539_v45 = vpop.permute.xlu0 %1252 }
 0x2f6   :  { %822 = vrot.lane.b32.xlu1 %v6537_v55, %s6650_s18  ;;  %v9598_v55 = vld [vmem:[%s11912_s0 + $0x340] sm:$0xff] }
 0x2f7   :  { %2112 = vrot.lane.b32.xlu0 %v9534_v42, %s6656_s1 }
 0x2f8   :  { %v9555_v23 = vpop.permute.xlu1 %806 }
 0x2f9   :  { %v2097_v43 = vpop.permute.xlu0 %2096 }
 0x2fa   :  { %v2708_v22 = vsel %vm2672_vm8, %v2643_v48, %v2097_v43  ;;  %1698 = vrot.lane.b32.xlu1 %v5594_v49, %s6654_s15  ;;  %v2319_v49 = vsel %vm33_vm2, %v2255_v33, %v9434_v18  ;;  %v9611_v48 = vld [vmem:[%s11912_s0 + $0x3b1] sm:$0xff] }
 0x2fb   :  { %1476 = vrot.lane.b32.xlu0 %v9562_v51, %s6653_s28  ;;  %6033 = vmatmul.mubr.msk.f32.gmra.mrb[34].mxu0 %vm2749_vm9, %v2708_v22  ;;  %12041 = vst [vmem:[#allocation7_spill] sm:$0xff] %v9611_v48  ;;  %v9616_v43 = vld [vmem:[%s11912_s0 + $0x450] sm:$0xff]  ;;  %v2384_v22 = vsel %vm2347_vm3, %v2319_v49, %v9460_v26 }
 0x2fc   :  { %v1683_v44 = vpop.permute.xlu1 %1682  ;;  %12042 = vst [vmem:[#allocation6_spill] sm:$0xff] %v9616_v43  ;;  %v2449_v18 = vsel %vm2412_vm4, %v2384_v22, %v9492_v56 }
 0x2fd   :  { %v1461_v19 = vpop.permute.xlu0 %1460 }
 0x2fe   :  { %1062 = vrot.lane.b32.xlu1 %v6539_v12, %s6651_s20 }
 0x2ff   :  { %824 = vrot.lane.b32.xlu0 %v6540_v57, %s6650_s18 }
 0x300   :  { %v9583_v15 = vpop.permute.xlu1 %1046 }
 0x301   :  { %v9585_v17 = vpop.permute.xlu0 %808 }
 0x302   :  { %1906 = vrot.lane.b32.xlu1 %v9578_v3, %s6655_s26 }
 0x303   :  { %1700 = vrot.lane.b32.xlu0 %v5595_v0, %s6654_s15  ;;  %v2514_v0 = vsel %vm2477_vm5, %v2449_v18, %v1459_v61  ;;  %v6544_v18 = vld [vmem:[%s11912_s0 + $0x170] sm:$0xff] }
 0x304   :  { %v1891_v28 = vpop.permute.xlu1 %1890  ;;  %v2579_v54 = vsel %vm2542_vm6, %v2514_v0, %v1683_v44  ;;  %v9644_v0 = vld [vmem:[%s11912_s0 + $0x2b1] sm:$0xff] }
 0x305   :  { %v1685_v21 = vpop.permute.xlu0 %1684  ;;  %12044 = vst [vmem:[#allocation14_spill] sm:$0xff] %v9644_v0 }
 0x306   :  { %1270 = vrot.lane.b32.xlu1 %v9598_v55, %s6652_s23 }
 0x307   :  { %1064 = vrot.lane.b32.xlu0 %v6543_v11, %s6651_s20  ;;  %v2644_v11 = vsel %vm2607_vm7, %v2579_v54, %v1891_v28 }
 0x308   :  { %v9620_v12 = vpop.permute.xlu1 %1254 }
 0x309   :  { %v9622_v57 = vpop.permute.xlu0 %1048 }
 0x30a   :  { %v6013_v60 = vpop.f32.mrb[20].mxu0  ;;  %2114 = vrot.lane.b32.xlu1 %v9611_v48, %s6656_s1  ;;  %v12043_v48 = vld [vmem:[#allocation41_spill] sm:$0xff] }
 0x30b   :  { %1908 = vrot.lane.b32.xlu0 %v9616_v43, %s6655_s26  ;;  %v3118_v26 = vadd.f32 %v9381_v13, %v6013_v60  ;;  %v3112_v33 = vpop.f32.mrb[21].mxu0  ;;  %v2256_v43 = vsel %vm2218_vm1, %v6544_v18, %v12043_v48  ;;  %v9662_v48 = vld [vmem:[%s11912_s0 + $0x3c1] sm:$0xff] }
 0x30c   :  { %v3113_v49 = vadd.f32 %v9381_v13, %v3112_v33  ;;  %v2099_v4 = vpop.permute.xlu1 %2098  ;;  %v2320_v28 = vsel %vm33_vm2, %v2256_v43, %v9462_v40  ;;  %12046 = vst [vmem:[#allocation13_spill] sm:$0xff] %v9662_v48  ;;  %v6547_v33 = vld [vmem:[%s11912_s0 + $0x1b1] sm:$0xff] }
 0x30d   :  { %v1893_v56 = vpop.permute.xlu0 %1892  ;;  %v3352_v22 = vmax.f32 %v3118_v26, 0.0  ;;  %v2709_v61 = vsel %vm2672_vm8, %v2644_v11, %v2099_v4  ;;  %v9651_v4 = vld [vmem:[%s11912_s0 + $0x350] sm:$0xff]  ;;  %v2385_v60 = vsel %vm2347_vm3, %v2320_v28, %v9494_v20  ;;  %v9706_v28 = vld [vmem:[%s11912_s0 + $0x460] sm:$0xff] }
 0x30e   :  { %v3351_v44 = vmax.f32 %v3113_v49, 0.0  ;;  %1478 = vrot.lane.b32.xlu1 %v9644_v0, %s6653_s28  ;;  %12045 = vst [vmem:[#allocation11_spill] sm:$0xff] %v9651_v4  ;;  %6035 = vmatprep.mubr.msk.f32.mxu0 %vm2749_vm9, %v2709_v61  ;;  %v2450_v40 = vsel %vm2412_vm4, %v2385_v60, %v9539_v45  ;;  %v5596_v11 = vld [vmem:[%s11912_s0 + $0x3d0] sm:$0xff]  ;;  %v9690_v61 = vld [vmem:[%s11912_s0 + $0x2c1] sm:$0xff]  ;;  %12048 = vst [vmem:[#allocation12_spill] sm:$0xff] %v9706_v28 }
 0x30f   :  { %1272 = vrot.lane.b32.xlu0 %v9651_v4, %s6652_s23  ;;  %3418 = vst.msk [vmem:[#allocation2 + $0x171] sm:$0xff] %vm33_vm2, %v3352_v22  ;;  %v2515_v43 = vsel %vm2477_vm5, %v2450_v40, %v1461_v19  ;;  %12047 = vst [vmem:[#allocation10_spill] sm:$0xff] %v9690_v61  ;;  %v5597_v60 = vld [vmem:[%s11912_s0 + $0x3e0] sm:$0xff] }
 0x310   :  { %3417 = vst.msk [vmem:[#allocation2 + $0x161] sm:$0xff] %vm33_vm2, %v3351_v44  ;;  %v1463_v54 = vpop.permute.xlu1 %1462  ;;  %v2580_v20 = vsel %vm2542_vm6, %v2515_v43, %v1685_v21  ;;  %v6550_v44 = vld [vmem:[%s11912_s0 + $0x1c1] sm:$0xff] }
 0x311   :  { %v9667_v26 = vpop.permute.xlu0 %1256  ;;  %v2645_v49 = vsel %vm2607_vm7, %v2580_v20, %v1893_v56  ;;  %v6549_v56 = vld [vmem:[%s11912_s0 + $0xa0] sm:$0xff] }
 0x312   :  { %826 = vrot.lane.b32.xlu1 %v6547_v33, %s6650_s18 }
 0x313   :  { %2116 = vrot.lane.b32.xlu0 %v9662_v48, %s6656_s1 }
 0x314   :  { %v9683_v45 = vpop.permute.xlu1 %810 }
 0x315   :  { %v2101_v19 = vpop.permute.xlu0 %2100 }
 0x316   :  { %v2710_v22 = vsel %vm2672_vm8, %v2645_v49, %v2101_v19  ;;  %1702 = vrot.lane.b32.xlu1 %v5596_v11, %s6654_s15  ;;  %v6551_v11 = vld [vmem:[%s11912_s0 + $0x180] sm:$0xff]  ;;  %v12049_v49 = vld [vmem:[#allocation44_spill] sm:$0xff] }
 0x317   :  { %1480 = vrot.lane.b32.xlu0 %v9690_v61, %s6653_s28  ;;  %6036 = vmatmul.mubr.msk.f32.gmra.mrb[36].mxu0 %vm2749_vm9, %v2710_v22  ;;  %v2257_v19 = vsel %vm2218_vm1, %v6551_v11, %v12049_v49  ;;  %v6552_v22 = vld [vmem:[%s11912_s0 + $0x11] sm:$0xff] }
 0x318   :  { %v1687_v21 = vpop.permute.xlu1 %1686  ;;  %v9741_v11 = vld [vmem:[%s11912_s0 + $0x470] sm:$0xff] }
 0x319   :  { %v1465_v18 = vpop.permute.xlu0 %1464  ;;  %12051 = vst [vmem:[#allocation16_spill] sm:$0xff] %v9741_v11 }
 0x31a   :  { %1066 = vrot.lane.b32.xlu1 %v6549_v56, %s6651_s20  ;;  %v6553_v56 = vld [vmem:[%s11912_s0 + $0xb0] sm:$0xff] }
 0x31b   :  { %828 = vrot.lane.b32.xlu0 %v6550_v44, %s6650_s18  ;;  %v2321_v44 = vsel %vm33_vm2, %v2257_v19, %v9555_v23 }
 0x31c   :  { %v9711_v40 = vpop.permute.xlu1 %1050  ;;  %v2386_v49 = vsel %vm2347_vm3, %v2321_v44, %v9583_v15 }
 0x31d   :  { %v9713_v43 = vpop.permute.xlu0 %812  ;;  %v2451_v23 = vsel %vm2412_vm4, %v2386_v49, %v9620_v12 }
 0x31e   :  { %1910 = vrot.lane.b32.xlu1 %v9706_v28, %s6655_s26  ;;  %v2516_v19 = vsel %vm2477_vm5, %v2451_v23, %v1463_v54  ;;  %v6554_v23 = vld [vmem:[%s11912_s0 + $0x190] sm:$0xff] }
 0x31f   :  { %1704 = vrot.lane.b32.xlu0 %v5597_v60, %s6654_s15  ;;  %v9736_v60 = vld [vmem:[%s11912_s0 + $0x3d1] sm:$0xff]  ;;  %v2581_v61 = vsel %vm2542_vm6, %v2516_v19, %v1687_v21  ;;  %v6555_v19 = vld [vmem:[%s11912_s0 + $0xa1] sm:$0xff] }
 0x320   :  { %v1895_v33 = vpop.permute.xlu1 %1894  ;;  %12050 = vst [vmem:[#allocation9_spill] sm:$0xff] %v9736_v60 }
 0x321   :  { %v1689_v20 = vpop.permute.xlu0 %1688  ;;  %v2646_v48 = vsel %vm2607_vm7, %v2581_v61, %v1895_v33  ;;  %v6556_v61 = vld [vmem:[%s11912_s0 + $0x21] sm:$0xff] }
 0x322   :  { %1274 = vrot.lane.b32.xlu1 %v6552_v22, %s6652_s23 }
 0x323   :  { %1068 = vrot.lane.b32.xlu0 %v6553_v56, %s6651_s20 }
 0x324   :  { %v9745_v22 = vpop.permute.xlu1 %1258 }
 0x325   :  { %v9747_v28 = vpop.permute.xlu0 %1052 }
 0x326   :  { %v6016_v56 = vpop.f32.mrb[22].mxu0  ;;  %2118 = vrot.lane.b32.xlu1 %v9736_v60, %s6656_s1  ;;  %v12052_v60 = vld [vmem:[#allocation43_spill] sm:$0xff] }
 0x327   :  { %1912 = vrot.lane.b32.xlu0 %v9741_v11, %s6655_s26  ;;  %v3128_v15 = vadd.f32 %v9381_v13, %v6016_v56  ;;  %v3122_v44 = vpop.f32.mrb[23].mxu0  ;;  %v2258_v11 = vsel %vm2218_vm1, %v6554_v23, %v12052_v60  ;;  %v6557_v56 = vld [vmem:[%s11912_s0 + $0x1d1] sm:$0xff] }
 0x328   :  { %v3123_v4 = vadd.f32 %v9381_v13, %v3122_v44  ;;  %v2103_v0 = vpop.permute.xlu1 %2102 }
 0x329   :  { %v1897_v12 = vpop.permute.xlu0 %1896  ;;  %v3354_v49 = vmax.f32 %v3128_v15, 0.0  ;;  %v2711_v54 = vsel %vm2672_vm8, %v2646_v48, %v2103_v0  ;;  %v2322_v0 = vsel %vm33_vm2, %v2258_v11, %v9585_v17 }
 0x32a   :  { %v3353_v21 = vmax.f32 %v3123_v4, 0.0  ;;  %1482 = vrot.lane.b32.xlu1 %v6555_v19, %s6653_s28  ;;  %6038 = vmatprep.mubr.msk.f32.mxu0 %vm2749_vm9, %v2711_v54  ;;  %v9781_v4 = vld [vmem:[%s11912_s0 + $0x3e1] sm:$0xff]  ;;  %v2387_v48 = vsel %vm2347_vm3, %v2322_v0, %v9622_v57 }
 0x32b   :  { %1276 = vrot.lane.b32.xlu0 %v6556_v61, %s6652_s23  ;;  %3420 = vst.msk [vmem:[#allocation2 + $0x191] sm:$0xff] %vm33_vm2, %v3354_v49  ;;  %v2452_v17 = vsel %vm2412_vm4, %v2387_v48, %v9667_v26  ;;  %v6561_v0 = vld [vmem:[%s11912_s0 + $0x360] sm:$0xff] }
 0x32c   :  { %3419 = vst.msk [vmem:[#allocation2 + $0x181] sm:$0xff] %vm33_vm2, %v3353_v21  ;;  %v1467_v33 = vpop.permute.xlu1 %1466  ;;  %v2517_v11 = vsel %vm2477_vm5, %v2452_v17, %v1465_v18  ;;  %v6558_v18 = vld [vmem:[%s11912_s0 + $0xb1] sm:$0xff]  ;;  %v12053_v48 = vld [vmem:[#allocation46_spill] sm:$0xff] }
 0x32d   :  { %v9786_v60 = vpop.permute.xlu0 %1260  ;;  %v2582_v57 = vsel %vm2542_vm6, %v2517_v11, %v1689_v20  ;;  %v2259_v17 = vsel %vm2218_vm1, %v6561_v0, %v12053_v48  ;;  %v6562_v11 = vld [vmem:[%s11912_s0 + $0x31] sm:$0xff] }
 0x32e   :  { %830 = vrot.lane.b32.xlu1 %v6557_v56, %s6650_s18  ;;  %v2647_v15 = vsel %vm2607_vm7, %v2582_v57, %v1897_v12  ;;  %v6559_v12 = vld [vmem:[%s11912_s0 + $0xc0] sm:$0xff] }
 0x32f   :  { %2120 = vrot.lane.b32.xlu0 %v9781_v4, %s6656_s1  ;;  %v5630_v56 = vld [vmem:[%s11912_s0 + $0x1c1] sm:$0xff] }
 0x330   :  { %v9799_v44 = vpop.permute.xlu1 %814 }
 0x331   :  { %v2105_v49 = vpop.permute.xlu0 %2104 }
 0x332   :  { %v2712_v26 = vsel %vm2672_vm8, %v2647_v15, %v2105_v49  ;;  %1706 = vrot.lane.b32.xlu1 %v8893_v50, %s6654_s15  ;;  %v6560_v50 = vld [vmem:[%s11912_s0 + $0x1e1] sm:$0xff] }
 0x333   :  { %1484 = vrot.lane.b32.xlu0 %v6558_v18, %s6653_s28  ;;  %6039 = vmatmul.mubr.msk.f32.gmra.mrb[38].mxu0 %vm2749_vm9, %v2712_v26 }
 0x334   :  { %v1691_v54 = vpop.permute.xlu1 %1690 }
 0x335   :  { %v1469_v20 = vpop.permute.xlu0 %1468 }
 0x336   :  { %1070 = vrot.lane.b32.xlu1 %v6559_v12, %s6651_s20 }
 0x337   :  { %832 = vrot.lane.b32.xlu0 %v6560_v50, %s6650_s18 }
 0x338   :  { %v9817_v23 = vpop.permute.xlu1 %1054 }
 0x339   :  { %v9819_v21 = vpop.permute.xlu0 %816 }
 0x33a   :  { %1914 = vrot.lane.b32.xlu1 %v8921_v32, %s6655_s26  ;;  %v6563_v32 = vld [vmem:[%s11912_s0 + $0xd0] sm:$0xff] }
 0x33b   :  { %1708 = vrot.lane.b32.xlu0 %v8926_v47, %s6654_s15  ;;  %v2323_v47 = vsel %vm33_vm2, %v2259_v17, %v9683_v45 }
 0x33c   :  { %v1899_v19 = vpop.permute.xlu1 %1898  ;;  %v2388_v57 = vsel %vm2347_vm3, %v2323_v47, %v9711_v40  ;;  %v12054_v47 = vld [vmem:[#allocation45_spill] sm:$0xff] }
 0x33d   :  { %v1693_v61 = vpop.permute.xlu0 %1692  ;;  %v2453_v26 = vsel %vm2412_vm4, %v2388_v57, %v9745_v22 }
 0x33e   :  { %1278 = vrot.lane.b32.xlu1 %v6562_v11, %s6652_s23  ;;  %v2518_v18 = vsel %vm2477_vm5, %v2453_v26, %v1467_v33  ;;  %v5631_v26 = vld [vmem:[%s11912_s0 + $0x1d1] sm:$0xff] }
 0x33f   :  { %1072 = vrot.lane.b32.xlu0 %v6563_v32, %s6651_s20  ;;  %v2583_v45 = vsel %vm2542_vm6, %v2518_v18, %v1691_v54  ;;  %v6564_v32 = vld [vmem:[%s11912_s0 + $0x370] sm:$0xff] }
 0x340   :  { %v9845_v15 = vpop.permute.xlu1 %1262  ;;  %v2648_v0 = vsel %vm2607_vm7, %v2583_v45, %v1899_v19  ;;  %v6566_v19 = vld [vmem:[%s11912_s0 + $0x41] sm:$0xff] }
 0x341   :  { %v9847_v49 = vpop.permute.xlu0 %1056 }
 0x342   :  { %v6019_v12 = vpop.f32.mrb[24].mxu0  ;;  %2122 = vrot.lane.b32.xlu1 %v5630_v56, %s6656_s1  ;;  %v6565_v56 = vld [vmem:[%s11912_s0 + $0xc1] sm:$0xff] }
 0x343   :  { %1916 = vrot.lane.b32.xlu0 %v8961_v7, %s6655_s26  ;;  %v3138_v50 = vadd.f32 %v9381_v13, %v6019_v12  ;;  %v3132_v40 = vpop.f32.mrb[25].mxu0  ;;  %v2260_v7 = vsel %vm2218_vm1, %v6564_v32, %v12054_v47 }
 0x344   :  { %v3133_v48 = vadd.f32 %v9381_v13, %v3132_v40  ;;  %v2107_v17 = vpop.permute.xlu1 %2106  ;;  %v2324_v57 = vsel %vm33_vm2, %v2260_v7, %v9713_v43  ;;  %v6567_v40 = vld [vmem:[%s11912_s0 + $0x1f1] sm:$0xff] }
 0x345   :  { %v1901_v11 = vpop.permute.xlu0 %1900  ;;  %v3356_v22 = vmax.f32 %v3138_v50, 0.0  ;;  %v2713_v33 = vsel %vm2672_vm8, %v2648_v0, %v2107_v17  ;;  %v2389_v18 = vsel %vm2347_vm3, %v2324_v57, %v9747_v28  ;;  %v6572_v57 = vld [vmem:[%s11912_s0 + $0x51] sm:$0xff] }
 0x346   :  { %v3355_v54 = vmax.f32 %v3133_v48, 0.0  ;;  %1486 = vrot.lane.b32.xlu1 %v6565_v56, %s6653_s28  ;;  %6041 = vmatprep.mubr.msk.f32.mxu0 %vm2749_vm9, %v2713_v33  ;;  %v2454_v50 = vsel %vm2412_vm4, %v2389_v18, %v9786_v60  ;;  %v6568_v60 = vld [vmem:[%s11912_s0 + $0xd1] sm:$0xff] }
 0x347   :  { %1280 = vrot.lane.b32.xlu0 %v6566_v19, %s6652_s23  ;;  %3422 = vst.msk [vmem:[#allocation2 + $0x371] sm:$0xff] %vm33_vm2, %v3356_v22  ;;  %v2519_v43 = vsel %vm2477_vm5, %v2454_v50, %v1469_v20  ;;  %v12055_v56 = vld [vmem:[#allocation48_spill] sm:$0xff] }
 0x348   :  { %3421 = vst.msk [vmem:[#allocation2 + $0x361] sm:$0xff] %vm33_vm2, %v3355_v54  ;;  %v1471_v12 = vpop.permute.xlu1 %1470  ;;  %v2584_v28 = vsel %vm2542_vm6, %v2519_v43, %v1693_v61  ;;  %v6571_v54 = vld [vmem:[%s11912_s0 + $0x380] sm:$0xff] }
 0x349   :  { %v9883_v45 = vpop.permute.xlu0 %1264  ;;  %v2649_v0 = vsel %vm2607_vm7, %v2584_v28, %v1901_v11  ;;  %v6569_v11 = vld [vmem:[%s11912_s0 + $0xe0] sm:$0xff]  ;;  %v2261_v19 = vsel %vm2218_vm1, %v6571_v54, %v12055_v56  ;;  %v6574_v54 = vld [vmem:[%s11912_s0 + $0x390] sm:$0xff] }
 0x34a   :  { %834 = vrot.lane.b32.xlu1 %v6567_v40, %s6650_s18  ;;  %v12056_v56 = vld [vmem:[#allocation47_spill] sm:$0xff] }
 0x34b   :  { %2124 = vrot.lane.b32.xlu0 %v5631_v26, %s6656_s1  ;;  %v5632_v26 = vld [vmem:[%s11912_s0 + $0x1e1] sm:$0xff] }
 0x34c   :  { %v9895_v48 = vpop.permute.xlu1 %818 }
 0x34d   :  { %v2109_v17 = vpop.permute.xlu0 %2108 }
 0x34e   :  { %v2714_v22 = vsel %vm2672_vm8, %v2649_v0, %v2109_v17  ;;  %1710 = vrot.lane.b32.xlu1 %v8996_v36, %s6654_s15  ;;  %v6570_v36 = vld [vmem:[%s11912_s0 + $0x201] sm:$0xff] }
 0x34f   :  { %1488 = vrot.lane.b32.xlu0 %v6568_v60, %s6653_s28  ;;  %6042 = vmatmul.mubr.msk.f32.gmra.mrb[40].mxu0 %vm2749_vm9, %v2714_v22 }
 0x350   :  { %v1695_v20 = vpop.permute.xlu1 %1694 }
 0x351   :  { %v1473_v61 = vpop.permute.xlu0 %1472 }
 0x352   :  { %1074 = vrot.lane.b32.xlu1 %v6569_v11, %s6651_s20 }
 0x353   :  { %836 = vrot.lane.b32.xlu0 %v6570_v36, %s6650_s18 }
 0x354   :  { %v9913_v33 = vpop.permute.xlu1 %1058 }
 0x355   :  { %v9915_v32 = vpop.permute.xlu0 %820 }
 0x356   :  { %1918 = vrot.lane.b32.xlu1 %v9022_v29, %s6655_s26  ;;  %v6573_v29 = vld [vmem:[%s11912_s0 + $0xf0] sm:$0xff] }
 0x357   :  { %1712 = vrot.lane.b32.xlu0 %v9027_v14, %s6654_s15  ;;  %v2325_v14 = vsel %vm33_vm2, %v2261_v19, %v9799_v44  ;;  %v6575_v19 = vld [vmem:[%s11912_s0 + $0xe1] sm:$0xff] }
 0x358   :  { %v1903_v47 = vpop.permute.xlu1 %1902  ;;  %v2390_v18 = vsel %vm2347_vm3, %v2325_v14, %v9817_v23 }
 0x359   :  { %v1697_v7 = vpop.permute.xlu0 %1696  ;;  %v2455_v40 = vsel %vm2412_vm4, %v2390_v18, %v9845_v15 }
 0x35a   :  { %1282 = vrot.lane.b32.xlu1 %v6572_v57, %s6652_s23  ;;  %v2520_v28 = vsel %vm2477_vm5, %v2455_v40, %v1471_v12 }
 0x35b   :  { %1076 = vrot.lane.b32.xlu0 %v6573_v29, %s6651_s20  ;;  %v2585_v44 = vsel %vm2542_vm6, %v2520_v28, %v1695_v20  ;;  %v5633_v29 = vld [vmem:[%s11912_s0 + $0x1f1] sm:$0xff] }
 0x35c   :  { %v9941_v50 = vpop.permute.xlu1 %1266  ;;  %v2650_v22 = vsel %vm2607_vm7, %v2585_v44, %v1903_v47  ;;  %v6576_v47 = vld [vmem:[%s11912_s0 + $0x61] sm:$0xff]  ;;  %v6577_v28 = vld [vmem:[%s11912_s0 + $0x211] sm:$0xff] }
 0x35d   :  { %v9943_v43 = vpop.permute.xlu0 %1060 }
 0x35e   :  { %v6022_v0 = vpop.f32.mrb[26].mxu0  ;;  %2126 = vrot.lane.b32.xlu1 %v5632_v26, %s6656_s1 }
 0x35f   :  { %1920 = vrot.lane.b32.xlu0 %v9061_v52, %s6655_s26  ;;  %v3148_v17 = vadd.f32 %v9381_v13, %v6022_v0  ;;  %v3142_v23 = vpop.f32.mrb[27].mxu0  ;;  %v2262_v52 = vsel %vm2218_vm1, %v6574_v54, %v12056_v56  ;;  %v12057_v54 = vld [vmem:[#allocation50_spill] sm:$0xff] }
 0x360   :  { %v3143_v60 = vadd.f32 %v9381_v13, %v3142_v23  ;;  %v2111_v11 = vpop.permute.xlu1 %2110  ;;  %v2326_v57 = vsel %vm33_vm2, %v2262_v52, %v9819_v21  ;;  %v6582_v52 = vld [vmem:[%s11912_s0 + $0x71] sm:$0xff] }
 0x361   :  { %v1905_v36 = vpop.permute.xlu0 %1904  ;;  %v3358_v15 = vmax.f32 %v3148_v17, 0.0  ;;  %v2715_v12 = vsel %vm2672_vm8, %v2650_v22, %v2111_v11  ;;  %v2391_v14 = vsel %vm2347_vm3, %v2326_v57, %v9847_v49  ;;  %v6579_v22 = vld [vmem:[%s11912_s0 + $0x100] sm:$0xff] }
 0x362   :  { %v3357_v20 = vmax.f32 %v3143_v60, 0.0  ;;  %1490 = vrot.lane.b32.xlu1 %v6575_v19, %s6653_s28  ;;  %6044 = vmatprep.mubr.msk.f32.mxu0 %vm2749_vm9, %v2715_v12  ;;  %v2456_v40 = vsel %vm2412_vm4, %v2391_v14, %v9883_v45  ;;  %v6578_v45 = vld [vmem:[%s11912_s0 + $0xf1] sm:$0xff]  ;;  %v6581_v12 = vld [vmem:[%s11912_s0 + $0x3a0] sm:$0xff] }
 0x363   :  { %1284 = vrot.lane.b32.xlu0 %v6576_v47, %s6652_s23  ;;  %3424 = vst.msk [vmem:[#allocation2 + $0x391] sm:$0xff] %vm33_vm2, %v3358_v15  ;;  %v2521_v21 = vsel %vm2477_vm5, %v2456_v40, %v1473_v61  ;;  %v2263_v56 = vsel %vm2218_vm1, %v6581_v12, %v12057_v54  ;;  %v6585_v54 = vld [vmem:[%s11912_s0 + $0x3f1] sm:$0xff] }
 0x364   :  { %3423 = vst.msk [vmem:[#allocation2 + $0x381] sm:$0xff] %vm33_vm2, %v3357_v20  ;;  %v1475_v26 = vpop.permute.xlu1 %1474  ;;  %v2586_v49 = vsel %vm2542_vm6, %v2521_v21, %v1697_v7 }
 0x365   :  { %v9979_v18 = vpop.permute.xlu0 %1268  ;;  %v2651_v0 = vsel %vm2607_vm7, %v2586_v49, %v1905_v36 }
 0x366   :  { %838 = vrot.lane.b32.xlu1 %v6577_v28, %s6650_s18 }
 0x367   :  { %2128 = vrot.lane.b32.xlu0 %v5633_v29, %s6656_s1 }
 0x368   :  { %v9991_v44 = vpop.permute.xlu1 %822 }
 0x369   :  { %v2113_v17 = vpop.permute.xlu0 %2112 }
 0x36a   :  { %v2716_v23 = vsel %vm2672_vm8, %v2651_v0, %v2113_v17  ;;  %1714 = vrot.lane.b32.xlu1 %v9096_v24, %s6654_s15  ;;  %v6580_v24 = vld [vmem:[%s11912_s0 + $0x221] sm:$0xff]  ;;  %v6583_v0 = vld [vmem:[%s11912_s0 + $0x3b0] sm:$0xff] }
 0x36b   :  { %1492 = vrot.lane.b32.xlu0 %v6578_v45, %s6653_s28  ;;  %6045 = vmatmul.mubr.msk.f32.gmra.mrb[42].mxu0 %vm2749_vm9, %v2716_v23  ;;  %v12058_v17 = vld [vmem:[#allocation49_spill] sm:$0xff] }
 0x36c   :  { %v1699_v61 = vpop.permute.xlu1 %1698  ;;  %v6584_v45 = vld [vmem:[%s11912_s0 + $0x101] sm:$0xff] }
 0x36d   :  { %v1477_v7 = vpop.permute.xlu0 %1476 }
 0x36e   :  { %1078 = vrot.lane.b32.xlu1 %v6579_v22, %s6651_s20  ;;  %v5635_v22 = vld [vmem:[%s11912_s0 + $0x211] sm:$0xff] }
 0x36f   :  { %840 = vrot.lane.b32.xlu0 %v6580_v24, %s6650_s18 }
 0x370   :  { %v10009_v60 = vpop.permute.xlu1 %1062 }
 0x371   :  { %v10011_v11 = vpop.permute.xlu0 %824 }
 0x372   :  { %1922 = vrot.lane.b32.xlu1 %v9122_v2, %s6655_s26  ;;  %v2327_v2 = vsel %vm33_vm2, %v2263_v56, %v9895_v48 }
 0x373   :  { %1716 = vrot.lane.b32.xlu0 %v9127_v62, %s6654_s15  ;;  %v5634_v62 = vld [vmem:[%s11912_s0 + $0x201] sm:$0xff]  ;;  %v2392_v20 = vsel %vm2347_vm3, %v2327_v2, %v9913_v33 }
 0x374   :  { %v1907_v36 = vpop.permute.xlu1 %1906  ;;  %v2457_v57 = vsel %vm2412_vm4, %v2392_v20, %v9941_v50  ;;  %v6587_v20 = vld [vmem:[%s11912_s0 + $0x2e0] sm:$0xff] }
 0x375   :  { %v1701_v15 = vpop.permute.xlu0 %1700  ;;  %v2522_v29 = vsel %vm2477_vm5, %v2457_v57, %v1475_v26 }
 0x376   :  { %1286 = vrot.lane.b32.xlu1 %v6582_v52, %s6652_s23  ;;  %v2587_v48 = vsel %vm2542_vm6, %v2522_v29, %v1699_v61 }
 0x377   :  { %1080 = vrot.lane.b32.xlu0 %v9155_v10, %s6651_s20  ;;  %v2652_v40 = vsel %vm2607_vm7, %v2587_v48, %v1907_v36 }
 0x378   :  { %v10035_v19 = vpop.permute.xlu1 %1270 }
 0x379   :  { %v10037_v47 = vpop.permute.xlu0 %1064 }
 0x37a   :  { %v6025_v10 = vpop.f32.mrb[28].mxu0  ;;  %2130 = vrot.lane.b32.xlu1 %v5634_v62, %s6656_s1 }
 0x37b   :  { %1924 = vrot.lane.b32.xlu0 %v9166_v31, %s6655_s26  ;;  %v3158_v14 = vadd.f32 %v9381_v13, %v6025_v10  ;;  %v3152_v33 = vpop.f32.mrb[29].mxu0  ;;  %v2264_v31 = vsel %vm2218_vm1, %v6583_v0, %v12058_v17 }
 0x37c   :  { %v3153_v21 = vadd.f32 %v9381_v13, %v3152_v33  ;;  %v2115_v28 = vpop.permute.xlu1 %2114  ;;  %v2328_v61 = vsel %vm33_vm2, %v2264_v31, %v9915_v32  ;;  %v12059_v33 = vld [vmem:[#allocation52_spill] sm:$0xff] }
 0x37d   :  { %v1909_v49 = vpop.permute.xlu0 %1908  ;;  %v3360_v50 = vmax.f32 %v3158_v14, 0.0  ;;  %v2717_v26 = vsel %vm2672_vm8, %v2652_v40, %v2115_v28  ;;  %v2393_v24 = vsel %vm2347_vm3, %v2328_v61, %v9943_v43  ;;  %v6589_v14 = vld [vmem:[%s11912_s0 + $0x3c0] sm:$0xff]  ;;  %v6590_v61 = vld [vmem:[%s11912_s0 + $0x3d0] sm:$0xff] }
 0x37e   :  { %v3359_v23 = vmax.f32 %v3153_v21, 0.0  ;;  %1494 = vrot.lane.b32.xlu1 %v6584_v45, %s6653_s28  ;;  %6047 = vmatprep.mubr.msk.f32.mxu0 %vm2749_vm9, %v2717_v26  ;;  %v2265_v40 = vsel %vm2218_vm1, %v6589_v14, %v12059_v33  ;;  %v12061_v14 = vld [vmem:[#allocation54_spill] sm:$0xff] }
 0x37f   :  { %1288 = vrot.lane.b32.xlu0 %v9192_v6, %s6652_s23  ;;  %3426 = vst.msk [vmem:[#allocation2 + $0x3b1] sm:$0xff] %vm33_vm2, %v3360_v50  ;;  %v2458_v6 = vsel %vm2412_vm4, %v2393_v24, %v9979_v18  ;;  %v6586_v18 = vld [vmem:[%s11912_s0 + $0x111] sm:$0xff] }
 0x380   :  { %3425 = vst.msk [vmem:[#allocation2 + $0x3a1] sm:$0xff] %vm33_vm2, %v3359_v23  ;;  %v1479_v36 = vpop.permute.xlu1 %1478  ;;  %v2523_v32 = vsel %vm2477_vm5, %v2458_v6, %v1477_v7 }
 0x381   :  { %v10071_v12 = vpop.permute.xlu0 %1272  ;;  %v2588_v43 = vsel %vm2542_vm6, %v2523_v32, %v1701_v15  ;;  %v5637_v32 = vld [vmem:[%s11912_s0 + $0x231] sm:$0xff] }
 0x382   :  { %842 = vrot.lane.b32.xlu1 %v6585_v54, %s6650_s18  ;;  %v2653_v56 = vsel %vm2607_vm7, %v2588_v43, %v1909_v49 }
 0x383   :  { %2132 = vrot.lane.b32.xlu0 %v5635_v22, %s6656_s1  ;;  %v12060_v22 = vld [vmem:[#allocation51_spill] sm:$0xff] }
 0x384   :  { %v10083_v52 = vpop.permute.xlu1 %826 }
 0x385   :  { %v2117_v2 = vpop.permute.xlu0 %2116 }
 0x386   :  { %v2718_v62 = vsel %vm2672_vm8, %v2653_v56, %v2117_v2  ;;  %1718 = vrot.lane.b32.xlu1 %v9206_v27, %s6654_s15  ;;  %v6588_v27 = vld [vmem:[%s11912_s0 + $0x401] sm:$0xff]  ;;  %v6592_v2 = vld [vmem:[%s11912_s0 + $0x2f1] sm:$0xff] }
 0x387   :  { %1496 = vrot.lane.b32.xlu0 %v6586_v18, %s6653_s28  ;;  %6048 = vmatmul.mubr.msk.f32.gmra.mrb[44].mxu0 %vm2749_vm9, %v2718_v62 }
 0x388   :  { %v1703_v7 = vpop.permute.xlu1 %1702 }
 0x389   :  { %v1481_v15 = vpop.permute.xlu0 %1480 }
 0x38a   :  { %1082 = vrot.lane.b32.xlu1 %v6587_v20, %s6651_s20 }
 0x38b   :  { %844 = vrot.lane.b32.xlu0 %v6588_v27, %s6650_s18  ;;  %v5639_v27 = vld [vmem:[%s11912_s0 + $0x411] sm:$0xff] }
 0x38c   :  { %v10101_v57 = vpop.permute.xlu1 %1066 }
 0x38d   :  { %v10103_v29 = vpop.permute.xlu0 %828 }
 0x38e   :  { %1926 = vrot.lane.b32.xlu1 %v9234_v37, %s6655_s26  ;;  %v2329_v37 = vsel %vm33_vm2, %v2265_v40, %v9991_v44  ;;  %v6594_v40 = vld [vmem:[%s11912_s0 + $0x421] sm:$0xff] }
 0x38f   :  { %1720 = vrot.lane.b32.xlu0 %v9239_v63, %s6654_s15  ;;  %v5636_v63 = vld [vmem:[%s11912_s0 + $0x221] sm:$0xff]  ;;  %v2394_v21 = vsel %vm2347_vm3, %v2329_v37, %v10009_v60  ;;  %v6595_v37 = vld [vmem:[%s11912_s0 + $0x411] sm:$0xff] }
 0x390   :  { %v1911_v10 = vpop.permute.xlu1 %1910 }
 0x391   :  { %v1705_v48 = vpop.permute.xlu0 %1704 }
 0x392   :  { %1290 = vrot.lane.b32.xlu1 %v9267_v38, %s6652_s23  ;;  %v2459_v38 = vsel %vm2412_vm4, %v2394_v21, %v10035_v19 }
 0x393   :  { %1084 = vrot.lane.b32.xlu0 %v9274_v46, %s6651_s20  ;;  %v2524_v50 = vsel %vm2477_vm5, %v2459_v38, %v1479_v36  ;;  %v6591_v36 = vld [vmem:[%s11912_s0 + $0x2e1] sm:$0xff] }
 0x394   :  { %v10125_v28 = vpop.permute.xlu1 %1274  ;;  %v2589_v44 = vsel %vm2542_vm6, %v2524_v50, %v1703_v7 }
 0x395   :  { %v10127_v49 = vpop.permute.xlu0 %1068  ;;  %v2654_v0 = vsel %vm2607_vm7, %v2589_v44, %v1911_v10 }
 0x396   :  { %v6028_v46 = vpop.f32.mrb[30].mxu0  ;;  %2134 = vrot.lane.b32.xlu1 %v5636_v63, %s6656_s1 }
 0x397   :  { %1928 = vrot.lane.b32.xlu0 %v9285_v59, %s6655_s26  ;;  %v3168_v26 = vadd.f32 %v9381_v13, %v6028_v46  ;;  %v3162_v60 = vpop.f32.mrb[31].mxu0  ;;  %v2266_v59 = vsel %vm2218_vm1, %v6590_v61, %v12060_v22  ;;  %v12062_v61 = vld [vmem:[#allocation53_spill] sm:$0xff] }
 0x398   :  { %v3163_v17 = vadd.f32 %v9381_v13, %v3162_v60  ;;  %v2119_v31 = vpop.permute.xlu1 %2118  ;;  %v2330_v6 = vsel %vm33_vm2, %v2266_v59, %v10011_v11 }
 0x399   :  { %v1913_v23 = vpop.permute.xlu0 %1912  ;;  %v3362_v19 = vmax.f32 %v3168_v26, 0.0  ;;  %v2719_v45 = vsel %vm2672_vm8, %v2654_v0, %v2119_v31  ;;  %v2395_v54 = vsel %vm2347_vm3, %v2330_v6, %v10037_v47 }
 0x39a   :  { %v3361_v24 = vmax.f32 %v3163_v17, 0.0  ;;  %1498 = vrot.lane.b32.xlu1 %v6591_v36, %s6653_s28  ;;  %6050 = vmatprep.mubr.msk.f32.mxu0 %vm2749_vm9, %v2719_v45  ;;  %v6597_v45 = vld [vmem:[%s11912_s0 + $0x1c0] sm:$0xff] }
 0x39b   :  { %1292 = vrot.lane.b32.xlu0 %v9313_v1, %s6652_s23  ;;  %3428 = vst.msk [vmem:[#allocation2 + $0x3d1] sm:$0xff] %vm33_vm2, %v3362_v19  ;;  %v2460_v1 = vsel %vm2412_vm4, %v2395_v54, %v10071_v12  ;;  %v2268_v22 = vsel %vm2218_vm1, %v6597_v45, %v12062_v61 }
 0x39c   :  { %3427 = vst.msk [vmem:[#allocation2 + $0x3c1] sm:$0xff] %vm33_vm2, %v3361_v24  ;;  %v1483_v43 = vpop.permute.xlu1 %1482  ;;  %v2525_v11 = vsel %vm2477_vm5, %v2460_v1, %v1481_v15 }
 0x39d   :  { %v10161_v56 = vpop.permute.xlu0 %1276  ;;  %v2590_v47 = vsel %vm2542_vm6, %v2525_v11, %v1705_v48 }
 0x39e   :  { %1500 = vrot.lane.b32.xlu1 %v6592_v2, %s6653_s28  ;;  %v2655_v62 = vsel %vm2607_vm7, %v2590_v47, %v1913_v23  ;;  %v5641_v47 = vld [vmem:[%s11912_s0 + $0x431] sm:$0xff] }
 0x39f   :  { %2136 = vrot.lane.b32.xlu0 %v5637_v32, %s6656_s1 }
 0x3a0   :  { %v10173_v18 = vpop.permute.xlu1 %830 }
 0x3a1   :  { %v2121_v7 = vpop.permute.xlu0 %2120 }
 0x3a2   :  { %v2720_v20 = vsel %vm2672_vm8, %v2655_v62, %v2121_v7  ;;  %1724 = vrot.lane.b32.xlu1 %v9362_v30, %s6654_s15  ;;  %v5638_v30 = vld [vmem:[%s11912_s0 + $0x401] sm:$0xff] }
 0x3a3   :  { %1722 = vrot.lane.b32.xlu0 %v9329_v9, %s6654_s15  ;;  %6051 = vmatmul.mubr.msk.f32.gmra.mrb[46].mxu0 %vm2749_vm9, %v2720_v20  ;;  %v12063_v20 = vld [vmem:[#allocation56_spill] sm:$0xff] }
 0x3a4   :  { %v1707_v12 = vpop.permute.xlu1 %1706 }
 0x3a5   :  { %v1485_v15 = vpop.permute.xlu0 %1484 }
 0x3a6   :  { %1932 = vrot.lane.b32.xlu1 %v9413_v5, %s6655_s26 }
 0x3a7   :  { %1930 = vrot.lane.b32.xlu0 %v9357_v35, %s6655_s26  ;;  %v6593_v35 = vld [vmem:[%s11912_s0 + $0x1b0] sm:$0xff] }
 0x3a8   :  { %v10191_v10 = vpop.permute.xlu1 %1070  ;;  %v2267_v33 = vsel %vm2218_vm1, %v6593_v35, %v12061_v14 }
 0x3a9   :  { %v10193_v9 = vpop.permute.xlu0 %832  ;;  %v2331_v63 = vsel %vm33_vm2, %v2267_v33, %v10083_v52  ;;  %v6596_v52 = vld [vmem:[%s11912_s0 + $0x300] sm:$0xff] }
 0x3aa   :  { %2140 = vrot.lane.b32.xlu1 %v5639_v27, %s6656_s1  ;;  %v2396_v21 = vsel %vm2347_vm3, %v2331_v63, %v10101_v57  ;;  %v6602_v27 = vld [vmem:[%s11912_s0 + $0x431] sm:$0xff] }
 0x3ab   :  { %2138 = vrot.lane.b32.xlu0 %v5638_v30, %s6656_s1  ;;  %v2461_v46 = vsel %vm2412_vm4, %v2396_v21, %v10125_v28 }
 0x3ac   :  { %v1915_v5 = vpop.permute.xlu1 %1914  ;;  %v2526_v44 = vsel %vm2477_vm5, %v2461_v46, %v1483_v43 }
 0x3ad   :  { %v1709_v48 = vpop.permute.xlu0 %1708  ;;  %v2591_v57 = vsel %vm2542_vm6, %v2526_v44, %v1707_v12 }
 0x3ae   :  { %848 = vrot.lane.b32.xlu1 %v6594_v40, %s6650_s18  ;;  %v2656_v17 = vsel %vm2607_vm7, %v2591_v57, %v1915_v5  ;;  %v6605_v57 = vld [vmem:[%s11912_s0 + $0x1e0] sm:$0xff] }
 0x3af   :  { %846 = vrot.lane.b32.xlu0 %v6595_v37, %s6650_s18  ;;  %v10321_v37 = vld [vmem:[%s11914_s2] ss:$0 sm:$0xff] }
 0x3b0   :  { %v10214_v38 = vpop.permute.xlu1 %1278 }
 0x3b1   :  { %v10216_v50 = vpop.permute.xlu0 %1072 }
 0x3b2   :  { %v6031_v26 = vpop.f32.mrb[32].mxu0  ;;  %1088 = vrot.lane.b32.xlu1 %v9402_v58, %s6651_s20 }
 0x3b3   :  { %1086 = vrot.lane.b32.xlu0 %v6596_v52, %s6651_s20  ;;  %v3178_v60 = vadd.f32 %v9381_v13, %v6031_v26  ;;  %v3172_v0 = vpop.f32.mrb[33].mxu0 }
 0x3b4   :  { %v3173_v28 = vadd.f32 %v9381_v13, %v3172_v0  ;;  %v2123_v31 = vpop.permute.xlu1 %2122  ;;  %v2332_v13 = vsel %vm33_vm2, %v2268_v22, %v10103_v29  ;;  %v6598_v29 = vld [vmem:[%s11912_s0 + $0x311] sm:$0xff] }
 0x3b5   :  { %v1917_v23 = vpop.permute.xlu0 %1916  ;;  %v3364_v19 = vmax.f32 %v3178_v60, 0.0  ;;  %v2721_v58 = vsel %vm2672_vm8, %v2656_v17, %v2123_v31  ;;  %v2397_v24 = vsel %vm2347_vm3, %v2332_v13, %v10127_v49  ;;  %v6599_v49 = vld [vmem:[%s11912_s0 + $0x301] sm:$0xff]  ;;  %v12064_v60 = vld [vmem:[#allocation55_spill] sm:$0xff] }
 0x3b6   :  { %v3363_v59 = vmax.f32 %v3173_v28, 0.0  ;;  %1296 = vrot.lane.b32.xlu1 %v9441_v53, %s6652_s23  ;;  %6053 = vmatprep.mubr.msk.f32.mxu0 %vm2749_vm9, %v2721_v58  ;;  %v2462_v53 = vsel %vm2412_vm4, %v2397_v24, %v10161_v56  ;;  %v2270_v0 = vsel %vm2218_vm1, %v6605_v57, %v12064_v60  ;;  %v6608_v13 = vld [vmem:[%s11912_s0 + $0x331] sm:$0xff] }
 0x3b7   :  { %1294 = vrot.lane.b32.xlu0 %v9395_v34, %s6652_s23  ;;  %3431 = vst.msk [vmem:[#allocation2 + $0xb0] sm:$0xff] %vm33_vm2, %v3364_v19  ;;  %v2527_v34 = vsel %vm2477_vm5, %v2462_v53, %v1485_v15  ;;  %v6601_v15 = vld [vmem:[%s11912_s0 + $0x441] sm:$0xff]  ;;  %v2334_v28 = vsel %vm33_vm2, %v2270_v0, %v10193_v9  ;;  %v6606_v9 = vld [vmem:[%s11912_s0 + $0x451] sm:$0xff] }
 0x3b8   :  { %3430 = vst.msk [vmem:[#allocation2 + $0xa0] sm:$0xff] %vm33_vm2, %v3363_v59  ;;  %v1487_v36 = vpop.permute.xlu1 %1486  ;;  %v2592_v32 = vsel %vm2542_vm6, %v2527_v34, %v1709_v48  ;;  %v2399_v31 = vsel %vm2347_vm3, %v2334_v28, %v10216_v50  ;;  %v6607_v50 = vld [vmem:[%s11912_s0 + $0x321] sm:$0xff]  ;;  %v12065_v34 = vld [vmem:[#allocation7_spill] sm:$0xff] }
 0x3b9   :  { %v10248_v6 = vpop.permute.xlu0 %1280  ;;  %v2657_v54 = vsel %vm2607_vm7, %v2592_v32, %v1917_v23  ;;  %v6613_v0 = vld [vmem:[%s11912_s0 + $0x351] sm:$0xff] }
 0x3ba   :  { %1504 = vrot.lane.b32.xlu1 %v6598_v29, %s6653_s28  ;;  %v12066_v29 = vld [vmem:[#allocation6_spill] sm:$0xff] }
 0x3bb   :  { %1502 = vrot.lane.b32.xlu0 %v6599_v49, %s6653_s28 }
 0x3bc   :  { %v10263_v43 = vpop.permute.xlu1 %834 }
 0x3bd   :  { %v2125_v56 = vpop.permute.xlu0 %2124 }
 0x3be   :  { %v2722_v1 = vsel %vm2672_vm8, %v2657_v54, %v2125_v56  ;;  %1728 = vrot.lane.b32.xlu1 %v9488_v8, %s6654_s15  ;;  %v5640_v8 = vld [vmem:[%s11912_s0 + $0x421] sm:$0xff] }
 0x3bf   :  { %1726 = vrot.lane.b32.xlu0 %v9455_v39, %s6654_s15  ;;  %6054 = vmatmul.mubr.msk.f32.gmra.mrb[48].mxu0 %vm2749_vm9, %v2722_v1  ;;  %v12067_v54 = vld [vmem:[#allocation58_spill] sm:$0xff] }
 0x3c0   :  { %v1711_v11 = vpop.permute.xlu1 %1710  ;;  %v12068_v1 = vld [vmem:[#allocation14_spill] sm:$0xff] }
 0x3c1   :  { %v1489_v2 = vpop.permute.xlu0 %1488 }
 0x3c2   :  { %1936 = vrot.lane.b32.xlu1 %v9534_v42, %s6655_s26 }
 0x3c3   :  { %1934 = vrot.lane.b32.xlu0 %v9483_v41, %s6655_s26  ;;  %v6600_v41 = vld [vmem:[%s11912_s0 + $0x1d0] sm:$0xff] }
 0x3c4   :  { %v10281_v62 = vpop.permute.xlu1 %1074  ;;  %v2269_v12 = vsel %vm2218_vm1, %v6600_v41, %v12063_v20 }
 0x3c5   :  { %v10283_v39 = vpop.permute.xlu0 %836  ;;  %v2333_v30 = vsel %vm33_vm2, %v2269_v12, %v10173_v18  ;;  %v6603_v18 = vld [vmem:[%s11912_s0 + $0x320] sm:$0xff] }
 0x3c6   :  { %2144 = vrot.lane.b32.xlu1 %v5641_v47, %s6656_s1  ;;  %v2398_v5 = vsel %vm2347_vm3, %v2333_v30, %v10191_v10  ;;  %v5642_v47 = vld [vmem:[%s11912_s0 + $0x441] sm:$0xff] }
 0x3c7   :  { %2142 = vrot.lane.b32.xlu0 %v5640_v8, %s6656_s1  ;;  %v2463_v14 = vsel %vm2412_vm4, %v2398_v5, %v10214_v38 }
 0x3c8   :  { %v1919_v42 = vpop.permute.xlu1 %1918  ;;  %v2528_v33 = vsel %vm2477_vm5, %v2463_v14, %v1487_v36 }
 0x3c9   :  { %v1713_v7 = vpop.permute.xlu0 %1712  ;;  %v2593_v10 = vsel %vm2542_vm6, %v2528_v33, %v1711_v11  ;;  %v12069_v11 = vld [vmem:[#allocation11_spill] sm:$0xff] }
 0x3ca   :  { %852 = vrot.lane.b32.xlu1 %v6601_v15, %s6650_s18  ;;  %v2658_v38 = vsel %vm2607_vm7, %v2593_v10, %v1919_v42  ;;  %v12071_v10 = vld [vmem:[#allocation57_spill] sm:$0xff] }
 0x3cb   :  { %850 = vrot.lane.b32.xlu0 %v6602_v27, %s6650_s18 }
 0x3cc   :  { %v10304_v48 = vpop.permute.xlu1 %1282 }
 0x3cd   :  { %v10306_v35 = vpop.permute.xlu0 %1076 }
 0x3ce   :  { %v6034_v40 = vpop.f32.mrb[34].mxu0  ;;  %1092 = vrot.lane.b32.xlu1 %v9523_v16, %s6651_s20 }
 0x3cf   :  { %1090 = vrot.lane.b32.xlu0 %v6603_v18, %s6651_s20  ;;  %v3188_v63 = vadd.f32 %v10321_v37, %v6034_v40  ;;  %v3182_v21 = vpop.f32.mrb[35].mxu0  ;;  %v6611_v18 = vld [vmem:[%s11912_s0 + $0x200] sm:$0xff] }
 0x3d0   :  { %v3183_v16 = vadd.f32 %v10321_v37, %v3182_v21  ;;  %v2127_v46 = vpop.permute.xlu1 %2126 }
 0x3d1   :  { %v1921_v44 = vpop.permute.xlu0 %1920  ;;  %v3366_v26 = vmax.f32 %v3188_v63, 0.0  ;;  %v2723_v52 = vsel %vm2672_vm8, %v2658_v38, %v2127_v46  ;;  %v2272_v63 = vsel %vm2218_vm1, %v6611_v18, %v12071_v10  ;;  %v6612_v38 = vld [vmem:[%s11912_s0 + $0x341] sm:$0xff]  ;;  %v3528_v10 = vld [vmem:[#allocation2 + $0x1b0] sm:$0xff] }
 0x3d2   :  { %v3365_v17 = vmax.f32 %v3183_v16, 0.0  ;;  %1300 = vrot.lane.b32.xlu1 %v9562_v51, %s6652_s23  ;;  %6056 = vmatprep.mubr.msk.f32.mxu0 %vm2749_vm9, %v2723_v52  ;;  %v2464_v51 = vsel %vm2412_vm4, %v2399_v31, %v10248_v6  ;;  %v6609_v6 = vld [vmem:[%s11912_s0 + $0x461] sm:$0xff]  ;;  %v2336_v46 = vsel %vm33_vm2, %v2272_v63, %v10283_v39 }
 0x3d3   :  { %1298 = vrot.lane.b32.xlu0 %v9516_v25, %s6652_s23  ;;  %3433 = vst.msk [vmem:[#allocation2 + $0xd0] sm:$0xff] %vm33_vm2, %v3366_v26  ;;  %v2529_v25 = vsel %vm2477_vm5, %v2464_v51, %v1489_v2  ;;  %v12072_v16 = vld [vmem:[#allocation10_spill] sm:$0xff]  ;;  %v2401_v26 = vsel %vm2347_vm3, %v2336_v46, %v10306_v35  ;;  %v12074_v51 = vld [vmem:[#allocation12_spill] sm:$0xff] }
 0x3d4   :  { %3432 = vst.msk [vmem:[#allocation2 + $0xc0] sm:$0xff] %vm33_vm2, %v3365_v17  ;;  %v1491_v23 = vpop.permute.xlu1 %1490  ;;  %v2594_v58 = vsel %vm2542_vm6, %v2529_v25, %v1713_v7  ;;  %v3529_v46 = vld [vmem:[#allocation2 + $0x1c0] sm:$0xff] }
 0x3d5   :  { %v10343_v19 = vpop.permute.xlu0 %1284  ;;  %v2659_v45 = vsel %vm2607_vm7, %v2594_v58, %v1921_v44  ;;  %v5643_v44 = vld [vmem:[%s11912_s0 + $0x451] sm:$0xff] }
 0x3d6   :  { %854 = vrot.lane.b32.xlu1 %v6606_v9, %s6650_s18  ;;  %v2466_v60 = vsel %vm2412_vm4, %v2401_v26, %v10343_v19  ;;  %v12073_v19 = vld [vmem:[#allocation16_spill] sm:$0xff] }
 0x3d7   :  { %1506 = vrot.lane.b32.xlu0 %v6607_v50, %s6653_s28  ;;  %v12075_v50 = vld [vmem:[#allocation9_spill] sm:$0xff]  ;;  %v5645_v58 = vld [vmem:[%s11912_s0 + $0x471] sm:$0xff] }
 0x3d8   :  { %v10358_v61 = vpop.permute.xlu1 %838 }
 0x3d9   :  { %v2129_v22 = vpop.permute.xlu0 %2128 }
 0x3da   :  { %v2724_v59 = vsel %vm2672_vm8, %v2659_v45, %v2129_v22  ;;  %1730 = vrot.lane.b32.xlu1 %v9578_v3, %s6654_s15  ;;  %v5644_v45 = vld [vmem:[%s11912_s0 + $0x461] sm:$0xff] }
 0x3db   :  { %1508 = vrot.lane.b32.xlu0 %v6608_v13, %s6653_s28  ;;  %6057 = vmatmul.mubr.msk.f32.gmra.mrb[50].mxu0 %vm2749_vm9, %v2724_v59 }
 0x3dc   :  { %v1715_v24 = vpop.permute.xlu1 %1714 }
 0x3dd   :  { %v1493_v36 = vpop.permute.xlu0 %1492 }
 0x3de   :  { %1094 = vrot.lane.b32.xlu1 %v9598_v55, %s6651_s20  ;;  %v6610_v55 = vld [vmem:[%s11912_s0 + $0x1f0] sm:$0xff]  ;;  %v2531_v39 = vsel %vm2477_vm5, %v2466_v60, %v1493_v36  ;;  %v10470_v36 = vld [vmem:[#allocation2 + $0xa0] sm:$0xff] }
 0x3df   :  { %856 = vrot.lane.b32.xlu0 %v6609_v6, %s6650_s18  ;;  %v2271_v56 = vsel %vm2218_vm1, %v6610_v55, %v12067_v54  ;;  %v6614_v6 = vld [vmem:[%s11912_s0 + $0x210] sm:$0xff]  ;;  %v12078_v60 = vld [vmem:[#allocation61_spill] sm:$0xff] }
 0x3e0   :  { %v10374_v3 = vpop.permute.xlu1 %1078  ;;  %v2335_v2 = vsel %vm33_vm2, %v2271_v56, %v10263_v43  ;;  %v12070_v43 = vld [vmem:[#allocation13_spill] sm:$0xff] }
 0x3e1   :  { %v10376_v53 = vpop.permute.xlu0 %840  ;;  %v2400_v8 = vsel %vm2347_vm3, %v2335_v2, %v10281_v62 }
 0x3e2   :  { %1938 = vrot.lane.b32.xlu1 %v12065_v34, %s6655_s26  ;;  %v2465_v41 = vsel %vm2412_vm4, %v2400_v8, %v10304_v48  ;;  %v12076_v34 = vld [vmem:[#allocation60_spill] sm:$0xff] }
 0x3e3   :  { %1732 = vrot.lane.b32.xlu0 %v12066_v29, %s6654_s15  ;;  %v2530_v20 = vsel %vm2477_vm5, %v2465_v41, %v1491_v23  ;;  %v2273_v29 = vsel %vm2218_vm1, %v6614_v6, %v12076_v34 }
 0x3e4   :  { %v1923_v49 = vpop.permute.xlu1 %1922  ;;  %v2595_v15 = vsel %vm2542_vm6, %v2530_v20, %v1715_v24 }
 0x3e5   :  { %v1717_v32 = vpop.permute.xlu0 %1716  ;;  %v2660_v30 = vsel %vm2607_vm7, %v2595_v15, %v1923_v49  ;;  %v2337_v49 = vsel %vm33_vm2, %v2273_v29, %v10358_v61 }
 0x3e6   :  { %1302 = vrot.lane.b32.xlu1 %v12068_v1, %s6652_s23  ;;  %v2596_v35 = vsel %vm2542_vm6, %v2531_v39, %v1717_v32  ;;  %v3496_v32 = vld [vmem:[#allocation2 + $0x1] sm:$0xff]  ;;  %v2402_v55 = vsel %vm2347_vm3, %v2337_v49, %v10374_v3 }
 0x3e7   :  { %1096 = vrot.lane.b32.xlu0 %v12069_v11, %s6651_s20 }
 0x3e8   :  { %v10398_v42 = vpop.permute.xlu1 %1286 }
 0x3e9   :  { %v10400_v7 = vpop.permute.xlu0 %1080  ;;  %v2467_v1 = vsel %vm2412_vm4, %v2402_v55, %v10398_v42  ;;  %v3512_v42 = vld [vmem:[#allocation2 + $0x120] sm:$0xff] }
 0x3ea   :  { %v6037_v12 = vpop.f32.mrb[36].mxu0  ;;  %2146 = vrot.lane.b32.xlu1 %v5642_v47, %s6656_s1 }
 0x3eb   :  { %1940 = vrot.lane.b32.xlu0 %v12070_v43, %s6655_s26  ;;  %v3198_v27 = vadd.f32 %v10321_v37, %v6037_v12  ;;  %v3192_v62 = vpop.f32.mrb[37].mxu0 }
 0x3ec   :  { %v3193_v5 = vadd.f32 %v10321_v37, %v3192_v62  ;;  %v2131_v14 = vpop.permute.xlu1 %2130  ;;  %v12077_v62 = vld [vmem:[#allocation59_spill] sm:$0xff] }
 0x3ed   :  { %v1925_v33 = vpop.permute.xlu0 %1924  ;;  %v3368_v48 = vmax.f32 %v3198_v27, 0.0  ;;  %v2725_v40 = vsel %vm2672_vm8, %v2660_v30, %v2131_v14  ;;  %v6615_v27 = vld [vmem:[%s11912_s0 + $0x220] sm:$0xff] }
 0x3ee   :  { %v3367_v21 = vmax.f32 %v3193_v5, 0.0  ;;  %1510 = vrot.lane.b32.xlu1 %v6612_v38, %s6653_s28  ;;  %6059 = vmatprep.mubr.msk.f32.mxu0 %vm2749_vm9, %v2725_v40  ;;  %v2661_v17 = vsel %vm2607_vm7, %v2596_v35, %v1925_v33  ;;  %v2274_v30 = vsel %vm2218_vm1, %v6615_v27, %v12077_v62  ;;  %v12079_v35 = vld [vmem:[#allocation62_spill] sm:$0xff]  ;;  %v12080_v27 = vld [vmem:[#allocation63_spill] sm:$0xff] }
 0x3ef   :  { %1304 = vrot.lane.b32.xlu0 %v12072_v16, %s6652_s23  ;;  %3435 = vst.msk [vmem:[#allocation2 + $0xf0] sm:$0xff] %vm33_vm2, %v3368_v48  ;;  %v2338_v14 = vsel %vm33_vm2, %v2274_v30, %v10376_v53  ;;  %v6619_v30 = vld [vmem:[%s11912_s0 + $0x410] sm:$0xff] }
 0x3f0   :  { %3434 = vst.msk [vmem:[#allocation2 + $0xe0] sm:$0xff] %vm33_vm2, %v3367_v21  ;;  %v1495_v52 = vpop.permute.xlu1 %1494  ;;  %v2403_v33 = vsel %vm2347_vm3, %v2338_v14, %v10400_v7 }
 0x3f1   :  { %v10434_v57 = vpop.permute.xlu0 %1288  ;;  %v2532_v11 = vsel %vm2477_vm5, %v2467_v1, %v1495_v52  ;;  %v10515_v52 = vld [vmem:[#allocation2 + $0xc0] sm:$0xff] }
 0x3f2   :  { %1512 = vrot.lane.b32.xlu1 %v6613_v0, %s6653_s28  ;;  %v2468_v18 = vsel %vm2412_vm4, %v2403_v33, %v10434_v57  ;;  %v6616_v57 = vld [vmem:[%s11912_s0 + $0x400] sm:$0xff]  ;;  %v6617_v0 = vld [vmem:[%s11912_s0 + $0x3f0] sm:$0xff] }
 0x3f3   :  { %2148 = vrot.lane.b32.xlu0 %v5643_v44, %s6656_s1  ;;  %v2276_v39 = vsel %vm2218_vm1, %v6616_v57, %v12078_v60 }
 0x3f4   :  { %v10446_v28 = vpop.permute.xlu1 %842 }
 0x3f5   :  { %v2133_v31 = vpop.permute.xlu0 %2132 }
 0x3f6   :  { %v2726_v23 = vsel %vm2672_vm8, %v2661_v17, %v2133_v31  ;;  %1736 = vrot.lane.b32.xlu1 %v12073_v19, %s6654_s15  ;;  %v2275_v17 = vsel %vm2218_vm1, %v6617_v0, %v12079_v35 }
 0x3f7   :  { %1734 = vrot.lane.b32.xlu0 %v12074_v51, %s6654_s15  ;;  %6060 = vmatmul.mubr.msk.f32.gmra.mrb[52].mxu0 %vm2749_vm9, %v2726_v23  ;;  %v2339_v31 = vsel %vm33_vm2, %v2275_v17, %v10446_v28 }
 0x3f8   :  { %v1719_v25 = vpop.permute.xlu1 %1718 }
 0x3f9   :  { %v1497_v9 = vpop.permute.xlu0 %1496  ;;  %v2597_v47 = vsel %vm2542_vm6, %v2532_v11, %v1719_v25 }
 0x3fa   :  { %1944 = vrot.lane.b32.xlu1 %v9781_v4, %s6655_s26  ;;  %v3480_v4 = vld [vmem:[#allocation2 + $0x90] sm:$0xff]  ;;  %v2533_v63 = vsel %vm2477_vm5, %v2468_v18, %v1497_v9 }
 0x3fb   :  { %1942 = vrot.lane.b32.xlu0 %v12075_v50, %s6655_s26 }
 0x3fc   :  { %v10464_v22 = vpop.permute.xlu1 %1082 }
 0x3fd   :  { %v10466_v59 = vpop.permute.xlu0 %844  ;;  %v2404_v19 = vsel %vm2347_vm3, %v2339_v31, %v10464_v22 }
 0x3fe   :  { %2152 = vrot.lane.b32.xlu1 %v5645_v58, %s6656_s1  ;;  %v2340_v23 = vsel %vm33_vm2, %v2276_v39, %v10466_v59 }
 0x3ff   :  { %2150 = vrot.lane.b32.xlu0 %v5644_v45, %s6656_s1  ;;  %v3545_v45 = vld [vmem:[#allocation2 + $0x131] sm:$0xff] }
 0x400   :  { %v1927_v13 = vpop.permute.xlu1 %1926 }
 0x401   :  { %v1721_v24 = vpop.permute.xlu0 %1720  ;;  %v2662_v61 = vsel %vm2607_vm7, %v2597_v47, %v1927_v13 }
 0x402   :  { %3626 = vrot.lane.b32.xlu1 %v10470_v36, %s6650_s18  ;;  %v2598_v21 = vsel %vm2542_vm6, %v2533_v63, %v1721_v24 }
 0x403   :  { %3624 = vrot.lane.b32.xlu0 %v3480_v4, %s6650_s18 }
 0x404   :  { %v1291_v54 = vpop.permute.xlu1 %1290 }
 0x405   :  { %v1085_v56 = vpop.permute.xlu0 %1084  ;;  %v2469_v50 = vsel %vm2412_vm4, %v2404_v19, %v1291_v54 }
 0x406   :  { %v6040_v2 = vpop.f32.mrb[38].mxu0  ;;  %v2405_v51 = vsel %vm2347_vm3, %v2340_v23, %v1085_v56 }
 0x407   :  { %3688 = vrot.lane.b32.xlu0 %v3496_v32, %s6652_s23  ;;  %v3208_v8 = vadd.f32 %v10321_v37, %v6040_v2  ;;  %v3202_v41 = vpop.f32.mrb[39].mxu0 }
 0x408   :  { %v3203_v20 = vadd.f32 %v10321_v37, %v3202_v41  ;;  %v2135_v3 = vpop.permute.xlu1 %2134 }
 0x409   :  { %v1929_v12 = vpop.permute.xlu0 %1928  ;;  %v3370_v43 = vmax.f32 %v3208_v8, 0.0  ;;  %v2727_v15 = vsel %vm2672_vm8, %v2662_v61, %v2135_v3 }
 0x40a   :  { %v3369_v5 = vmax.f32 %v3203_v20, 0.0  ;;  %6062 = vmatprep.mubr.msk.f32.mxu0 %vm2749_vm9, %v2727_v15  ;;  %v2663_v53 = vsel %vm2607_vm7, %v2598_v21, %v1929_v12 }
 0x40b   :  { %3752 = vrot.lane.b32.xlu0 %v3512_v42, %s6654_s15  ;;  %3437 = vst.msk [vmem:[#allocation2 + $0x110] sm:$0xff] %vm33_vm2, %v3370_v43  ;;  %v6618_v42 = vld [vmem:[%s11912_s0 + $0x420] sm:$0xff] }
 0x40c   :  { %3436 = vst.msk [vmem:[#allocation2 + $0x100] sm:$0xff] %vm33_vm2, %v3369_v5  ;;  %v1499_v48 = vpop.permute.xlu1 %1498  ;;  %v2278_v62 = vsel %vm2218_vm1, %v6618_v42, %v12080_v27  ;;  %v12081_v5 = vld [vmem:[#allocation64_spill] sm:$0xff] }
 0x40d   :  { %v1293_v40 = vpop.permute.xlu0 %1292  ;;  %v2534_v4 = vsel %vm2477_vm5, %v2469_v50, %v1499_v48  ;;  %v2277_v14 = vsel %vm2218_vm1, %v6619_v30, %v12081_v5  ;;  %v12083_v30 = vld [vmem:[#allocation65_spill] sm:$0xff] }
 0x40e   :  { %v2470_v58 = vsel %vm2412_vm4, %v2405_v51, %v1293_v40 }
 0x40f   :  { %3816 = vrot.lane.b32.xlu0 %v3528_v10, %s6656_s1 }
 0x410   :  { %v1501_v38 = vpop.permute.xlu1 %1500 }
 0x411   :  { %v2137_v16 = vpop.permute.xlu0 %2136  ;;  %v2535_v13 = vsel %vm2477_vm5, %v2470_v58, %v1501_v38 }
 0x412   :  { %v2728_v7 = vsel %vm2672_vm8, %v2663_v53, %v2137_v16 }
 0x413   :  { %6063 = vmatmul.mubr.msk.f32.gmra.mrb[54].mxu0 %vm2749_vm9, %v2728_v7  ;;  %3818 = vrot.lane.b32.xlu0 %v3529_v46, %s6656_s1 }
 0x414   :  { %v1725_v44 = vpop.permute.xlu1 %1724 }
 0x415   :  { %v1723_v26 = vpop.permute.xlu0 %1722  ;;  %v2600_v28 = vsel %vm2542_vm6, %v2535_v13, %v1725_v44 }
 0x416   :  { %v2599_v22 = vsel %vm2542_vm6, %v2534_v4, %v1723_v26 }
 0x417   :  { %3630 = vrot.lane.b32.xlu0 %v10515_v52, %s6650_s18 }
 0x418   :  { %v1933_v25 = vpop.permute.xlu1 %1932 }
 0x419   :  { %v1931_v9 = vpop.permute.xlu0 %1930  ;;  %v2665_v59 = vsel %vm2607_vm7, %v2600_v28, %v1933_v25 }
 0x41a   :  { %v2664_v24 = vsel %vm2607_vm7, %v2599_v22, %v1931_v9 }
 0x41b   :  { %3882 = vrot.lane.b32.xlu0 %v3545_v45, %s6658_s14 }
 0x41c   :  { %v2141_v6 = vpop.permute.xlu1 %2140 }
 0x41d   :  { %v2139_v34 = vpop.permute.xlu0 %2138  ;;  %v2730_v29 = vsel %vm2672_vm8, %v2665_v59, %v2141_v6 }
 0x41e   :  { %v2729_v49 = vsel %vm2672_vm8, %v2664_v24, %v2139_v34 }
 0x41f   :  { %6065 = vmatprep.mubr.msk.f32.mxu0 %vm2749_vm9, %v2729_v49  ;;  %v6620_v49 = vld [vmem:[%s11912_s0 + $0x430] sm:$0xff] }
 0x420   :  { %6066 = vmatmul.mubr.msk.f32.gmra.mrb[56].mxu0 %vm2749_vm9, %v2730_v29  ;;  %v849_v32 = vpop.permute.xlu1 %848 }
 0x421   :  { %v847_v55 = vpop.permute.xlu0 %846  ;;  %v2342_v33 = vsel %vm33_vm2, %v2278_v62, %v849_v32  ;;  %v12082_v32 = vld [vmem:[#allocation66_spill] sm:$0xff] }
 0x422   :  { %v6043_v54 = vpop.f32.mrb[40].mxu0  ;;  %v2341_v48 = vsel %vm33_vm2, %v2277_v14, %v847_v55  ;;  %v2279_v55 = vsel %vm2218_vm1, %v6620_v49, %v12082_v32  ;;  %v6621_v62 = vld [vmem:[%s11912_s0 + $0x440] sm:$0xff] }
 0x423   :  { %v3218_v56 = vadd.f32 %v10321_v37, %v6043_v54  ;;  %v3212_v1 = vpop.f32.mrb[41].mxu0  ;;  %v2280_v5 = vsel %vm2218_vm1, %v6621_v62, %v12083_v30 }
 0x424   :  { %v3213_v11 = vadd.f32 %v10321_v37, %v3212_v1  ;;  %v1089_v2 = vpop.permute.xlu1 %1088 }
 0x425   :  { %v1087_v47 = vpop.permute.xlu0 %1086  ;;  %v3372_v8 = vmax.f32 %v3218_v56, 0.0  ;;  %v2407_v40 = vsel %vm2347_vm3, %v2342_v33, %v1089_v2 }
 0x426   :  { %v3371_v41 = vmax.f32 %v3213_v11, 0.0  ;;  %v2406_v18 = vsel %vm2347_vm3, %v2341_v48, %v1087_v47 }
 0x427   :  { %3439 = vst.msk [vmem:[#allocation2 + $0x2f0] sm:$0xff] %vm33_vm2, %v3372_v8 }
 0x428   :  { %3438 = vst.msk [vmem:[#allocation2 + $0x2e0] sm:$0xff] %vm33_vm2, %v3371_v41  ;;  %v1297_v61 = vpop.permute.xlu1 %1296 }
 0x429   :  { %v1295_v20 = vpop.permute.xlu0 %1294  ;;  %v2472_v21 = vsel %vm2412_vm4, %v2407_v40, %v1297_v61 }
 0x42a   :  { %v2471_v53 = vsel %vm2412_vm4, %v2406_v18, %v1295_v20 }
 0x42c   :  { %v1505_v3 = vpop.permute.xlu1 %1504 }
 0x42d   :  { %v1503_v12 = vpop.permute.xlu0 %1502  ;;  %v2537_v38 = vsel %vm2477_vm5, %v2472_v21, %v1505_v3 }
 0x42e   :  { %v2536_v16 = vsel %vm2477_vm5, %v2471_v53, %v1503_v12 }
 0x430   :  { %v1729_v43 = vpop.permute.xlu1 %1728 }
 0x431   :  { %v1727_v15 = vpop.permute.xlu0 %1726  ;;  %v2602_v7 = vsel %vm2542_vm6, %v2537_v38, %v1729_v43 }
 0x432   :  { %v2601_v46 = vsel %vm2542_vm6, %v2536_v16, %v1727_v15 }
 0x434   :  { %v1937_v10 = vpop.permute.xlu1 %1936 }
 0x435   :  { %v1935_v63 = vpop.permute.xlu0 %1934  ;;  %v2667_v44 = vsel %vm2607_vm7, %v2602_v7, %v1937_v10 }
 0x436   :  { %v2666_v26 = vsel %vm2607_vm7, %v2601_v46, %v1935_v63 }
 0x438   :  { %v2145_v57 = vpop.permute.xlu1 %2144 }
 0x439   :  { %v2143_v60 = vpop.permute.xlu0 %2142  ;;  %v2732_v39 = vsel %vm2672_vm8, %v2667_v44, %v2145_v57  ;;  %v12084_v57 = vld [vmem:[#allocation67_spill] sm:$0xff] }
 0x43a   :  { %v2731_v0 = vsel %vm2672_vm8, %v2666_v26, %v2143_v60  ;;  %v6622_v26 = vld [vmem:[%s11912_s0 + $0x460] sm:$0xff] }
 0x43b   :  { %6068 = vmatprep.mubr.msk.f32.mxu0 %vm2749_vm9, %v2731_v0  ;;  %v2282_v60 = vsel %vm2218_vm1, %v6622_v26, %v12084_v57  ;;  %v12085_v0 = vld [vmem:[#allocation68_spill] sm:$0xff]  ;;  %v4260_v57 = vld [vmem:[%s11915_s3 + $0x40] sm:$0xff] }
 0x43c   :  { %6069 = vmatmul.mubr.msk.f32.gmra.mrb[58].mxu0 %vm2749_vm9, %v2732_v39  ;;  %v853_v35 = vpop.permute.xlu1 %852  ;;  %v6623_v39 = vld [vmem:[%s11912_s0 + $0x450] sm:$0xff] }
 0x43d   :  { %v851_v17 = vpop.permute.xlu0 %850  ;;  %v2344_v33 = vsel %vm33_vm2, %v2280_v5, %v853_v35  ;;  %v2281_v35 = vsel %vm2218_vm1, %v6623_v39, %v12085_v0  ;;  %v3515_v0 = vld [vmem:[#allocation2 + $0x150] sm:$0xff]  ;;  %vm4575_vm1 = vcmask 654336  }
 0x43e   :  { %v6046_v31 = vpop.f32.mrb[42].mxu0  ;;  %v2343_v54 = vsel %vm33_vm2, %v2279_v55, %v851_v17 }
 0x43f   :  { %v3228_v23 = vadd.f32 %v10321_v37, %v6046_v31  ;;  %v3222_v19 = vpop.f32.mrb[43].mxu0 }
 0x440   :  { %v3223_v51 = vadd.f32 %v10321_v37, %v3222_v19  ;;  %v1093_v25 = vpop.permute.xlu1 %1092 }
 0x441   :  { %v1091_v9 = vpop.permute.xlu0 %1090  ;;  %v3374_v50 = vmax.f32 %v3228_v23, 0.0  ;;  %v2409_v48 = vsel %vm2347_vm3, %v2344_v33, %v1093_v25  ;;  %v4255_v33 = vld [vmem:[%s11915_s3 + $0x18] sm:$0xff] }
 0x442   :  { %v3373_v58 = vmax.f32 %v3223_v51, 0.0  ;;  %v2408_v56 = vsel %vm2347_vm3, %v2343_v54, %v1091_v9 }
 0x443   :  { %3441 = vst.msk [vmem:[#allocation2 + $0x310] sm:$0xff] %vm33_vm2, %v3374_v50 }
 0x444   :  { %3440 = vst.msk [vmem:[#allocation2 + $0x300] sm:$0xff] %vm33_vm2, %v3373_v58  ;;  %v1301_v45 = vpop.permute.xlu1 %1300 }
 0x445   :  { %v1299_v4 = vpop.permute.xlu0 %1298  ;;  %v2474_v10 = vsel %vm2412_vm4, %v2409_v48, %v1301_v45 }
 0x446   :  { %v2473_v2 = vsel %vm2412_vm4, %v2408_v56, %v1299_v4 }
 0x448   :  { %v855_v13 = vpop.permute.xlu1 %854 }
 0x449   :  { %v1507_v28 = vpop.permute.xlu0 %1506  ;;  %v2345_v17 = vsel %vm33_vm2, %v2281_v35, %v855_v13 }
 0x44a   :  { %v2538_v47 = vsel %vm2477_vm5, %v2473_v2, %v1507_v28 }
 0x44c   :  { %v1731_v22 = vpop.permute.xlu1 %1730 }
 0x44d   :  { %v1509_v59 = vpop.permute.xlu0 %1508  ;;  %v2603_v41 = vsel %vm2542_vm6, %v2538_v47, %v1731_v22 }
 0x44e   :  { %v2539_v63 = vsel %vm2477_vm5, %v2474_v10, %v1509_v59 }
 0x450   :  { %v1095_v24 = vpop.permute.xlu1 %1094 }
 0x451   :  { %v857_v6 = vpop.permute.xlu0 %856  ;;  %v2410_v23 = vsel %vm2347_vm3, %v2345_v17, %v1095_v24 }
 0x452   :  { %v2346_v31 = vsel %vm33_vm2, %v2282_v60, %v857_v6  ;;  %v3530_v60 = vld [vmem:[#allocation2 + $0x1d0] sm:$0xff] }
 0x454   :  { %v1939_v34 = vpop.permute.xlu1 %1938 }
 0x455   :  { %v1733_v29 = vpop.permute.xlu0 %1732  ;;  %v2668_v3 = vsel %vm2607_vm7, %v2603_v41, %v1939_v34 }
 0x456   :  { %v2604_v21 = vsel %vm2542_vm6, %v2539_v63, %v1733_v29 }
 0x458   :  { %v1303_v1 = vpop.permute.xlu1 %1302 }
 0x459   :  { %v1097_v11 = vpop.permute.xlu0 %1096  ;;  %v2475_v9 = vsel %vm2412_vm4, %v2410_v23, %v1303_v1  ;;  %v3484_v23 = vld [vmem:[#allocation2 + $0xd0] sm:$0xff] }
 0x45a   :  { %v6049_v8 = vpop.f32.mrb[44].mxu0  ;;  %v2411_v19 = vsel %vm2347_vm3, %v2346_v31, %v1097_v11  ;;  %vm4579_vm3 = vcmask 916480  }
 0x45b   :  { %v3238_v61 = vadd.f32 %v10321_v37, %v6049_v8  ;;  %v3232_v20 = vpop.f32.mrb[45].mxu0 }
 0x45c   :  { %v3233_v12 = vadd.f32 %v10321_v37, %v3232_v20  ;;  %v2147_v43 = vpop.permute.xlu1 %2146  ;;  %v3513_v20 = vld [vmem:[#allocation2 + $0x130] sm:$0xff] }
 0x45d   :  { %v1941_v15 = vpop.permute.xlu0 %1940  ;;  %v3376_v42 = vmax.f32 %v3238_v61, 0.0  ;;  %v2733_v27 = vsel %vm2672_vm8, %v2668_v3, %v2147_v43  ;;  %v3482_v3 = vld [vmem:[#allocation2 + $0xb0] sm:$0xff]  ;;  %v4252_v43 = vld [vmem:[%s11915_s3] sm:$0xff] }
 0x45e   :  { %v3375_v14 = vmax.f32 %v3233_v12, 0.0  ;;  %6071 = vmatprep.mubr.msk.f32.mxu0 %vm2749_vm9, %v2733_v27  ;;  %v2669_v53 = vsel %vm2607_vm7, %v2604_v21, %v1941_v15  ;;  %v3544_v12 = vld [vmem:[#allocation2 + $0x121] sm:$0xff] }
 0x45f   :  { %3443 = vst.msk [vmem:[#allocation2 + $0x330] sm:$0xff] %vm33_vm2, %v3376_v42  ;;  %v4253_v15 = vld [vmem:[%s11915_s3 + $0x8] sm:$0xff]  ;;  %v4256_v21 = vld [vmem:[%s11915_s3 + $0x20] sm:$0xff] }
 0x460   :  { %3442 = vst.msk [vmem:[#allocation2 + $0x320] sm:$0xff] %vm33_vm2, %v3375_v14  ;;  %v1511_v40 = vpop.permute.xlu1 %1510  ;;  %v6138_v42 = vpack.c.bf16 %v4253_v15, %v4252_v43  ;;  %v4254_v14 = vld [vmem:[%s11915_s3 + $0x10] sm:$0xff] }
 0x461   :  { %v1305_v18 = vpop.permute.xlu0 %1304  ;;  %v2540_v58 = vsel %vm2477_vm5, %v2475_v9, %v1511_v40  ;;  %v6142_v40 = vpack.c.bf16 %v4255_v33, %v4254_v14  ;;  %v3549_v43 = vld [vmem:[#allocation2 + $0x171] sm:$0xff] }
 0x462   :  { %v2476_v50 = vsel %vm2412_vm4, %v2411_v19, %v1305_v18  ;;  %6139 = vmatprep.subr.bf16.mxu1 %v6138_v42  ;;  %v3488_v14 = vld [vmem:[#allocation2 + $0x2d0] sm:$0xff] }
 0x463   :  { %6141 = vmatpush3.bf16.msra.mxu1 %v6138_v42  ;;  %v3534_v42 = vld [vmem:[#allocation2 + $0x210] sm:$0xff] }
 0x464   :  { %v1513_v38 = vpop.permute.xlu1 %1512  ;;  %6143 = vmatprep.subr.bf16.mxu1 %v6142_v40 }
 0x465   :  { %v2149_v16 = vpop.permute.xlu0 %2148  ;;  %v2541_v45 = vsel %vm2477_vm5, %v2476_v50, %v1513_v38  ;;  %v3546_v50 = vld [vmem:[#allocation2 + $0x141] sm:$0xff]  ;;  %vm5406_vm5 = vcmask 25600  }
 0x466   :  { %v2734_v7 = vsel %vm2672_vm8, %v2669_v53, %v2149_v16  ;;  %v4257_v53 = vld [vmem:[%s11915_s3 + $0x28] sm:$0xff]  ;;  %v3514_v16 = vld [vmem:[#allocation2 + $0x140] sm:$0xff] }
 0x467   :  { %6072 = vmatmul.mubr.msk.f32.gmra.mrb[60].mxu0 %vm2749_vm9, %v2734_v7  ;;  %6145 = vmatpush3.bf16.msra.mxu1 %v6142_v40  ;;  %v6146_v38 = vpack.c.bf16 %v4257_v53, %v4256_v21  ;;  %v4258_v7 = vld [vmem:[%s11915_s3 + $0x30] sm:$0xff]  ;;  %v3550_v53 = vld [vmem:[#allocation2 + $0x181] sm:$0xff] }
 0x468   :  { %v1737_v46 = vpop.permute.xlu1 %1736 }
 0x469   :  { %v1735_v44 = vpop.permute.xlu0 %1734  ;;  %v2606_v4 = vsel %vm2542_vm6, %v2541_v45, %v1737_v46  ;;  %6147 = vmatprep.subr.bf16.mxu1 %v6146_v38  ;;  %v4259_v46 = vld [vmem:[%s11915_s3 + $0x38] sm:$0xff]  ;;  %v3485_v45 = vld [vmem:[#allocation2 + $0xe0] sm:$0xff] }
 0x46a   :  { %v2605_v13 = vsel %vm2542_vm6, %v2540_v58, %v1735_v44  ;;  %v6150_v44 = vpack.c.bf16 %v4259_v46, %v4258_v7 }
 0x46b   :  { %6149 = vmatpush3.bf16.msra.mxu1 %v6146_v38 }
 0x46c   :  { %v1945_v51 = vpop.permute.xlu1 %1944  ;;  %6151 = vmatprep.subr.bf16.mxu1 %v6150_v44 }
 0x46d   :  { %v1943_v25 = vpop.permute.xlu0 %1942  ;;  %v2671_v28 = vsel %vm2607_vm7, %v2606_v4, %v1945_v51  ;;  %v3516_v4 = vld [vmem:[#allocation2 + $0x160] sm:$0xff] }
 0x46e   :  { %v2670_v22 = vsel %vm2607_vm7, %v2605_v13, %v1943_v25  ;;  %v3547_v13 = vld [vmem:[#allocation2 + $0x151] sm:$0xff] }
 0x46f   :  { %6153 = vmatpush3.bf16.msra.mxu1 %v6150_v44 }
 0x470   :  { %v2153_v59 = vpop.permute.xlu1 %2152  ;;  %6093 = vmatprep.subr.mxu1 %v4260_v57 }
 0x471   :  { %v2151_v24 = vpop.permute.xlu0 %2150  ;;  %v2736_v6 = vsel %vm2672_vm8, %v2671_v28, %v2153_v59 }
 0x472   :  { %v2735_v34 = vsel %vm2672_vm8, %v2670_v22, %v2151_v24  ;;  %v3532_v22 = vld [vmem:[#allocation2 + $0x1f0] sm:$0xff] }
 0x473   :  { %6074 = vmatprep.mubr.msk.f32.mxu0 %vm2749_vm9, %v2735_v34  ;;  %6094 = vmatpush3.msra.mxu1 %v4260_v57  ;;  %v3517_v24 = vld [vmem:[#allocation2 + $0x170] sm:$0xff]  ;;  %v10770_v57 = vld [vmem:[#allocation2 + $0x2e0] sm:$0xff] }
 0x474   :  { %6075 = vmatmul.mubr.msk.f32.gmra.mrb[62].mxu0 %vm2749_vm9, %v2736_v6  ;;  %v10759_v40 = vpop.permute.xlu1 %3626 }
 0x476   :  { %v6052_v29 = vpop.f32.mrb[46].mxu0 }
 0x477   :  { %v3248_v49 = vadd.f32 %v10321_v37, %v6052_v29  ;;  %v3242_v32 = vpop.f32.mrb[47].mxu0 }
 0x478   :  { %v3243_v55 = vadd.f32 %v10321_v37, %v3242_v32 }
 0x479   :  { %v3378_v54 = vmax.f32 %v3248_v49, 0.0  ;;  %v3533_v49 = vld [vmem:[#allocation2 + $0x200] sm:$0xff] }
 0x47a   :  { %v3377_v56 = vmax.f32 %v3243_v55, 0.0 }
 0x47b   :  { %3445 = vst.msk [vmem:[#allocation2 + $0x350] sm:$0xff] %vm33_vm2, %v3378_v54  ;;  %v3486_v54 = vld [vmem:[#allocation2 + $0xf0] sm:$0xff] }
 0x47c   :  { %3444 = vst.msk [vmem:[#allocation2 + $0x340] sm:$0xff] %vm33_vm2, %v3377_v56 }
 0x492   :  { %v6055_v1 = vpop.f32.mrb[48].mxu0 }
 0x493   :  { %v3258_v11 = vadd.f32 %v10321_v37, %v6055_v1  ;;  %v3252_v2 = vpop.f32.mrb[49].mxu0  ;;  %v3548_v1 = vld [vmem:[#allocation2 + $0x161] sm:$0xff] }
 0x494   :  { %v3253_v47 = vadd.f32 %v10321_v37, %v3252_v2 }
 0x495   :  { %v3380_v8 = vmax.f32 %v3258_v11, 0.0 }
 0x496   :  { %v3379_v41 = vmax.f32 %v3253_v47, 0.0 }
 0x497   :  { %3448 = vst.msk [vmem:[#allocation2 + $0x21] sm:$0xff] %vm33_vm2, %v3380_v8 }
 0x498   :  { %3447 = vst.msk [vmem:[#allocation2 + $0x11] sm:$0xff] %vm33_vm2, %v3379_v41  ;;  %v3487_v41 = vld [vmem:[#allocation2 + $0x100] sm:$0xff] }
 0x49e   :  { %v3498_v5 = vld [vmem:[#allocation2 + $0x21] sm:$0xff] }
 0x49f   :  { %v3497_v61 = vld [vmem:[#allocation2 + $0x11] sm:$0xff]  ;;  %v10691_v39 = vld [vmem:[#allocation2 + $0x20] sm:$0xff] }
 0x4a0   :  { %3690 = vrot.lane.b32.xlu1 %v3497_v61, %s6652_s23  ;;  %v10667_v63 = vld [vmem:[#allocation2 + $0x10] sm:$0xff] }
 0x4a4   :  { %3754 = vrot.lane.b32.xlu1 %v3513_v20, %s6654_s15 }
 0x4a8   :  { %3628 = vrot.lane.b32.xlu1 %v3482_v3, %s6650_s18 }
 0x4ac   :  { %3880 = vrot.lane.b32.xlu1 %v3544_v12, %s6658_s14  ;;  %v3518_v12 = vld [vmem:[#allocation2 + $0x180] sm:$0xff] }
 0x4ae   :  { %v6058_v27 = vpop.f32.mrb[50].mxu0 }
 0x4af   :  { %v3268_v62 = vadd.f32 %v10321_v37, %v6058_v27  ;;  %v3262_v30 = vpop.f32.mrb[51].mxu0 }
 0x4b0   :  { %v3263_v48 = vadd.f32 %v10321_v37, %v3262_v30  ;;  %3692 = vrot.lane.b32.xlu1 %v3498_v5, %s6652_s23  ;;  %v3625_v30 = vpop.permute.xlu0 %3624 }
 0x4b1   :  { %v3382_v18 = vmax.f32 %v3268_v62, 0.0  ;;  %v3519_v62 = vld [vmem:[#allocation2 + $0x190] sm:$0xff] }
 0x4b2   :  { %v3381_v10 = vmax.f32 %v3263_v48, 0.0  ;;  %v3504_v48 = vld [vmem:[#allocation2 + $0x241] sm:$0xff] }
 0x4b3   :  { %3450 = vst.msk [vmem:[#allocation2 + $0x41] sm:$0xff] %vm33_vm2, %v3382_v18 }
 0x4b4   :  { %3449 = vst.msk [vmem:[#allocation2 + $0x31] sm:$0xff] %vm33_vm2, %v3381_v10  ;;  %3944 = vrot.lane.b32.xlu1 %v10667_v63, %s6659_s22  ;;  %v3689_v33 = vpop.permute.xlu0 %3688 }
 0x4b8   :  { %3756 = vrot.lane.b32.xlu1 %v3514_v16, %s6654_s15  ;;  %v3753_v7 = vpop.permute.xlu0 %3752 }
 0x4ba   :  { %v3500_v9 = vld [vmem:[#allocation2 + $0x41] sm:$0xff] }
 0x4bb   :  { %v3499_v26 = vld [vmem:[#allocation2 + $0x31] sm:$0xff]  ;;  %v10718_v59 = vld [vmem:[#allocation2 + $0x40] sm:$0xff] }
 0x4bc   :  { %4008 = vrot.lane.b32.xlu1 %v10470_v36, %s6660_s29  ;;  %3694 = vrot.lane.b32.xlu0 %v3499_v26, %s6652_s23  ;;  %v3531_v36 = vld [vmem:[#allocation2 + $0x1e0] sm:$0xff]  ;;  %v10708_v58 = vld [vmem:[#allocation2 + $0x30] sm:$0xff] }
 0x4c0   :  { %3820 = vrot.lane.b32.xlu1 %v3530_v60, %s6656_s1  ;;  %3946 = vrot.lane.b32.xlu0 %v10691_v39, %s6659_s22  ;;  %v3520_v60 = vld [vmem:[#allocation2 + $0x360] sm:$0xff] }
 0x4c4   :  { %4072 = vrot.lane.b32.xlu1 %v3497_v61, %s6661_s10  ;;  %3758 = vrot.lane.b32.xlu0 %v3515_v0, %s6654_s15  ;;  %v3551_v0 = vld [vmem:[#allocation2 + $0x191] sm:$0xff] }
 0x4c8   :  { %3822 = vrot.lane.b32.xlu1 %v3531_v36, %s6656_s1  ;;  %4010 = vrot.lane.b32.xlu0 %v3482_v3, %s6660_s29  ;;  %v3817_v36 = vpop.permute.xlu0 %3816 }
 0x4ca   :  { %v6061_v35 = vpop.f32.mrb[52].mxu0 }
 0x4cb   :  { %v3278_v17 = vadd.f32 %v10321_v37, %v6061_v35  ;;  %v3272_v31 = vpop.f32.mrb[53].mxu0 }
 0x4cc   :  { %v3273_v19 = vadd.f32 %v10321_v37, %v3272_v31  ;;  %4074 = vrot.lane.b32.xlu1 %v3498_v5, %s6661_s10  ;;  %3632 = vrot.lane.b32.xlu0 %v3484_v23, %s6650_s18  ;;  %v3535_v5 = vld [vmem:[#allocation2 + $0x220] sm:$0xff]  ;;  %v3819_v31 = vpop.permute.xlu0 %3818 }
 0x4cd   :  { %v3384_v51 = vmax.f32 %v3278_v17, 0.0 }
 0x4ce   :  { %v3383_v25 = vmax.f32 %v3273_v19, 0.0  ;;  %v3536_v19 = vld [vmem:[#allocation2 + $0x3f0] sm:$0xff] }
 0x4cf   :  { %3452 = vst.msk [vmem:[#allocation2 + $0x61] sm:$0xff] %vm33_vm2, %v3384_v51 }
 0x4d0   :  { %3451 = vst.msk [vmem:[#allocation2 + $0x51] sm:$0xff] %vm33_vm2, %v3383_v25  ;;  %3696 = vrot.lane.b32.xlu1 %v3500_v9, %s6652_s23  ;;  %3884 = vrot.lane.b32.xlu0 %v3546_v50, %s6658_s14  ;;  %v10790_v50 = vpop.permute.xlu0 %3630 }
 0x4d4   :  { %3948 = vrot.lane.b32.xlu1 %v10708_v58, %s6659_s22  ;;  %3634 = vrot.lane.b32.xlu0 %v3485_v45, %s6650_s18 }
 0x4d6   :  { %v3502_v56 = vld [vmem:[#allocation2 + $0x61] sm:$0xff] }
 0x4d7   :  { %v3501_v28 = vld [vmem:[#allocation2 + $0x51] sm:$0xff]  ;;  %v10748_v27 = vld [vmem:[#allocation2 + $0x60] sm:$0xff] }
 0x4d8   :  { %3760 = vrot.lane.b32.xlu1 %v3516_v4, %s6654_s15  ;;  %3886 = vrot.lane.b32.xlu0 %v3547_v13, %s6658_s14  ;;  %v10736_v8 = vld [vmem:[#allocation2 + $0x50] sm:$0xff]  ;;  %v3552_v4 = vld [vmem:[#allocation2 + $0x361] sm:$0xff] }
 0x4d9   :  { %v3583_v13 = vld [vmem:[#allocation2 + $0x110] sm:$0xff] }
 0x4dc   :  { %4012 = vrot.lane.b32.xlu1 %v10515_v52, %s6660_s29  ;;  %3698 = vrot.lane.b32.xlu0 %v3501_v28, %s6652_s23 }
 0x4e0   :  { %3824 = vrot.lane.b32.xlu1 %v3532_v22, %s6656_s1  ;;  %3950 = vrot.lane.b32.xlu0 %v10718_v59, %s6659_s22  ;;  %v3883_v22 = vpop.permute.xlu0 %3882 }
 0x4e4   :  { %4076 = vrot.lane.b32.xlu1 %v3499_v26, %s6661_s10  ;;  %3762 = vrot.lane.b32.xlu0 %v3517_v24, %s6654_s15 }
 0x4e6   :  { %v6064_v6 = vpop.f32.mrb[54].mxu0 }
 0x4e7   :  { %v3288_v34 = vadd.f32 %v10321_v37, %v6064_v6  ;;  %v3282_v29 = vpop.f32.mrb[55].mxu0  ;;  %v3553_v6 = vld [vmem:[#allocation2 + $0x371] sm:$0xff] }
 0x4e8   :  { %v3283_v52 = vadd.f32 %v10321_v37, %v3282_v29  ;;  %3826 = vrot.lane.b32.xlu1 %v3533_v49, %s6656_s1  ;;  %4014 = vrot.lane.b32.xlu0 %v3484_v23, %s6660_s29 }
 0x4e9   :  { %v3386_v32 = vmax.f32 %v3288_v34, 0.0  ;;  %v3537_v34 = vld [vmem:[#allocation2 + $0x400] sm:$0xff] }
 0x4ea   :  { %v3385_v55 = vmax.f32 %v3283_v52, 0.0 }
 0x4eb   :  { %3454 = vst.msk [vmem:[#allocation2 + $0x81] sm:$0xff] %vm33_vm2, %v3386_v32 }
 0x4ec   :  { %3453 = vst.msk [vmem:[#allocation2 + $0x71] sm:$0xff] %vm33_vm2, %v3385_v55  ;;  %4078 = vrot.lane.b32.xlu1 %v3500_v9, %s6661_s10  ;;  %3636 = vrot.lane.b32.xlu0 %v3486_v54, %s6650_s18  ;;  %v3521_v9 = vld [vmem:[#allocation2 + $0x370] sm:$0xff] }
 0x4f0   :  { %3700 = vrot.lane.b32.xlu1 %v3502_v56, %s6652_s23  ;;  %3888 = vrot.lane.b32.xlu0 %v3548_v1, %s6658_s14 }
 0x4f2   :  { %v3567_v51 = vld [vmem:[#allocation2 + $0x80] sm:$0xff] }
 0x4f3   :  { %v6067_v11 = vpop.f32.mrb[56].mxu0  ;;  %v3503_v15 = vld [vmem:[#allocation2 + $0x71] sm:$0xff] }
 0x4f4   :  { %v3298_v2 = vadd.f32 %v10321_v37, %v6067_v11  ;;  %v3292_v47 = vpop.f32.mrb[57].mxu0  ;;  %3952 = vrot.lane.b32.xlu1 %v10736_v8, %s6659_s22  ;;  %3638 = vrot.lane.b32.xlu0 %v3487_v41, %s6650_s18  ;;  %v10768_v26 = vld [vmem:[#allocation2 + $0x70] sm:$0xff] }
 0x4f5   :  { %v3293_v61 = vadd.f32 %v10321_v37, %v3292_v47  ;;  %v3585_v47 = vld [vmem:[#allocation2 + $0x2f0] sm:$0xff] }
 0x4f6   :  { %v3388_v20 = vmax.f32 %v3298_v2, 0.0 }
 0x4f7   :  { %v3387_v3 = vmax.f32 %v3293_v61, 0.0  ;;  %v4121_v61 = vsel %vm33_vm2, %v10667_v63, %v10759_v40 }
 0x4f8   :  { %3456 = vst.msk [vmem:[#allocation2 + $0x261] sm:$0xff] %vm33_vm2, %v3388_v20  ;;  %3764 = vrot.lane.b32.xlu1 %v3518_v12, %s6654_s15  ;;  %3890 = vrot.lane.b32.xlu0 %v3549_v43, %s6658_s14 }
 0x4f9   :  { %3455 = vst.msk [vmem:[#allocation2 + $0x251] sm:$0xff] %vm33_vm2, %v3387_v3 }
 0x4fc   :  { %4016 = vrot.lane.b32.xlu1 %v3485_v45, %s6660_s29  ;;  %3702 = vrot.lane.b32.xlu0 %v3503_v15, %s6652_s23 }
 0x4ff   :  { %v10804_v55 = vld [vmem:[#allocation2 + $0x260] sm:$0xff] }
 0x500   :  { %3828 = vrot.lane.b32.xlu1 %v3534_v42, %s6656_s1  ;;  %3954 = vrot.lane.b32.xlu0 %v10748_v27, %s6659_s22  ;;  %v10781_v17 = vld [vmem:[#allocation2 + $0x251] sm:$0xff]  ;;  %v3601_v63 = vld [vmem:[#allocation2 + $0x261] sm:$0xff] }
 0x504   :  { %4080 = vrot.lane.b32.xlu1 %v3501_v28, %s6661_s10  ;;  %3766 = vrot.lane.b32.xlu0 %v3519_v62, %s6654_s15  ;;  %v3463_v28 = vld [vmem:[#allocation2] sm:$0xff] }
 0x505   :  { %v4120_v29 = vsel %vm33_vm2, %v3463_v28, %v3625_v30 }
 0x506   :  { %v4136_v32 = vsel %vm2412_vm4, %v4120_v29, %v3689_v33  ;;  %v6624_v33 = vld [vmem:[%s11914_s2] ss:$0 sm:$0xff] }
 0x508   :  { %3830 = vrot.lane.b32.xlu1 %v3535_v5, %s6656_s1  ;;  %4018 = vrot.lane.b32.xlu0 %v3486_v54, %s6660_s29  ;;  %v3599_v54 = vld [vmem:[#allocation2 + $0x81] sm:$0xff] }
 0x50c   :  { %4082 = vrot.lane.b32.xlu1 %v3502_v56, %s6661_s10  ;;  %3640 = vrot.lane.b32.xlu0 %v3488_v14, %s6650_s18  ;;  %v4152_v56 = vsel %vm2542_vm6, %v4136_v32, %v3753_v7  ;;  %v3538_v32 = vld [vmem:[#allocation2 + $0x410] sm:$0xff] }
 0x50d   :  { %v4168_v2 = vsel %vm2672_vm8, %v4152_v56, %v3817_v36 }
 0x50f   :  { %v6070_v18 = vpop.f32.mrb[58].mxu0 }
 0x510   :  { %v3308_v10 = vadd.f32 %v10321_v37, %v6070_v18  ;;  %v3302_v21 = vpop.f32.mrb[59].mxu0  ;;  %3704 = vrot.lane.b32.xlu1 %v3504_v48, %s6652_s23  ;;  %3892 = vrot.lane.b32.xlu0 %v3550_v53, %s6658_s14 }
 0x511   :  { %v3303_v38 = vadd.f32 %v10321_v37, %v3302_v21  ;;  %v10840_v21 = vld [vmem:[#allocation2 + $0x300] sm:$0xff] }
 0x512   :  { %v3390_v16 = vmax.f32 %v3308_v10, 0.0  ;;  %v10765_v44 = vpop.permute.xlu1 %3690 }
 0x513   :  { %v3389_v46 = vmax.f32 %v3303_v38, 0.0  ;;  %v4137_v3 = vsel %vm2412_vm4, %v4121_v61, %v10765_v44 }
 0x514   :  { %3458 = vst.msk [vmem:[#allocation2 + $0x281] sm:$0xff] %vm33_vm2, %v3390_v16  ;;  %3956 = vrot.lane.b32.xlu1 %v10768_v26, %s6659_s22  ;;  %3642 = vrot.lane.b32.xlu0 %v10770_v57, %s6650_s18 }
 0x515   :  { %3457 = vst.msk [vmem:[#allocation2 + $0x271] sm:$0xff] %vm33_vm2, %v3389_v46 }
 0x516   :  { %v3755_v37 = vpop.permute.xlu1 %3754 }
 0x517   :  { %v4153_v43 = vsel %vm2542_vm6, %v4137_v3, %v3755_v37 }
 0x518   :  { %3768 = vrot.lane.b32.xlu1 %v3520_v60, %s6654_s15  ;;  %3894 = vrot.lane.b32.xlu0 %v3551_v0, %s6658_s14  ;;  %v4169_v5 = vsel %vm2672_vm8, %v4153_v43, %v3819_v31  ;;  %v3523_v31 = vld [vmem:[#allocation2 + $0x390] sm:$0xff] }
 0x519   :  { %v4186_v53 = vsel %vm4184_vm12, %v4169_v5, %v3883_v22  ;;  %v4123_v5 = vsel %vm33_vm2, %v10708_v58, %v10790_v50  ;;  %v10918_v58 = vld [vmem:[#allocation2 + $0x320] sm:$0xff] }
 0x51a   :  { %v10779_v35 = vpop.permute.xlu1 %3628 }
 0x51c   :  { %4020 = vrot.lane.b32.xlu1 %v3487_v41, %s6660_s29  ;;  %3706 = vrot.lane.b32.xlu0 %v10781_v17, %s6652_s23  ;;  %v10813_v41 = vld [vmem:[#allocation2 + $0x250] sm:$0xff] }
 0x51d   :  { %v10853_v0 = vld [vmem:[#allocation2 + $0x271] sm:$0xff] }
 0x51e   :  { %v3881_v23 = vpop.permute.xlu1 %3880 }
 0x51f   :  { %v4185_v20 = vsel %vm4184_vm12, %v4168_v2, %v3881_v23  ;;  %v3554_v2 = vld [vmem:[#allocation2 + $0x381] sm:$0xff] }
 0x520   :  { %3832 = vrot.lane.b32.xlu1 %v3536_v19, %s6656_s1  ;;  %3958 = vrot.lane.b32.xlu0 %v3567_v51, %s6659_s22 }
 0x522   :  { %v10788_v25 = vpop.permute.xlu1 %3692 }
 0x524   :  { %4084 = vrot.lane.b32.xlu1 %v3503_v15, %s6661_s10  ;;  %3770 = vrot.lane.b32.xlu0 %v3521_v9, %s6654_s15  ;;  %v3539_v9 = vld [vmem:[#allocation2 + $0x420] sm:$0xff] }
 0x526   :  { %v3945_v45 = vpop.permute.xlu1 %3944 }
 0x527   :  { %v4202_v12 = vsel %vm4201_vm11, %v4185_v20, %v3945_v45  ;;  %v3522_v45 = vld [vmem:[#allocation2 + $0x380] sm:$0xff] }
 0x528   :  { %3896 = vrot.lane.b32.xlu1 %v3552_v4, %s6658_s14  ;;  %4022 = vrot.lane.b32.xlu0 %v3583_v13, %s6660_s29 }
 0x52a   :  { %v10796_v24 = vpop.permute.xlu1 %3756 }
 0x52c   :  { %3898 = vrot.lane.b32.xlu1 %v3553_v6, %s6658_s14  ;;  %3834 = vrot.lane.b32.xlu0 %v3537_v34, %s6656_s1 }
 0x52e   :  { %v4009_v52 = vpop.permute.xlu1 %4008  ;;  %v10801_v49 = vpop.permute.xlu0 %3694 }
 0x52f   :  { %v4219_v15 = vsel %vm4218_vm13, %v4202_v12, %v4009_v52  ;;  %v3555_v52 = vld [vmem:[#allocation2 + $0x391] sm:$0xff] }
 0x530   :  { %3962 = vrot.lane.b32.xlu1 %v10804_v55, %s6659_s22  ;;  %4086 = vrot.lane.b32.xlu0 %v3599_v54, %s6661_s10 }
 0x532   :  { %v10810_v1 = vpop.permute.xlu1 %3820  ;;  %v3947_v11 = vpop.permute.xlu0 %3946 }
 0x533   :  { %v4203_v7 = vsel %vm4201_vm11, %v4186_v53, %v3947_v11  ;;  %v10876_v11 = vld [vmem:[#allocation2 + $0x280] sm:$0xff] }
 0x534   :  { %4026 = vrot.lane.b32.xlu1 %v3585_v47, %s6660_s29  ;;  %3960 = vrot.lane.b32.xlu0 %v10813_v41, %s6659_s22 }
 0x536   :  { %v4073_v42 = vpop.permute.xlu1 %4072  ;;  %v10827_v62 = vpop.permute.xlu0 %3758 }
 0x537   :  { %v4236_v30 = vsel %vm4235_vm14, %v4219_v15, %v4073_v42  ;;  %v3587_v15 = vld [vmem:[#allocation2 + $0x310] sm:$0xff] }
 0x538   :  { %4090 = vrot.lane.b32.xlu1 %v3601_v63, %s6661_s10  ;;  %4024 = vrot.lane.b32.xlu0 %v10770_v57, %s6660_s29  ;;  %v10892_v42 = vld [vmem:[#allocation2 + $0x270] sm:$0xff] }
 0x539   :  { %6095 = vmatprep.mubr.msk.f32.mxu1 %vm4268_vm15, %v4236_v30 }
 0x53a   :  { %v6073_v14 = vpop.f32.mrb[60].mxu0  ;;  %v10838_v40 = vpop.permute.xlu1 %3822 }
 0x53b   :  { %v3318_v48 = vadd.f32 %v6624_v33, %v6073_v14  ;;  %v4011_v18 = vpop.permute.xlu0 %4010  ;;  %v3312_v10 = vpop.f32.mrb[61].mxu0  ;;  %v4139_v14 = vsel %vm2412_vm4, %v4123_v5, %v10801_v49  ;;  %v3542_v5 = vld [vmem:[#allocation2 + $0x450] sm:$0xff] }
 0x53c   :  { %v3313_v16 = vadd.f32 %v6624_v33, %v3312_v10  ;;  %3646 = vrot.lane.b32.xlu1 %v10840_v21, %s6650_s18  ;;  %4088 = vrot.lane.b32.xlu0 %v10781_v17, %s6661_s10  ;;  %v4220_v46 = vsel %vm4218_vm13, %v4203_v7, %v4011_v18 }
 0x53d   :  { %v3392_v38 = vmax.f32 %v3318_v48, 0.0 }
 0x53e   :  { %v3391_v44 = vmax.f32 %v3313_v16, 0.0  ;;  %v4075_v57 = vpop.permute.xlu1 %4074 }
 0x53f   :  { %3460 = vst.msk [vmem:[#allocation2 + $0x2a1] sm:$0xff] %vm33_vm2, %v3392_v38  ;;  %v10850_v37 = vpop.permute.xlu0 %3632  ;;  %v4237_v60 = vsel %vm4235_vm14, %v4220_v46, %v4075_v57  ;;  %v3525_v46 = vld [vmem:[#allocation2 + $0x3b0] sm:$0xff] }
 0x540   :  { %3459 = vst.msk [vmem:[#allocation2 + $0x291] sm:$0xff] %vm33_vm2, %v3391_v44  ;;  %3710 = vrot.lane.b32.xlu1 %v10853_v0, %s6652_s23  ;;  %3644 = vrot.lane.b32.xlu0 %v3585_v47, %s6650_s18  ;;  %v4122_v47 = vsel %vm33_vm2, %v10691_v39, %v10779_v35 }
 0x541   :  { %6096 = vmatmul.mubr.msk.f32.vlgmr.msra.gmra.mrb[0].mxu1 %vm4268_vm15, %v4237_v60  ;;  %v4138_v61 = vsel %vm2412_vm4, %v4122_v47, %v10788_v25  ;;  %v10942_v60 = vld [vmem:[#allocation2 + $0x330] sm:$0xff] }
 0x542   :  { %v10860_v36 = vpop.permute.xlu1 %3696  ;;  %v4154_v20 = vsel %vm2542_vm6, %v4138_v61, %v10796_v24 }
 0x543   :  { %v3885_v17 = vpop.permute.xlu0 %3884  ;;  %v4170_v43 = vsel %vm2672_vm8, %v4154_v20, %v10810_v1  ;;  %v3603_v1 = vld [vmem:[#allocation2 + $0x281] sm:$0xff] }
 0x544   :  { %3774 = vrot.lane.b32.xlu1 %v3523_v31, %s6654_s15  ;;  %3708 = vrot.lane.b32.xlu0 %v3601_v63, %s6652_s23  ;;  %v4187_v39 = vsel %vm4184_vm12, %v4170_v43, %v3885_v17  ;;  %v3526_v20 = vld [vmem:[#allocation2 + $0x3c0] sm:$0xff] }
 0x546   :  { %v3949_v23 = vpop.permute.xlu1 %3948 }
 0x547   :  { %v10864_v19 = vpop.permute.xlu0 %3634  ;;  %v6076_v51 = vpop.f32.mrb[62].mxu0  ;;  %v4204_v35 = vsel %vm4201_vm11, %v4187_v39, %v3949_v23  ;;  %v3556_v23 = vld [vmem:[#allocation2 + $0x3a1] sm:$0xff] }
 0x548   :  { %v3328_v4 = vadd.f32 %v6624_v33, %v6076_v51  ;;  %v3322_v13 = vpop.f32.mrb[63].mxu0  ;;  %3838 = vrot.lane.b32.xlu1 %v3539_v9, %s6656_s1  ;;  %3772 = vrot.lane.b32.xlu0 %v3522_v45, %s6654_s15  ;;  %v3540_v51 = vld [vmem:[#allocation2 + $0x430] sm:$0xff] }
 0x549   :  { %v3323_v28 = vadd.f32 %v6624_v33, %v3322_v13  ;;  %v4155_v33 = vsel %vm2542_vm6, %v4139_v14, %v10827_v62  ;;  %v3541_v13 = vld [vmem:[#allocation2 + $0x440] sm:$0xff] }
 0x54a   :  { %v3394_v22 = vmax.f32 %v3328_v4, 0.0  ;;  %v10868_v6 = vpop.permute.xlu1 %3760  ;;  %v4171_v10 = vsel %vm2672_vm8, %v4155_v33, %v10838_v40  ;;  %v10930_v40 = vld [vmem:[#allocation2 + $0x291] sm:$0xff]  ;;  %v10953_v4 = vld [vmem:[#allocation2 + $0x2a1] sm:$0xff] }
 0x54b   :  { %v3887_v34 = vpop.permute.xlu0 %3886  ;;  %v3393_v29 = vmax.f32 %v3323_v28, 0.0  ;;  %v4124_v28 = vsel %vm33_vm2, %v10718_v59, %v10850_v37  ;;  %v10971_v59 = vld [vmem:[#allocation2 + $0x340] sm:$0xff] }
 0x54c   :  { %3462 = vst.msk [vmem:[#allocation2 + $0x2c1] sm:$0xff] %vm33_vm2, %v3394_v22  ;;  %3902 = vrot.lane.b32.xlu1 %v3555_v52, %s6658_s14  ;;  %3836 = vrot.lane.b32.xlu0 %v3538_v32, %s6656_s1  ;;  %v4188_v50 = vsel %vm4184_vm12, %v4171_v10, %v3887_v34  ;;  %v4140_v22 = vsel %vm2412_vm4, %v4124_v28, %v10860_v36  ;;  %v11006_v14 = vld [vmem:[#allocation2 + $0x2a0] sm:$0xff] }
 0x54d   :  { %3461 = vst.msk [vmem:[#allocation2 + $0x2b1] sm:$0xff] %vm33_vm2, %v3393_v29  ;;  %v4156_v34 = vsel %vm2542_vm6, %v4140_v22, %v10868_v6 }
 0x54e   :  { %v4013_v54 = vpop.permute.xlu1 %4012 }
 0x54f   :  { %v10874_v56 = vpop.permute.xlu0 %3698  ;;  %v4221_v25 = vsel %vm4218_vm13, %v4204_v35, %v4013_v54  ;;  %v10969_v54 = vld [vmem:[#allocation2 + $0x290] sm:$0xff] }
 0x550   :  { %3966 = vrot.lane.b32.xlu1 %v10876_v11, %s6659_s22  ;;  %3900 = vrot.lane.b32.xlu0 %v3554_v2, %s6658_s14 }
 0x552   :  { %v10888_v3 = vpop.permute.xlu1 %3824 }
 0x553   :  { %v3951_v12 = vpop.permute.xlu0 %3950  ;;  %v4172_v32 = vsel %vm2672_vm8, %v4156_v34, %v10888_v3  ;;  %v3557_v3 = vld [vmem:[#allocation2 + $0x3b1] sm:$0xff]  ;;  %v3607_v22 = vld [vmem:[#allocation2 + $0x2c1] sm:$0xff] }
 0x554   :  { %4030 = vrot.lane.b32.xlu1 %v3587_v15, %s6660_s29  ;;  %3964 = vrot.lane.b32.xlu0 %v10892_v42, %s6659_s22  ;;  %v4205_v49 = vsel %vm4201_vm11, %v4188_v50, %v3951_v12  ;;  %v4125_v12 = vsel %vm33_vm2, %v10736_v8, %v10864_v19  ;;  %v3558_v50 = vld [vmem:[#allocation2 + $0x3c1] sm:$0xff] }
 0x555   :  { %v4141_v43 = vsel %vm2412_vm4, %v4125_v12, %v10874_v56 }
 0x556   :  { %v4077_v24 = vpop.permute.xlu1 %4076 }
 0x557   :  { %v10900_v63 = vpop.permute.xlu0 %3762  ;;  %v4238_v30 = vsel %vm4235_vm14, %v4221_v25, %v4077_v24  ;;  %v3511_v24 = vld [vmem:[#allocation2 + $0x2b1] sm:$0xff] }
 0x558   :  { %4094 = vrot.lane.b32.xlu1 %v3603_v1, %s6661_s10  ;;  %4028 = vrot.lane.b32.xlu0 %v10840_v21, %s6660_s29 }
 0x559   :  { %6098 = vmatprep.mubr.msk.f32.mxu1 %vm4268_vm15, %v4238_v30 }
 0x55a   :  { %v10914_v48 = vpop.permute.xlu1 %3826 }
 0x55b   :  { %v4015_v18 = vpop.permute.xlu0 %4014 }
 0x55c   :  { %3650 = vrot.lane.b32.xlu1 %v10918_v58, %s6650_s18  ;;  %4092 = vrot.lane.b32.xlu0 %v10853_v0, %s6661_s10  ;;  %v4222_v62 = vsel %vm4218_vm13, %v4205_v49, %v4015_v18  ;;  %v3524_v0 = vld [vmem:[#allocation2 + $0x3a0] sm:$0xff]  ;;  %v3527_v18 = vld [vmem:[#allocation2 + $0x3d0] sm:$0xff] }
 0x55e   :  { %v4079_v21 = vpop.permute.xlu1 %4078 }
 0x55f   :  { %v10927_v53 = vpop.permute.xlu0 %3636  ;;  %v4239_v38 = vsel %vm4235_vm14, %v4222_v62, %v4079_v21  ;;  %v3559_v21 = vld [vmem:[#allocation2 + $0x3d1] sm:$0xff] }
 0x560   :  { %3714 = vrot.lane.b32.xlu1 %v10930_v40, %s6652_s23  ;;  %3648 = vrot.lane.b32.xlu0 %v3587_v15, %s6650_s18  ;;  %v4157_v15 = vsel %vm2542_vm6, %v4141_v43, %v10900_v63 }
 0x561   :  { %6099 = vmatmul.mubr.msk.f32.gmra.mrb[2].mxu1 %vm4268_vm15, %v4239_v38  ;;  %v4173_v25 = vsel %vm2672_vm8, %v4157_v15, %v10914_v48  ;;  %v3543_v38 = vld [vmem:[#allocation2 + $0x460] sm:$0xff] }
 0x562   :  { %v10936_v16 = vpop.permute.xlu1 %3700 }
 0x563   :  { %v3889_v7 = vpop.permute.xlu0 %3888 }
 0x564   :  { %3778 = vrot.lane.b32.xlu1 %v3525_v46, %s6654_s15  ;;  %3712 = vrot.lane.b32.xlu0 %v3603_v1, %s6652_s23  ;;  %v4189_v37 = vsel %vm4184_vm12, %v4172_v32, %v3889_v7  ;;  %v3575_v46 = vld [vmem:[#allocation2 + $0x2c0] sm:$0xff] }
 0x566   :  { %v3953_v44 = vpop.permute.xlu1 %3952 }
 0x567   :  { %v10940_v57 = vpop.permute.xlu0 %3638  ;;  %v4206_v36 = vsel %vm4201_vm11, %v4189_v37, %v3953_v44  ;;  %v4126_v44 = vsel %vm33_vm2, %v10748_v27, %v10927_v53 }
 0x568   :  { %3652 = vrot.lane.b32.xlu1 %v10942_v60, %s6650_s18  ;;  %3776 = vrot.lane.b32.xlu0 %v3524_v0, %s6654_s15 }
 0x56a   :  { %v10947_v17 = vpop.permute.xlu1 %3764 }
 0x56b   :  { %v3891_v31 = vpop.permute.xlu0 %3890 }
 0x56c   :  { %3904 = vrot.lane.b32.xlu1 %v3556_v23, %s6658_s14  ;;  %3840 = vrot.lane.b32.xlu0 %v3540_v51, %s6656_s1  ;;  %v4190_v8 = vsel %vm4184_vm12, %v4173_v25, %v3891_v31 }
 0x56e   :  { %v4017_v9 = vpop.permute.xlu1 %4016 }
 0x56f   :  { %v10951_v45 = vpop.permute.xlu0 %3702  ;;  %v4223_v6 = vsel %vm4218_vm13, %v4206_v36, %v4017_v9  ;;  %v3591_v9 = vld [vmem:[#allocation2 + $0x350] sm:$0xff] }
 0x570   :  { %3716 = vrot.lane.b32.xlu1 %v10953_v4, %s6652_s23  ;;  %3842 = vrot.lane.b32.xlu0 %v3541_v13, %s6656_s1  ;;  %v11034_v13 = vld [vmem:[#allocation2 + $0x2b0] sm:$0xff] }
 0x572   :  { %v10965_v29 = vpop.permute.xlu1 %3828 }
 0x573   :  { %v3955_v52 = vpop.permute.xlu0 %3954 }
 0x574   :  { %3968 = vrot.lane.b32.xlu1 %v10969_v54, %s6659_s22  ;;  %3654 = vrot.lane.b32.xlu0 %v10971_v59, %s6650_s18  ;;  %v4207_v19 = vsel %vm4201_vm11, %v4190_v8, %v3955_v52  ;;  %v4127_v52 = vsel %vm33_vm2, %v10768_v26, %v10940_v57 }
 0x575   :  { %v4143_v32 = vsel %vm2412_vm4, %v4127_v52, %v10951_v45  ;;  %v3471_v45 = vld [vmem:[#allocation2 + $0x240] sm:$0xff] }
 0x576   :  { %v4081_v2 = vpop.permute.xlu1 %4080 }
 0x577   :  { %v10980_v47 = vpop.permute.xlu0 %3766  ;;  %v4240_v61 = vsel %vm4235_vm14, %v4223_v6, %v4081_v2 }
 0x578   :  { %3780 = vrot.lane.b32.xlu1 %v3526_v20, %s6654_s15  ;;  %3906 = vrot.lane.b32.xlu0 %v3557_v3, %s6658_s14  ;;  %v4159_v37 = vsel %vm2542_vm6, %v4143_v32, %v10980_v47 }
 0x579   :  { %6101 = vmatprep.mubr.msk.f32.mxu1 %vm4268_vm15, %v4240_v61 }
 0x57a   :  { %v10993_v39 = vpop.permute.xlu1 %3830 }
 0x57b   :  { %v4019_v35 = vpop.permute.xlu0 %4018 }
 0x57c   :  { %4032 = vrot.lane.b32.xlu1 %v10918_v58, %s6660_s29  ;;  %3718 = vrot.lane.b32.xlu0 %v3511_v24, %s6652_s23  ;;  %v4224_v56 = vsel %vm4218_vm13, %v4207_v19, %v4019_v35 }
 0x57e   :  { %v4083_v30 = vpop.permute.xlu1 %4082 }
 0x57f   :  { %v11003_v63 = vpop.permute.xlu0 %3640  ;;  %v4241_v1 = vsel %vm4235_vm14, %v4224_v56, %v4083_v30 }
 0x580   :  { %3844 = vrot.lane.b32.xlu1 %v3542_v5, %s6656_s1  ;;  %3970 = vrot.lane.b32.xlu0 %v11006_v14, %s6659_s22  ;;  %v4128_v15 = vsel %vm33_vm2, %v3471_v45, %v11003_v63 }
 0x581   :  { %6102 = vmatmul.mubr.msk.f32.gmra.mrb[4].mxu1 %vm4268_vm15, %v4241_v1 }
 0x582   :  { %v11012_v33 = vpop.permute.xlu1 %3704 }
 0x583   :  { %v3893_v48 = vpop.permute.xlu0 %3892  ;;  %v4144_v35 = vsel %vm2412_vm4, %v4128_v15, %v11012_v33 }
 0x584   :  { %4096 = vrot.lane.b32.xlu1 %v10930_v40, %s6661_s10  ;;  %3782 = vrot.lane.b32.xlu0 %v3527_v18, %s6654_s15 }
 0x586   :  { %v3957_v10 = vpop.permute.xlu1 %3956 }
 0x587   :  { %v3643_v58 = vpop.permute.xlu0 %3642 }
 0x588   :  { %3908 = vrot.lane.b32.xlu1 %v3558_v50, %s6658_s14  ;;  %4034 = vrot.lane.b32.xlu0 %v10942_v60, %s6660_s29  ;;  %v4142_v60 = vsel %vm2412_vm4, %v4126_v44, %v10936_v16  ;;  %v4129_v43 = vsel %vm33_vm2, %v10813_v41, %v3643_v58 }
 0x589   :  { %v4158_v0 = vsel %vm2542_vm6, %v4142_v60, %v10947_v17 }
 0x58a   :  { %v3769_v49 = vpop.permute.xlu1 %3768  ;;  %v4174_v51 = vsel %vm2672_vm8, %v4158_v0, %v10965_v29 }
 0x58b   :  { %v3895_v62 = vpop.permute.xlu0 %3894  ;;  %v4191_v27 = vsel %vm4184_vm12, %v4174_v51, %v3893_v48 }
 0x58c   :  { %3910 = vrot.lane.b32.xlu1 %v3559_v21, %s6658_s14  ;;  %3846 = vrot.lane.b32.xlu0 %v3543_v38, %s6656_s1  ;;  %v4208_v53 = vsel %vm4201_vm11, %v4191_v27, %v3957_v10 }
 0x58e   :  { %v4021_v7 = vpop.permute.xlu1 %4020 }
 0x58f   :  { %v3707_v40 = vpop.permute.xlu0 %3706  ;;  %v4225_v16 = vsel %vm4218_vm13, %v4208_v53, %v4021_v7 }
 0x590   :  { %3974 = vrot.lane.b32.xlu1 %v3575_v46, %s6659_s22  ;;  %4098 = vrot.lane.b32.xlu0 %v10953_v4, %s6661_s10 }
 0x592   :  { %v3833_v31 = vpop.permute.xlu1 %3832 }
 0x593   :  { %v3959_v23 = vpop.permute.xlu0 %3958 }
 0x594   :  { %4038 = vrot.lane.b32.xlu1 %v3591_v9, %s6660_s29  ;;  %3972 = vrot.lane.b32.xlu0 %v11034_v13, %s6659_s22 }
 0x596   :  { %v4085_v17 = vpop.permute.xlu1 %4084 }
 0x597   :  { %v3771_v4 = vpop.permute.xlu0 %3770  ;;  %v4242_v28 = vsel %vm4235_vm14, %v4225_v16, %v4085_v17 }
 0x598   :  { %4102 = vrot.lane.b32.xlu1 %v3607_v22, %s6661_s10  ;;  %4036 = vrot.lane.b32.xlu0 %v10971_v59, %s6660_s29  ;;  %v4175_v59 = vsel %vm2672_vm8, %v4159_v37, %v10993_v39  ;;  %v4145_v39 = vsel %vm2412_vm4, %v4129_v43, %v3707_v40 }
 0x599   :  { %6104 = vmatprep.mubr.msk.f32.mxu1 %vm4268_vm15, %v4242_v28  ;;  %v4192_v2 = vsel %vm4184_vm12, %v4175_v59, %v3895_v62  ;;  %v4161_v25 = vsel %vm2542_vm6, %v4145_v39, %v3771_v4 }
 0x59a   :  { %v3897_v34 = vpop.permute.xlu1 %3896  ;;  %v4209_v61 = vsel %vm4201_vm11, %v4192_v2, %v3959_v23 }
 0x59b   :  { %v4023_v29 = vpop.permute.xlu0 %4022 }
 0x59c   :  { %4100 = vrot.lane.b32.xlu0 %v3511_v24, %s6661_s10  ;;  %v4226_v20 = vsel %vm4218_vm13, %v4209_v61, %v4023_v29  ;;  %v4160_v24 = vsel %vm2542_vm6, %v4144_v35, %v3769_v49 }
 0x59d   :  { %v4176_v30 = vsel %vm2672_vm8, %v4160_v24, %v3833_v31 }
 0x59e   :  { %v3899_v36 = vpop.permute.xlu1 %3898  ;;  %v4193_v41 = vsel %vm4184_vm12, %v4176_v30, %v3897_v34 }
 0x59f   :  { %v3835_v6 = vpop.permute.xlu0 %3834 }
 0x5a0   :  { %v4177_v8 = vsel %vm2672_vm8, %v4161_v25, %v3835_v6 }
 0x5a1   :  { %v4194_v1 = vsel %vm4184_vm12, %v4177_v8, %v3899_v36 }
 0x5a2   :  { %v3963_v26 = vpop.permute.xlu1 %3962 }
 0x5a3   :  { %v4087_v57 = vpop.permute.xlu0 %4086  ;;  %v4211_v5 = vsel %vm4201_vm11, %v4194_v1, %v3963_v26 }
 0x5a4   :  { %v4243_v3 = vsel %vm4235_vm14, %v4226_v20, %v4087_v57 }
 0x5a5   :  { %6105 = vmatmul.mubr.msk.f32.gmra.mrb[6].mxu1 %vm4268_vm15, %v4243_v3 }
 0x5a6   :  { %v4027_v12 = vpop.permute.xlu1 %4026 }
 0x5a7   :  { %v3961_v47 = vpop.permute.xlu0 %3960  ;;  %v4228_v10 = vsel %vm4218_vm13, %v4211_v5, %v4027_v12 }
 0x5a8   :  { %v4210_v63 = vsel %vm4201_vm11, %v4193_v41, %v3961_v47 }
 0x5aa   :  { %v4091_v19 = vpop.permute.xlu1 %4090 }
 0x5ab   :  { %v4025_v56 = vpop.permute.xlu0 %4024  ;;  %v4245_v50 = vsel %vm4235_vm14, %v4228_v10, %v4091_v19 }
 0x5ac   :  { %v4227_v33 = vsel %vm4218_vm13, %v4210_v63, %v4025_v56 }
 0x5ae   :  { %v3647_v48 = vpop.permute.xlu1 %3646 }
 0x5af   :  { %v4089_v18 = vpop.permute.xlu0 %4088  ;;  %v4131_v9 = vsel %vm33_vm2, %v10892_v42, %v3647_v48 }
 0x5b0   :  { %v4244_v58 = vsel %vm4235_vm14, %v4227_v33, %v4089_v18 }
 0x5b1   :  { %6107 = vmatprep.mubr.msk.f32.mxu1 %vm4268_vm15, %v4244_v58 }
 0x5b2   :  { %6108 = vmatmul.mubr.msk.f32.gmra.mrb[8].mxu1 %vm4268_vm15, %v4245_v50  ;;  %v3711_v49 = vpop.permute.xlu1 %3710 }
 0x5b3   :  { %v3645_v62 = vpop.permute.xlu0 %3644  ;;  %v4147_v53 = vsel %vm2412_vm4, %v4131_v9, %v3711_v49 }
 0x5b4   :  { %v4130_v51 = vsel %vm33_vm2, %v10804_v55, %v3645_v62 }
 0x5b6   :  { %v3775_v21 = vpop.permute.xlu1 %3774 }
 0x5b7   :  { %v3709_v38 = vpop.permute.xlu0 %3708  ;;  %v4163_v28 = vsel %vm2542_vm6, %v4147_v53, %v3775_v21 }
 0x5b8   :  { %v4146_v27 = vsel %vm2412_vm4, %v4130_v51, %v3709_v38 }
 0x5ba   :  { %v3839_v7 = vpop.permute.xlu1 %3838 }
 0x5bb   :  { %v3773_v40 = vpop.permute.xlu0 %3772  ;;  %v4179_v34 = vsel %vm2672_vm8, %v4163_v28, %v3839_v7 }
 0x5bc   :  { %v4162_v16 = vsel %vm2542_vm6, %v4146_v27, %v3773_v40 }
 0x5be   :  { %v3903_v46 = vpop.permute.xlu1 %3902 }
 0x5bf   :  { %v3837_v44 = vpop.permute.xlu0 %3836  ;;  %v4196_v55 = vsel %vm4184_vm12, %v4179_v34, %v3903_v46 }
 0x5c0   :  { %v4178_v22 = vsel %vm2672_vm8, %v4162_v16, %v3837_v44 }
 0x5c2   :  { %v3967_v60 = vpop.permute.xlu1 %3966 }
 0x5c3   :  { %v3901_v0 = vpop.permute.xlu0 %3900  ;;  %v4213_v52 = vsel %vm4201_vm11, %v4196_v55, %v3967_v60 }
 0x5c4   :  { %v4195_v29 = vsel %vm4184_vm12, %v4178_v22, %v3901_v0 }
 0x5c6   :  { %v4031_v31 = vpop.permute.xlu1 %4030 }
 0x5c7   :  { %v3965_v23 = vpop.permute.xlu0 %3964  ;;  %v4230_v6 = vsel %vm4218_vm13, %v4213_v52, %v4031_v31 }
 0x5c8   :  { %v4212_v42 = vsel %vm4201_vm11, %v4195_v29, %v3965_v23 }
 0x5ca   :  { %v4095_v17 = vpop.permute.xlu1 %4094 }
 0x5cb   :  { %v4029_v4 = vpop.permute.xlu0 %4028  ;;  %v4247_v2 = vsel %vm4235_vm14, %v4230_v6, %v4095_v17 }
 0x5cc   :  { %v4229_v32 = vsel %vm4218_vm13, %v4212_v42, %v4029_v4 }
 0x5ce   :  { %v3651_v37 = vpop.permute.xlu1 %3650 }
 0x5cf   :  { %v4093_v36 = vpop.permute.xlu0 %4092  ;;  %v4133_v62 = vsel %vm33_vm2, %v10969_v54, %v3651_v37 }
 0x5d0   :  { %v4246_v59 = vsel %vm4235_vm14, %v4229_v32, %v4093_v36 }
 0x5d1   :  { %6110 = vmatprep.mubr.msk.f32.mxu1 %vm4268_vm15, %v4246_v59 }
 0x5d2   :  { %6111 = vmatmul.mubr.msk.f32.gmra.mrb[10].mxu1 %vm4268_vm15, %v4247_v2  ;;  %v3715_v61 = vpop.permute.xlu1 %3714 }
 0x5d3   :  { %v3649_v20 = vpop.permute.xlu0 %3648  ;;  %v4149_v21 = vsel %vm2412_vm4, %v4133_v62, %v3715_v61  ;;  %v4911_v62 = vld [vmem:[%s11917_s5 + $0x28] sm:$0xff] }
 0x5d4   :  { %v4132_v8 = vsel %vm33_vm2, %v10876_v11, %v3649_v20 }
 0x5d6   :  { %v3779_v26 = vpop.permute.xlu1 %3778 }
 0x5d7   :  { %v3713_v57 = vpop.permute.xlu0 %3712  ;;  %v4165_v38 = vsel %vm2542_vm6, %v4149_v21, %v3779_v26 }
 0x5d8   :  { %v4148_v30 = vsel %vm2412_vm4, %v4132_v8, %v3713_v57  ;;  %v4908_v8 = vld [vmem:[%s11917_s5 + $0x10] sm:$0xff] }
 0x5da   :  { %v3653_v3 = vpop.permute.xlu1 %3652 }
 0x5db   :  { %v3777_v45 = vpop.permute.xlu0 %3776  ;;  %v4134_v53 = vsel %vm33_vm2, %v11006_v14, %v3653_v3 }
 0x5dc   :  { %v4164_v41 = vsel %vm2542_vm6, %v4148_v30, %v3777_v45  ;;  %v4922_v45 = vld [vmem:[%s11917_s5 + $0x80] sm:$0xff] }
 0x5dd   :  { %v5018_v30 = vld [vmem:[%s11917_s5 + $0x380] sm:$0xff] }
 0x5de   :  { %v3905_v12 = vpop.permute.xlu1 %3904 }
 0x5df   :  { %v3841_v47 = vpop.permute.xlu0 %3840 }
 0x5e0   :  { %v4180_v1 = vsel %vm2672_vm8, %v4164_v41, %v3841_v47  ;;  %v5019_v41 = vld [vmem:[%s11917_s5 + $0x388] sm:$0xff] }
 0x5e1   :  { %v4197_v33 = vsel %vm4184_vm12, %v4180_v1, %v3905_v12  ;;  %v4923_v12 = vld [vmem:[%s11917_s5 + $0x88] sm:$0xff]  ;;  %v4926_v1 = vld [vmem:[%s11917_s5 + $0xa0] sm:$0xff] }
 0x5e2   :  { %v3717_v43 = vpop.permute.xlu1 %3716  ;;  %v6154_v47 = vpack.c.bf16 %v4923_v12, %v4922_v45 }
 0x5e3   :  { %v3843_v15 = vpop.permute.xlu0 %3842  ;;  %v4150_v17 = vsel %vm2412_vm4, %v4134_v53, %v3717_v43  ;;  %v4906_v43 = vld [vmem:[%s11917_s5] sm:$0xff] }
 0x5e4   :  { %v4181_v46 = vsel %vm2672_vm8, %v4165_v38, %v3843_v15  ;;  %6155 = vmatprep.subr.bf16.mxu1 %v6154_v47  ;;  %v4907_v15 = vld [vmem:[%s11917_s5 + $0x8] sm:$0xff]  ;;  %v4928_v38 = vld [vmem:[%s11917_s5 + $0xb0] sm:$0xff] }
 0x5e6   :  { %v3969_v39 = vpop.permute.xlu1 %3968 }
 0x5e7   :  { %v3655_v35 = vpop.permute.xlu0 %3654  ;;  %v4214_v48 = vsel %vm4201_vm11, %v4197_v33, %v3969_v39  ;;  %v6156_v39 = vpack.c.bf16 %v4907_v15, %v4906_v43  ;;  %v5002_v33 = vld [vmem:[%s11917_s5 + $0x300] sm:$0xff]  ;;  %v4917_v43 = vld [vmem:[%s11917_s5 + $0x58] sm:$0xff] }
 0x5e8   :  { %v4135_v9 = vsel %vm33_vm2, %v11034_v13, %v3655_v35  ;;  %v4924_v35 = vld [vmem:[%s11917_s5 + $0x90] sm:$0xff]  ;;  %vm4577_vm2 = vcmask 785408  }
 0x5e9   :  { %6157 = vmatpush3.bf16.msra.mxu1 %v6156_v39 }
 0x5ea   :  { %v3781_v25 = vpop.permute.xlu1 %3780 }
 0x5eb   :  { %v3907_v24 = vpop.permute.xlu0 %3906  ;;  %v4166_v28 = vsel %vm2542_vm6, %v4150_v17, %v3781_v25  ;;  %v4925_v25 = vld [vmem:[%s11917_s5 + $0x98] sm:$0xff] }
 0x5ec   :  { %v4198_v44 = vsel %vm4184_vm12, %v4181_v46, %v3907_v24  ;;  %v6158_v24 = vpack.c.bf16 %v4925_v25, %v4924_v35 }
 0x5ee   :  { %v4033_v19 = vpop.permute.xlu1 %4032  ;;  %6159 = vmatprep.subr.bf16.mxu1 %v6158_v24 }
 0x5ef   :  { %v3719_v56 = vpop.permute.xlu0 %3718  ;;  %v4231_v18 = vsel %vm4218_vm13, %v4214_v48, %v4033_v19  ;;  %v4909_v19 = vld [vmem:[%s11917_s5 + $0x18] sm:$0xff]  ;;  %v5003_v48 = vld [vmem:[%s11917_s5 + $0x308] sm:$0xff] }
 0x5f0   :  { %v4151_v16 = vsel %vm2412_vm4, %v4135_v9, %v3719_v56  ;;  %v6160_v56 = vpack.c.bf16 %v4909_v19, %v4908_v8  ;;  %v4931_v9 = vld [vmem:[%s11917_s5 + $0xc8] sm:$0xff] }
 0x5f2   :  { %v3845_v63 = vpop.permute.xlu1 %3844  ;;  %6161 = vmatpush3.bf16.msra.mxu1 %v6160_v56 }
 0x5f3   :  { %v3971_v5 = vpop.permute.xlu0 %3970  ;;  %v4182_v29 = vsel %vm2672_vm8, %v4166_v28, %v3845_v63  ;;  %v6250_v63 = vpack.c.bf16 %v5019_v41, %v5018_v30 }
 0x5f4   :  { %v4215_v60 = vsel %vm4201_vm11, %v4198_v44, %v3971_v5  ;;  %v4927_v5 = vld [vmem:[%s11917_s5 + $0xa8] sm:$0xff]  ;;  %v4913_v44 = vld [vmem:[%s11917_s5 + $0x38] sm:$0xff] }
 0x5f5   :  { %6251 = vmatprep.subr.bf16.mxu0 %v6250_v63 }
 0x5f6   :  { %v4097_v10 = vpop.permute.xlu1 %4096 }
 0x5f7   :  { %v3783_v58 = vpop.permute.xlu0 %3782  ;;  %v4248_v11 = vsel %vm4235_vm14, %v4231_v18, %v4097_v10  ;;  %v6162_v10 = vpack.c.bf16 %v4927_v5, %v4926_v1 }
 0x5f8   :  { %6113 = vmatprep.mubr.msk.f32.mxu1 %vm4268_vm15, %v4248_v11  ;;  %v4167_v4 = vsel %vm2542_vm6, %v4151_v16, %v3783_v58  ;;  %v6252_v58 = vpack.c.bf16 %v5003_v48, %v5002_v33  ;;  %v11198_v11 = vld [vmem:[%s11916_s4] ss:$0 sm:$0xff]  ;;  %v4915_v16 = vld [vmem:[%s11917_s5 + $0x48] sm:$0xff] }
 0x5f9   :  { %6163 = vmatprep.subr.bf16.mxu1 %v6162_v10 }
 0x5fa   :  { %v3909_v50 = vpop.permute.xlu1 %3908  ;;  %6253 = vmatpush3.bf16.msra.mxu0 %v6252_v58 }
 0x5fb   :  { %v4035_v49 = vpop.permute.xlu0 %4034  ;;  %v4199_v55 = vsel %vm4184_vm12, %v4182_v29, %v3909_v50 }
 0x5fc   :  { %v4232_v0 = vsel %vm4218_vm13, %v4215_v60, %v4035_v49  ;;  %v4910_v49 = vld [vmem:[%s11917_s5 + $0x20] sm:$0xff] }
 0x5fd   :  { %v6164_v21 = vpack.c.bf16 %v4911_v62, %v4910_v49 }
 0x5fe   :  { %v3911_v7 = vpop.permute.xlu1 %3910 }
 0x5ff   :  { %v3847_v40 = vpop.permute.xlu0 %3846  ;;  %6165 = vmatpush3.bf16.msra.mxu1 %v6164_v21 }
 0x600   :  { %v4183_v22 = vsel %vm2672_vm8, %v4167_v4, %v3847_v40  ;;  %v4912_v40 = vld [vmem:[%s11917_s5 + $0x30] sm:$0xff] }
 0x601   :  { %v4200_v13 = vsel %vm4184_vm12, %v4183_v22, %v3911_v7  ;;  %v4929_v7 = vld [vmem:[%s11917_s5 + $0xb8] sm:$0xff]  ;;  %v6168_v60 = vpack.c.bf16 %v4913_v44, %v4912_v40  ;;  %v5020_v44 = vld [vmem:[%s11917_s5 + $0x390] sm:$0xff] }
 0x602   :  { %v3975_v31 = vpop.permute.xlu1 %3974  ;;  %v6166_v46 = vpack.c.bf16 %v4929_v7, %v4928_v38 }
 0x603   :  { %v4099_v23 = vpop.permute.xlu0 %4098  ;;  %v4217_v52 = vsel %vm4201_vm11, %v4200_v13, %v3975_v31 }
 0x604   :  { %v4249_v51 = vsel %vm4235_vm14, %v4232_v0, %v4099_v23  ;;  %6167 = vmatprep.subr.bf16.mxu1 %v6166_v46 }
 0x605   :  { %6114 = vmatmul.mubr.msk.f32.gmra.mrb[12].mxu1 %vm4268_vm15, %v4249_v51 }
 0x606   :  { %v4039_v27 = vpop.permute.xlu1 %4038  ;;  %6169 = vmatpush3.bf16.msra.mxu1 %v6168_v60 }
 0x607   :  { %v3973_v54 = vpop.permute.xlu0 %3972  ;;  %v4234_v36 = vsel %vm4218_vm13, %v4217_v52, %v4039_v27  ;;  %v4914_v27 = vld [vmem:[%s11917_s5 + $0x40] sm:$0xff] }
 0x608   :  { %v4216_v42 = vsel %vm4201_vm11, %v4199_v55, %v3973_v54  ;;  %v4930_v54 = vld [vmem:[%s11917_s5 + $0xc0] sm:$0xff] }
 0x609   :  { %v6170_v53 = vpack.c.bf16 %v4931_v9, %v4930_v54  ;;  %v5021_v9 = vld [vmem:[%s11917_s5 + $0x398] sm:$0xff] }
 0x60a   :  { %v4103_v14 = vpop.permute.xlu1 %4102 }
 0x60b   :  { %v4037_v34 = vpop.permute.xlu0 %4036  ;;  %v4251_v59 = vsel %vm4235_vm14, %v4234_v36, %v4103_v14  ;;  %6171 = vmatprep.subr.bf16.mxu1 %v6170_v53  ;;  %v4935_v53 = vld [vmem:[%s11917_s5 + $0xe8] sm:$0xff] }
 0x60c   :  { %v4233_v32 = vsel %vm4218_vm13, %v4216_v42, %v4037_v34  ;;  %v6172_v34 = vpack.c.bf16 %v4915_v16, %v4914_v27  ;;  %v4934_v27 = vld [vmem:[%s11917_s5 + $0xe0] sm:$0xff] }
 0x60e   :  { %6173 = vmatpush3.bf16.msra.mxu1 %v6172_v34  ;;  %v4918_v34 = vld [vmem:[%s11917_s5 + $0x60] sm:$0xff] }
 0x60f   :  { %v4101_v37 = vpop.permute.xlu0 %4100 }
 0x610   :  { %v4250_v6 = vsel %vm4235_vm14, %v4233_v32, %v4101_v37 }
 0x611   :  { %6116 = vmatprep.mubr.msk.f32.mxu1 %vm4268_vm15, %v4250_v6  ;;  %v4932_v6 = vld [vmem:[%s11917_s5 + $0xd0] sm:$0xff] }
 0x612   :  { %6117 = vmatmul.mubr.msk.f32.gmra.mrb[14].mxu1 %vm4268_vm15, %v4251_v59  ;;  %v4933_v59 = vld [vmem:[%s11917_s5 + $0xd8] sm:$0xff] }
 0x613   :  { %v6174_v47 = vpack.c.bf16 %v4933_v59, %v4932_v6  ;;  %v6254_v59 = vpack.c.bf16 %v5021_v9, %v5020_v44 }
 0x614   :  { %v6097_v2 = vpop.f32.mrb[0].mxu1 }
 0x615   :  { %v4383_v61 = vpop.f32.mrb[1].mxu1  ;;  %v4389_v0 = vadd.f32 %v6097_v2, %v11198_v11  ;;  %v4916_v2 = vld [vmem:[%s11917_s5 + $0x50] sm:$0xff]  ;;  %6175 = vmatprep.subr.bf16.mxu1 %v6174_v47  ;;  %6255 = vmatprep.subr.bf16.mxu0 %v6254_v59 }
 0x616   :  { %v4384_v31 = vadd.f32 %v11198_v11, %v4383_v61  ;;  %v6176_v25 = vpack.c.bf16 %v4917_v43, %v4916_v2  ;;  %v6178_v2 = vpack.c.bf16 %v4935_v53, %v4934_v27  ;;  %v4920_v43 = vld [vmem:[%s11917_s5 + $0x70] sm:$0xff] }
 0x617   :  { %v11222_v23 = vmax.f32 %v4389_v0, 0.0 }
 0x618   :  { %v11224_v51 = vmax.f32 %v4384_v31, 0.0  ;;  %6177 = vmatpush3.bf16.msra.mxu1 %v6176_v25  ;;  %v4955_v25 = vld [vmem:[%s11917_s5 + $0x188] sm:$0xff] }
 0x619   :  { %v4530_v4 = vrot.slane %v11222_v23, 1  ;;  %v4535_v28 = vrot.slane %v11222_v23, 2  ;;  %v4541_v22 = vrot.slane %v11222_v23, 3  ;;  %v4547_v14 = vrot.slane %v11222_v23, 4  ;;  %6179 = vmatprep.subr.bf16.mxu1 %v6178_v2 }
 0x61a   :  { %v4484_v13 = vrot.slane %v11224_v51, 1  ;;  %v4489_v42 = vrot.slane %v11224_v51, 2  ;;  %v4495_v32 = vrot.slane %v11224_v51, 3  ;;  %v4501_v37 = vrot.slane %v11224_v51, 4 }
 0x61b   :  { %v4507_v36 = vrot.slane %v11224_v51, 5  ;;  %v4553_v45 = vrot.slane %v11222_v23, 5  ;;  %v4513_v12 = vrot.slane %v11224_v51, 6  ;;  %v4559_v39 = vrot.slane %v11222_v23, 6 }
 0x61c   :  { %v4519_v35 = vrot.slane %v11224_v51, 7 }
 0x634   :  { %v11143_v20 = vpop.f32.mrb[2].mxu1 }
 0x635   :  { %v11145_v26 = vpop.f32.mrb[3].mxu1 }
 0x654   :  { %v11147_v57 = vpop.f32.mrb[4].mxu1 }
 0x655   :  { %v11149_v3 = vpop.f32.mrb[5].mxu1 }
 0x678   :  { %v11193_v18 = vpop.f32.mrb[6].mxu1 }
 0x679   :  { %v11200_v50 = vpop.f32.mrb[7].mxu1 }
 0x685   :  { %v6109_v17 = vpop.f32.mrb[8].mxu1 }
 0x686   :  { %v4429_v29 = vadd.f32 %v6109_v17, %v11198_v11  ;;  %v4423_v55 = vpop.f32.mrb[9].mxu1  ;;  %v4565_v17 = vrot.slane %v11222_v23, 7 }
 0x687   :  { %v4424_v52 = vadd.f32 %v11198_v11, %v4423_v55 }
 0x688   :  { %v11258_v61 = vmax.f32 %v4429_v29, 0.0 }
 0x689   :  { %v11265_v15 = vmax.f32 %v4424_v52, 0.0  ;;  %v4936_v52 = vld [vmem:[%s11917_s5 + $0xf0] sm:$0xff] }
 0x68a   :  { %v4531_v24 = vsel %vm4481_vm0, %v11258_v61, %v4530_v4  ;;  %v4536_v8 = vrot.slane %v11258_v61, 1  ;;  %v4542_v19 = vrot.slane %v11258_v61, 2  ;;  %v4548_v56 = vrot.slane %v11258_v61, 3 }
 0x68b   :  { %v4485_v30 = vsel %vm4481_vm0, %v11265_v15, %v4484_v13  ;;  %v4490_v41 = vrot.slane %v11265_v15, 1  ;;  %v4496_v1 = vrot.slane %v11265_v15, 2  ;;  %v4502_v63 = vrot.slane %v11265_v15, 3 }
 0x68c   :  { %v6307_v5 = vpack.i.bf16 %v4485_v30, %v4531_v24  ;;  %v4537_v33 = vsel %vm4481_vm0, %v4536_v8, %v4535_v28  ;;  %v4543_v48 = vsel %vm4481_vm0, %v4542_v19, %v4541_v22  ;;  %v4549_v10 = vsel %vm4481_vm0, %v4548_v56, %v4547_v14  ;;  %v5004_v28 = vld [vmem:[%s11917_s5 + $0x310] sm:$0xff]  ;;  %v5005_v22 = vld [vmem:[%s11917_s5 + $0x318] sm:$0xff]  ;;  %v4919_v14 = vld [vmem:[%s11917_s5 + $0x68] sm:$0xff] }
 0x68d   :  { %v4491_v58 = vsel %vm4481_vm0, %v4490_v41, %v4489_v42  ;;  %v4497_v49 = vsel %vm4481_vm0, %v4496_v1, %v4495_v32  ;;  %v4503_v62 = vsel %vm4481_vm0, %v4502_v63, %v4501_v37  ;;  %v4508_v21 = vrot.slane %v11265_v15, 4  ;;  %v4937_v32 = vld [vmem:[%s11917_s5 + $0xf8] sm:$0xff]  ;;  %v5022_v24 = vld [vmem:[%s11917_s5 + $0x3a0] sm:$0xff]  ;;  %v5023_v8 = vld [vmem:[%s11917_s5 + $0x3a8] sm:$0xff] }
 0x68e   :  { %6308 = vrot.lane.b32.xlu0 %v6307_v5, %s6652_s23  ;;  %v6312_v38 = vpack.i.bf16 %v4491_v58, %v4537_v33  ;;  %v6317_v7 = vpack.i.bf16 %v4497_v49, %v4543_v48  ;;  %v6322_v40 = vpack.i.bf16 %v4503_v62, %v4549_v10  ;;  %v4554_v46 = vrot.slane %v11258_v61, 4  ;;  %v5006_v30 = vld [vmem:[%s11917_s5 + $0x320] sm:$0xff]  ;;  %v5007_v41 = vld [vmem:[%s11917_s5 + $0x328] sm:$0xff] }
 0x68f   :  { %v4509_v60 = vsel %vm4481_vm0, %v4508_v21, %v4507_v36  ;;  %v4514_v0 = vrot.slane %v11265_v15, 5  ;;  %v4560_v31 = vrot.slane %v11258_v61, 5  ;;  %v4520_v54 = vrot.slane %v11265_v15, 6 }
 0x690   :  { %6313 = vrot.lane.b32.xlu1 %v6312_v38, %s6656_s1  ;;  %v4555_v16 = vsel %vm4481_vm0, %v4554_v46, %v4553_v45  ;;  %v4566_v4 = vrot.slane %v11258_v61, 6  ;;  %v6256_v45 = vpack.c.bf16 %v5005_v22, %v5004_v28  ;;  %v6182_v47 = vpack.c.bf16 %v4937_v32, %v4936_v52 }
 0x691   :  { %v6327_v29 = vpack.i.bf16 %v4509_v60, %v4555_v16  ;;  %v4515_v55 = vsel %vm4481_vm0, %v4514_v0, %v4513_v12  ;;  %v4561_v13 = vsel %vm4481_vm0, %v4560_v31, %v4559_v39  ;;  %v4521_v42 = vsel %vm4481_vm0, %v4520_v54, %v4519_v35  ;;  %v4921_v39 = vld [vmem:[%s11917_s5 + $0x78] sm:$0xff]  ;;  %v4954_v35 = vld [vmem:[%s11917_s5 + $0x180] sm:$0xff] }
 0x692   :  { %6318 = vrot.lane.b32.xlu0 %v6317_v7, %s6659_s22  ;;  %v6332_v37 = vpack.i.bf16 %v4515_v55, %v4561_v13  ;;  %v4567_v36 = vsel %vm4481_vm0, %v4566_v4, %v4565_v17  ;;  %v6180_v12 = vpack.c.bf16 %v4919_v14, %v4918_v34  ;;  %6257 = vmatpush3.bf16.msra.mxu0 %v6256_v45 }
 0x693   :  { %v6337_v6 = vpack.i.bf16 %v4521_v42, %v4567_v36  ;;  %v6184_v19 = vpack.c.bf16 %v4921_v39, %v4920_v43  ;;  %v6258_v56 = vpack.c.bf16 %v5023_v8, %v5022_v24  ;;  %v6186_v1 = vpack.c.bf16 %v4955_v25, %v4954_v35 }
 0x694   :  { %6323 = vrot.lane.b32.xlu1 %v6322_v40, %s6661_s10  ;;  %6181 = vmatpush3.bf16.msra.mxu1 %v6180_v12  ;;  %v6260_v63 = vpack.c.bf16 %v5007_v41, %v5006_v30  ;;  %v4399_v5 = vadd.f32 %v11143_v20, %v11198_v11  ;;  %v4394_v33 = vadd.f32 %v11198_v11, %v11145_v26  ;;  %v5025_v30 = vld [vmem:[%s11917_s5 + $0x3b8] sm:$0xff] }
 0x695   :  { %6183 = vmatprep.subr.bf16.mxu1 %v6182_v47  ;;  %6259 = vmatprep.subr.bf16.mxu0 %v6258_v56  ;;  %v5024_v56 = vld [vmem:[%s11917_s5 + $0x3b0] sm:$0xff] }
 0x696   :  { %6328 = vrot.lane.b32.xlu0 %v6327_v29, %s6662_s11  ;;  %6261 = vmatpush3.bf16.msra.mxu0 %v6260_v63  ;;  %v11363_v48 = vmax.f32 %v4399_v5, 0.0  ;;  %v11365_v10 = vmax.f32 %v4394_v33, 0.0  ;;  %v5008_v33 = vld [vmem:[%s11917_s5 + $0x330] sm:$0xff] }
 0x698   :  { %6333 = vrot.lane.b32.xlu1 %v6332_v37, %s6663_s13  ;;  %6185 = vmatpush3.bf16.msra.mxu1 %v6184_v19  ;;  %v4639_v49 = vrot.slane %v11363_v48, 1  ;;  %v4644_v38 = vrot.slane %v11363_v48, 2  ;;  %v4650_v7 = vrot.slane %v11363_v48, 3  ;;  %v4656_v40 = vrot.slane %v11363_v48, 4 }
 0x699   :  { %6187 = vmatprep.subr.bf16.mxu1 %v6186_v1  ;;  %v4593_v26 = vrot.slane %v11365_v10, 1  ;;  %v4598_v46 = vrot.slane %v11365_v10, 2  ;;  %v4604_v44 = vrot.slane %v11365_v10, 3  ;;  %v4610_v0 = vrot.slane %v11365_v10, 4 }
 0x69a   :  { %6338 = vrot.lane.b32.xlu0 %v6337_v6, %s6664_s19  ;;  %v4616_v31 = vrot.slane %v11365_v10, 5  ;;  %v4662_v54 = vrot.slane %v11363_v48, 5  ;;  %v4622_v27 = vrot.slane %v11365_v10, 6  ;;  %v4668_v53 = vrot.slane %v11363_v48, 6 }
 0x69b   :  { %v4628_v16 = vrot.slane %v11365_v10, 7  ;;  %v4674_v8 = vrot.slane %v11363_v48, 7 }
 0x6a5   :  { %v6112_v58 = vpop.f32.mrb[10].mxu1 }
 0x6a6   :  { %v4439_v62 = vadd.f32 %v6112_v58, %v11198_v11  ;;  %v4433_v21 = vpop.f32.mrb[11].mxu1  ;;  %v5009_v58 = vld [vmem:[%s11917_s5 + $0x338] sm:$0xff] }
 0x6a7   :  { %v4434_v20 = vadd.f32 %v11198_v11, %v4433_v21  ;;  %v5026_v21 = vld [vmem:[%s11917_s5 + $0x3c0] sm:$0xff] }
 0x6a8   :  { %v11376_v60 = vmax.f32 %v4439_v62, 0.0 }
 0x6a9   :  { %v11381_v9 = vmax.f32 %v4434_v20, 0.0  ;;  %v5010_v20 = vld [vmem:[%s11917_s5 + $0x340] sm:$0xff] }
 0x6aa   :  { %v4640_v17 = vsel %vm4481_vm0, %v11376_v60, %v4639_v49  ;;  %v4645_v4 = vrot.slane %v11376_v60, 1  ;;  %v4651_v28 = vrot.slane %v11376_v60, 2  ;;  %v4657_v22 = vrot.slane %v11376_v60, 3 }
 0x6ab   :  { %v4594_v34 = vsel %vm4481_vm0, %v11381_v9, %v4593_v26  ;;  %v4599_v29 = vrot.slane %v11381_v9, 1  ;;  %v4605_v55 = vrot.slane %v11381_v9, 2  ;;  %v4611_v13 = vrot.slane %v11381_v9, 3  ;;  %v5011_v26 = vld [vmem:[%s11917_s5 + $0x348] sm:$0xff] }
 0x6ac   :  { %v6342_v42 = vpack.i.bf16 %v4594_v34, %v4640_v17  ;;  %v4646_v14 = vsel %vm4481_vm0, %v4645_v4, %v4644_v38  ;;  %v4652_v52 = vsel %vm4481_vm0, %v4651_v28, %v4650_v7  ;;  %v4658_v32 = vsel %vm4481_vm0, %v4657_v22, %v4656_v40  ;;  %v5027_v38 = vld [vmem:[%s11917_s5 + $0x3c8] sm:$0xff] }
 0x6ad   :  { %v4600_v37 = vsel %vm4481_vm0, %v4599_v29, %v4598_v46  ;;  %v4606_v36 = vsel %vm4481_vm0, %v4605_v55, %v4604_v44  ;;  %v4612_v6 = vsel %vm4481_vm0, %v4611_v13, %v4610_v0  ;;  %v4617_v59 = vrot.slane %v11381_v9, 4  ;;  %v5028_v44 = vld [vmem:[%s11917_s5 + $0x3d0] sm:$0xff]  ;;  %v5029_v0 = vld [vmem:[%s11917_s5 + $0x3d8] sm:$0xff] }
 0x6ae   :  { %6343 = vrot.lane.b32.xlu1 %v6342_v42, %s6652_s23  ;;  %v6347_v2 = vpack.i.bf16 %v4600_v37, %v4646_v14  ;;  %v6352_v45 = vpack.i.bf16 %v4606_v36, %v4652_v52  ;;  %v6357_v12 = vpack.i.bf16 %v4612_v6, %v4658_v32  ;;  %v4663_v47 = vrot.slane %v11376_v60, 4 }
 0x6af   :  { %v4618_v43 = vsel %vm4481_vm0, %v4617_v59, %v4616_v31  ;;  %v4623_v39 = vrot.slane %v11381_v9, 5  ;;  %v4669_v35 = vrot.slane %v11376_v60, 5  ;;  %v4629_v25 = vrot.slane %v11381_v9, 6 }
 0x6b0   :  { %6348 = vrot.lane.b32.xlu0 %v6347_v2, %s6656_s1  ;;  %v4664_v24 = vsel %vm4481_vm0, %v4663_v47, %v4662_v54  ;;  %v4675_v19 = vrot.slane %v11376_v60, 6  ;;  %v6262_v40 = vpack.c.bf16 %v5025_v30, %v5024_v56  ;;  %v6264_v46 = vpack.c.bf16 %v5009_v58, %v5008_v33 }
 0x6b1   :  { %v6362_v41 = vpack.i.bf16 %v4618_v43, %v4664_v24  ;;  %v4624_v1 = vsel %vm4481_vm0, %v4623_v39, %v4622_v27  ;;  %v4670_v63 = vsel %vm4481_vm0, %v4669_v35, %v4668_v53  ;;  %v4630_v5 = vsel %vm4481_vm0, %v4629_v25, %v4628_v16  ;;  %v5012_v53 = vld [vmem:[%s11917_s5 + $0x350] sm:$0xff]  ;;  %v5013_v16 = vld [vmem:[%s11917_s5 + $0x358] sm:$0xff]  ;;  %v5031_v25 = vld [vmem:[%s11917_s5 + $0x3e8] sm:$0xff] }
 0x6b2   :  { %6353 = vrot.lane.b32.xlu1 %v6352_v45, %s6659_s22  ;;  %v6367_v49 = vpack.i.bf16 %v4624_v1, %v4670_v63  ;;  %v4676_v62 = vsel %vm4481_vm0, %v4675_v19, %v4674_v8  ;;  %6263 = vmatprep.subr.bf16.mxu0 %v6262_v40  ;;  %v6266_v31 = vpack.c.bf16 %v5027_v38, %v5026_v21 }
 0x6b3   :  { %v6372_v7 = vpack.i.bf16 %v4630_v5, %v4676_v62  ;;  %6265 = vmatpush3.bf16.msra.mxu0 %v6264_v46  ;;  %v6268_v54 = vpack.c.bf16 %v5011_v26, %v5010_v20  ;;  %v6270_v27 = vpack.c.bf16 %v5029_v0, %v5028_v44  ;;  %v6272_v17 = vpack.c.bf16 %v5013_v16, %v5012_v53 }
 0x6b4   :  { %6358 = vrot.lane.b32.xlu0 %v6357_v12, %s6661_s10  ;;  %6267 = vmatprep.subr.bf16.mxu0 %v6266_v31  ;;  %v4409_v4 = vadd.f32 %v11147_v57, %v11198_v11  ;;  %v4404_v28 = vadd.f32 %v11198_v11, %v11149_v3  ;;  %v4419_v42 = vadd.f32 %v11193_v18, %v11198_v11  ;;  %v5030_v12 = vld [vmem:[%s11917_s5 + $0x3e0] sm:$0xff] }
 0x6b5   :  { %v4414_v14 = vadd.f32 %v11198_v11, %v11200_v50  ;;  %v6274_v56 = vpack.c.bf16 %v5031_v25, %v5030_v12 }
 0x6b6   :  { %6363 = vrot.lane.b32.xlu1 %v6362_v41, %s6662_s11  ;;  %v11462_v22 = vmax.f32 %v4409_v4, 0.0  ;;  %v11464_v34 = vmax.f32 %v4404_v28, 0.0  ;;  %v11494_v24 = vmax.f32 %v4419_v42, 0.0  ;;  %v5015_v42 = vld [vmem:[%s11917_s5 + $0x368] sm:$0xff] }
 0x6b7   :  { %6269 = vmatpush3.bf16.msra.mxu0 %v6268_v54  ;;  %v11496_v8 = vmax.f32 %v4414_v14, 0.0 }
 0x6b8   :  { %6368 = vrot.lane.b32.xlu0 %v6367_v49, %s6663_s13  ;;  %6271 = vmatprep.subr.bf16.mxu0 %v6270_v27  ;;  %v4745_v29 = vrot.slane %v11462_v22, 1  ;;  %v4750_v55 = vrot.slane %v11462_v22, 2  ;;  %v4756_v13 = vrot.slane %v11462_v22, 3  ;;  %v4699_v52 = vrot.slane %v11464_v34, 1 }
 0x6b9   :  { %v4762_v3 = vrot.slane %v11462_v22, 4  ;;  %v4704_v36 = vrot.slane %v11464_v34, 2  ;;  %v4710_v6 = vrot.slane %v11464_v34, 3  ;;  %v4716_v59 = vrot.slane %v11464_v34, 4 }
 0x6ba   :  { %6373 = vrot.lane.b32.xlu1 %v6372_v7, %s6664_s19  ;;  %v4722_v18 = vrot.slane %v11464_v34, 5  ;;  %v4768_v50 = vrot.slane %v11462_v22, 5  ;;  %v4728_v45 = vrot.slane %v11464_v34, 6  ;;  %v4774_v43 = vrot.slane %v11462_v22, 6 }
 0x6bb   :  { %6273 = vmatpush3.bf16.msra.mxu0 %v6272_v17  ;;  %v4734_v39 = vrot.slane %v11464_v34, 7  ;;  %v4780_v35 = vrot.slane %v11462_v22, 7  ;;  %v4851_v28 = vrot.slane %v11494_v24, 1  ;;  %v4834_v25 = vrot.slane %v11496_v8, 6 }
 0x6bc   :  { %6275 = vmatprep.subr.bf16.mxu0 %v6274_v56 }
 0x6d8   :  { %v6115_v57 = vpop.f32.mrb[12].mxu1 }
 0x6d9   :  { %v4449_v32 = vadd.f32 %v6115_v57, %v11198_v11  ;;  %v4443_v37 = vpop.f32.mrb[13].mxu1 }
 0x6da   :  { %v4444_v2 = vadd.f32 %v11198_v11, %v4443_v37 }
 0x6db   :  { %v11486_v47 = vmax.f32 %v4449_v32, 0.0 }
 0x6dc   :  { %v11498_v19 = vmax.f32 %v4444_v2, 0.0 }
 0x6dd   :  { %v4746_v30 = vsel %vm4481_vm0, %v11486_v47, %v4745_v29  ;;  %v4751_v41 = vrot.slane %v11486_v47, 1  ;;  %v4757_v1 = vrot.slane %v11486_v47, 2  ;;  %v4763_v63 = vrot.slane %v11486_v47, 3 }
 0x6de   :  { %v4700_v5 = vsel %vm4481_vm0, %v11498_v19, %v4699_v52  ;;  %v4705_v33 = vrot.slane %v11498_v19, 1  ;;  %v4711_v58 = vrot.slane %v11498_v19, 2  ;;  %v4717_v49 = vrot.slane %v11498_v19, 3 }
 0x6df   :  { %v6377_v62 = vpack.i.bf16 %v4700_v5, %v4746_v30  ;;  %v4752_v21 = vsel %vm4481_vm0, %v4751_v41, %v4750_v55  ;;  %v4758_v38 = vsel %vm4481_vm0, %v4757_v1, %v4756_v13  ;;  %v4764_v7 = vsel %vm4481_vm0, %v4763_v63, %v4762_v3  ;;  %v5014_v13 = vld [vmem:[%s11917_s5 + $0x360] sm:$0xff]  ;;  %v5032_v63 = vld [vmem:[%s11917_s5 + $0x3f0] sm:$0xff] }
 0x6e0   :  { %v4706_v40 = vsel %vm4481_vm0, %v4705_v33, %v4704_v36  ;;  %v4712_v20 = vsel %vm4481_vm0, %v4711_v58, %v4710_v6  ;;  %v4718_v26 = vsel %vm4481_vm0, %v4717_v49, %v4716_v59  ;;  %v4723_v46 = vrot.slane %v11498_v19, 4 }
 0x6e1   :  { %6378 = vrot.lane.b32.xlu0 %v6377_v62, %s6652_s23  ;;  %v6382_v44 = vpack.i.bf16 %v4706_v40, %v4752_v21  ;;  %v6387_v0 = vpack.i.bf16 %v4712_v20, %v4758_v38  ;;  %v6397_v31 = vpack.i.bf16 %v4718_v26, %v4764_v7  ;;  %v4769_v54 = vrot.slane %v11486_v47, 4 }
 0x6e2   :  { %v4724_v27 = vsel %vm4481_vm0, %v4723_v46, %v4722_v18  ;;  %v4729_v53 = vrot.slane %v11498_v19, 5  ;;  %v4775_v16 = vrot.slane %v11486_v47, 5  ;;  %v4735_v17 = vrot.slane %v11498_v19, 6 }
 0x6e3   :  { %6383 = vrot.lane.b32.xlu1 %v6382_v44, %s6656_s1  ;;  %v4770_v4 = vsel %vm4481_vm0, %v4769_v54, %v4768_v50  ;;  %v4856_v29 = vrot.slane %v11494_v24, 2  ;;  %v4781_v55 = vrot.slane %v11486_v47, 6  ;;  %v4862_v6 = vrot.slane %v11494_v24, 3 }
 0x6e4   :  { %v6407_v14 = vpack.i.bf16 %v4724_v27, %v4770_v4  ;;  %v4730_v57 = vsel %vm4481_vm0, %v4729_v53, %v4728_v45  ;;  %v4776_v52 = vsel %vm4481_vm0, %v4775_v16, %v4774_v43  ;;  %v11537_v3 = vsel %vm4481_vm0, %v4735_v17, %v4734_v39 }
 0x6e5   :  { %v6118_v32 = vpop.f32.mrb[14].mxu1  ;;  %6388 = vrot.lane.b32.xlu0 %v6387_v0, %s6659_s22  ;;  %v6417_v37 = vpack.i.bf16 %v4730_v57, %v4776_v52  ;;  %v11541_v36 = vsel %vm4481_vm0, %v4781_v55, %v4780_v35  ;;  %v4880_v59 = vrot.slane %v11494_v24, 6  ;;  %v4805_v50 = vrot.slane %v11496_v8, 1 }
 0x6e6   :  { %v4459_v2 = vadd.f32 %v6118_v32, %v11198_v11  ;;  %v4453_v18 = vpop.f32.mrb[15].mxu1  ;;  %v6427_v45 = vpack.i.bf16 %v11537_v3, %v11541_v36  ;;  %v6276_v12 = vpack.c.bf16 %v5015_v42, %v5014_v13  ;;  %v4810_v39 = vrot.slane %v11496_v8, 2  ;;  %v5016_v36 = vld [vmem:[%s11917_s5 + $0x370] sm:$0xff] }
 0x6e7   :  { %v4454_v43 = vadd.f32 %v11198_v11, %v4453_v18  ;;  %v4816_v35 = vrot.slane %v11496_v8, 3  ;;  %v4822_v30 = vrot.slane %v11496_v8, 4  ;;  %v4868_v41 = vrot.slane %v11494_v24, 4  ;;  %v5033_v11 = vld [vmem:[%s11917_s5 + $0x3f8] sm:$0xff] }
 0x6e8   :  { %v11553_v56 = vmax.f32 %v4459_v2, 0.0  ;;  %v4828_v1 = vrot.slane %v11496_v8, 5  ;;  %6277 = vmatpush3.bf16.msra.mxu0 %v6276_v12  ;;  %v4874_v33 = vrot.slane %v11494_v24, 5  ;;  %v4840_v58 = vrot.slane %v11496_v8, 7 }
 0x6e9   :  { %v11564_v5 = vmax.f32 %v4454_v43, 0.0  ;;  %6398 = vrot.lane.b32.xlu0 %v6397_v31, %s6661_s10  ;;  %v6278_v49 = vpack.c.bf16 %v5033_v11, %v5032_v63  ;;  %v4886_v3 = vrot.slane %v11494_v24, 7 }
 0x6ea   :  { %v4852_v62 = vsel %vm4481_vm0, %v11553_v56, %v4851_v28  ;;  %v4857_v21 = vrot.slane %v11553_v56, 1  ;;  %v4863_v38 = vrot.slane %v11553_v56, 2  ;;  %v4881_v7 = vrot.slane %v11553_v56, 5 }
 0x6eb   :  { %v4806_v40 = vsel %vm4481_vm0, %v11564_v5, %v4805_v50  ;;  %v4811_v20 = vrot.slane %v11564_v5, 1  ;;  %v4817_v26 = vrot.slane %v11564_v5, 2  ;;  %v4835_v46 = vrot.slane %v11564_v5, 5  ;;  %6279 = vmatprep.subr.bf16.mxu0 %v6278_v49 }
 0x6ec   :  { %v6392_v44 = vpack.i.bf16 %v4806_v40, %v4852_v62  ;;  %v4858_v0 = vsel %vm4481_vm0, %v4857_v21, %v4856_v29  ;;  %v4864_v31 = vsel %vm4481_vm0, %v4863_v38, %v4862_v6  ;;  %v4882_v54 = vsel %vm4481_vm0, %v4881_v7, %v4880_v59  ;;  %v5017_v6 = vld [vmem:[%s11917_s5 + $0x378] sm:$0xff] }
 0x6ed   :  { %6408 = vrot.lane.b32.xlu0 %v6407_v14, %s6662_s11  ;;  %v4812_v27 = vsel %vm4481_vm0, %v4811_v20, %v4810_v39  ;;  %v4818_v53 = vsel %vm4481_vm0, %v4817_v26, %v4816_v35  ;;  %v4836_v16 = vsel %vm4481_vm0, %v4835_v46, %v4834_v25  ;;  %v4823_v17 = vrot.slane %v11564_v5, 3 }
 0x6ee   :  { %6393 = vrot.lane.b32.xlu1 %v6392_v44, %s6652_s23  ;;  %v6402_v4 = vpack.i.bf16 %v4812_v27, %v4858_v0  ;;  %v6412_v28 = vpack.i.bf16 %v4818_v53, %v4864_v31  ;;  %v6437_v55 = vpack.i.bf16 %v4836_v16, %v4882_v54  ;;  %v4869_v29 = vrot.slane %v11553_v56, 3 }
 0x6ef   :  { %v4824_v13 = vsel %vm4481_vm0, %v4823_v17, %v4822_v30  ;;  %v4829_v42 = vrot.slane %v11564_v5, 4  ;;  %v4875_v14 = vrot.slane %v11553_v56, 4  ;;  %v4841_v57 = vrot.slane %v11564_v5, 6 }
 0x6f0   :  { %v4870_v52 = vsel %vm4481_vm0, %v4869_v29, %v4868_v41  ;;  %v4887_v32 = vrot.slane %v11553_v56, 6  ;;  %v6280_v35 = vpack.c.bf16 %v5017_v6, %v5016_v36  ;;  %v4527_v25 = vrot.slane %v11258_v61, 7 }
 0x6f1   :  { %6418 = vrot.lane.b32.xlu0 %v6417_v37, %s6663_s13  ;;  %v6422_v59 = vpack.i.bf16 %v4824_v13, %v4870_v52  ;;  %v4830_v2 = vsel %vm4481_vm0, %v4829_v42, %v4828_v1  ;;  %v4876_v18 = vsel %vm4481_vm0, %v4875_v14, %v4874_v33  ;;  %v4842_v50 = vsel %vm4481_vm0, %v4841_v57, %v4840_v58  ;;  %v4956_v13 = vld [vmem:[%s11917_s5 + $0x190] sm:$0xff]  ;;  %v4957_v42 = vld [vmem:[%s11917_s5 + $0x198] sm:$0xff] }
 0x6f2   :  { %6403 = vrot.lane.b32.xlu1 %v6402_v4, %s6656_s1  ;;  %v6432_v12 = vpack.i.bf16 %v4830_v2, %v4876_v18  ;;  %v4888_v43 = vsel %vm4481_vm0, %v4887_v32, %v4886_v3  ;;  %6281 = vmatpush3.bf16.msra.mxu0 %v6280_v35  ;;  %v4480_v37 = vrot.slane %v11265_v15, 7  ;;  %v4528_v63 = vsel %vm4481_vm0, %v4527_v25, %v11222_v23  ;;  %v4940_v2 = vld [vmem:[%s11917_s5 + $0x110] sm:$0xff]  ;;  %v4941_v18 = vld [vmem:[%s11917_s5 + $0x118] sm:$0xff]  ;;  %v4942_v35 = vld [vmem:[%s11917_s5 + $0x120] sm:$0xff] }
 0x6f3   :  { %v6442_v39 = vpack.i.bf16 %v4842_v50, %v4888_v43  ;;  %v4958_v50 = vld [vmem:[%s11917_s5 + $0x1a0] sm:$0xff]  ;;  %v6192_v43 = vpack.c.bf16 %v4941_v18, %v4940_v2  ;;  %v4960_v25 = vld [vmem:[%s11917_s5 + $0x1b0] sm:$0xff] }
 0x6f5   :  { %6428 = vrot.lane.b32.xlu0 %v6427_v45, %s6664_s19  ;;  %v4482_v45 = vsel %vm4481_vm0, %v4480_v37, %v11224_v51  ;;  %v4943_v37 = vld [vmem:[%s11917_s5 + $0x128] sm:$0xff] }
 0x6f6   :  { %6413 = vrot.lane.b32.xlu1 %v6412_v28, %s6659_s22  ;;  %v4938_v28 = vld [vmem:[%s11917_s5 + $0x100] sm:$0xff] }
 0x6f9   :  { %6438 = vrot.lane.b32.xlu0 %v6437_v55, %s6663_s13  ;;  %v4939_v55 = vld [vmem:[%s11917_s5 + $0x108] sm:$0xff] }
 0x6fa   :  { %6423 = vrot.lane.b32.xlu1 %v6422_v59, %s6661_s10  ;;  %v6188_v32 = vpack.c.bf16 %v4939_v55, %v4938_v28  ;;  %v6190_v59 = vpack.c.bf16 %v4957_v42, %v4956_v13 }
 0x6fe   :  { %6433 = vrot.lane.b32.xlu1 %v6432_v12, %s6662_s11  ;;  %v4959_v12 = vld [vmem:[%s11917_s5 + $0x1a8] sm:$0xff] }
 0x700   :  { %v6309_v30 = vpop.permute.xlu0 %6308 }
 0x701   :  { %v6311_v41 = vunpack.i.h.bf16 %v6309_v30  ;;  %v6310_v1 = vunpack.i.l.bf16 %v6309_v30  ;;  %v4961_v30 = vld [vmem:[%s11917_s5 + $0x1b8] sm:$0xff] }
 0x702   :  { %6443 = vrot.lane.b32.xlu1 %v6442_v39, %s6664_s19  ;;  %v6314_v11 = vpop.permute.xlu1 %6313  ;;  %v6194_v39 = vpack.c.bf16 %v4959_v12, %v4958_v50  ;;  %v4953_v12 = vld [vmem:[%s11917_s5 + $0x178] sm:$0xff] }
 0x703   :  { %v4571_v33 = vsel %vm2412_vm4, %v4482_v45, %v6311_v41  ;;  %v4581_v58 = vsel %vm2412_vm4, %v4528_v63, %v6310_v1  ;;  %v6316_v49 = vunpack.i.h.bf16 %v6314_v11  ;;  %v6315_v15 = vunpack.i.l.bf16 %v6314_v11  ;;  %v4944_v63 = vld [vmem:[%s11917_s5 + $0x130] sm:$0xff]  ;;  %v4945_v45 = vld [vmem:[%s11917_s5 + $0x138] sm:$0xff]  ;;  %v4962_v11 = vld [vmem:[%s11917_s5 + $0x1c0] sm:$0xff] }
 0x704   :  { %v6319_v62 = vpop.permute.xlu0 %6318  ;;  %v6196_v41 = vpack.c.bf16 %v4943_v37, %v4942_v35  ;;  %v6198_v1 = vpack.c.bf16 %v4961_v30, %v4960_v25 }
 0x705   :  { %v4572_v61 = vsel %vm2672_vm8, %v4571_v33, %v6316_v49  ;;  %v4582_v21 = vsel %vm2672_vm8, %v4581_v58, %v6315_v15  ;;  %v6321_v38 = vunpack.i.h.bf16 %v6319_v62  ;;  %v6320_v7 = vunpack.i.l.bf16 %v6319_v62  ;;  %v4963_v33 = vld [vmem:[%s11917_s5 + $0x1c8] sm:$0xff]  ;;  %v4946_v15 = vld [vmem:[%s11917_s5 + $0x140] sm:$0xff] }
 0x706   :  { %v6324_v23 = vpop.permute.xlu1 %6323  ;;  %v6200_v58 = vpack.c.bf16 %v4945_v45, %v4944_v63  ;;  %v6202_v49 = vpack.c.bf16 %v4963_v33, %v4962_v11  ;;  %v4947_v62 = vld [vmem:[%s11917_s5 + $0x148] sm:$0xff] }
 0x707   :  { %v4573_v40 = vsel %vm4201_vm11, %v4572_v61, %v6321_v38  ;;  %v4583_v51 = vsel %vm4201_vm11, %v4582_v21, %v6320_v7  ;;  %v6326_v20 = vunpack.i.h.bf16 %v6324_v23  ;;  %v6325_v26 = vunpack.i.l.bf16 %v6324_v23  ;;  %v4964_v61 = vld [vmem:[%s11917_s5 + $0x1d0] sm:$0xff]  ;;  %v4965_v21 = vld [vmem:[%s11917_s5 + $0x1d8] sm:$0xff] }
 0x708   :  { %v6329_v46 = vpop.permute.xlu0 %6328  ;;  %v4590_v38 = vrot.slane %v11381_v9, 7  ;;  %v4636_v7 = vrot.slane %v11376_v60, 7  ;;  %v6204_v23 = vpack.c.bf16 %v4947_v62, %v4946_v15  ;;  %v4967_v9 = vld [vmem:[%s11917_s5 + $0x1e8] sm:$0xff]  ;;  %v4970_v15 = vld [vmem:[%s11917_s5 + $0x200] sm:$0xff] }
 0x709   :  { %v4574_v44 = vsel %vm4235_vm14, %v4573_v40, %v6326_v20  ;;  %v4584_v0 = vsel %vm4235_vm14, %v4583_v51, %v6325_v26  ;;  %v6331_v31 = vunpack.i.h.bf16 %v6329_v46  ;;  %v6330_v54 = vunpack.i.l.bf16 %v6329_v46  ;;  %v4948_v40 = vld [vmem:[%s11917_s5 + $0x150] sm:$0xff]  ;;  %v4949_v20 = vld [vmem:[%s11917_s5 + $0x158] sm:$0xff]  ;;  %v4966_v26 = vld [vmem:[%s11917_s5 + $0x1e0] sm:$0xff] }
 0x70a   :  { %v6334_v27 = vpop.permute.xlu1 %6333  ;;  %v6206_v51 = vpack.c.bf16 %v4965_v21, %v4964_v61  ;;  %v4971_v62 = vld [vmem:[%s11917_s5 + $0x208] sm:$0xff]  ;;  %v4988_v21 = vld [vmem:[%s11917_s5 + $0x290] sm:$0xff] }
 0x70b   :  { %v4576_v53 = vsel %vm4575_vm1, %v4574_v44, %v6331_v31  ;;  %v6336_v16 = vunpack.i.h.bf16 %v6334_v27  ;;  %v6335_v17 = vunpack.i.l.bf16 %v6334_v27  ;;  %v4585_v4 = vsel %vm4575_vm1, %v4584_v0, %v6330_v54 }
 0x70c   :  { %v6339_v29 = vpop.permute.xlu0 %6338  ;;  %v4591_v0 = vsel %vm4481_vm0, %v4590_v38, %v11365_v10  ;;  %v4637_v31 = vsel %vm4481_vm0, %v4636_v7, %v11363_v48  ;;  %v6208_v27 = vpack.c.bf16 %v4949_v20, %v4948_v40  ;;  %v4951_v10 = vld [vmem:[%s11917_s5 + $0x168] sm:$0xff]  ;;  %v4968_v48 = vld [vmem:[%s11917_s5 + $0x1f0] sm:$0xff]  ;;  %v4989_v38 = vld [vmem:[%s11917_s5 + $0x298] sm:$0xff]  ;;  %v6220_v20 = vpack.c.bf16 %v4971_v62, %v4970_v15 }
 0x70d   :  { %v4578_v14 = vsel %vm4577_vm2, %v4576_v53, %v6336_v16  ;;  %v6341_v57 = vunpack.i.h.bf16 %v6339_v29  ;;  %v6340_v52 = vunpack.i.l.bf16 %v6339_v29  ;;  %v4586_v3 = vsel %vm4577_vm2, %v4585_v4, %v6335_v17  ;;  %v4950_v16 = vld [vmem:[%s11917_s5 + $0x160] sm:$0xff]  ;;  %v4969_v29 = vld [vmem:[%s11917_s5 + $0x1f8] sm:$0xff] }
 0x70e   :  { %v6210_v53 = vpack.c.bf16 %v4967_v9, %v4966_v26 }
 0x70f   :  { %v4587_v36 = vsel %vm4579_vm3, %v4586_v3, %v6340_v52  ;;  %v4580_v6 = vsel %vm4579_vm3, %v4578_v14, %v6341_v57 }
 0x710   :  { %5105 = vmatprep.mubr.f32.mxu1 %v4587_v36  ;;  %v6214_v36 = vpack.c.bf16 %v4969_v29, %v4968_v48  ;;  %v4977_v48 = vld [vmem:[%s11917_s5 + $0x238] sm:$0xff]  ;;  %v4994_v29 = vld [vmem:[%s11917_s5 + $0x2c0] sm:$0xff] }
 0x711   :  { %5106 = vmatmul.mubr.f32.vlgmr.msra.gmra.mrb[16].mxu1 %v4580_v6  ;;  %v4952_v6 = vld [vmem:[%s11917_s5 + $0x170] sm:$0xff] }
 0x712   :  { %6189 = vmatpush3.bf16.msra.mxu1 %v6188_v32  ;;  %v6212_v32 = vpack.c.bf16 %v4951_v10, %v4950_v16  ;;  %v6216_v63 = vpack.c.bf16 %v4953_v12, %v4952_v6  ;;  %v4975_v16 = vld [vmem:[%s11917_s5 + $0x228] sm:$0xff]  ;;  %v4976_v10 = vld [vmem:[%s11917_s5 + $0x230] sm:$0xff] }
 0x713   :  { %6191 = vmatprep.subr.bf16.mxu1 %v6190_v59 }
 0x716   :  { %6193 = vmatpush3.bf16.msra.mxu1 %v6192_v43  ;;  %v4986_v43 = vld [vmem:[%s11917_s5 + $0x280] sm:$0xff] }
 0x717   :  { %6195 = vmatprep.subr.bf16.mxu1 %v6194_v39  ;;  %v4987_v39 = vld [vmem:[%s11917_s5 + $0x288] sm:$0xff] }
 0x718   :  { %v6218_v45 = vpack.c.bf16 %v4987_v39, %v4986_v43  ;;  %v4982_v39 = vld [vmem:[%s11917_s5 + $0x260] sm:$0xff] }
 0x71a   :  { %6197 = vmatpush3.bf16.msra.mxu1 %v6196_v41 }
 0x71b   :  { %6199 = vmatprep.subr.bf16.mxu1 %v6198_v1 }
 0x71e   :  { %6201 = vmatpush3.bf16.msra.mxu1 %v6200_v58 }
 0x71f   :  { %6203 = vmatprep.subr.bf16.mxu1 %v6202_v49 }
 0x720   :  { %v6344_v60 = vpop.permute.xlu1 %6343 }
 0x721   :  { %v6346_v46 = vunpack.i.h.bf16 %v6344_v60  ;;  %v6345_v44 = vunpack.i.l.bf16 %v6344_v60  ;;  %v6222_v60 = vpack.c.bf16 %v4989_v38, %v4988_v21 }
 0x722   :  { %v6349_v54 = vpop.permute.xlu0 %6348  ;;  %6205 = vmatpush3.bf16.msra.mxu1 %v6204_v23 }
 0x723   :  { %v4680_v17 = vsel %vm2412_vm4, %v4591_v0, %v6346_v46  ;;  %v4687_v4 = vsel %vm2412_vm4, %v4637_v31, %v6345_v44  ;;  %v6351_v28 = vunpack.i.h.bf16 %v6349_v54  ;;  %v6350_v55 = vunpack.i.l.bf16 %v6349_v54  ;;  %6207 = vmatprep.subr.bf16.mxu1 %v6206_v51  ;;  %v4972_v46 = vld [vmem:[%s11917_s5 + $0x210] sm:$0xff]  ;;  %v4973_v44 = vld [vmem:[%s11917_s5 + $0x218] sm:$0xff]  ;;  %v4990_v0 = vld [vmem:[%s11917_s5 + $0x2a0] sm:$0xff] }
 0x724   :  { %v6354_v13 = vpop.permute.xlu1 %6353  ;;  %v4991_v31 = vld [vmem:[%s11917_s5 + $0x2a8] sm:$0xff]  ;;  %v6224_v54 = vpack.c.bf16 %v4973_v44, %v4972_v46 }
 0x725   :  { %v4681_v42 = vsel %vm2672_vm8, %v4680_v17, %v6351_v28  ;;  %v4688_v14 = vsel %vm2672_vm8, %v4687_v4, %v6350_v55  ;;  %v6356_v57 = vunpack.i.h.bf16 %v6354_v13  ;;  %v6355_v52 = vunpack.i.l.bf16 %v6354_v13  ;;  %v4992_v17 = vld [vmem:[%s11917_s5 + $0x2b0] sm:$0xff]  ;;  %v4993_v4 = vld [vmem:[%s11917_s5 + $0x2b8] sm:$0xff]  ;;  %v4995_v13 = vld [vmem:[%s11917_s5 + $0x2c8] sm:$0xff] }
 0x726   :  { %v6359_v3 = vpop.permute.xlu0 %6358  ;;  %6209 = vmatpush3.bf16.msra.mxu1 %v6208_v27  ;;  %v6226_v27 = vpack.c.bf16 %v4991_v31, %v4990_v0  ;;  %v6230_v55 = vpack.c.bf16 %v4993_v4, %v4992_v17 }
 0x727   :  { %v4682_v59 = vsel %vm4201_vm11, %v4681_v42, %v6356_v57  ;;  %v4689_v2 = vsel %vm4201_vm11, %v4688_v14, %v6355_v52  ;;  %v6361_v18 = vunpack.i.h.bf16 %v6359_v3  ;;  %v6360_v50 = vunpack.i.l.bf16 %v6359_v3  ;;  %6211 = vmatprep.subr.bf16.mxu1 %v6210_v53  ;;  %v4974_v53 = vld [vmem:[%s11917_s5 + $0x220] sm:$0xff]  ;;  %v4979_v52 = vld [vmem:[%s11917_s5 + $0x248] sm:$0xff]  ;;  %v4996_v3 = vld [vmem:[%s11917_s5 + $0x2d0] sm:$0xff] }
 0x728   :  { %v6364_v35 = vpop.permute.xlu1 %6363  ;;  %v6228_v28 = vpack.c.bf16 %v4975_v16, %v4974_v53  ;;  %v6232_v42 = vpack.c.bf16 %v4977_v48, %v4976_v10  ;;  %v6234_v14 = vpack.c.bf16 %v4995_v13, %v4994_v29  ;;  %v4978_v57 = vld [vmem:[%s11917_s5 + $0x240] sm:$0xff] }
 0x729   :  { %v4683_v37 = vsel %vm4235_vm14, %v4682_v59, %v6361_v18  ;;  %v4690_v25 = vsel %vm4235_vm14, %v4689_v2, %v6360_v50  ;;  %v6366_v30 = vunpack.i.h.bf16 %v6364_v35  ;;  %v6365_v41 = vunpack.i.l.bf16 %v6364_v35  ;;  %v4980_v59 = vld [vmem:[%s11917_s5 + $0x250] sm:$0xff]  ;;  %v4981_v2 = vld [vmem:[%s11917_s5 + $0x258] sm:$0xff]  ;;  %v4998_v18 = vld [vmem:[%s11917_s5 + $0x2e0] sm:$0xff] }
 0x72a   :  { %v6369_v1 = vpop.permute.xlu0 %6368  ;;  %6213 = vmatpush3.bf16.msra.mxu1 %v6212_v32  ;;  %v4997_v32 = vld [vmem:[%s11917_s5 + $0x2d8] sm:$0xff]  ;;  %v4999_v50 = vld [vmem:[%s11917_s5 + $0x2e8] sm:$0xff]  ;;  %v6240_v12 = vpack.c.bf16 %v4981_v2, %v4980_v59 }
 0x72b   :  { %v4684_v11 = vsel %vm4575_vm1, %v4683_v37, %v6366_v30  ;;  %v6371_v33 = vunpack.i.h.bf16 %v6369_v1  ;;  %v6370_v58 = vunpack.i.l.bf16 %v6369_v1  ;;  %6215 = vmatprep.subr.bf16.mxu1 %v6214_v36  ;;  %v4691_v49 = vsel %vm4575_vm1, %v4690_v25, %v6365_v41  ;;  %v4983_v35 = vld [vmem:[%s11917_s5 + $0x268] sm:$0xff]  ;;  %v5000_v37 = vld [vmem:[%s11917_s5 + $0x2f0] sm:$0xff]  ;;  %v5001_v25 = vld [vmem:[%s11917_s5 + $0x2f8] sm:$0xff] }
 0x72c   :  { %v6374_v61 = vpop.permute.xlu1 %6373  ;;  %v6236_v36 = vpack.c.bf16 %v4979_v52, %v4978_v57  ;;  %v6238_v6 = vpack.c.bf16 %v4997_v32, %v4996_v3  ;;  %v6242_v43 = vpack.c.bf16 %v4999_v50, %v4998_v18  ;;  %v6244_v30 = vpack.c.bf16 %v4983_v35, %v4982_v39  ;;  %v4984_v1 = vld [vmem:[%s11917_s5 + $0x270] sm:$0xff] }
 0x72d   :  { %v6376_v7 = vunpack.i.h.bf16 %v6374_v61  ;;  %v6375_v23 = vunpack.i.l.bf16 %v6374_v61  ;;  %v4692_v40 = vsel %vm4577_vm2, %v4691_v49, %v6370_v58  ;;  %v4685_v51 = vsel %vm4577_vm2, %v4684_v11, %v6371_v33 }
 0x72e   :  { %6217 = vmatpush3.bf16.msra.mxu1 %v6216_v63  ;;  %v6246_v41 = vpack.c.bf16 %v5001_v25, %v5000_v37  ;;  %v4985_v63 = vld [vmem:[%s11917_s5 + $0x278] sm:$0xff]  ;;  %v4696_v58 = vrot.slane %v11498_v19, 7  ;;  %v4742_v49 = vrot.slane %v11486_v47, 7  ;;  %v4802_v52 = vrot.slane %v11564_v5, 7 }
 0x72f   :  { %v4693_v26 = vsel %vm4579_vm3, %v4692_v40, %v6375_v23  ;;  %v4686_v9 = vsel %vm4579_vm3, %v4685_v51, %v6376_v7  ;;  %6219 = vmatprep.subr.bf16.mxu1 %v6218_v45  ;;  %v6248_v45 = vpack.c.bf16 %v4985_v63, %v4984_v1  ;;  %v4848_v3 = vrot.slane %v11553_v56, 7 }
 0x730   :  { %5175 = vmatprep.mubr.f32.mxu1 %v4693_v26  ;;  %v4697_v38 = vsel %vm4481_vm0, %v4696_v58, %v11464_v34  ;;  %v4743_v7 = vsel %vm4481_vm0, %v4742_v49, %v11462_v22  ;;  %v4803_v39 = vsel %vm4481_vm0, %v4802_v52, %v11496_v8  ;;  %v5730_v52 = vld [vmem:[%s11920_s8] ss:$0 sm:$0xff] }
 0x731   :  { %5176 = vmatmul.mubr.f32.vlgmr.msra.gmra.mrb[18].mxu1 %v4686_v9  ;;  %v4849_v5 = vsel %vm4481_vm0, %v4848_v3, %v11494_v24 }
 0x732   :  { %6221 = vmatpush3.bf16.msra.mxu1 %v6220_v20 }
 0x733   :  { %6223 = vmatprep.subr.bf16.mxu1 %v6222_v60 }
 0x736   :  { %6225 = vmatpush3.bf16.msra.mxu1 %v6224_v54 }
 0x737   :  { %6227 = vmatprep.subr.bf16.mxu1 %v6226_v27 }
 0x73a   :  { %6229 = vmatpush3.bf16.msra.mxu1 %v6228_v28 }
 0x73b   :  { %6231 = vmatprep.subr.bf16.mxu1 %v6230_v55 }
 0x73e   :  { %6233 = vmatpush3.bf16.msra.mxu1 %v6232_v42 }
 0x73f   :  { %6235 = vmatprep.subr.bf16.mxu1 %v6234_v14 }
 0x742   :  { %6237 = vmatpush3.bf16.msra.mxu1 %v6236_v36 }
 0x743   :  { %6239 = vmatprep.subr.bf16.mxu1 %v6238_v6 }
 0x746   :  { %6241 = vmatpush3.bf16.msra.mxu1 %v6240_v12 }
 0x747   :  { %6243 = vmatprep.subr.bf16.mxu1 %v6242_v43 }
 0x74a   :  { %6245 = vmatpush3.bf16.msra.mxu1 %v6244_v30 }
 0x74b   :  { %6247 = vmatprep.subr.bf16.mxu1 %v6246_v41 }
 0x74e   :  { %6249 = vmatpush3.bf16.msra.mxu1 %v6248_v45 }
 0x753   :  { %v6379_v11 = vpop.permute.xlu0 %6378 }
 0x754   :  { %v6381_v62 = vunpack.i.h.bf16 %v6379_v11  ;;  %v6380_v61 = vunpack.i.l.bf16 %v6379_v11 }
 0x755   :  { %v6384_v21 = vpop.permute.xlu1 %6383 }
 0x756   :  { %v6386_v23 = vunpack.i.h.bf16 %v6384_v21  ;;  %v6385_v40 = vunpack.i.l.bf16 %v6384_v21  ;;  %v4786_v20 = vsel %vm2412_vm4, %v4697_v38, %v6381_v62  ;;  %v4793_v26 = vsel %vm2412_vm4, %v4743_v7, %v6380_v61 }
 0x757   :  { %v6389_v33 = vpop.permute.xlu0 %6388 }
 0x758   :  { %v6391_v9 = vunpack.i.h.bf16 %v6389_v33  ;;  %v6390_v47 = vunpack.i.l.bf16 %v6389_v33  ;;  %v4787_v60 = vsel %vm2672_vm8, %v4786_v20, %v6386_v23  ;;  %v4794_v46 = vsel %vm2672_vm8, %v4793_v26, %v6385_v40 }
 0x759   :  { %v6665_v26 = vmov 0.0|0.0  }
 0x75a   :  { %v4788_v16 = vsel %vm4201_vm11, %v4787_v60, %v6391_v9  ;;  %v4795_v17 = vsel %vm4201_vm11, %v4794_v46, %v6390_v47  ;;  %6282 = vmatprep.subr.bf16.mxu1 %v6665_v26  ;;  %v5323_v9 = vld [vmem:[%s11919_s7 + $0x8] sm:$0xff]  ;;  %v5324_v60 = vld [vmem:[%s11919_s7 + $0x10] sm:$0xff]  ;;  %v5325_v46 = vld [vmem:[%s11919_s7 + $0x18] sm:$0xff] }
 0x75b   :  { %v6399_v15 = vpop.permute.xlu0 %6398 }
 0x75c   :  { %v6401_v44 = vunpack.i.h.bf16 %v6399_v15  ;;  %v6400_v0 = vunpack.i.l.bf16 %v6399_v15 }
 0x75e   :  { %v4789_v4 = vsel %vm4235_vm14, %v4788_v16, %v6401_v44  ;;  %v4796_v28 = vsel %vm4235_vm14, %v4795_v17, %v6400_v0  ;;  %v6286_v44 = vpack.c.bf16 %v5325_v46, %v5324_v60  ;;  %v12086_v0 = vmov 0.0  }
 0x75f   :  { %v6409_v51 = vpop.permute.xlu0 %6408 }
 0x760   :  { %v6394_v19 = vpop.permute.xlu1 %6393  ;;  %v6411_v31 = vunpack.i.h.bf16 %v6409_v51  ;;  %v6410_v54 = vunpack.i.l.bf16 %v6409_v51 }
 0x761   :  { %v6396_v6 = vunpack.i.h.bf16 %v6394_v19  ;;  %v6395_v59 = vunpack.i.l.bf16 %v6394_v19  ;;  %v5322_v19 = vld [vmem:[%s11919_s7] sm:$0xff] }
 0x762   :  { %v4790_v10 = vsel %vm4575_vm1, %v4789_v4, %v6411_v31  ;;  %v4797_v42 = vsel %vm4575_vm1, %v4796_v28, %v6410_v54  ;;  %v6283_v47 = vpack.c.bf16 %v5323_v9, %v5322_v19 }
 0x763   :  { %v6419_v34 = vpop.permute.xlu0 %6418  ;;  %v4892_v37 = vsel %vm2412_vm4, %v4803_v39, %v6396_v6  ;;  %v4899_v25 = vsel %vm2412_vm4, %v4849_v5, %v6395_v59  ;;  %vm6666_vm4 = vmmov 0  }
 0x764   :  { %v6404_v22 = vpop.permute.xlu1 %6403  ;;  %v6421_v27 = vunpack.i.h.bf16 %v6419_v34  ;;  %v6420_v53 = vunpack.i.l.bf16 %v6419_v34 }
 0x765   :  { %v6406_v2 = vunpack.i.h.bf16 %v6404_v22  ;;  %v6405_v18 = vunpack.i.l.bf16 %v6404_v22  ;;  %v5729_v22 = vld [vmem:[%s11918_s6] ss:$0 sm:$0xff]  ;;  %s6667_s6 = smov [#allocation3]  }
 0x766   :  { %v4798_v14 = vsel %vm4577_vm2, %v4797_v42, %v6420_v53  ;;  %v4791_v57 = vsel %vm4577_vm2, %v4790_v10, %v6421_v27  ;;  %s5414_s13 = sshll.u32 %s6667_s6, 4  ;;  %s5415_s13 = int_to_ptr.vmem [resolvable:$true] %s5414_s13 }
 0x767   :  { %v6429_v55 = vpop.permute.xlu0 %6428  ;;  %v4893_v30 = vsel %vm2672_vm8, %v4892_v37, %v6406_v2  ;;  %v4900_v41 = vsel %vm2672_vm8, %v4899_v25, %v6405_v18  ;;  %s6625_s19 = scalar_lea.vmem %s5415_s13, 32  ;;  %p6630_p1 = scmp.lt.s32.totalorder %s5415_s13, %s5415_s13 }
 0x768   :  { %v6431_v48 = vunpack.i.h.bf16 %v6429_v55  ;;  %v6430_v29 = vunpack.i.l.bf16 %v6429_v55  ;;  %v6414_v13 = vpop.permute.xlu1 %6413  ;;  %p6626_p0 = scmp.ne.s32.totalorder %s5415_s13, %s6625_s19  ;;  %p6631_p2 = scmp.lt.s32.totalorder %s6625_s19, %s6625_s19 }
 0x769   :  { %v6416_v12 = vunpack.i.h.bf16 %v6414_v13  ;;  %v6415_v43 = vunpack.i.l.bf16 %v6414_v13 }
 0x76a   :  { %v4799_v32 = vsel %vm4579_vm3, %v4798_v14, %v6430_v29  ;;  %v4792_v36 = vsel %vm4579_vm3, %v4791_v57, %v6431_v48  ;;  %p6632_p3 = por %p6631_p2, %p6630_p1 }
 0x76b   :  { %5245 = vmatprep.mubr.f32.mxu1 %v4799_v32  ;;  %v4894_v63 = vsel %vm4201_vm11, %v4893_v30, %v6416_v12  ;;  %v4901_v45 = vsel %vm4201_vm11, %v4900_v41, %v6415_v43  ;;  %v6439_v11 = vpop.permute.xlu0 %6438 }
 0x76c   :  { %v6424_v50 = vpop.permute.xlu1 %6423  ;;  %5246 = vmatmul.mubr.f32.vlgmr.msra.gmra.mrb[20].mxu1 %v4792_v36  ;;  %v6441_v62 = vunpack.i.h.bf16 %v6439_v11  ;;  %v6440_v61 = vunpack.i.l.bf16 %v6439_v11  ;;  %p6633_p4 = pnand %p6632_p3, %p6626_p0 }
 0x76d   :  { %v6426_v56 = vunpack.i.h.bf16 %v6424_v50  ;;  %v6425_v35 = vunpack.i.l.bf16 %v6424_v50  ;;  %6284 = vmatpush3.bf16.msra.mxu1 %v6283_v47  ;;  %6127 = vmatprep.mubr.msk.f32.mxu1 %vm6666_vm4, %v12086_v0 }
 0x76e   :  { %6285 = vmatprep.subr.bf16.mxu1 %v6665_v26 }
 0x76f   :  { %v4895_v24 = vsel %vm4235_vm14, %v4894_v63, %v6426_v56  ;;  %v4902_v58 = vsel %vm4235_vm14, %v4901_v45, %v6425_v35 }
 0x770   :  { %v6434_v1 = vpop.permute.xlu1 %6433 }
 0x771   :  { %v6436_v8 = vunpack.i.h.bf16 %v6434_v1  ;;  %v6435_v33 = vunpack.i.l.bf16 %v6434_v1  ;;  %6287 = vmatpush3.bf16.msra.mxu1 %v6286_v44 }
 0x773   :  { %v4896_v49 = vsel %vm4575_vm1, %v4895_v24, %v6436_v8  ;;  %v4903_v15 = vsel %vm4575_vm1, %v4902_v58, %v6435_v33 }
 0x774   :  { %v6444_v21 = vpop.permute.xlu1 %6443  ;;  %v4897_v23 = vsel %vm4577_vm2, %v4896_v49, %v6441_v62  ;;  %v4904_v40 = vsel %vm4577_vm2, %v4903_v15, %v6440_v61 }
 0x775   :  { %v6446_v38 = vunpack.i.h.bf16 %v6444_v21  ;;  %v6445_v7 = vunpack.i.l.bf16 %v6444_v21 }
 0x777   :  { %v4898_v51 = vsel %vm4579_vm3, %v4897_v23, %v6446_v38  ;;  %v4905_v20 = vsel %vm4579_vm3, %v4904_v40, %v6445_v7 }
 0x778   :  { %5315 = vmatprep.mubr.f32.mxu0 %v4905_v20 }
 0x779   :  { %5316 = vmatmul.mubr.f32.vlgmr.msra.gmra.mrb[64].mxu0 %v4898_v51 }
 0x7e4   :  { %v5858_v34 = vpop.f32.mrb[16].mxu1 }
 0x7e5   :  { %v5859_v31 = vpop.f32.mrb[17].mxu1 }
 0x7e6   :  { %v5860_v54 = vadd.f32 %v5859_v31, %v5858_v34 }
 0x7e8   :  { %v5108_v16 = vadd.f32 %v5860_v54, %v5729_v22 }
 0x804   :  { %v5893_v27 = vpop.f32.mrb[18].mxu1 }
 0x805   :  { %v5894_v53 = vpop.f32.mrb[19].mxu1 }
 0x806   :  { %v5895_v17 = vadd.f32 %v5894_v53, %v5893_v27 }
 0x808   :  { %v5178_v4 = vadd.f32 %v5895_v17, %v5108_v16 }
 0x83f   :  { %v5928_v28 = vpop.f32.mrb[20].mxu1 }
 0x840   :  { %v5929_v55 = vpop.f32.mrb[21].mxu1 }
 0x841   :  { %v5930_v10 = vadd.f32 %v5929_v55, %v5928_v28 }
 0x843   :  { %v5248_v48 = vadd.f32 %v5930_v10, %v5178_v4 }
 0x84c   :  { %v5963_v29 = vpop.f32.mrb[64].mxu0 }
 0x84d   :  { %v5964_v13 = vpop.f32.mrb[65].mxu0 }
 0x84e   :  { %v5965_v42 = vadd.f32 %v5964_v13, %v5963_v29 }
 0x850   :  { %v5318_v14 = vadd.f32 %v5965_v42, %v5248_v48 }
 0x852   :  { %v5321_v57 = vmax.f32 %v5318_v14, 0.0 }
 0x854   :  { %6128 = vmatmul.mubr.msk.f32.vlgmr.msra.gmra.mrb[22].mxu1 %vm2672_vm8, %v5321_v57 }
 0x927   :  { %v5402_v3 = vpop.f32.mrb[22].mxu1 }
 0x928   :  { %v5403_v32 = vadd.f32 %v5730_v52, %v5402_v3  ;;  %v6129_v36 = vpop.f32.mrb[23].mxu1 }
 0x92a   :  { %5407 = vst.msk [vmem:[#allocation3] sm:$0x3] %vm5406_vm5, %v5403_v32 }
 0x92b   :  { %6636 = shalt.err (!%p6633_p4)
}
 0x92c   :  { %s6637_s25 = scalar_lea.hbm %s11921_s9, 32 }
 0x92d   :  { %p6638_p5 = scmp.ne.s32.totalorder %s11921_s9, %s6637_s25  ;;  %p6641_p6 = scmp.lt.u32.totalorder %s6637_s25, %s11921_s9 }
 0x92f   :  { %p6643_p7 = pnand %p6641_p6, %p6638_p5 }
 0x931   :  { %6646 = shalt.err (!%p6643_p7)
}
 0x932   :  { %5417 = dma.vmem_to_hbm [thread:$0]  %s5415_s13, 32, %s11921_s9, [#allocation4]  }
 0x933   :  { %6647 = dma.done.wait [#allocation4], 32  }
 0x934   :  { %6648 = vsyncadd [#allocation4], 4294967264 }
 0x935   :  { %5421 = vsyncpa [#allocation4], 1 }

</bundles_post_ra>
